<compile_context>
chip_gen: v7x
topology: tpu7x:2x2x1
jax: 0.10.0
libtpu: 0.0.40
codegen_flags: <defaults>
</compile_context>

<pallas_src>
import functools

import numpy as np
import jax
import jax.numpy as jnp
from jax.experimental import pallas as pl
from jax.experimental.pallas import tpu as pltpu

EPS = 1e-6


# --------------------------------------------------------------------------
# Deterministic parameter init (mirrors the torch __init__ construction).
# --------------------------------------------------------------------------
def _rot_chain(angles, P, transpose=False):
    """eye(P) with overlapping 2x2 rotation blocks, det-normalized, last row = e_last."""
    m = np.eye(P, dtype=np.float64)
    for i, a in enumerate(angles):
        c, s = np.cos(a), np.sin(a)
        blk = np.array([[c, s], [-s, c]]) if transpose else np.array([[c, -s], [s, c]])
        m[i:i + 2, i:i + 2] = blk
    det = np.linalg.det(m)
    m = m / np.abs(det) ** (1.0 / P)
    m[-1, :] = 0.0
    m[-1, -1] = 1.0
    return m


def init_params(seed, feature_dim, num_heads):
    D, H = feature_dim, num_heads
    P = D + 1
    rng = np.random.default_rng(seed)
    W_q = np.zeros((H, P, P))
    W_k = np.zeros((H, P, P))
    W_v = np.zeros((H, P, P))
    for h in range(H):
        ang = rng.uniform(0.0, 2.0 * np.pi, size=D)      # q and k share angles
        W_q[h] = _rot_chain(ang, P, transpose=False)
        W_k[h] = _rot_chain(ang, P, transpose=True)
        ang_v = rng.uniform(0.0, 2.0 * np.pi, size=D)
        W_v[h] = _rot_chain(ang_v, P, transpose=False)
    ang_o = rng.uniform(0.0, 2.0 * np.pi, size=D)
    W_o = _rot_chain(ang_o, P, transpose=False)
    return {k: jnp.asarray(v, jnp.float32)
            for k, v in dict(W_q=W_q, W_k=W_k, W_v=W_v, W_o=W_o).items()}


# --------------------------------------------------------------------------
# Parameter preprocessing: effective projective weight (det normalization +
# SVD polar factor). Small P x P matrices -> plain JAX, not the hot path.
# --------------------------------------------------------------------------
def _effective_weight(w):
    P = w.shape[-1]
    w = w / jnp.abs(jnp.linalg.det(w)) ** (1.0 / P)
    u, _, vh = jnp.linalg.svd(w[:P - 1, :P - 1], full_matrices=False)
    spatial = u @ vh
    eff = jnp.zeros((P, P), w.dtype)
    eff = eff.at[:P - 1, :P - 1].set(spatial)
    eff = eff.at[P - 1, P - 1].set(1.0)
    return eff


def _pad_weight(w, Pp):
    """Zero-pad (..., P, P) effective weights to (..., Pp, Pp)."""
    P = w.shape[-1]
    pad = [(0, 0)] * (w.ndim - 2) + [(0, Pp - P), (0, Pp - P)]
    return jnp.pad(w, pad).astype(jnp.float32)


def _round_up(x, m):
    return ((x + m - 1) // m) * m


# --------------------------------------------------------------------------
# VMEM model for batch_block selection (review feedback: size tiles from an
# explicit budget instead of a fixed cap; keep >=2 grid steps for pipelining
# and for v7x's two TensorCores).
# --------------------------------------------------------------------------
def _vmem_model_bytes(Bb, N, H, Pp):
    f32, bf16 = 4, 2
    io = 2 * ((3 * Bb * N * Pp) * f32        # q, k, v blocks (double-buffered)
              + Bb * N * H * Pp * f32        # fused output slab
              + Bb * H * N * N * f32)        # attention weights
    weights = 2 * ((3 * H + 1) * Pp * Pp) * bf16
    tmp = 8 * Bb * N * Pp * f32 + 4 * Bb * N * N * f32   # rough per-head live set
    return io + weights + tmp


def _pick_batch_block(B, N, H, Pp, budget_bytes=12 << 20):
    best = 1
    for Bb in range(B, 0, -1):
        if B % Bb:
            continue
        steps = B // Bb
        if B >= 2 and steps < 2:          # keep the grid pipelined / both TCs busy
            continue
        if Bb * N > 1024:                 # MXU row dimension saturates well before this
            continue
        if _vmem_model_bytes(Bb, N, H, Pp) > budget_bytes:
            continue
        best = Bb
        break
    return best


# --------------------------------------------------------------------------
# Fused Pallas kernel: for a block of batches, all heads:
#   projective transform of q/k/v, cross-ratio scores, softmax, weighted value
#   sum, spatial normalization, and the W_o output projection.
# Layout: points are rows of (rows, Pp) tiles, Pp = 128 (lane-dense); the
# homogeneous coordinate sits at lane index `homog_idx` (= D), padded lanes
# beyond it are zero.
# --------------------------------------------------------------------------
def _uhg_fused_attention_kernel(q_ref, k_ref, v_ref, wqkv_ref, wo_ref,
                                out_ref, attn_ref, *,
                                num_heads, homog_idx, eps):
    Bb, N, Pp = q_ref.shape
    R = Bb * N
    D = homog_idx                                   # lane index of homogeneous coord

    q_in = q_ref[...].reshape(R, Pp)
    k_in = k_ref[...].reshape(R, Pp)
    v_in = v_ref[...].reshape(R, Pp)
    w_o = wo_ref[...]

    # Hoisted lane-index map (JAX does not CSE broadcast_in_dim across the head loop).
    lane = jax.lax.broadcasted_iota(jnp.int32, (R, Pp), 1)
    spatial_mask = lane < D

    def xwt(x, w):                                  # x @ w.T on the MXU, bf16 operands
        return jax.lax.dot_general(
            x.astype(jnp.bfloat16), w.astype(jnp.bfloat16),
            (((1,), (1,)), ((), ())),
            preferred_element_type=jnp.float32)

    def cr_norm(x):
        # projective cross-ratio normalization against e1, e2, e3 (reconstruction);
        # the two chained divides x/(cr+eps) and x/(x_last+eps) fold algebraically
        # into one EUP reciprocal:  x / (last + eps*(cr+eps)).
        last = x[:, D:D + 1]
        cr = (last - x[:, 1:2]) * pl.reciprocal(last - x[:, 2:3] + eps, approx=True)
        return x * pl.reciprocal(last + eps * (cr + eps), approx=True)

    def proj_transform(x, w):                       # _projective_transform (polar weight)
        y = xwt(x, w)
        y = y * pl.reciprocal(y[:, D:D + 1] + eps, approx=True)
        return cr_norm(y)

    for h in range(num_heads):
        qh = proj_transform(q_in, wqkv_ref[0, h])
        kh = proj_transform(k_in, wqkv_ref[1, h])
        vh = proj_transform(v_in, wqkv_ref[2, h])

        qn = cr_norm(qh)                            # _normalize_projective before scores
        kn = cr_norm(kh)

        # Cross ratio vs the ideal points (rank-1 -> pure outer product, no MXU):
        #   cr[b,i,j] = q_i0 * k_j1 / (q_i1 * k_j0 + eps)
        q0 = qn[:, 0:1].reshape(Bb, N, 1)
        q1 = qn[:, 1:2].reshape(Bb, N, 1)
        knT = jnp.swapaxes(kn.reshape(Bb, N, Pp), 1, 2)      # (Bb, Pp, N), one XLU transpose
        k0 = knT[:, 0:1, :]                                   # (Bb, 1, N)
        k1 = knT[:, 1:2, :]
        cr = (q0 * k1) * pl.reciprocal(q1 * k0 + eps, approx=True)
        scores = pl.reciprocal(1.0 + jnp.abs(jnp.log(jnp.abs(cr) + eps)), approx=True)

        # softmax over keys; exact normalization so stored attention rows sum to 1
        m = jnp.max(scores, axis=-1, keepdims=True)
        e = jnp.exp(scores - m)
        p = e * (1.0 / jnp.sum(e, axis=-1, keepdims=True))
        attn_ref[:, h:h + 1] = p[:, None]            # streaming per-head store

        # attention-weighted sum of values (bf16 MXU operands, f32 accumulation)
        o = jnp.einsum('bij,bjp->bip',
                       p.astype(jnp.bfloat16),
                       vh.reshape(Bb, N, Pp).astype(jnp.bfloat16),
                       preferred_element_type=jnp.float32).reshape(R, Pp)

        # normalize_points: L2 normalization of the spatial lanes (EUP rsqrt)
        spatial = jnp.where(spatial_mask, o, 0.0)
        inv_nrm = jax.lax.rsqrt(jnp.sum(spatial * spatial, axis=-1, keepdims=True)
                                + eps * eps)
        o = jnp.where(spatial_mask, o * inv_nrm, o)

        # fused W_o output projection (row-wise, so per-head == post-head-merge),
        # stored straight into the lane-dense output slab (128-aligned per head).
        out_ref[:, :, h * Pp:(h + 1) * Pp] = proj_transform(o, w_o).reshape(Bb, N, Pp)


# --------------------------------------------------------------------------
# Full forward (matches UHGMultiHeadAttention.forward semantics, mask=None,
# eval-mode dropout).
# --------------------------------------------------------------------------
def uhg_multi_head_attention(query, key, value, params, eps=EPS, batch_block=None):
    B, N, D = query.shape
    P = D + 1
    H = params["W_q"].shape[0]
    Pp = _round_up(P, 128)                           # lane-dense padded projective dim

    # effective (det-normalized, polar-projected) weights, zero-padded to (Pp, Pp),
    # folded into one bf16 stack so they stay resident in VMEM across grid steps
    Wq = _pad_weight(jax.vmap(_effective_weight)(params["W_q"]), Pp)
    Wk = _pad_weight(jax.vmap(_effective_weight)(params["W_k"]), Pp)
    Wv = _pad_weight(jax.vmap(_effective_weight)(params["W_v"]), Pp)
    Wqkv = jnp.stack([Wq, Wk, Wv], axis=0).astype(jnp.bfloat16)          # (3, H, Pp, Pp)
    Wo = _pad_weight(_effective_weight(params["W_o"]), Pp).astype(jnp.bfloat16)

    def prep(x):   # ensure_projective + zero-pad lanes to Pp
        ones = jnp.ones(x.shape[:-1] + (1,), x.dtype)
        xp = jnp.concatenate([x, ones], axis=-1)
        return jnp.pad(xp, ((0, 0), (0, 0), (0, Pp - P))).astype(jnp.float32)

    q, k, v = prep(query), prep(key), prep(value)

    if batch_block is None:
        batch_block = _pick_batch_block(B, N, H, Pp)
    grid = (B // batch_block,)

    vmem_need = _vmem_model_bytes(batch_block, N, H, Pp)
    vmem_limit = int(min(48 << 20, max(16 << 20, 2 * vmem_need + (4 << 20))))

    kernel = functools.partial(_uhg_fused_attention_kernel,
                               num_heads=H, homog_idx=D, eps=eps)

    out, attn = pl.pallas_call(
        kernel,
        out_shape=(jax.ShapeDtypeStruct((B, N, H * Pp), jnp.float32),
                   jax.ShapeDtypeStruct((B, H, N, N), jnp.float32)),
        grid=grid,
        in_specs=[
            pl.BlockSpec((batch_block, N, Pp), lambda g: (g, 0, 0)),
            pl.BlockSpec((batch_block, N, Pp), lambda g: (g, 0, 0)),
            pl.BlockSpec((batch_block, N, Pp), lambda g: (g, 0, 0)),
            # Weight stack + output weight: constant index_map -> resident in VMEM.
            pl.BlockSpec((3, H, Pp, Pp), lambda g: (0, 0, 0, 0)),
            pl.BlockSpec((Pp, Pp), lambda g: (0, 0)),
        ],
        out_specs=(
            pl.BlockSpec((batch_block, N, H * Pp), lambda g: (g, 0, 0)),
            pl.BlockSpec((batch_block, H, N, N), lambda g: (g, 0, 0, 0)),
        ),
        compiler_params=pltpu.CompilerParams(
            dimension_semantics=("parallel",),
            vmem_limit_bytes=vmem_limit),
    )(q, k, v, Wqkv, Wo)

    # (B, N, H*Pp) -> (B, N, H, Pp) -> drop homog + padding -> (B, N*H, D)
    # (matches torch: permute(0,2,1,3).view(B, N*H, P)[..., :-1])
    out = out.reshape(B, N, H, Pp)[..., :D].reshape(B, N * H, D)
    return out, attn


if __name__ == "__main__":
    B, N, D, H = 2, 8, 8, 2          # feature_dim=8, num_heads=2  (P = 9 -> Pp = 128)
    root = jax.random.PRNGKey(0)
    kq, kk, kv = jax.random.split(root, 3)
    query = jax.random.normal(kq, (B, N, D), jnp.float32)
    key_in = jax.random.normal(kk, (B, N, D), jnp.float32)
    value = jax.random.normal(kv, (B, N, D), jnp.float32)

    params = init_params(0, D, H)

    fwd = jax.jit(lambda q, k, v: uhg_multi_head_attention(q, k, v, params))
    out, attn = fwd(query, key_in, value)
    jax.block_until_ready((out, attn))

    assert out.shape == (B, N * H, D), out.shape
    assert attn.shape == (B, H, N, N), attn.shape
    assert bool(jnp.all(jnp.isfinite(out))) and bool(jnp.all(jnp.isfinite(attn)))
    # attention rows are softmax-normalized (exact normalization on the stored attn)
    assert bool(jnp.allclose(jnp.sum(attn, axis=-1), 1.0, atol=5e-3))
    print("KERNEL_OK")
</pallas_src>

<mosaic_0001>
module attributes {stable_mosaic.version = 11 : i64} {
  func.func @_uhg_fused_attention_kernel(%arg0: i32, %arg1: memref<1x8x128xf32, #tpu.memory_space<vmem>>, %arg2: memref<1x8x128xf32, #tpu.memory_space<vmem>>, %arg3: memref<1x8x128xf32, #tpu.memory_space<vmem>>, %arg4: memref<3x2x128x128xbf16, #tpu.memory_space<vmem>>, %arg5: memref<128x128xbf16, #tpu.memory_space<vmem>>, %arg6: memref<1x8x256xf32, #tpu.memory_space<vmem>>, %arg7: memref<1x2x8x8xf32, #tpu.memory_space<vmem>>) attributes {dimension_semantics = [#tpu.dimension_semantics<parallel>], iteration_bounds = array<i64: 2>, scalar_prefetch = 0 : i64, scratch_operands = 0 : i64, tpu.core_type = #tpu.core_type<tc>, window_params = [{transform_indices = @transform_0, window_bounds = array<i64: 1, 8, 128>}, {transform_indices = @transform_1, window_bounds = array<i64: 1, 8, 128>}, {transform_indices = @transform_2, window_bounds = array<i64: 1, 8, 128>}, {pipeline_mode = #tpu.pipeline_mode<synchronous>, transform_indices = @transform_3, window_bounds = array<i64: 3, 2, 128, 128>}, {pipeline_mode = #tpu.pipeline_mode<synchronous>, transform_indices = @transform_4, window_bounds = array<i64: 128, 128>}, {transform_indices = @transform_5, window_bounds = array<i64: 1, 8, 256>}, {transform_indices = @transform_6, window_bounds = array<i64: 1, 2, 8, 8>}]} {
    %c0 = arith.constant 0 : index
    %c0_0 = arith.constant 0 : index
    %c0_1 = arith.constant 0 : index
    %0 = vector.load %arg1[%c0, %c0_0, %c0_1] : memref<1x8x128xf32, #tpu.memory_space<vmem>>, vector<1x8x128xf32>
    %1 = vector.shape_cast %0 : vector<1x8x128xf32> to vector<8x128xf32>
    %c0_2 = arith.constant 0 : index
    %c0_3 = arith.constant 0 : index
    %c0_4 = arith.constant 0 : index
    %2 = vector.load %arg2[%c0_2, %c0_3, %c0_4] : memref<1x8x128xf32, #tpu.memory_space<vmem>>, vector<1x8x128xf32>
    %3 = vector.shape_cast %2 : vector<1x8x128xf32> to vector<8x128xf32>
    %c0_5 = arith.constant 0 : index
    %c0_6 = arith.constant 0 : index
    %c0_7 = arith.constant 0 : index
    %4 = vector.load %arg3[%c0_5, %c0_6, %c0_7] : memref<1x8x128xf32, #tpu.memory_space<vmem>>, vector<1x8x128xf32>
    %5 = vector.shape_cast %4 : vector<1x8x128xf32> to vector<8x128xf32>
    %c0_8 = arith.constant 0 : index
    %c0_9 = arith.constant 0 : index
    %6 = vector.load %arg5[%c0_8, %c0_9] : memref<128x128xbf16, #tpu.memory_space<vmem>>, vector<128x128xbf16>
    %7 = tpu.iota {dimensions = array<i32: 1>} : vector<8x128xi32>
    %c8_i32 = arith.constant 8 : i32
    %8 = vector.broadcast %c8_i32 : i32 to vector<8x128xi32>
    %9 = arith.cmpi slt, %7, %8 : vector<8x128xi32>
    %c0_10 = arith.constant 0 : index
    %c0_11 = arith.constant 0 : index
    %c0_12 = arith.constant 0 : index
    %c0_13 = arith.constant 0 : index
    %10 = vector.load %arg4[%c0_10, %c0_11, %c0_12, %c0_13] : memref<3x2x128x128xbf16, #tpu.memory_space<vmem>>, vector<1x1x128x128xbf16>
    %11 = vector.shape_cast %10 : vector<1x1x128x128xbf16> to vector<128x128xbf16>
    %12 = arith.truncf %1 : vector<8x128xf32> to vector<8x128xbf16>
    %cst = arith.constant dense<0.000000e+00> : vector<8x128xf32>
    %13 = tpu.matmul %12, %11, %cst {dimension_numbers = #tpu.dot_dimension_numbers<[1], [1], [0], [0], [0, 0, 1, 0], [], []>} : vector<8x128xbf16>, vector<128x128xbf16>, vector<8x128xf32> -> vector<8x128xf32>
    %14 = vector.extract_strided_slice %13 {offsets = [0, 8], sizes = [8, 1], strides = [1, 1]} : vector<8x128xf32> to vector<8x1xf32>
    %cst_14 = arith.constant 9.99999997E-7 : f32
    %15 = vector.broadcast %cst_14 : f32 to vector<8x1xf32>
    %16 = arith.addf %14, %15 : vector<8x1xf32>
    %17 = tpu.reciprocal %16 {approx = true} : vector<8x1xf32> -> vector<8x1xf32>
    %18 = vector.broadcast %17 : vector<8x1xf32> to vector<8x128xf32>
    %19 = arith.mulf %13, %18 : vector<8x128xf32>
    %20 = vector.extract_strided_slice %19 {offsets = [0, 8], sizes = [8, 1], strides = [1, 1]} : vector<8x128xf32> to vector<8x1xf32>
    %21 = vector.extract_strided_slice %19 {offsets = [0, 1], sizes = [8, 1], strides = [1, 1]} : vector<8x128xf32> to vector<8x1xf32>
    %22 = arith.subf %20, %21 : vector<8x1xf32>
    %23 = vector.extract_strided_slice %19 {offsets = [0, 2], sizes = [8, 1], strides = [1, 1]} : vector<8x128xf32> to vector<8x1xf32>
    %24 = arith.subf %20, %23 : vector<8x1xf32>
    %cst_15 = arith.constant 9.99999997E-7 : f32
    %25 = vector.broadcast %cst_15 : f32 to vector<8x1xf32>
    %26 = arith.addf %24, %25 : vector<8x1xf32>
    %27 = tpu.reciprocal %26 {approx = true} : vector<8x1xf32> -> vector<8x1xf32>
    %28 = arith.mulf %22, %27 : vector<8x1xf32>
    %cst_16 = arith.constant 9.99999997E-7 : f32
    %29 = vector.broadcast %cst_16 : f32 to vector<8x1xf32>
    %30 = arith.addf %28, %29 : vector<8x1xf32>
    %cst_17 = arith.constant 9.99999997E-7 : f32
    %31 = vector.broadcast %cst_17 : f32 to vector<8x1xf32>
    %32 = arith.mulf %31, %30 : vector<8x1xf32>
    %33 = arith.addf %20, %32 : vector<8x1xf32>
    %34 = tpu.reciprocal %33 {approx = true} : vector<8x1xf32> -> vector<8x1xf32>
    %35 = vector.broadcast %34 : vector<8x1xf32> to vector<8x128xf32>
    %36 = arith.mulf %19, %35 : vector<8x128xf32>
    %c1 = arith.constant 1 : index
    %c0_18 = arith.constant 0 : index
    %c0_19 = arith.constant 0 : index
    %c0_20 = arith.constant 0 : index
    %37 = vector.load %arg4[%c1, %c0_18, %c0_19, %c0_20] : memref<3x2x128x128xbf16, #tpu.memory_space<vmem>>, vector<1x1x128x128xbf16>
    %38 = vector.shape_cast %37 : vector<1x1x128x128xbf16> to vector<128x128xbf16>
    %39 = arith.truncf %3 : vector<8x128xf32> to vector<8x128xbf16>
    %cst_21 = arith.constant dense<0.000000e+00> : vector<8x128xf32>
    %40 = tpu.matmul %39, %38, %cst_21 {dimension_numbers = #tpu.dot_dimension_numbers<[1], [1], [0], [0], [0, 0, 1, 0], [], []>} : vector<8x128xbf16>, vector<128x128xbf16>, vector<8x128xf32> -> vector<8x128xf32>
    %41 = vector.extract_strided_slice %40 {offsets = [0, 8], sizes = [8, 1], strides = [1, 1]} : vector<8x128xf32> to vector<8x1xf32>
    %cst_22 = arith.constant 9.99999997E-7 : f32
    %42 = vector.broadcast %cst_22 : f32 to vector<8x1xf32>
    %43 = arith.addf %41, %42 : vector<8x1xf32>
    %44 = tpu.reciprocal %43 {approx = true} : vector<8x1xf32> -> vector<8x1xf32>
    %45 = vector.broadcast %44 : vector<8x1xf32> to vector<8x128xf32>
    %46 = arith.mulf %40, %45 : vector<8x128xf32>
    %47 = vector.extract_strided_slice %46 {offsets = [0, 8], sizes = [8, 1], strides = [1, 1]} : vector<8x128xf32> to vector<8x1xf32>
    %48 = vector.extract_strided_slice %46 {offsets = [0, 1], sizes = [8, 1], strides = [1, 1]} : vector<8x128xf32> to vector<8x1xf32>
    %49 = arith.subf %47, %48 : vector<8x1xf32>
    %50 = vector.extract_strided_slice %46 {offsets = [0, 2], sizes = [8, 1], strides = [1, 1]} : vector<8x128xf32> to vector<8x1xf32>
    %51 = arith.subf %47, %50 : vector<8x1xf32>
    %cst_23 = arith.constant 9.99999997E-7 : f32
    %52 = vector.broadcast %cst_23 : f32 to vector<8x1xf32>
    %53 = arith.addf %51, %52 : vector<8x1xf32>
    %54 = tpu.reciprocal %53 {approx = true} : vector<8x1xf32> -> vector<8x1xf32>
    %55 = arith.mulf %49, %54 : vector<8x1xf32>
    %cst_24 = arith.constant 9.99999997E-7 : f32
    %56 = vector.broadcast %cst_24 : f32 to vector<8x1xf32>
    %57 = arith.addf %55, %56 : vector<8x1xf32>
    %cst_25 = arith.constant 9.99999997E-7 : f32
    %58 = vector.broadcast %cst_25 : f32 to vector<8x1xf32>
    %59 = arith.mulf %58, %57 : vector<8x1xf32>
    %60 = arith.addf %47, %59 : vector<8x1xf32>
    %61 = tpu.reciprocal %60 {approx = true} : vector<8x1xf32> -> vector<8x1xf32>
    %62 = vector.broadcast %61 : vector<8x1xf32> to vector<8x128xf32>
    %63 = arith.mulf %46, %62 : vector<8x128xf32>
    %c2 = arith.constant 2 : index
    %c0_26 = arith.constant 0 : index
    %c0_27 = arith.constant 0 : index
    %c0_28 = arith.constant 0 : index
    %64 = vector.load %arg4[%c2, %c0_26, %c0_27, %c0_28] : memref<3x2x128x128xbf16, #tpu.memory_space<vmem>>, vector<1x1x128x128xbf16>
    %65 = vector.shape_cast %64 : vector<1x1x128x128xbf16> to vector<128x128xbf16>
    %66 = arith.truncf %5 : vector<8x128xf32> to vector<8x128xbf16>
    %cst_29 = arith.constant dense<0.000000e+00> : vector<8x128xf32>
    %67 = tpu.matmul %66, %65, %cst_29 {dimension_numbers = #tpu.dot_dimension_numbers<[1], [1], [0], [0], [0, 0, 1, 0], [], []>} : vector<8x128xbf16>, vector<128x128xbf16>, vector<8x128xf32> -> vector<8x128xf32>
    %68 = vector.extract_strided_slice %67 {offsets = [0, 8], sizes = [8, 1], strides = [1, 1]} : vector<8x128xf32> to vector<8x1xf32>
    %cst_30 = arith.constant 9.99999997E-7 : f32
    %69 = vector.broadcast %cst_30 : f32 to vector<8x1xf32>
    %70 = arith.addf %68, %69 : vector<8x1xf32>
    %71 = tpu.reciprocal %70 {approx = true} : vector<8x1xf32> -> vector<8x1xf32>
    %72 = vector.broadcast %71 : vector<8x1xf32> to vector<8x128xf32>
    %73 = arith.mulf %67, %72 : vector<8x128xf32>
    %74 = vector.extract_strided_slice %73 {offsets = [0, 8], sizes = [8, 1], strides = [1, 1]} : vector<8x128xf32> to vector<8x1xf32>
    %75 = vector.extract_strided_slice %73 {offsets = [0, 1], sizes = [8, 1], strides = [1, 1]} : vector<8x128xf32> to vector<8x1xf32>
    %76 = arith.subf %74, %75 : vector<8x1xf32>
    %77 = vector.extract_strided_slice %73 {offsets = [0, 2], sizes = [8, 1], strides = [1, 1]} : vector<8x128xf32> to vector<8x1xf32>
    %78 = arith.subf %74, %77 : vector<8x1xf32>
    %cst_31 = arith.constant 9.99999997E-7 : f32
    %79 = vector.broadcast %cst_31 : f32 to vector<8x1xf32>
    %80 = arith.addf %78, %79 : vector<8x1xf32>
    %81 = tpu.reciprocal %80 {approx = true} : vector<8x1xf32> -> vector<8x1xf32>
    %82 = arith.mulf %76, %81 : vector<8x1xf32>
    %cst_32 = arith.constant 9.99999997E-7 : f32
    %83 = vector.broadcast %cst_32 : f32 to vector<8x1xf32>
    %84 = arith.addf %82, %83 : vector<8x1xf32>
    %cst_33 = arith.constant 9.99999997E-7 : f32
    %85 = vector.broadcast %cst_33 : f32 to vector<8x1xf32>
    %86 = arith.mulf %85, %84 : vector<8x1xf32>
    %87 = arith.addf %74, %86 : vector<8x1xf32>
    %88 = tpu.reciprocal %87 {approx = true} : vector<8x1xf32> -> vector<8x1xf32>
    %89 = vector.broadcast %88 : vector<8x1xf32> to vector<8x128xf32>
    %90 = arith.mulf %73, %89 : vector<8x128xf32>
    %91 = vector.extract_strided_slice %36 {offsets = [0, 8], sizes = [8, 1], strides = [1, 1]} : vector<8x128xf32> to vector<8x1xf32>
    %92 = vector.extract_strided_slice %36 {offsets = [0, 1], sizes = [8, 1], strides = [1, 1]} : vector<8x128xf32> to vector<8x1xf32>
    %93 = arith.subf %91, %92 : vector<8x1xf32>
    %94 = vector.extract_strided_slice %36 {offsets = [0, 2], sizes = [8, 1], strides = [1, 1]} : vector<8x128xf32> to vector<8x1xf32>
    %95 = arith.subf %91, %94 : vector<8x1xf32>
    %cst_34 = arith.constant 9.99999997E-7 : f32
    %96 = vector.broadcast %cst_34 : f32 to vector<8x1xf32>
    %97 = arith.addf %95, %96 : vector<8x1xf32>
    %98 = tpu.reciprocal %97 {approx = true} : vector<8x1xf32> -> vector<8x1xf32>
    %99 = arith.mulf %93, %98 : vector<8x1xf32>
    %cst_35 = arith.constant 9.99999997E-7 : f32
    %100 = vector.broadcast %cst_35 : f32 to vector<8x1xf32>
    %101 = arith.addf %99, %100 : vector<8x1xf32>
    %cst_36 = arith.constant 9.99999997E-7 : f32
    %102 = vector.broadcast %cst_36 : f32 to vector<8x1xf32>
    %103 = arith.mulf %102, %101 : vector<8x1xf32>
    %104 = arith.addf %91, %103 : vector<8x1xf32>
    %105 = tpu.reciprocal %104 {approx = true} : vector<8x1xf32> -> vector<8x1xf32>
    %106 = vector.broadcast %105 : vector<8x1xf32> to vector<8x128xf32>
    %107 = arith.mulf %36, %106 : vector<8x128xf32>
    %108 = vector.extract_strided_slice %63 {offsets = [0, 8], sizes = [8, 1], strides = [1, 1]} : vector<8x128xf32> to vector<8x1xf32>
    %109 = vector.extract_strided_slice %63 {offsets = [0, 1], sizes = [8, 1], strides = [1, 1]} : vector<8x128xf32> to vector<8x1xf32>
    %110 = arith.subf %108, %109 : vector<8x1xf32>
    %111 = vector.extract_strided_slice %63 {offsets = [0, 2], sizes = [8, 1], strides = [1, 1]} : vector<8x128xf32> to vector<8x1xf32>
    %112 = arith.subf %108, %111 : vector<8x1xf32>
    %cst_37 = arith.constant 9.99999997E-7 : f32
    %113 = vector.broadcast %cst_37 : f32 to vector<8x1xf32>
    %114 = arith.addf %112, %113 : vector<8x1xf32>
    %115 = tpu.reciprocal %114 {approx = true} : vector<8x1xf32> -> vector<8x1xf32>
    %116 = arith.mulf %110, %115 : vector<8x1xf32>
    %cst_38 = arith.constant 9.99999997E-7 : f32
    %117 = vector.broadcast %cst_38 : f32 to vector<8x1xf32>
    %118 = arith.addf %116, %117 : vector<8x1xf32>
    %cst_39 = arith.constant 9.99999997E-7 : f32
    %119 = vector.broadcast %cst_39 : f32 to vector<8x1xf32>
    %120 = arith.mulf %119, %118 : vector<8x1xf32>
    %121 = arith.addf %108, %120 : vector<8x1xf32>
    %122 = tpu.reciprocal %121 {approx = true} : vector<8x1xf32> -> vector<8x1xf32>
    %123 = vector.broadcast %122 : vector<8x1xf32> to vector<8x128xf32>
    %124 = arith.mulf %63, %123 : vector<8x128xf32>
    %125 = vector.extract_strided_slice %107 {offsets = [0, 0], sizes = [8, 1], strides = [1, 1]} : vector<8x128xf32> to vector<8x1xf32>
    %126 = vector.shape_cast %125 : vector<8x1xf32> to vector<1x8x1xf32>
    %127 = vector.extract_strided_slice %107 {offsets = [0, 1], sizes = [8, 1], strides = [1, 1]} : vector<8x128xf32> to vector<8x1xf32>
    %128 = vector.shape_cast %127 : vector<8x1xf32> to vector<1x8x1xf32>
    %129 = vector.shape_cast %124 : vector<8x128xf32> to vector<1x8x128xf32>
    %130 = tpu.transpose %129, [0, 2, 1] : vector<1x8x128xf32> -> vector<1x128x8xf32>
    %131 = vector.extract_strided_slice %130 {offsets = [0, 0, 0], sizes = [1, 1, 8], strides = [1, 1, 1]} : vector<1x128x8xf32> to vector<1x1x8xf32>
    %132 = vector.extract_strided_slice %130 {offsets = [0, 1, 0], sizes = [1, 1, 8], strides = [1, 1, 1]} : vector<1x128x8xf32> to vector<1x1x8xf32>
    %133 = vector.broadcast %126 : vector<1x8x1xf32> to vector<1x8x8xf32>
    %134 = vector.broadcast %132 : vector<1x1x8xf32> to vector<1x8x8xf32>
    %135 = arith.mulf %133, %134 : vector<1x8x8xf32>
    %136 = vector.broadcast %128 : vector<1x8x1xf32> to vector<1x8x8xf32>
    %137 = vector.broadcast %131 : vector<1x1x8xf32> to vector<1x8x8xf32>
    %138 = arith.mulf %136, %137 : vector<1x8x8xf32>
    %cst_40 = arith.constant 9.99999997E-7 : f32
    %139 = vector.broadcast %cst_40 : f32 to vector<1x8x8xf32>
    %140 = arith.addf %138, %139 : vector<1x8x8xf32>
    %141 = tpu.reciprocal %140 {approx = true} : vector<1x8x8xf32> -> vector<1x8x8xf32>
    %142 = arith.mulf %135, %141 : vector<1x8x8xf32>
    %143 = math.absf %142 : vector<1x8x8xf32>
    %cst_41 = arith.constant 9.99999997E-7 : f32
    %144 = vector.broadcast %cst_41 : f32 to vector<1x8x8xf32>
    %145 = arith.addf %143, %144 : vector<1x8x8xf32>
    %146 = math.log %145 : vector<1x8x8xf32>
    %147 = math.absf %146 : vector<1x8x8xf32>
    %cst_42 = arith.constant 1.000000e+00 : f32
    %148 = vector.broadcast %cst_42 : f32 to vector<1x8x8xf32>
    %149 = arith.addf %148, %147 : vector<1x8x8xf32>
    %150 = tpu.reciprocal %149 {approx = true} : vector<1x8x8xf32> -> vector<1x8x8xf32>
    %cst_43 = arith.constant dense<0xFF800000> : vector<1x8xf32>
    %151 = vector.multi_reduction <maximumf>, %150, %cst_43 [2] : vector<1x8x8xf32> to vector<1x8xf32>
    %152 = vector.shape_cast %151 : vector<1x8xf32> to vector<1x8x1xf32>
    %153 = vector.broadcast %152 : vector<1x8x1xf32> to vector<1x8x8xf32>
    %154 = arith.subf %150, %153 : vector<1x8x8xf32>
    %155 = math.exp %154 : vector<1x8x8xf32>
    %cst_44 = arith.constant dense<0.000000e+00> : vector<1x8xf32>
    %156 = vector.multi_reduction <add>, %155, %cst_44 [2] : vector<1x8x8xf32> to vector<1x8xf32>
    %157 = vector.shape_cast %156 : vector<1x8xf32> to vector<1x8x1xf32>
    %cst_45 = arith.constant 1.000000e+00 : f32
    %158 = vector.broadcast %cst_45 : f32 to vector<1x8x1xf32>
    %159 = arith.divf %158, %157 : vector<1x8x1xf32>
    %160 = vector.broadcast %159 : vector<1x8x1xf32> to vector<1x8x8xf32>
    %161 = arith.mulf %155, %160 : vector<1x8x8xf32>
    %162 = vector.shape_cast %161 : vector<1x8x8xf32> to vector<1x1x8x8xf32>
    %c0_46 = arith.constant 0 : index
    %c0_47 = arith.constant 0 : index
    %c0_48 = arith.constant 0 : index
    %c0_49 = arith.constant 0 : index
    %163 = vector.load %arg7[%c0_46, %c0_47, %c0_48, %c0_49] : memref<1x2x8x8xf32, #tpu.memory_space<vmem>>, vector<1x1x8x8xf32>
    tpu.vector_store %arg7[%c0_46, %c0_47, %c0_48, %c0_49], %162 {strides = array<i32>} : memref<1x2x8x8xf32, #tpu.memory_space<vmem>>, vector<1x1x8x8xf32>,
    %164 = arith.truncf %161 : vector<1x8x8xf32> to vector<1x8x8xbf16>
    %165 = vector.shape_cast %90 : vector<8x128xf32> to vector<1x8x128xf32>
    %166 = arith.truncf %165 : vector<1x8x128xf32> to vector<1x8x128xbf16>
    "tpu.trace_start"() <{level = 10 : i32, message = "bij,bjp->bip"}> : () -> ()
    %cst_50 = arith.constant dense<0.000000e+00> : vector<1x8x128xf32>
    %167 = tpu.matmul %164, %166, %cst_50 {dimension_numbers = #tpu.dot_dimension_numbers<[2], [1], [1], [2], [0, 0, 0, 1, 1, 2], [0], [0]>} : vector<1x8x8xbf16>, vector<1x8x128xbf16>, vector<1x8x128xf32> -> vector<1x8x128xf32>
    "tpu.trace_stop"() : () -> ()
    %168 = vector.shape_cast %167 : vector<1x8x128xf32> to vector<8x128xf32>
    %cst_51 = arith.constant 0.000000e+00 : f32
    %169 = vector.broadcast %cst_51 : f32 to vector<8x128xf32>
    %170 = arith.select %9, %168, %169 : vector<8x128xi1>, vector<8x128xf32>
    %171 = arith.mulf %170, %170 : vector<8x128xf32>
    %cst_52 = arith.constant dense<0.000000e+00> : vector<8xf32>
    %172 = vector.multi_reduction <add>, %171, %cst_52 [1] : vector<8x128xf32> to vector<8xf32>
    %173 = vector.shape_cast %172 : vector<8xf32> to vector<8x1xf32>
    %cst_53 = arith.constant 9.99999996E-13 : f32
    %174 = vector.broadcast %cst_53 : f32 to vector<8x1xf32>
    %175 = arith.addf %173, %174 : vector<8x1xf32>
    %176 = math.rsqrt %175 : vector<8x1xf32>
    %177 = vector.broadcast %176 : vector<8x1xf32> to vector<8x128xf32>
    %178 = arith.mulf %168, %177 : vector<8x128xf32>
    %179 = arith.select %9, %178, %168 : vector<8x128xi1>, vector<8x128xf32>
    %180 = arith.truncf %179 : vector<8x128xf32> to vector<8x128xbf16>
    %cst_54 = arith.constant dense<0.000000e+00> : vector<8x128xf32>
    %181 = tpu.matmul %180, %6, %cst_54 {dimension_numbers = #tpu.dot_dimension_numbers<[1], [1], [0], [0], [0, 0, 1, 0], [], []>} : vector<8x128xbf16>, vector<128x128xbf16>, vector<8x128xf32> -> vector<8x128xf32>
    %182 = vector.extract_strided_slice %181 {offsets = [0, 8], sizes = [8, 1], strides = [1, 1]} : vector<8x128xf32> to vector<8x1xf32>
    %cst_55 = arith.constant 9.99999997E-7 : f32
    %183 = vector.broadcast %cst_55 : f32 to vector<8x1xf32>
    %184 = arith.addf %182, %183 : vector<8x1xf32>
    %185 = tpu.reciprocal %184 {approx = true} : vector<8x1xf32> -> vector<8x1xf32>
    %186 = vector.broadcast %185 : vector<8x1xf32> to vector<8x128xf32>
    %187 = arith.mulf %181, %186 : vector<8x128xf32>
    %188 = vector.extract_strided_slice %187 {offsets = [0, 8], sizes = [8, 1], strides = [1, 1]} : vector<8x128xf32> to vector<8x1xf32>
    %189 = vector.extract_strided_slice %187 {offsets = [0, 1], sizes = [8, 1], strides = [1, 1]} : vector<8x128xf32> to vector<8x1xf32>
    %190 = arith.subf %188, %189 : vector<8x1xf32>
    %191 = vector.extract_strided_slice %187 {offsets = [0, 2], sizes = [8, 1], strides = [1, 1]} : vector<8x128xf32> to vector<8x1xf32>
    %192 = arith.subf %188, %191 : vector<8x1xf32>
    %cst_56 = arith.constant 9.99999997E-7 : f32
    %193 = vector.broadcast %cst_56 : f32 to vector<8x1xf32>
    %194 = arith.addf %192, %193 : vector<8x1xf32>
    %195 = tpu.reciprocal %194 {approx = true} : vector<8x1xf32> -> vector<8x1xf32>
    %196 = arith.mulf %190, %195 : vector<8x1xf32>
    %cst_57 = arith.constant 9.99999997E-7 : f32
    %197 = vector.broadcast %cst_57 : f32 to vector<8x1xf32>
    %198 = arith.addf %196, %197 : vector<8x1xf32>
    %cst_58 = arith.constant 9.99999997E-7 : f32
    %199 = vector.broadcast %cst_58 : f32 to vector<8x1xf32>
    %200 = arith.mulf %199, %198 : vector<8x1xf32>
    %201 = arith.addf %188, %200 : vector<8x1xf32>
    %202 = tpu.reciprocal %201 {approx = true} : vector<8x1xf32> -> vector<8x1xf32>
    %203 = vector.broadcast %202 : vector<8x1xf32> to vector<8x128xf32>
    %204 = arith.mulf %187, %203 : vector<8x128xf32>
    %205 = vector.shape_cast %204 : vector<8x128xf32> to vector<1x8x128xf32>
    %c0_59 = arith.constant 0 : index
    %c0_60 = arith.constant 0 : index
    %c0_61 = arith.constant 0 : index
    %206 = vector.load %arg6[%c0_59, %c0_60, %c0_61] : memref<1x8x256xf32, #tpu.memory_space<vmem>>, vector<1x8x128xf32>
    tpu.vector_store %arg6[%c0_59, %c0_60, %c0_61], %205 {strides = array<i32>} : memref<1x8x256xf32, #tpu.memory_space<vmem>>, vector<1x8x128xf32>,
    %c0_62 = arith.constant 0 : index
    %c1_63 = arith.constant 1 : index
    %c0_64 = arith.constant 0 : index
    %c0_65 = arith.constant 0 : index
    %207 = vector.load %arg4[%c0_62, %c1_63, %c0_64, %c0_65] : memref<3x2x128x128xbf16, #tpu.memory_space<vmem>>, vector<1x1x128x128xbf16>
    %208 = vector.shape_cast %207 : vector<1x1x128x128xbf16> to vector<128x128xbf16>
    %209 = arith.truncf %1 : vector<8x128xf32> to vector<8x128xbf16>
    %cst_66 = arith.constant dense<0.000000e+00> : vector<8x128xf32>
    %210 = tpu.matmul %209, %208, %cst_66 {dimension_numbers = #tpu.dot_dimension_numbers<[1], [1], [0], [0], [0, 0, 1, 0], [], []>} : vector<8x128xbf16>, vector<128x128xbf16>, vector<8x128xf32> -> vector<8x128xf32>
    %211 = vector.extract_strided_slice %210 {offsets = [0, 8], sizes = [8, 1], strides = [1, 1]} : vector<8x128xf32> to vector<8x1xf32>
    %cst_67 = arith.constant 9.99999997E-7 : f32
    %212 = vector.broadcast %cst_67 : f32 to vector<8x1xf32>
    %213 = arith.addf %211, %212 : vector<8x1xf32>
    %214 = tpu.reciprocal %213 {approx = true} : vector<8x1xf32> -> vector<8x1xf32>
    %215 = vector.broadcast %214 : vector<8x1xf32> to vector<8x128xf32>
    %216 = arith.mulf %210, %215 : vector<8x128xf32>
    %217 = vector.extract_strided_slice %216 {offsets = [0, 8], sizes = [8, 1], strides = [1, 1]} : vector<8x128xf32> to vector<8x1xf32>
    %218 = vector.extract_strided_slice %216 {offsets = [0, 1], sizes = [8, 1], strides = [1, 1]} : vector<8x128xf32> to vector<8x1xf32>
    %219 = arith.subf %217, %218 : vector<8x1xf32>
    %220 = vector.extract_strided_slice %216 {offsets = [0, 2], sizes = [8, 1], strides = [1, 1]} : vector<8x128xf32> to vector<8x1xf32>
    %221 = arith.subf %217, %220 : vector<8x1xf32>
    %cst_68 = arith.constant 9.99999997E-7 : f32
    %222 = vector.broadcast %cst_68 : f32 to vector<8x1xf32>
    %223 = arith.addf %221, %222 : vector<8x1xf32>
    %224 = tpu.reciprocal %223 {approx = true} : vector<8x1xf32> -> vector<8x1xf32>
    %225 = arith.mulf %219, %224 : vector<8x1xf32>
    %cst_69 = arith.constant 9.99999997E-7 : f32
    %226 = vector.broadcast %cst_69 : f32 to vector<8x1xf32>
    %227 = arith.addf %225, %226 : vector<8x1xf32>
    %cst_70 = arith.constant 9.99999997E-7 : f32
    %228 = vector.broadcast %cst_70 : f32 to vector<8x1xf32>
    %229 = arith.mulf %228, %227 : vector<8x1xf32>
    %230 = arith.addf %217, %229 : vector<8x1xf32>
    %231 = tpu.reciprocal %230 {approx = true} : vector<8x1xf32> -> vector<8x1xf32>
    %232 = vector.broadcast %231 : vector<8x1xf32> to vector<8x128xf32>
    %233 = arith.mulf %216, %232 : vector<8x128xf32>
    %c1_71 = arith.constant 1 : index
    %c1_72 = arith.constant 1 : index
    %c0_73 = arith.constant 0 : index
    %c0_74 = arith.constant 0 : index
    %234 = vector.load %arg4[%c1_71, %c1_72, %c0_73, %c0_74] : memref<3x2x128x128xbf16, #tpu.memory_space<vmem>>, vector<1x1x128x128xbf16>
    %235 = vector.shape_cast %234 : vector<1x1x128x128xbf16> to vector<128x128xbf16>
    %236 = arith.truncf %3 : vector<8x128xf32> to vector<8x128xbf16>
    %cst_75 = arith.constant dense<0.000000e+00> : vector<8x128xf32>
    %237 = tpu.matmul %236, %235, %cst_75 {dimension_numbers = #tpu.dot_dimension_numbers<[1], [1], [0], [0], [0, 0, 1, 0], [], []>} : vector<8x128xbf16>, vector<128x128xbf16>, vector<8x128xf32> -> vector<8x128xf32>
    %238 = vector.extract_strided_slice %237 {offsets = [0, 8], sizes = [8, 1], strides = [1, 1]} : vector<8x128xf32> to vector<8x1xf32>
    %cst_76 = arith.constant 9.99999997E-7 : f32
    %239 = vector.broadcast %cst_76 : f32 to vector<8x1xf32>
    %240 = arith.addf %238, %239 : vector<8x1xf32>
    %241 = tpu.reciprocal %240 {approx = true} : vector<8x1xf32> -> vector<8x1xf32>
    %242 = vector.broadcast %241 : vector<8x1xf32> to vector<8x128xf32>
    %243 = arith.mulf %237, %242 : vector<8x128xf32>
    %244 = vector.extract_strided_slice %243 {offsets = [0, 8], sizes = [8, 1], strides = [1, 1]} : vector<8x128xf32> to vector<8x1xf32>
    %245 = vector.extract_strided_slice %243 {offsets = [0, 1], sizes = [8, 1], strides = [1, 1]} : vector<8x128xf32> to vector<8x1xf32>
    %246 = arith.subf %244, %245 : vector<8x1xf32>
    %247 = vector.extract_strided_slice %243 {offsets = [0, 2], sizes = [8, 1], strides = [1, 1]} : vector<8x128xf32> to vector<8x1xf32>
    %248 = arith.subf %244, %247 : vector<8x1xf32>
    %cst_77 = arith.constant 9.99999997E-7 : f32
    %249 = vector.broadcast %cst_77 : f32 to vector<8x1xf32>
    %250 = arith.addf %248, %249 : vector<8x1xf32>
    %251 = tpu.reciprocal %250 {approx = true} : vector<8x1xf32> -> vector<8x1xf32>
    %252 = arith.mulf %246, %251 : vector<8x1xf32>
    %cst_78 = arith.constant 9.99999997E-7 : f32
    %253 = vector.broadcast %cst_78 : f32 to vector<8x1xf32>
    %254 = arith.addf %252, %253 : vector<8x1xf32>
    %cst_79 = arith.constant 9.99999997E-7 : f32
    %255 = vector.broadcast %cst_79 : f32 to vector<8x1xf32>
    %256 = arith.mulf %255, %254 : vector<8x1xf32>
    %257 = arith.addf %244, %256 : vector<8x1xf32>
    %258 = tpu.reciprocal %257 {approx = true} : vector<8x1xf32> -> vector<8x1xf32>
    %259 = vector.broadcast %258 : vector<8x1xf32> to vector<8x128xf32>
    %260 = arith.mulf %243, %259 : vector<8x128xf32>
    %c2_80 = arith.constant 2 : index
    %c1_81 = arith.constant 1 : index
    %c0_82 = arith.constant 0 : index
    %c0_83 = arith.constant 0 : index
    %261 = vector.load %arg4[%c2_80, %c1_81, %c0_82, %c0_83] : memref<3x2x128x128xbf16, #tpu.memory_space<vmem>>, vector<1x1x128x128xbf16>
    %262 = vector.shape_cast %261 : vector<1x1x128x128xbf16> to vector<128x128xbf16>
    %263 = arith.truncf %5 : vector<8x128xf32> to vector<8x128xbf16>
    %cst_84 = arith.constant dense<0.000000e+00> : vector<8x128xf32>
    %264 = tpu.matmul %263, %262, %cst_84 {dimension_numbers = #tpu.dot_dimension_numbers<[1], [1], [0], [0], [0, 0, 1, 0], [], []>} : vector<8x128xbf16>, vector<128x128xbf16>, vector<8x128xf32> -> vector<8x128xf32>
    %265 = vector.extract_strided_slice %264 {offsets = [0, 8], sizes = [8, 1], strides = [1, 1]} : vector<8x128xf32> to vector<8x1xf32>
    %cst_85 = arith.constant 9.99999997E-7 : f32
    %266 = vector.broadcast %cst_85 : f32 to vector<8x1xf32>
    %267 = arith.addf %265, %266 : vector<8x1xf32>
    %268 = tpu.reciprocal %267 {approx = true} : vector<8x1xf32> -> vector<8x1xf32>
    %269 = vector.broadcast %268 : vector<8x1xf32> to vector<8x128xf32>
    %270 = arith.mulf %264, %269 : vector<8x128xf32>
    %271 = vector.extract_strided_slice %270 {offsets = [0, 8], sizes = [8, 1], strides = [1, 1]} : vector<8x128xf32> to vector<8x1xf32>
    %272 = vector.extract_strided_slice %270 {offsets = [0, 1], sizes = [8, 1], strides = [1, 1]} : vector<8x128xf32> to vector<8x1xf32>
    %273 = arith.subf %271, %272 : vector<8x1xf32>
    %274 = vector.extract_strided_slice %270 {offsets = [0, 2], sizes = [8, 1], strides = [1, 1]} : vector<8x128xf32> to vector<8x1xf32>
    %275 = arith.subf %271, %274 : vector<8x1xf32>
    %cst_86 = arith.constant 9.99999997E-7 : f32
    %276 = vector.broadcast %cst_86 : f32 to vector<8x1xf32>
    %277 = arith.addf %275, %276 : vector<8x1xf32>
    %278 = tpu.reciprocal %277 {approx = true} : vector<8x1xf32> -> vector<8x1xf32>
    %279 = arith.mulf %273, %278 : vector<8x1xf32>
    %cst_87 = arith.constant 9.99999997E-7 : f32
    %280 = vector.broadcast %cst_87 : f32 to vector<8x1xf32>
    %281 = arith.addf %279, %280 : vector<8x1xf32>
    %cst_88 = arith.constant 9.99999997E-7 : f32
    %282 = vector.broadcast %cst_88 : f32 to vector<8x1xf32>
    %283 = arith.mulf %282, %281 : vector<8x1xf32>
    %284 = arith.addf %271, %283 : vector<8x1xf32>
    %285 = tpu.reciprocal %284 {approx = true} : vector<8x1xf32> -> vector<8x1xf32>
    %286 = vector.broadcast %285 : vector<8x1xf32> to vector<8x128xf32>
    %287 = arith.mulf %270, %286 : vector<8x128xf32>
    %288 = vector.extract_strided_slice %233 {offsets = [0, 8], sizes = [8, 1], strides = [1, 1]} : vector<8x128xf32> to vector<8x1xf32>
    %289 = vector.extract_strided_slice %233 {offsets = [0, 1], sizes = [8, 1], strides = [1, 1]} : vector<8x128xf32> to vector<8x1xf32>
    %290 = arith.subf %288, %289 : vector<8x1xf32>
    %291 = vector.extract_strided_slice %233 {offsets = [0, 2], sizes = [8, 1], strides = [1, 1]} : vector<8x128xf32> to vector<8x1xf32>
    %292 = arith.subf %288, %291 : vector<8x1xf32>
    %cst_89 = arith.constant 9.99999997E-7 : f32
    %293 = vector.broadcast %cst_89 : f32 to vector<8x1xf32>
    %294 = arith.addf %292, %293 : vector<8x1xf32>
    %295 = tpu.reciprocal %294 {approx = true} : vector<8x1xf32> -> vector<8x1xf32>
    %296 = arith.mulf %290, %295 : vector<8x1xf32>
    %cst_90 = arith.constant 9.99999997E-7 : f32
    %297 = vector.broadcast %cst_90 : f32 to vector<8x1xf32>
    %298 = arith.addf %296, %297 : vector<8x1xf32>
    %cst_91 = arith.constant 9.99999997E-7 : f32
    %299 = vector.broadcast %cst_91 : f32 to vector<8x1xf32>
    %300 = arith.mulf %299, %298 : vector<8x1xf32>
    %301 = arith.addf %288, %300 : vector<8x1xf32>
    %302 = tpu.reciprocal %301 {approx = true} : vector<8x1xf32> -> vector<8x1xf32>
    %303 = vector.broadcast %302 : vector<8x1xf32> to vector<8x128xf32>
    %304 = arith.mulf %233, %303 : vector<8x128xf32>
    %305 = vector.extract_strided_slice %260 {offsets = [0, 8], sizes = [8, 1], strides = [1, 1]} : vector<8x128xf32> to vector<8x1xf32>
    %306 = vector.extract_strided_slice %260 {offsets = [0, 1], sizes = [8, 1], strides = [1, 1]} : vector<8x128xf32> to vector<8x1xf32>
    %307 = arith.subf %305, %306 : vector<8x1xf32>
    %308 = vector.extract_strided_slice %260 {offsets = [0, 2], sizes = [8, 1], strides = [1, 1]} : vector<8x128xf32> to vector<8x1xf32>
    %309 = arith.subf %305, %308 : vector<8x1xf32>
    %cst_92 = arith.constant 9.99999997E-7 : f32
    %310 = vector.broadcast %cst_92 : f32 to vector<8x1xf32>
    %311 = arith.addf %309, %310 : vector<8x1xf32>
    %312 = tpu.reciprocal %311 {approx = true} : vector<8x1xf32> -> vector<8x1xf32>
    %313 = arith.mulf %307, %312 : vector<8x1xf32>
    %cst_93 = arith.constant 9.99999997E-7 : f32
    %314 = vector.broadcast %cst_93 : f32 to vector<8x1xf32>
    %315 = arith.addf %313, %314 : vector<8x1xf32>
    %cst_94 = arith.constant 9.99999997E-7 : f32
    %316 = vector.broadcast %cst_94 : f32 to vector<8x1xf32>
    %317 = arith.mulf %316, %315 : vector<8x1xf32>
    %318 = arith.addf %305, %317 : vector<8x1xf32>
    %319 = tpu.reciprocal %318 {approx = true} : vector<8x1xf32> -> vector<8x1xf32>
    %320 = vector.broadcast %319 : vector<8x1xf32> to vector<8x128xf32>
    %321 = arith.mulf %260, %320 : vector<8x128xf32>
    %322 = vector.extract_strided_slice %304 {offsets = [0, 0], sizes = [8, 1], strides = [1, 1]} : vector<8x128xf32> to vector<8x1xf32>
    %323 = vector.shape_cast %322 : vector<8x1xf32> to vector<1x8x1xf32>
    %324 = vector.extract_strided_slice %304 {offsets = [0, 1], sizes = [8, 1], strides = [1, 1]} : vector<8x128xf32> to vector<8x1xf32>
    %325 = vector.shape_cast %324 : vector<8x1xf32> to vector<1x8x1xf32>
    %326 = vector.shape_cast %321 : vector<8x128xf32> to vector<1x8x128xf32>
    %327 = tpu.transpose %326, [0, 2, 1] : vector<1x8x128xf32> -> vector<1x128x8xf32>
    %328 = vector.extract_strided_slice %327 {offsets = [0, 0, 0], sizes = [1, 1, 8], strides = [1, 1, 1]} : vector<1x128x8xf32> to vector<1x1x8xf32>
    %329 = vector.extract_strided_slice %327 {offsets = [0, 1, 0], sizes = [1, 1, 8], strides = [1, 1, 1]} : vector<1x128x8xf32> to vector<1x1x8xf32>
    %330 = vector.broadcast %323 : vector<1x8x1xf32> to vector<1x8x8xf32>
    %331 = vector.broadcast %329 : vector<1x1x8xf32> to vector<1x8x8xf32>
    %332 = arith.mulf %330, %331 : vector<1x8x8xf32>
    %333 = vector.broadcast %325 : vector<1x8x1xf32> to vector<1x8x8xf32>
    %334 = vector.broadcast %328 : vector<1x1x8xf32> to vector<1x8x8xf32>
    %335 = arith.mulf %333, %334 : vector<1x8x8xf32>
    %cst_95 = arith.constant 9.99999997E-7 : f32
    %336 = vector.broadcast %cst_95 : f32 to vector<1x8x8xf32>
    %337 = arith.addf %335, %336 : vector<1x8x8xf32>
    %338 = tpu.reciprocal %337 {approx = true} : vector<1x8x8xf32> -> vector<1x8x8xf32>
    %339 = arith.mulf %332, %338 : vector<1x8x8xf32>
    %340 = math.absf %339 : vector<1x8x8xf32>
    %cst_96 = arith.constant 9.99999997E-7 : f32
    %341 = vector.broadcast %cst_96 : f32 to vector<1x8x8xf32>
    %342 = arith.addf %340, %341 : vector<1x8x8xf32>
    %343 = math.log %342 : vector<1x8x8xf32>
    %344 = math.absf %343 : vector<1x8x8xf32>
    %cst_97 = arith.constant 1.000000e+00 : f32
    %345 = vector.broadcast %cst_97 : f32 to vector<1x8x8xf32>
    %346 = arith.addf %345, %344 : vector<1x8x8xf32>
    %347 = tpu.reciprocal %346 {approx = true} : vector<1x8x8xf32> -> vector<1x8x8xf32>
    %cst_98 = arith.constant dense<0xFF800000> : vector<1x8xf32>
    %348 = vector.multi_reduction <maximumf>, %347, %cst_98 [2] : vector<1x8x8xf32> to vector<1x8xf32>
    %349 = vector.shape_cast %348 : vector<1x8xf32> to vector<1x8x1xf32>
    %350 = vector.broadcast %349 : vector<1x8x1xf32> to vector<1x8x8xf32>
    %351 = arith.subf %347, %350 : vector<1x8x8xf32>
    %352 = math.exp %351 : vector<1x8x8xf32>
    %cst_99 = arith.constant dense<0.000000e+00> : vector<1x8xf32>
    %353 = vector.multi_reduction <add>, %352, %cst_99 [2] : vector<1x8x8xf32> to vector<1x8xf32>
    %354 = vector.shape_cast %353 : vector<1x8xf32> to vector<1x8x1xf32>
    %cst_100 = arith.constant 1.000000e+00 : f32
    %355 = vector.broadcast %cst_100 : f32 to vector<1x8x1xf32>
    %356 = arith.divf %355, %354 : vector<1x8x1xf32>
    %357 = vector.broadcast %356 : vector<1x8x1xf32> to vector<1x8x8xf32>
    %358 = arith.mulf %352, %357 : vector<1x8x8xf32>
    %359 = vector.shape_cast %358 : vector<1x8x8xf32> to vector<1x1x8x8xf32>
    %c0_101 = arith.constant 0 : index
    %c1_102 = arith.constant 1 : index
    %c0_103 = arith.constant 0 : index
    %c0_104 = arith.constant 0 : index
    %360 = vector.load %arg7[%c0_101, %c1_102, %c0_103, %c0_104] : memref<1x2x8x8xf32, #tpu.memory_space<vmem>>, vector<1x1x8x8xf32>
    tpu.vector_store %arg7[%c0_101, %c1_102, %c0_103, %c0_104], %359 {strides = array<i32>} : memref<1x2x8x8xf32, #tpu.memory_space<vmem>>, vector<1x1x8x8xf32>,
    %361 = arith.truncf %358 : vector<1x8x8xf32> to vector<1x8x8xbf16>
    %362 = vector.shape_cast %287 : vector<8x128xf32> to vector<1x8x128xf32>
    %363 = arith.truncf %362 : vector<1x8x128xf32> to vector<1x8x128xbf16>
    "tpu.trace_start"() <{level = 10 : i32, message = "bij,bjp->bip"}> : () -> ()
    %cst_105 = arith.constant dense<0.000000e+00> : vector<1x8x128xf32>
    %364 = tpu.matmul %361, %363, %cst_105 {dimension_numbers = #tpu.dot_dimension_numbers<[2], [1], [1], [2], [0, 0, 0, 1, 1, 2], [0], [0]>} : vector<1x8x8xbf16>, vector<1x8x128xbf16>, vector<1x8x128xf32> -> vector<1x8x128xf32>
    "tpu.trace_stop"() : () -> ()
    %365 = vector.shape_cast %364 : vector<1x8x128xf32> to vector<8x128xf32>
    %cst_106 = arith.constant 0.000000e+00 : f32
    %366 = vector.broadcast %cst_106 : f32 to vector<8x128xf32>
    %367 = arith.select %9, %365, %366 : vector<8x128xi1>, vector<8x128xf32>
    %368 = arith.mulf %367, %367 : vector<8x128xf32>
    %cst_107 = arith.constant dense<0.000000e+00> : vector<8xf32>
    %369 = vector.multi_reduction <add>, %368, %cst_107 [1] : vector<8x128xf32> to vector<8xf32>
    %370 = vector.shape_cast %369 : vector<8xf32> to vector<8x1xf32>
    %cst_108 = arith.constant 9.99999996E-13 : f32
    %371 = vector.broadcast %cst_108 : f32 to vector<8x1xf32>
    %372 = arith.addf %370, %371 : vector<8x1xf32>
    %373 = math.rsqrt %372 : vector<8x1xf32>
    %374 = vector.broadcast %373 : vector<8x1xf32> to vector<8x128xf32>
    %375 = arith.mulf %365, %374 : vector<8x128xf32>
    %376 = arith.select %9, %375, %365 : vector<8x128xi1>, vector<8x128xf32>
    %377 = arith.truncf %376 : vector<8x128xf32> to vector<8x128xbf16>
    %cst_109 = arith.constant dense<0.000000e+00> : vector<8x128xf32>
    %378 = tpu.matmul %377, %6, %cst_109 {dimension_numbers = #tpu.dot_dimension_numbers<[1], [1], [0], [0], [0, 0, 1, 0], [], []>} : vector<8x128xbf16>, vector<128x128xbf16>, vector<8x128xf32> -> vector<8x128xf32>
    %379 = vector.extract_strided_slice %378 {offsets = [0, 8], sizes = [8, 1], strides = [1, 1]} : vector<8x128xf32> to vector<8x1xf32>
    %cst_110 = arith.constant 9.99999997E-7 : f32
    %380 = vector.broadcast %cst_110 : f32 to vector<8x1xf32>
    %381 = arith.addf %379, %380 : vector<8x1xf32>
    %382 = tpu.reciprocal %381 {approx = true} : vector<8x1xf32> -> vector<8x1xf32>
    %383 = vector.broadcast %382 : vector<8x1xf32> to vector<8x128xf32>
    %384 = arith.mulf %378, %383 : vector<8x128xf32>
    %385 = vector.extract_strided_slice %384 {offsets = [0, 8], sizes = [8, 1], strides = [1, 1]} : vector<8x128xf32> to vector<8x1xf32>
    %386 = vector.extract_strided_slice %384 {offsets = [0, 1], sizes = [8, 1], strides = [1, 1]} : vector<8x128xf32> to vector<8x1xf32>
    %387 = arith.subf %385, %386 : vector<8x1xf32>
    %388 = vector.extract_strided_slice %384 {offsets = [0, 2], sizes = [8, 1], strides = [1, 1]} : vector<8x128xf32> to vector<8x1xf32>
    %389 = arith.subf %385, %388 : vector<8x1xf32>
    %cst_111 = arith.constant 9.99999997E-7 : f32
    %390 = vector.broadcast %cst_111 : f32 to vector<8x1xf32>
    %391 = arith.addf %389, %390 : vector<8x1xf32>
    %392 = tpu.reciprocal %391 {approx = true} : vector<8x1xf32> -> vector<8x1xf32>
    %393 = arith.mulf %387, %392 : vector<8x1xf32>
    %cst_112 = arith.constant 9.99999997E-7 : f32
    %394 = vector.broadcast %cst_112 : f32 to vector<8x1xf32>
    %395 = arith.addf %393, %394 : vector<8x1xf32>
    %cst_113 = arith.constant 9.99999997E-7 : f32
    %396 = vector.broadcast %cst_113 : f32 to vector<8x1xf32>
    %397 = arith.mulf %396, %395 : vector<8x1xf32>
    %398 = arith.addf %385, %397 : vector<8x1xf32>
    %399 = tpu.reciprocal %398 {approx = true} : vector<8x1xf32> -> vector<8x1xf32>
    %400 = vector.broadcast %399 : vector<8x1xf32> to vector<8x128xf32>
    %401 = arith.mulf %384, %400 : vector<8x128xf32>
    %402 = vector.shape_cast %401 : vector<8x128xf32> to vector<1x8x128xf32>
    %c0_114 = arith.constant 0 : index
    %c0_115 = arith.constant 0 : index
    %c128 = arith.constant 128 : index
    %403 = vector.load %arg6[%c0_114, %c0_115, %c128] : memref<1x8x256xf32, #tpu.memory_space<vmem>>, vector<1x8x128xf32>
    tpu.vector_store %arg6[%c0_114, %c0_115, %c128], %402 {strides = array<i32>} : memref<1x8x256xf32, #tpu.memory_space<vmem>>, vector<1x8x128xf32>,
    return
  }
  func.func @transform_0(%arg0: i32) -> (i32, i32, i32) {
    %c0_i32 = arith.constant 0 : i32
    %c0_i32_0 = arith.constant 0 : i32
    %c0_i32_1 = arith.constant 0 : i32
    return %arg0, %c0_i32, %c0_i32_0 : i32, i32, i32
  }
  func.func @transform_1(%arg0: i32) -> (i32, i32, i32) {
    %c0_i32 = arith.constant 0 : i32
    %c0_i32_0 = arith.constant 0 : i32
    %c0_i32_1 = arith.constant 0 : i32
    return %arg0, %c0_i32, %c0_i32_0 : i32, i32, i32
  }
  func.func @transform_2(%arg0: i32) -> (i32, i32, i32) {
    %c0_i32 = arith.constant 0 : i32
    %c0_i32_0 = arith.constant 0 : i32
    %c0_i32_1 = arith.constant 0 : i32
    return %arg0, %c0_i32, %c0_i32_0 : i32, i32, i32
  }
  func.func @transform_3(%arg0: i32) -> (i32, i32, i32, i32) {
    %c0_i32 = arith.constant 0 : i32
    %c0_i32_0 = arith.constant 0 : i32
    %c0_i32_1 = arith.constant 0 : i32
    %c0_i32_2 = arith.constant 0 : i32
    %c0_i32_3 = arith.constant 0 : i32
    return %c0_i32, %c0_i32_0, %c0_i32_1, %c0_i32_2 : i32, i32, i32, i32
  }
  func.func @transform_4(%arg0: i32) -> (i32, i32) {
    %c0_i32 = arith.constant 0 : i32
    %c0_i32_0 = arith.constant 0 : i32
    %c0_i32_1 = arith.constant 0 : i32
    return %c0_i32, %c0_i32_0 : i32, i32
  }
  func.func @transform_5(%arg0: i32) -> (i32, i32, i32) {
    %c0_i32 = arith.constant 0 : i32
    %c0_i32_0 = arith.constant 0 : i32
    %c0_i32_1 = arith.constant 0 : i32
    return %arg0, %c0_i32, %c0_i32_0 : i32, i32, i32
  }
  func.func @transform_6(%arg0: i32) -> (i32, i32, i32, i32) {
    %c0_i32 = arith.constant 0 : i32
    %c0_i32_0 = arith.constant 0 : i32
    %c0_i32_1 = arith.constant 0 : i32
    %c0_i32_2 = arith.constant 0 : i32
    return %arg0, %c0_i32, %c0_i32_0, %c0_i32_1 : i32, i32, i32, i32
  }
}

</mosaic_0001>

<bundles_post_ra>
// kernel: custom-call.168
= control target key start
LH: loop header
LB: loop body
LE: loop exit
PB: predicated region body
PF: predicated region fallthrough
CT: control target
= control target key end

     0   :  { %5 = vsyncpa [#allocation6], 0  ;;  %s957_s0 = inlined_call_operand.vmem [shape: f32[2,9,9], index: 0, kind: input, shape index: {}]   ;;  %s958_s1 = inlined_call_operand.vmem [shape: f32[2,9,9], index: 1, kind: output, shape index: {0}]   ;;  %s959_s2 = inlined_call_operand.vmem [shape: s32[2,9], index: 2, kind: output, shape index: {1}]   ;;  %s960_s3 = inlined_call_operand.hbm [shape: s32[2,9], index: 3, kind: output, shape index: {2}]  }
   0x1   :  { %7 = vsyncpa [#allocation6 + $0x1], 0  ;;  %s755_s12 = smov 0   ;;  %s757_s13 = smov 0  }
   0x2   :  { %s759_s14 = smov 0   ;;  %s761_s15 = smov 0  }
   0x3 LB: > { %s776_s16 = sadd.s32 4294967295, %s723_s15   ;;  %s565_s17 = sadd.s32 4294967294, %s723_s15   ;;  %s723_s15 = sphi %s761_s15, %s970_s15   ;;  %s719_s14 = sphi %s759_s14, %s969_s14   ;;  %s715_s13 = sphi %s757_s13, %s968_s13   ;;  %s711_s12 = sphi %s755_s12, %s967_s12  }
   0x4   : > { %s780_s18 = sadd.s32 1, %s723_s15   ;;  %s17_s19 = sshrl.u32 %s723_s15, 3 }
   0x5   : > { %s18_s20 = sshrl.u32 %s780_s18, 3  ;;  %s22_s21 = sadd.s32 1, %s719_s14 }
   0x6   : > { %s19_s22 = ssub.s32 %s17_s19, %s18_s20  ;;  %p32_p0 = scmp.ne.s32.totalorder %s719_s14, %s715_s13 }
   0x7   : > { %p20_p1 = scmp.eq.s32.totalorder %s19_s22, 0  ;;  %p33_p2 = scmp.eq.s32.totalorder %s776_s16, 1 }
   0x8   : > { %p66_p3 = scmp.ne.s32.totalorder %s715_s13, %s711_s12  ;;  %p67_p4 = scmp.eq.s32.totalorder %s565_s17, 1 }
   0x9   : > { %s791_s23 = scalar_select %p20_p1, %s719_s14, %s22_s21  }
   0xa   : > { %p793_p5 = por %p33_p2, %p32_p0  ;;  %p797_p6 = por %p67_p4, %p66_p3 }
   0xb   : > { %p961_p7 = scmp.ge.s32.totalorder %s723_s15, 2 }
   0xc   : > { %s85_s26 = sand.u32 (!%p961_p7), 1, %s723_s15   ;;  %s569_s27 = sshll.u32 (!%p961_p7), %s723_s15, 4 }
   0xd   : > { %83 = sbr.rel (%p961_p7) target bundleno = 20 (0x14), region = 16  ;;  %s568_s28 = sshll.u32 (!%p961_p7), %s85_s26, 4 }
   0xe   : > { %s89_s4 = scalar_lea.vmem (!%p961_p7), %s957_s0, %s569_s27  ;;  %s87_s5 = scalar_lea.vmem (!%p961_p7), [#allocation0], %s568_s28 }
   0xf   : > { %v102_v0 = vld [vmem:[%s89_s4] sm:$0xff] (!%p961_p7)  ;;  %v104_v1 = vld [vmem:[%s89_s4 + $0x8] sm:$0xff] (!%p961_p7) }
  0x10   : > { %103 = vst [vmem:[%s87_s5] sm:$0xff] (!%p961_p7), %v102_v0  ;;  %105 = vst [vmem:[%s87_s5 + $0x8] sm:$0xff] (!%p961_p7), %v104_v1 }
  0x14 PF: > { %p570_p8 = scmp.ge.s32.totalorder %s723_s15, 1  ;;  %p110_p9 = scmp.lt.s32.totalorder %s723_s15, 3 }
  0x16   : > { %p111_p10 = pnand %p570_p8, %p110_p9 }
  0x18   : > { %114 = sbr.rel (%p111_p10) target bundleno = 467 (0x1d3), region = 39 }
  0x1f   : > { %s117_s6 = sand.u32 1, %s776_s16   ;;  %s131_s7 = sand.u32 1, %s715_s13   ;;  %v154_v2 = vlaneseq  ;;  %v733_v6 = vmov 0  }
  0x20   : > { %s571_s8 = sshll.u32 %s117_s6, 4  ;;  %s815_s9 = sshll.u32 %s131_s7, 1 }
  0x21   : > { %v818_v3 = vshrl.u32 %v154_v2, 7  ;;  %s119_s10 = scalar_lea.vmem [#allocation0], %s571_s8  ;;  %s820_s11 = scalar_lea.vmem [#allocation1], %s571_s8 }
  0x22   : > { %v143_v4 = vld [vmem:[%s119_s10] sm:$0xff]  ;;  %v575_v5 = vld [vmem:[%s119_s10 + $0x8] sm:$0xff]  ;;  %s149_s17 = sand.u32 7, %s776_s16   ;;  %s133_s20 = scalar_lea.vmem [#allocation3], %s815_s9 }
  0x23   : > { %144 = vst [vmem:[%s820_s11] sm:$0xff] %v143_v4  ;;  %576 = vst [vmem:[%s820_s11 + $0x8] sm:$0xff] %v575_v5  ;;  %s825_s19 = scalar_lea.vmem [#allocation2], %s149_s17  ;;  %s140_s21 = scalar_lea.vmem [#allocation5], %s815_s9 }
  0x24   : > { %153 = vst [vmem:[%s825_s19] sm:$0x1] %v733_v6  ;;  %s830_s22 = scalar_lea.vmem [#allocation4], %s149_s17  ;;  %s725_s26 = smov 0  }
  0x25 LB: >> { %s577_s27 = sshll.u32 %s727_s26, 3  ;;  %s162_s26 = sadd.s32 1, %s727_s26   ;;  %s727_s26 = sphi %s725_s26, %s162_s26  }
  0x26   : >> { %v166_v7 = vstv %s577_s27  ;;  %s164_s28 = scalar_lea.vmem [#allocation7], %s577_s27  ;;  %p159_p11 = scmp.ge.s32.totalorder %s162_s26, 2  }
  0x27   : >> { %v167_v8 = vadd.s32 %v166_v7, %v818_v3  ;;  %s833_s29 = smov (%p159_p11), 0  }
  0x28   : > { %161 = sbr.rel (!%p159_p11) target bundleno = 37 (0x25), region = 191 }
  0x29   : >> { %168 = vst [vmem:[%s164_s28] sm:$0xff] %v167_v8 }
  0x2f LB: >> { %v179_v9 = vld [vmem:[%s820_s11] sm:$0xff]  ;;  %v580_v10 = vld [vmem:[%s820_s11 + $0x8] sm:$0xff]  ;;  %v841_v11 = vadd.s32 8, %v818_v3  ;;  %v844_v13 = vstv %s731_s29  ;;  %s237_s30 = ssub.s32 128, %s731_s29  ;;  %v243_v46 = vand.u32 127, %v154_v2  ;;  %s249_s4 = scalar_lea.vmem %s820_s11, %s731_s29 [#allocation1]  ;;  %s731_s29 = sphi %s833_s29, %s174_s29  }
  0x30   : >> { %v180_v12 = vand.u32 2147483647, %v179_v9  ;;  %v192_v14 = vand.u32 2147483647, %v580_v10  ;;  %vm183_vm1 = vcmp.ge.s32.totalorder %v818_v3, %v844_v13  ;;  %v246_v49 = vld [vmem:[%s825_s19] ss:$0 sm:$0xff] }
  0x31   : >> { %vm196_vm0 = vcmp.lt.s32.totalorder %v841_v11, 9  ;;  %vm195_vm3 = vcmp.ge.s32.totalorder %v841_v11, %v844_v13  ;;  %vm267_vm15 = vcmp.gt.s32.totalorder %v243_v46, %v844_v13  ;;  %v251_v50 = vld [vmem:[%s249_s4] ss:$0 sm:$0xff]  ;;  %s255_s6 = scalar_lea.vmem [#allocation7], %s731_s29  ;;  %s174_s29 = sadd.s32 1, %s731_s29  }
  0x32   : >> { %vm579_vm2 = vcmp.gt.f32.partialorder %v180_v12, -inf  ;;  %vm197_vm5 = vmand %vm195_vm3, %vm196_vm0  ;;  %vm290_vm0 = vcmp.gt.s32.totalorder %v841_v11, %v844_v13  ;;  %v257_v51 = vld [vmem:[%s255_s6] ss:$0 sm:$0xff]  ;;  %p171_p12 = scmp.ge.s32.totalorder %s174_s29, 9  }
  0x33   : >> { %vm187_vm4 = vmand %vm183_vm1, %vm579_vm2  ;;  %vm244_vm1 = vcmp.eq.s32.totalorder %v243_v46, %v844_v13  ;;  %s586_s17 = sshll.u32 (%p171_p12), %s776_s16, 4 }
  0x34   : >> { %v188_v15 = vsel %vm187_vm4, %v818_v3, %v844_v13  ;;  %v189_v16 = vsel %vm187_vm4, %v180_v12, -inf  ;;  %vm865_vm2 = vmand %vm290_vm0, %vm244_vm1  ;;  %vm275_vm4 = vcmp.gt.s32.totalorder %v818_v3, %v844_v13  ;;  %s377_s28 = scalar_lea.vmem (%p171_p12), %s958_s1, %s586_s17 }
  0x35   : >> { %vm198_vm6 = vcmp.lt.f32.partialorder %v189_v16, %v192_v14 }
  0x36   : >> { %vm199_vm7 = vmand %vm197_vm5, %vm198_vm6 }
  0x37   : >> { %v200_v17 = vsel %vm199_vm7, %v841_v11, %v188_v15  ;;  %v201_v18 = vsel %vm199_vm7, %v192_v14, %v189_v16  ;;  %vm279_vm6 = vmand %vm275_vm4, %vm244_vm1 }
  0x38   : >> { %v202_v19 = vrot.slane %v201_v18, 1  ;;  %v203_v20 = vrot.slane %v200_v17, 1 }
  0x3a   : >> { %vm204_vm8 = vcmp.ge.f32.partialorder %v202_v19, %v201_v18  ;;  %v207_v21 = vrot.slane %v202_v19, 1  ;;  %v208_v22 = vrot.slane %v203_v20, 1 }
  0x3b   : >> { %v205_v23 = vsel %vm204_vm8, %v202_v19, %v201_v18  ;;  %v206_v24 = vsel %vm204_vm8, %v203_v20, %v200_v17 }
  0x3c   : >> { %vm209_vm9 = vcmp.ge.f32.partialorder %v207_v21, %v205_v23  ;;  %v212_v25 = vrot.slane %v207_v21, 1  ;;  %v213_v26 = vrot.slane %v208_v22, 1 }
  0x3d   : >> { %v210_v27 = vsel %vm209_vm9, %v207_v21, %v205_v23  ;;  %v211_v28 = vsel %vm209_vm9, %v208_v22, %v206_v24 }
  0x3e   : >> { %vm214_vm10 = vcmp.ge.f32.partialorder %v212_v25, %v210_v27  ;;  %v217_v29 = vrot.slane %v212_v25, 1  ;;  %v218_v30 = vrot.slane %v213_v26, 1 }
  0x3f   : >> { %v215_v31 = vsel %vm214_vm10, %v212_v25, %v210_v27  ;;  %v216_v32 = vsel %vm214_vm10, %v213_v26, %v211_v28 }
  0x40   : >> { %vm219_vm11 = vcmp.ge.f32.partialorder %v217_v29, %v215_v31  ;;  %v222_v33 = vrot.slane %v217_v29, 1  ;;  %v223_v34 = vrot.slane %v218_v30, 1 }
  0x41   : >> { %v220_v35 = vsel %vm219_vm11, %v217_v29, %v215_v31  ;;  %v221_v36 = vsel %vm219_vm11, %v218_v30, %v216_v32 }
  0x42   : >> { %vm224_vm12 = vcmp.ge.f32.partialorder %v222_v33, %v220_v35  ;;  %v227_v37 = vrot.slane %v222_v33, 1  ;;  %v228_v38 = vrot.slane %v223_v34, 1 }
  0x43   : >> { %v225_v39 = vsel %vm224_vm12, %v222_v33, %v220_v35  ;;  %v226_v40 = vsel %vm224_vm12, %v223_v34, %v221_v36 }
  0x44   : >> { %vm229_vm13 = vcmp.ge.f32.partialorder %v227_v37, %v225_v39  ;;  %v232_v41 = vrot.slane %v227_v37, 1  ;;  %v233_v42 = vrot.slane %v228_v38, 1 }
  0x45   : >> { %v230_v43 = vsel %vm229_vm13, %v227_v37, %v225_v39  ;;  %v231_v44 = vsel %vm229_vm13, %v228_v38, %v226_v40 }
  0x46   : >> { %vm234_vm14 = vcmp.ge.f32.partialorder %v232_v41, %v230_v43 }
  0x47   : >> { %v236_v45 = vsel %vm234_vm14, %v233_v42, %v231_v44 }
  0x48   : >> { %238 = vrot.lane.b32.xlu0 %v236_v45, %s237_s30 }
  0xba   : >> { %v239_v48 = vpop.permute.xlu0 %238 }
  0xbb   : >> { %591 = vpush %v239_v48 }
  0xec   : >> { %s592_s5 = spop %591 }
  0xed   : >> { %v245_v52 = vstv %s592_s5  ;;  %s250_s8 = scalar_lea.vmem %s820_s11, %s592_s5 [#allocation1]  ;;  %s256_s10 = scalar_lea.vmem [#allocation7], %s592_s5 }
  0xee   : >> { %v247_v53 = vsel %vm244_vm1, %v245_v52, %v246_v49  ;;  %v252_v54 = vld [vmem:[%s250_s8] ss:$0 sm:$0xff] }
  0xef   : >> { %v258_v55 = vld [vmem:[%s256_s10] ss:$0 sm:$0xff]  ;;  %248 = vst [vmem:[%s825_s19] sm:$0x1] %v247_v53  ;;  %253 = vst [vmem:[%s250_s8] sm:$0x1] %v251_v50  ;;  %vm261_vm3 = vcmp.ne.f32.partialorder %v252_v54, 0.0  ;;  %v268_v5 = vsel %vm267_vm15, %v252_v54, 0.0 }
  0xf0   : >> { %259 = vst [vmem:[%s256_s10] sm:$0x1] %v257_v51  ;;  %254 = vst [vmem:[%s249_s4] sm:$0x1] %v252_v54  ;;  %s910_s19 = scalar_lea.sflag (%p171_p12), [#allocation6], %s131_s7 }
  0xf1   : >> { %260 = vst [vmem:[%s255_s6] sm:$0x1] %v258_v55  ;;  %vm262_vm5 = vmand %vm244_vm1, %vm261_vm3 }
  0xf2   : >> { %v263_v56 = vsel %vm262_vm5, %v252_v54, 1.0 }
  0xf3   : >> { %v291_v57 = vsel %vm290_vm0, %v263_v56, 1.0  ;;  %v276_v58 = vsel %vm275_vm4, %v263_v56, 1.0 }
  0xf4   : >> { %649 = vrcp.f32 %v291_v57 }
  0xf5   : >> { %651 = vrcp.f32 %v276_v58 }
  0xf6   : > { %v354_v14 = vld [vmem:[#allocation2] sm:$0x3] (%p171_p12) }
  0xf7   : >> { %v581_v60 = vld [vmem:[%s820_s11 + $0x8] sm:$0xff]  ;;  %v272_v63 = vld [vmem:[%s820_s11] sm:$0xff]  ;;  %356 = vst [vmem:[%s133_s20] sm:$0x3] (%p171_p12), %v354_v14 }
  0xf8   : > { %v301_v12 = vld [vmem:[#allocation7] sm:$0xff] (%p171_p12)  ;;  %v303_v13 = vld [vmem:[#allocation7 + $0x8] sm:$0xff] (%p171_p12) }
  0xfe   : >> { %v650_v59 = vpop.eup %649 }
  0xff   : >> { %v652_v61 = vpop.eup %651  ;;  %v293_v62 = vmul.f32 %v650_v59, %v581_v60 }
 0x100   : >> { %v278_v0 = vmul.f32 %v652_v61, %v272_v63 }
 0x101   : >> { %v295_v1 = vsel %vm865_vm2, %v293_v62, 0.0 }
 0x102   : >> { %296 = vadd.xlane.f32.xlu1 %v295_v1  ;;  %v280_v4 = vsel %vm279_vm6, %v278_v0, 0.0 }
 0x103   : >> { %281 = vadd.xlane.f32.xlu0 %v280_v4 }
 0x130   : > { %318 = vxpose.xlu0.b32.start [1/2] (short) (narrow) (%p171_p12), %v301_v12, 8 }
 0x134   : > { %319 = vxpose.xlu0.b32.end [2/2] (short) (narrow) (%p171_p12), %v303_v13, 8 }
 0x18f   : >> { %v297_v6 = vpop.xlane.xlu1 %296  ;;  %173 = sbr.rel (!%p171_p12) target bundleno = 47 (0x2f), region = 202 }
 0x190   : >> { %v298_v7 = vmul.f32 %v297_v6, %v268_v5  ;;  %v282_v8 = vpop.xlane.xlu0 %281 }
 0x191   : >> { %v283_v9 = vmul.f32 %v282_v8, %v268_v5 }
 0x192   : >> { %v299_v10 = vsub.f32 %v293_v62, %v298_v7 }
 0x193   : >> { %v284_v11 = vsub.f32 %v278_v0, %v283_v9 }
 0x194   : >> { %582 = vst [vmem:[%s820_s11 + $0x8] sm:$0xff] %v299_v10 }
 0x195   : >> { %285 = vst [vmem:[%s820_s11] sm:$0xff] %v284_v11 }
 0x196   : > { %s400_s29 = sshrl.u32 (%p793_p5), %s776_s16, 3  ;;  %v418_v17 = vld [vmem:[%s133_s20] sm:$0x3] (%p793_p5) }
 0x19b   : > { %v392_v16 = vld [vmem:[%s820_s11 + $0x8] sm:$0xff] }
 0x19c   : > { %v390_v15 = vld [vmem:[%s820_s11] sm:$0xff]  ;;  %393 = vst [vmem:[%s377_s28 + $0x8] sm:$0xff] %v392_v16  ;;  %s587_s11 = sshll.u32 (%p793_p5), %s400_s29, 1 }
 0x19d   : > { %391 = vst [vmem:[%s377_s28] sm:$0xff] %v390_v15  ;;  %s402_s5 = scalar_lea.vmem (%p793_p5), %s959_s2, %s587_s11 }
 0x19e   : > { %419 = vst [vmem:[%s402_s5] sm:$0x3] (%p793_p5), %v418_v17 }
 0x1b0   : > { %v334_v2 = vpop.trf.xlu0 }
 0x1b1   : > { %350 = vst [vmem:[%s830_s22] sm:$0x1] %v334_v2 }
 0x1b3   : > { %399 = sbr.rel (!%p793_p5) target bundleno = 442 (0x1ba), region = 76 }
 0x1b8   : > { %v360_v3 = vld [vmem:[#allocation4] sm:$0x3] }
 0x1b9   : > { %362 = vst [vmem:[%s140_s21] sm:$0x3] %v360_v3 }
 0x1ba PF: > { %s437_s7 = sshrl.u32 %s776_s16, 3  ;;  %s444_s22 = sshll.u32 %s140_s21, 4  ;;  %s445_s22 = int_to_ptr.vmem [resolvable:$true] %s444_s22 }
 0x1bb   : > { %s588_s6 = sshll.u32 %s437_s7, 5  ;;  %s653_s20 = scalar_lea.vmem %s445_s22, 32 }
 0x1bc   : > { %s442_s17 = scalar_lea.hbm %s960_s3, %s588_s6  ;;  %p654_p13 = scmp.ne.s32.totalorder %s445_s22, %s653_s20 }
 0x1bd   : > { %s734_s26 = smov [#allocation5]  }
 0x1be   : > { %p655_p0 = pnand %p654_p13, %p793_p5  ;;  %s657_s27 = sshll.u32 %s734_s26, 4  ;;  %s658_s27 = int_to_ptr.vmem [resolvable:$false] %s657_s27 }
 0x1bf   : > { %s659_s28 = scalar_lea.vmem %s658_s27, 64  ;;  %p660_p2 = scmp.lt.s32.totalorder %s445_s22, %s658_s27 }
 0x1c0   : > { %p656_p1 = pneg %p655_p0  ;;  %p661_p3 = scmp.lt.s32.totalorder %s659_s28, %s653_s20 }
 0x1c2   : > { %p662_p4 = por %p661_p3, %p660_p2 }
 0x1c4   : > { %p663_p8 = pnand %p662_p4, %p656_p1 }
 0x1c6   : > { %666 = shalt.err (!%p663_p8)
}
 0x1c7   : > { %s667_s16 = scalar_lea.hbm %s442_s17, 32  ;;  %s671_s29 = scalar_lea.hbm %s960_s3, 32 }
 0x1c8   : > { %p668_p9 = scmp.ne.s32.totalorder %s442_s17, %s667_s16  ;;  %p672_p12 = scmp.lt.u32.totalorder %s442_s17, %s960_s3 }
 0x1c9   : > { %p673_p13 = scmp.lt.u32.totalorder %s671_s29, %s667_s16  ;;  %p675_p7 = scmp.lt.u32.totalorder %s667_s16, %s442_s17 }
 0x1ca   : > { %p669_p10 = pnand %p668_p9, %p793_p5 }
 0x1cb   : > { %p674_p0 = por %p673_p13, %p672_p12 }
 0x1cc   : > { %p670_p11 = pneg %p669_p10 }
 0x1cd   : > { %p676_p2 = por %p675_p7, %p674_p0 }
 0x1cf   : > { %p677_p1 = pnand %p676_p2, %p670_p11 }
 0x1d1   : > { %680 = shalt.err (!%p677_p1)
}
 0x1d2   : > { %593 = dma.vmem_to_hbm [thread:$0]  (%p793_p5), %s445_s22, 32, %s442_s17, %s910_s19  }
 0x1d3 PF: > { %s467_s4 = sand.u32 1, %s711_s12   ;;  %p966_p3 = scmp.ge.s32.totalorder %s723_s15, 2 }
 0x1d4   : > { %s468_s5 = scalar_lea.sflag [#allocation6], %s467_s4 }
 0x1d5   : > { %p596_p4 = pnand %p966_p3, %p797_p6 }
 0x1d7   : > { %706 = dma.done.wait (!%p596_p4), %s468_s5, 32  }
 0x1d8   : > { %708 = vsyncadd (!%p596_p4), %s468_s5, 4294967264  ;;  %p10_p7 = scmp.ge.s32.totalorder %s780_s18, 4   ;;  %s967_s12 = smov %s715_s13 }
 0x1d9   : > { %s968_s13 = smov %s719_s14  ;;  %s969_s14 = smov %s791_s23 }
 0x1da   : > { %s970_s15 = smov %s780_s18  ;;  %12 = sbr.rel (!%p10_p7) target bundleno = 3 (0x3), region = 213 }
 0x1e1   :  { %473 = vsyncpa [#allocation6], 1 }
 0x1e2   :  { %475 = vsyncpa [#allocation6 + $0x1], 1 }

// kernel: custom-call.209
= control target key start
LH: loop header
LB: loop body
LE: loop exit
PB: predicated region body
PF: predicated region fallthrough
CT: control target
= control target key end

     0   :  { %s736_s9 = smov 0   ;;  %s738_s10 = smov 0   ;;  %s918_s0 = inlined_call_operand.vmem [shape: f32[2,16,8], index: 0, kind: input, shape index: {}]   ;;  %s919_s1 = inlined_call_operand.vmem [shape: f32[2,16,8], index: 1, kind: output, shape index: {0}]   ;;  %s920_s2 = inlined_call_operand.vmem [shape: f32[2,8], index: 2, kind: output, shape index: {1}]  }
   0x1   :  { %s740_s11 = smov 0   ;;  %s742_s12 = smov 0  }
   0x2   :  { %s744_s13 = smov 0  }
   0x3 LB: > { %s28_s14 = sadd.s32 1, %s709_s12  ;;  %s578_s15 = sadd.s32 4294967295, %s713_s13   ;;  %s713_s13 = sphi %s744_s13, %s9_s13   ;;  %s709_s12 = sphi %s742_s12, %s927_s12   ;;  %s705_s11 = sphi %s740_s11, %s926_s11   ;;  %s701_s10 = sphi %s738_s10, %s925_s10   ;;  %s697_s9 = sphi %s736_s9, %s924_s9  }
   0x4   : > { %p30_p0 = scmp.ge.s32.totalorder %s28_s14, 2  ;;  %s33_s16 = ssub.s32 0, %s709_s12 }
   0x5   : > { %s580_s17 = smin.u32 %s709_s12, %s33_s16  ;;  %p57_p1 = scmp.ne.s32.totalorder %s701_s10, %s697_s9 }
   0x6   : > { %s929_s14 = smov (%p30_p0, %s28_s14), 0  ;;  %s35_s18 = sshrl.u32 %s580_s17, 3 }
   0x7   : > { %s39_s19 = ssub.s32 0, %s929_s14  ;;  %p58_p2 = scmp.eq.s32.totalorder %s578_s15, 1 }
   0x8   : > { %s581_s20 = smin.u32 %s39_s19, %s929_s14  ;;  %s47_s24 = sadd.s32 1, %s701_s10 }
   0x9   : > { %s41_s21 = sshrl.u32 %s581_s20, 3  ;;  %p773_p3 = por %p58_p2, %p57_p1 }
   0xa   : > { %s44_s23 = ssub.s32 %s35_s18, %s41_s21  ;;  %p583_p5 = scmp.ge.s32.totalorder %s713_s13, 2 }
   0xb   : > { %p45_p4 = scmp.eq.s32.totalorder %s44_s23, 0  ;;  %s82_s26 = sand.u32 (!%p583_p5), 1, %s713_s13  }
   0xc   : > { %80 = sbr.rel (%p583_p5) target bundleno = 19 (0x13), region = 16  ;;  %s609_s27 = sshll.u32 (!%p583_p5), %s709_s12, 4 }
   0xd   : > { %s779_s25 = scalar_select %p45_p4, %s701_s10, %s47_s24  }
   0xe   : > { %s584_s28 = sshll.u32 (!%p583_p5), %s82_s26, 4  ;;  %s90_s3 = scalar_lea.vmem (!%p583_p5), %s918_s0, %s609_s27 }
   0xf   : > { %v120_v0 = vld [vmem:[%s90_s3] sm:$0xff] (!%p583_p5)  ;;  %v122_v1 = vld [vmem:[%s90_s3 + $0x8] sm:$0xff] (!%p583_p5)  ;;  %s84_s4 = scalar_lea.vmem (!%p583_p5), [#allocation0], %s584_s28 }
  0x10   : > { %121 = vst [vmem:[%s84_s4] sm:$0xff] (!%p583_p5), %v120_v0  ;;  %123 = vst [vmem:[%s84_s4 + $0x8] sm:$0xff] (!%p583_p5), %v122_v1 }
  0x13 PF: > { %p587_p6 = scmp.ge.s32.totalorder %s713_s13, 1  ;;  %p128_p7 = scmp.lt.s32.totalorder %s713_s13, 3 }
  0x15   : > { %p129_p8 = pnand %p587_p6, %p128_p7 }
  0x17   : > { %132 = sbr.rel (%p129_p8) target bundleno = 339 (0x153), region = 54 }
  0x1e   : > { %s135_s5 = sand.u32 1, %s578_s15   ;;  %s149_s6 = sand.u32 1, %s697_s9   ;;  %v719_v4 = vmov 0.0  }
  0x1f   : > { %s588_s7 = sshll.u32 %s135_s5, 4  ;;  %s792_s8 = sshll.u32 %s149_s6, 1 }
  0x20   : > { %s160_s16 = sand.u32 7, %s705_s11   ;;  %s137_s17 = scalar_lea.vmem [#allocation0], %s588_s7 }
  0x21   : > { %v162_v2 = vld [vmem:[%s137_s17] sm:$0xff]  ;;  %v591_v3 = vld [vmem:[%s137_s17 + $0x8] sm:$0xff]  ;;  %s795_s18 = scalar_lea.vmem [#allocation1], %s588_s7  ;;  %s799_s19 = scalar_lea.vmem [#allocation2], %s160_s16 }
  0x22   : > { %163 = vst [vmem:[%s795_s18] sm:$0xff] %v162_v2  ;;  %592 = vst [vmem:[%s795_s18 + $0x8] sm:$0xff] %v591_v3  ;;  %s151_s9 = scalar_lea.vmem [#allocation3], %s792_s8  ;;  %s803_s15 = smov 0  }
  0x23   : > { %168 = vst [vmem:[%s799_s19] sm:$0x1] %v719_v4 }
  0x24 LB: >> { %v176_v5 = vlaneseq  ;;  %v813_v8 = vstv %s717_s15  ;;  %s213_s20 = scalar_lea.vmem %s795_s18, %s717_s15 [#allocation1]  ;;  %s289_s21 = scalar_lea.vmem [#allocation4], %s717_s15  ;;  %s717_s15 = sphi %s803_s15, %s174_s15  }
  0x25   : >> { %s306_s23 = smov [#allocation4] }
  0x26   : >> { %v810_v7 = vshrl.u32 %v176_v5, 7  ;;  %v842_v56 = vand.u32 127, %v176_v5 }
  0x28   : >> { %vm180_vm0 = vcmp.gt.s32.totalorder %v810_v7, %v813_v8  ;;  %v187_v10 = vadd.s32 8, %v810_v7  ;;  %v252_v7 = vmov %v810_v7  ;;  %vm846_vm12 = vcmp.eq.s32.totalorder %v842_v56, %v813_v8 }
  0x29   : >> { %v175_v6 = vld [vmem:[%s795_s18] sm:$0xff]  ;;  %v593_v9 = vld [vmem:[%s795_s18 + $0x8] sm:$0xff]  ;;  %v271_v52 = vadd.s32 8, %v252_v7  ;;  %s249_s18 = smov %s795_s18  ;;  %vm256_vm10 = vcmp.gt.s32.totalorder %v252_v7, %v813_v8  ;;  %v309_v7 = vmov %v810_v7 }
  0x2a   : >> { %v181_v11 = vsel %vm180_vm0, %v175_v6, 0.0  ;;  %vm189_vm1 = vcmp.gt.s32.totalorder %v187_v10, %v813_v8  ;;  %v214_v22 = vld [vmem:[%s213_s20] ss:$0 sm:$0xff]  ;;  %v595_v55 = vld [vmem:[%s249_s18 + $0x8] sm:$0xff]  ;;  %vm342_vm0 = vcmp.gt.s32.totalorder %v842_v56, %v813_v8 }
  0x2b   : >> { %v182_v12 = vmul.f32 %v181_v11, %v181_v11  ;;  %v192_v13 = vsel %vm189_vm1, %v593_v9, 0.0  ;;  %v215_v23 = vand.u32 2147483647, %v214_v22  ;;  %vm240_vm7 = vcmp.lt.f32.partialorder %v214_v22, 0.0  ;;  %v253_v54 = vld [vmem:[%s249_s18] sm:$0xff]  ;;  %s305_s18 = smov %s795_s18 }
  0x2c   : >> { %v193_v14 = vmul.f32 %v192_v13, %v192_v13  ;;  %vm273_vm8 = vcmp.gt.s32.totalorder %v271_v52, %v813_v8  ;;  %vm274_vm9 = vcmp.lt.s32.totalorder %v271_v52, 16  ;;  %v257_v58 = vsel %vm256_vm10, %v253_v54, 0.0  ;;  %v302_v9 = vld [vmem:[%s799_s19] ss:$0 sm:$0xff] }
  0x2d   : >> { %v216_v28 = vmax.f32 %v215_v23, 0.0  ;;  %vm275_vm11 = vmand %vm273_vm8, %vm274_vm9 }
  0x2e   : >> { %v194_v15 = vadd.f32 %v193_v14, %v182_v12  ;;  %v276_v59 = vsel %vm275_vm11, %v595_v55, 0.0  ;;  %v720_v14 = vmov 1.0  }
  0x30   : >> { %v195_v16 = vrot.slane %v194_v15, 4 }
  0x32   : >> { %v196_v17 = vadd.f32 %v195_v16, %v194_v15  ;;  %v314_v15 = vadd.s32 8, %v309_v7  ;;  %v312_v16 = vld [vmem:[%s305_s18] sm:$0xff]  ;;  %v333_v7 = vmov %v810_v7 }
  0x33   : >> { %vm350_vm14 = vcmp.ge.s32.totalorder %v333_v7, %v813_v8 }
  0x34   : >> { %v197_v18 = vrot.slane %v196_v17, 2  ;;  %vm320_vm13 = vcmp.lt.s32.totalorder %v314_v15, 16  ;;  %vm351_vm1 = vmand %vm846_vm12, %vm350_vm14 }
  0x36   : >> { %v198_v19 = vadd.f32 %v197_v18, %v196_v17  ;;  %v597_v17 = vld [vmem:[%s305_s18 + $0x8] sm:$0xff]  ;;  %s329_s18 = smov %s305_s18 }
  0x37   : >> { %s375_s24 = scalar_lea.vmem %s329_s18, %s717_s15  ;;  %s174_s15 = sadd.s32 1, %s717_s15  }
  0x38   : >> { %v199_v20 = vrot.slane %v198_v19, 1  ;;  %p171_p9 = scmp.ge.s32.totalorder %s174_s15, 8  }
  0x39   : > { %s610_s26 = sshll.u32 (%p171_p9), %s705_s11, 4 }
  0x3a   : >> { %v820_v21 = vadd.f32 %v199_v20, %v198_v19  ;;  %s402_s29 = scalar_lea.vmem (%p171_p9), %s919_s1, %s610_s26 }
  0x3c   : >> { %661 = vrsqrt.f32 %v820_v21  ;;  %vm203_vm2 = vcmp.eq.f32.partialorder %v820_v21, inf  ;;  %v206_v25 = vand.u32 2147483648, %v820_v21  ;;  %vm205_vm3 = vcmp.eq.f32.partialorder %v820_v21, 0.0 }
  0x46   : >> { %v662_v24 = vpop.eup %661 }
  0x47   : >> { %v202_v26 = vmul.f32 %v662_v24, %v820_v21 }
  0x49   : >> { %v204_v27 = vsel %vm203_vm2, %v820_v21, %v202_v26 }
  0x4a   : >> { %v207_v29 = vsel %vm205_vm3, %v206_v25, %v204_v27 }
  0x4b   : >> { %v217_v30 = vand.u32 2147483647, %v207_v29  ;;  %v354_v29 = vadd.s32 8, %v333_v7 }
  0x4d   : >> { %v218_v31 = vmax.f32 %v216_v28, %v217_v30  ;;  %vm371_vm15 = vcmp.ge.s32.totalorder %v354_v29, %v813_v8 }
  0x4e   : >> { %vm372_vm2 = vmand %vm846_vm12, %vm371_vm15 }
  0x4f   : >> { %663 = vrcp.f32 %v218_v31  ;;  %vm230_vm6 = vcmp.eq.f32.partialorder %v218_v31, 0.0 }
  0x59   : >> { %v664_v32 = vpop.eup %663 }
  0x5a   : >> { %v220_v33 = vmul.f32 %v664_v32, %v215_v23  ;;  %v223_v34 = vmul.f32 0.0, %v664_v32  ;;  %v227_v35 = vmul.f32 %v664_v32, %v217_v30 }
  0x5c   : >> { %v221_v36 = vmul.f32 %v220_v33, %v220_v33  ;;  %v224_v37 = vmul.f32 %v223_v34, %v223_v34  ;;  %v228_v38 = vmul.f32 %v227_v35, %v227_v35  ;;  %v599_v35 = vld [vmem:[%s329_s18 + $0x8] sm:$0xff] }
  0x5e   : >> { %v225_v39 = vadd.f32 %v224_v37, %v221_v36 }
  0x60   : >> { %v229_v40 = vadd.f32 %v228_v38, %v225_v39 }
  0x62   : >> { %665 = vrsqrt.f32 %v229_v40  ;;  %vm233_vm4 = vcmp.eq.f32.partialorder %v229_v40, inf  ;;  %v236_v42 = vand.u32 2147483648, %v229_v40  ;;  %vm235_vm5 = vcmp.eq.f32.partialorder %v229_v40, 0.0 }
  0x6c   : >> { %v666_v41 = vpop.eup %665 }
  0x6d   : >> { %v232_v43 = vmul.f32 %v666_v41, %v229_v40 }
  0x6f   : >> { %v234_v44 = vsel %vm233_vm4, %v229_v40, %v232_v43 }
  0x70   : >> { %v237_v45 = vsel %vm235_vm5, %v236_v42, %v234_v44 }
  0x71   : >> { %v238_v46 = vmul.f32 %v237_v45, %v218_v31  ;;  %v340_v31 = vld [vmem:[%s329_s18] sm:$0xff] }
  0x73   : >> { %v239_v47 = vsel %vm230_vm6, 0.0, %v238_v46 }
  0x74   : >> { %v241_v48 = vxor.u32 2147483648, %v239_v47 }
  0x76   : >> { %v242_v49 = vsel %vm240_vm7, %v239_v47, %v241_v48 }
  0x77   : >> { %v835_v50 = vsel %vm205_vm3, %v214_v22, %v242_v49  ;;  %667 = vrcp.f32 %v242_v49  ;;  %v243_v53 = vsub.f32 %v242_v49, %v214_v22 }
  0x78   : >> { %v248_v51 = vsub.f32 %v214_v22, %v835_v50 }
  0x7a   : >> { %669 = vrcp.f32 %v248_v51 }
  0x81   : >> { %v668_v57 = vpop.eup %667 }
  0x82   : >> { %v245_v60 = vmul.f32 %v668_v57, %v243_v53 }
  0x84   : >> { %v670_v61 = vpop.eup %669  ;;  %v247_v63 = vsel %vm205_vm3, 0.0, %v245_v60 }
  0x85   : >> { %v259_v0 = vmul.f32 %v670_v61, %v257_v58  ;;  %v278_v1 = vmul.f32 %v670_v61, %v276_v59  ;;  %v295_v2 = vsel %vm846_vm12, %v247_v63, 0.0 }
  0x86   : >> { %296 = vadd.xlane.f32.xlu1 %v295_v2 }
  0x87   : >> { %v260_v3 = vsel %vm205_vm3, 0.0, %v259_v0  ;;  %v279_v4 = vsel %vm205_vm3, 0.0, %v278_v1 }
  0x88   : >> { %v265_v5 = vsel %vm846_vm12, %v260_v3, 0.0  ;;  %v284_v6 = vsel %vm846_vm12, %v279_v4, 0.0 }
  0x89   : >> { %266 = vadd.xlane.f32.xlu0 %v265_v5 }
  0x8d   : >> { %285 = vadd.xlane.f32.xlu0 %v284_v6 }
 0x113   : >> { %v297_v10 = vpop.xlane.xlu1 %296 }
 0x114   : >> { %v303_v11 = vsel %vm846_vm12, %v297_v10, %v302_v9 }
 0x115   : >> { %304 = vst [vmem:[%s799_s19] sm:$0x1] %v303_v11 }
 0x116   : >> { %v267_v12 = vpop.xlane.xlu0 %266 }
 0x117   : >> { %268 = vst [vmem:[#allocation4] sm:$0xff] %v267_v12 }
 0x11a   : >> { %v286_v13 = vpop.xlane.xlu0 %285 }
 0x11b   : >> { %288 = vst [vmem:[#allocation4 + $0x8] sm:$0xff] %v286_v13 }
 0x11c   : >> { %290 = vst [vmem:[%s289_s21] sm:$0x1] %v720_v14  ;;  %v386_v44 = vld [vmem:[#allocation2] sm:$0x3] (%p171_p9) }
 0x11d   : > { %388 = vst [vmem:[%s151_s9] sm:$0x3] (%p171_p9), %v386_v44 }
 0x123   : >> { %v311_v18 = vld [vmem:[%s306_s23] sm:$0xff]  ;;  %v596_v19 = vld [vmem:[%s306_s23 + $0x8] sm:$0xff]  ;;  %s330_s23 = smov %s306_s23 }
 0x124   : >> { %v313_v20 = vmul.f32 %v312_v16, %v311_v18  ;;  %v319_v21 = vmul.f32 %v597_v17, %v596_v19  ;;  %v338_v33 = vld [vmem:[%s330_s23] sm:$0xff]  ;;  %v598_v34 = vld [vmem:[%s330_s23 + $0x8] sm:$0xff] }
 0x126   : >> { %v321_v22 = vsel %vm320_vm13, %v319_v21, 0.0 }
 0x127   : >> { %v322_v23 = vadd.f32 %v321_v22, %v313_v20 }
 0x129   : >> { %v323_v24 = vrot.slane %v322_v23, 4 }
 0x12b   : >> { %v324_v25 = vadd.f32 %v323_v24, %v322_v23 }
 0x12d   : >> { %v325_v26 = vrot.slane %v324_v25, 2 }
 0x12f   : >> { %v326_v27 = vadd.f32 %v325_v26, %v324_v25 }
 0x131   : >> { %v327_v28 = vrot.slane %v326_v27, 1 }
 0x133   : >> { %v328_v30 = vadd.f32 %v327_v28, %v326_v27 }
 0x135   : >> { %v334_v32 = vmul.f32 %v328_v30, %v297_v10 }
 0x137   : >> { %v339_v36 = vmul.f32 %v338_v33, %v334_v32  ;;  %v359_v37 = vmul.f32 %v598_v34, %v334_v32 }
 0x139   : >> { %v343_v38 = vsub.f32 %v340_v31, %v339_v36  ;;  %v364_v7 = vsub.f32 %v599_v35, %v359_v37 }
 0x13b   : >> { %v344_v39 = vsel %vm342_vm0, %v343_v38, %v340_v31  ;;  %v365_v40 = vsel %vm342_vm0, %v364_v7, %v599_v35 }
 0x13c   : >> { %v352_v41 = vsel %vm351_vm1, %v338_v33, %v344_v39  ;;  %v373_v42 = vsel %vm372_vm2, %v598_v34, %v365_v40 }
 0x13d   : >> { %353 = vst [vmem:[%s329_s18] sm:$0xff] %v352_v41  ;;  %600 = vst [vmem:[%s329_s18 + $0x8] sm:$0xff] %v373_v42 }
 0x140   : > { %173 = sbr.rel (!%p171_p9) target bundleno = 36 (0x24), region = 184 }
 0x144   : >> { %v376_v43 = vld [vmem:[%s375_s24] ss:$0 sm:$0xff] }
 0x145   : >> { %v381_v8 = vsel %vm846_vm12, %v835_v50, %v376_v43 }
 0x146   : >> { %382 = vst [vmem:[%s375_s24] sm:$0x1] %v381_v8 }
 0x147   : > { %p442_p10 = scmp.lt.s32.totalorder (%p773_p3), %s705_s11, 0  ;;  %s443_s30 = ssub.s32 (%p773_p3), 0, %s705_s11  ;;  %v465_v47 = vld [vmem:[%s151_s9] sm:$0x3] (%p773_p3) }
 0x148   : > { %441 = sbr.rel (!%p773_p3) target bundleno = 339 (0x153), region = 99  ;;  %s605_s3 = smin.u32 (%p773_p3), %s705_s11, %s443_s30 }
 0x149   : > { %s445_s4 = sshrl.u32 (%p773_p3), %s605_s3, 3 }
 0x14a   : > { %s446_s5 = ssub.s32 (%p773_p3), 0, %s445_s4 }
 0x14d   : > { %v432_v45 = vld [vmem:[%s795_s18] sm:$0xff]  ;;  %v434_v46 = vld [vmem:[%s795_s18 + $0x8] sm:$0xff] }
 0x14e   : > { %433 = vst [vmem:[%s402_s29] sm:$0xff] %v432_v45  ;;  %435 = vst [vmem:[%s402_s29 + $0x8] sm:$0xff] %v434_v46 }
 0x14f   : > { %s931_s5 = smov (!%p442_p10, %s446_s5), %s445_s4 }
 0x150   : > { %s606_s6 = sshll.u32 %s931_s5, 1 }
 0x151   : > { %s449_s17 = scalar_lea.vmem %s920_s2, %s606_s6 }
 0x152   : > { %466 = vst [vmem:[%s449_s17] sm:$0x3] %v465_v47 }
 0x153 PF: > { %s9_s13 = sadd.s32 1, %s713_s13   ;;  %s924_s9 = smov %s701_s10 }
 0x154   : > { %p6_p11 = scmp.ge.s32.totalorder %s9_s13, 4   ;;  %s925_s10 = smov %s779_s25 }
 0x155   : > { %s926_s11 = smov %s709_s12  ;;  %s927_s12 = smov %s929_s14 }
 0x156   :  { %8 = sbr.rel (!%p6_p11) target bundleno = 3 (0x3), region = 195 }

// kernel: custom-call.210
= control target key start
LH: loop header
LB: loop body
LE: loop exit
PB: predicated region body
PF: predicated region fallthrough
CT: control target
= control target key end

     0   :  { %s290_s6 = smov 0   ;;  %s331_s0 = inlined_call_operand.vmem [shape: f32[2,8,8], index: 0, kind: input, shape index: {}]   ;;  %s332_s1 = inlined_call_operand.vmem [shape: f32[2,8,8], index: 1, kind: output, shape index: {}]  }
   0x1 LB: > { %s245_s7 = sadd.s32 4294967295, %s278_s6   ;;  %p247_p0 = scmp.ge.s32.totalorder %s278_s6, 2  ;;  %s278_s6 = sphi %s290_s6, %s7_s6  }
   0x2   : > { %s23_s8 = sand.u32 (!%p247_p0), 1, %s278_s6   ;;  %s249_s9 = sshll.u32 (!%p247_p0), %s278_s6, 3 }
   0x3   : > { %21 = sbr.rel (%p247_p0) target bundleno = 10 (0xa), region = 16  ;;  %s248_s10 = sshll.u32 (!%p247_p0), %s23_s8, 3 }
   0x4   : > { %s27_s13 = scalar_lea.vmem (!%p247_p0), %s331_s0, %s249_s9  ;;  %s25_s14 = scalar_lea.vmem (!%p247_p0), [#allocation0], %s248_s10 }
   0x5   : > { %v55_v0 = vld [vmem:[%s27_s13] sm:$0xff] (!%p247_p0) }
   0x6   : > { %56 = vst [vmem:[%s25_s14] sm:$0xff] (!%p247_p0), %v55_v0 }
   0xa PF: > { %p250_p1 = scmp.ge.s32.totalorder %s278_s6, 1  ;;  %p61_p2 = scmp.lt.s32.totalorder %s278_s6, 3 }
   0xc   : > { %p62_p3 = pnand %p250_p1, %p61_p2 }
   0xd   : > { %s68_s15 = sand.u32 (!%p62_p3), 1, %s245_s7   ;;  %v79_v1 = vlaneseq (!%p62_p3)  ;;  %vm93_vm0 = vcmask (!%p62_p3), 64512   ;;  %s261_s18 = sshll.u32 (!%p62_p3), %s245_s7, 3 }
   0xe   : > { %65 = sbr.rel (%p62_p3) target bundleno = 1036 (0x40c), region = 54  ;;  %s251_s16 = sshll.u32 (!%p62_p3), %s68_s15, 3 }
   0xf   : > { %v80_v2 = vand.u32 (!%p62_p3), 127, %v79_v1  ;;  %v82_v3 = vshrl.u32 (!%p62_p3), %v79_v1, 7  ;;  %s306_s17 = scalar_lea.vmem (!%p62_p3), [#allocation0], %s251_s16  ;;  %s174_s21 = scalar_lea.vmem (!%p62_p3), %s332_s1, %s261_s18 }
  0x10   : > { %v85_v4 = vld [vmem:[%s306_s17] sm:$0xff] (!%p62_p3) }
  0x11   : > { %v253_v5 = vld [vmem:[%s306_s17 + $0x1] ss:$0 sm:$0xff] (!%p62_p3)  ;;  %vm84_vm1 = vcmp.eq.s32.totalorder (!%p62_p3), %v80_v2, %v82_v3  ;;  %vm88_vm2 = vcmp.eq.s32.totalorder (!%p62_p3), %v80_v2, 0  ;;  %v254_v10 = vld [vmem:[%s306_s17 + $0x2] ss:$0 sm:$0xff] (!%p62_p3)  ;;  %vm97_vm3 = vcmp.eq.s32.totalorder (!%p62_p3), %v80_v2, 1 }
  0x12   : > { %v94_v6 = vsel (!%p62_p3), %vm93_vm0, %v253_v5, 0.0  ;;  %v89_v7 = vsel (!%p62_p3), %vm88_vm2, %v85_v4, 1.0  ;;  %v105_v11 = vsel (!%p62_p3), %vm93_vm0, %v254_v10, 0.0  ;;  %v255_v15 = vld [vmem:[%s306_s17 + $0x3] ss:$0 sm:$0xff] (!%p62_p3)  ;;  %vm108_vm4 = vcmp.eq.s32.totalorder (!%p62_p3), %v80_v2, 2 }
  0x13   : > { %v90_v8 = vsel (!%p62_p3), %vm84_vm1, %v89_v7, 0.0  ;;  %v116_v16 = vsel (!%p62_p3), %vm93_vm0, %v255_v15, 0.0  ;;  %v256_v20 = vld [vmem:[%s306_s17 + $0x4] ss:$0 sm:$0xff] (!%p62_p3)  ;;  %vm119_vm5 = vcmp.eq.s32.totalorder (!%p62_p3), %v80_v2, 3  ;;  %vm130_vm6 = vcmp.eq.s32.totalorder (!%p62_p3), %v80_v2, 4 }
  0x14   : > { %v98_v9 = vmul.f32 (!%p62_p3), %v94_v6, %v90_v8  ;;  %v127_v21 = vsel (!%p62_p3), %vm93_vm0, %v256_v20, 0.0  ;;  %v257_v25 = vld [vmem:[%s306_s17 + $0x5] ss:$0 sm:$0xff] (!%p62_p3)  ;;  %v258_v30 = vld [vmem:[%s306_s17 + $0x6] ss:$0 sm:$0xff] (!%p62_p3)  ;;  %vm141_vm7 = vcmp.eq.s32.totalorder (!%p62_p3), %v80_v2, 5 }
  0x15   : > { %v138_v26 = vsel %vm93_vm0, %v257_v25, 0.0  ;;  %v149_v31 = vsel %vm93_vm0, %v258_v30, 0.0  ;;  %v259_v35 = vld [vmem:[%s306_s17 + $0x7] ss:$0 sm:$0xff]  ;;  %vm152_vm8 = vcmp.eq.s32.totalorder %v80_v2, 6  ;;  %vm163_vm9 = vcmp.eq.s32.totalorder %v80_v2, 7 }
  0x16   : > { %99 = vadd.xlane.f32.xlu0 %v98_v9  ;;  %v160_v36 = vsel %vm93_vm0, %v259_v35, 0.0 }
  0xa3   : > { %v100_v12 = vpop.xlane.xlu0 %99 }
  0xa4   : > { %v101_v13 = vsel %vm97_vm3, %v100_v12, %v90_v8 }
  0xa5   : > { %v109_v14 = vmul.f32 %v105_v11, %v101_v13 }
  0xa7   : > { %110 = vadd.xlane.f32.xlu0 %v109_v14 }
 0x134   : > { %v111_v17 = vpop.xlane.xlu0 %110 }
 0x135   : > { %v112_v18 = vsel %vm108_vm4, %v111_v17, %v101_v13 }
 0x136   : > { %v120_v19 = vmul.f32 %v116_v16, %v112_v18 }
 0x138   : > { %121 = vadd.xlane.f32.xlu1 %v120_v19 }
 0x1c5   : > { %v122_v22 = vpop.xlane.xlu1 %121 }
 0x1c6   : > { %v123_v23 = vsel %vm119_vm5, %v122_v22, %v112_v18 }
 0x1c7   : > { %v131_v24 = vmul.f32 %v127_v21, %v123_v23 }
 0x1c9   : > { %132 = vadd.xlane.f32.xlu1 %v131_v24 }
 0x256   : > { %v133_v27 = vpop.xlane.xlu1 %132 }
 0x257   : > { %v134_v28 = vsel %vm130_vm6, %v133_v27, %v123_v23 }
 0x258   : > { %v142_v29 = vmul.f32 %v138_v26, %v134_v28 }
 0x25a   : > { %143 = vadd.xlane.f32.xlu0 %v142_v29 }
 0x2e7   : > { %v144_v32 = vpop.xlane.xlu0 %143 }
 0x2e8   : > { %v145_v33 = vsel %vm141_vm7, %v144_v32, %v134_v28 }
 0x2e9   : > { %v153_v34 = vmul.f32 %v149_v31, %v145_v33 }
 0x2eb   : > { %154 = vadd.xlane.f32.xlu1 %v153_v34 }
 0x378   : > { %v155_v37 = vpop.xlane.xlu1 %154 }
 0x379   : > { %v156_v38 = vsel %vm152_vm8, %v155_v37, %v145_v33 }
 0x37a   : > { %v164_v39 = vmul.f32 %v160_v36, %v156_v38 }
 0x37c   : > { %165 = vadd.xlane.f32.xlu0 %v164_v39 }
 0x409   : > { %v166_v40 = vpop.xlane.xlu0 %165 }
 0x40a   : > { %v167_v41 = vsel %vm163_vm9, %v166_v40, %v156_v38 }
 0x40b   : > { %203 = vst [vmem:[%s174_s21] sm:$0xff] %v167_v41 }
 0x40c PF: > { %s7_s6 = sadd.s32 1, %s278_s6  }
 0x40d   : > { %p4_p4 = scmp.ge.s32.totalorder %s7_s6, 4  }
 0x40f   :  { %6 = sbr.rel (!%p4_p4) target bundleno = 1 (0x1), region = 125 }

// kernel: custom-call.211
= control target key start
LH: loop header
LB: loop body
LE: loop exit
PB: predicated region body
PF: predicated region fallthrough
CT: control target
= control target key end

     0   :  { %s469_s6 = smov 0   ;;  %s471_s7 = smov 0   ;;  %s549_s0 = inlined_call_operand.vmem [shape: f32[2,8,8], index: 0, kind: input, shape index: {}]   ;;  %s550_s1 = inlined_call_operand.vmem [shape: f32[2,8,8], index: 1, kind: output, shape index: {}]  }
   0x1   :  { %s473_s8 = smov 0  }
   0x2 LB: > { %s367_s9 = sadd.s32 4294967295, %s456_s8   ;;  %s26_s10 = sadd.s32 1, %s452_s7  ;;  %s456_s8 = sphi %s473_s8, %s7_s8   ;;  %s452_s7 = sphi %s471_s7, %s552_s7   ;;  %s448_s6 = sphi %s469_s6, %s551_s6  }
   0x3   : > { %p28_p0 = scmp.ge.s32.totalorder %s26_s10, 2  ;;  %p369_p1 = scmp.ge.s32.totalorder %s456_s8, 2 }
   0x4   : > { %s42_s11 = sand.u32 (!%p369_p1), 1, %s456_s8   ;;  %s371_s12 = sshll.u32 (!%p369_p1), %s452_s7, 3 }
   0x5   : > { %s554_s10 = smov (%p28_p0, %s26_s10), 0  ;;  %40 = sbr.rel (%p369_p1) target bundleno = 12 (0xc), region = 16 }
   0x6   : > { %s370_s13 = sshll.u32 (!%p369_p1), %s42_s11, 3  ;;  %s48_s16 = scalar_lea.vmem (!%p369_p1), %s549_s0, %s371_s12 }
   0x7   : > { %v76_v0 = vld [vmem:[%s48_s16] sm:$0xff] (!%p369_p1)  ;;  %s44_s17 = scalar_lea.vmem (!%p369_p1), [#allocation0], %s370_s13 }
   0x8   : > { %77 = vst [vmem:[%s44_s17] sm:$0xff] (!%p369_p1), %v76_v0 }
   0xc PF: > { %p372_p2 = scmp.ge.s32.totalorder %s456_s8, 1  ;;  %p82_p3 = scmp.lt.s32.totalorder %s456_s8, 3 }
   0xe   : > { %p83_p4 = pnand %p372_p2, %p82_p3 }
   0xf   : > { %s89_s18 = sand.u32 (!%p83_p4), 1, %s367_s9   ;;  %v458_v1 = vmov (!%p83_p4), 0.0   ;;  %vm101_vm0 = vcmask (!%p83_p4), 7168   ;;  %vm119_vm1 = vcmask (!%p83_p4), 15368   ;;  %vm136_vm2 = vcmask (!%p83_p4), 1047553   ;;  %s390_s22 = sshll.u32 (!%p83_p4), %s448_s6, 3 }
  0x10   : > { %86 = sbr.rel (%p83_p4) target bundleno = 1377 (0x561), region = 54  ;;  %s373_s19 = sshll.u32 (!%p83_p4), %s89_s18, 3  ;;  %vm137_vm3 = vmand (!%p83_p4), %vm119_vm1, %vm136_vm2  ;;  %vm141_vm4 = vcmask (!%p83_p4), 23568   ;;  %vm158_vm5 = vcmask (!%p83_p4), 1047554   ;;  %vm163_vm7 = vcmask (!%p83_p4), 31768   ;;  %vm180_vm8 = vcmask (!%p83_p4), 1047555  }
  0x11   : > { %s496_s20 = scalar_lea.vmem (!%p83_p4), [#allocation1], %s373_s19  ;;  %s500_s21 = scalar_lea.vmem (!%p83_p4), [#allocation0], %s373_s19  ;;  %vm159_vm6 = vmand (!%p83_p4), %vm141_vm4, %vm158_vm5  ;;  %vm185_vm10 = vcmask (!%p83_p4), 39968   ;;  %vm202_vm11 = vcmask (!%p83_p4), 1047556   ;;  %vm207_vm13 = vcmask (!%p83_p4), 48168   ;;  %vm224_vm14 = vcmask (!%p83_p4), 1047557  }
  0x12   : > { %100 = vst [vmem:[%s496_s20] sm:$0xff] (!%p83_p4), %v458_v1  ;;  %v103_v5 = vld [vmem:[%s500_s21] ss:$0 sm:$0xff] (!%p83_p4)  ;;  %v376_v17 = vld [vmem:[%s500_s21 + $0x1] ss:$0 sm:$0xff] (!%p83_p4)  ;;  %v378_v29 = vld [vmem:[%s500_s21 + $0x2] ss:$0 sm:$0xff] (!%p83_p4)  ;;  %s280_s25 = scalar_lea.vmem (!%p83_p4), %s550_s1, %s390_s22 }
  0x13   : > { %v504_v9 = vld [vmem:[%s500_s21] sm:$0xff] (!%p83_p4)  ;;  %vm181_vm9 = vmand (!%p83_p4), %vm163_vm7, %vm180_vm8  ;;  %vm246_vm1 = vcmask (!%p83_p4), 1047558   ;;  %vm268_vm4 = vcmask (!%p83_p4), 1047559  }
  0x14   : > { %v380_v41 = vld [vmem:[%s500_s21 + $0x3] ss:$0 sm:$0xff] (!%p83_p4)  ;;  %v382_v53 = vld [vmem:[%s500_s21 + $0x4] ss:$0 sm:$0xff] (!%p83_p4)  ;;  %vm203_vm12 = vmand (!%p83_p4), %vm185_vm10, %vm202_vm11 }
  0x15   : > { %v384_v1 = vld [vmem:[%s500_s21 + $0x5] ss:$0 sm:$0xff] (!%p83_p4)  ;;  %vm225_vm15 = vmand (!%p83_p4), %vm207_vm13, %vm224_vm14 }
  0x19   : > { %v102_v2 = vld [vmem:[%s496_s20] ss:$0 sm:$0xff] }
  0x1a   : > { %v104_v3 = vmul.f32 %v102_v2, %v102_v2  ;;  %v111_v4 = vmul.f32 0.0, %v102_v2 }
  0x1c   : > { %105 = vadd.xlane.f32.xlu0 %v104_v3 }
  0x20   : > { %112 = vadd.xlane.f32.xlu0 %v111_v4 }
  0xa9   : > { %v106_v6 = vpop.xlane.xlu0 %105 }
  0xaa   : > { %v107_v7 = vsub.f32 %v103_v5, %v106_v6 }
  0xac   : > { %418 = vrsqrt.f32 %v107_v7 }
  0xad   : > { %v113_v8 = vpop.xlane.xlu0 %112 }
  0xae   : > { %v114_v10 = vsub.f32 %v504_v9, %v113_v8 }
  0xb6   : > { %v419_v11 = vpop.eup %418 }
  0xb7   : > { %v115_v12 = vmul.f32 %v419_v11, %v114_v10 }
  0xb9   : > { %v116_v13 = vsel %vm101_vm0, %v115_v12, 0.0  ;;  %vm229_vm0 = vcmask 56368  }
  0xba   : > { %118 = vst [vmem:[%s496_s20] sm:$0xff] %v116_v13  ;;  %vm247_vm2 = vmand %vm229_vm0, %vm246_vm1 }
  0xc1   : > { %v375_v14 = vld [vmem:[%s496_s20 + $0x1] ss:$0 sm:$0xff] }
  0xc2   : > { %v124_v15 = vmul.f32 %v375_v14, %v375_v14  ;;  %v131_v16 = vmul.f32 %v375_v14, %v116_v13  ;;  %v386_v14 = vld [vmem:[%s500_s21 + $0x6] ss:$0 sm:$0xff] }
  0xc4   : > { %125 = vadd.xlane.f32.xlu1 %v124_v15 }
  0xc8   : > { %132 = vadd.xlane.f32.xlu1 %v131_v16 }
 0x151   : > { %v126_v18 = vpop.xlane.xlu1 %125 }
 0x152   : > { %v127_v19 = vsub.f32 %v376_v17, %v126_v18 }
 0x154   : > { %420 = vrsqrt.f32 %v127_v19 }
 0x155   : > { %v133_v20 = vpop.xlane.xlu1 %132 }
 0x156   : > { %v134_v21 = vsub.f32 %v504_v9, %v133_v20 }
 0x15e   : > { %v421_v22 = vpop.eup %420 }
 0x15f   : > { %v135_v23 = vmul.f32 %v421_v22, %v134_v21 }
 0x161   : > { %v138_v24 = vsel %vm137_vm3, %v135_v23, 0.0  ;;  %vm251_vm3 = vcmask 64568  }
 0x162   : > { %v139_v25 = vadd.f32 %v138_v24, %v116_v13  ;;  %vm269_vm5 = vmand %vm251_vm3, %vm268_vm4 }
 0x164   : > { %140 = vst [vmem:[%s496_s20] sm:$0xff] %v139_v25 }
 0x16b   : > { %v377_v26 = vld [vmem:[%s496_s20 + $0x2] ss:$0 sm:$0xff] }
 0x16c   : > { %v153_v27 = vmul.f32 %v377_v26, %v139_v25  ;;  %v146_v28 = vmul.f32 %v377_v26, %v377_v26  ;;  %v388_v26 = vld [vmem:[%s500_s21 + $0x7] ss:$0 sm:$0xff] }
 0x16e   : > { %154 = vadd.xlane.f32.xlu1 %v153_v27  ;;  %147 = vadd.xlane.f32.xlu0 %v146_v28 }
 0x1fb   : > { %v148_v30 = vpop.xlane.xlu0 %147  ;;  %v155_v32 = vpop.xlane.xlu1 %154 }
 0x1fc   : > { %v149_v31 = vsub.f32 %v378_v29, %v148_v30  ;;  %v156_v33 = vsub.f32 %v504_v9, %v155_v32 }
 0x1fe   : > { %422 = vrsqrt.f32 %v149_v31 }
 0x208   : > { %v423_v34 = vpop.eup %422 }
 0x209   : > { %v157_v35 = vmul.f32 %v423_v34, %v156_v33 }
 0x20b   : > { %v160_v36 = vsel %vm159_vm6, %v157_v35, 0.0 }
 0x20c   : > { %v161_v37 = vadd.f32 %v160_v36, %v139_v25 }
 0x20e   : > { %162 = vst [vmem:[%s496_s20] sm:$0xff] %v161_v37 }
 0x215   : > { %v379_v38 = vld [vmem:[%s496_s20 + $0x3] ss:$0 sm:$0xff] }
 0x216   : > { %v175_v39 = vmul.f32 %v379_v38, %v161_v37  ;;  %v168_v40 = vmul.f32 %v379_v38, %v379_v38 }
 0x218   : > { %176 = vadd.xlane.f32.xlu1 %v175_v39  ;;  %169 = vadd.xlane.f32.xlu0 %v168_v40 }
 0x2a5   : > { %v170_v42 = vpop.xlane.xlu0 %169  ;;  %v177_v44 = vpop.xlane.xlu1 %176 }
 0x2a6   : > { %v171_v43 = vsub.f32 %v380_v41, %v170_v42  ;;  %v178_v45 = vsub.f32 %v504_v9, %v177_v44 }
 0x2a8   : > { %424 = vrsqrt.f32 %v171_v43 }
 0x2b2   : > { %v425_v46 = vpop.eup %424 }
 0x2b3   : > { %v179_v47 = vmul.f32 %v425_v46, %v178_v45 }
 0x2b5   : > { %v182_v48 = vsel %vm181_vm9, %v179_v47, 0.0 }
 0x2b6   : > { %v183_v49 = vadd.f32 %v182_v48, %v161_v37 }
 0x2b8   : > { %184 = vst [vmem:[%s496_s20] sm:$0xff] %v183_v49 }
 0x2bf   : > { %v381_v50 = vld [vmem:[%s496_s20 + $0x4] ss:$0 sm:$0xff] }
 0x2c0   : > { %v197_v51 = vmul.f32 %v381_v50, %v183_v49  ;;  %v190_v52 = vmul.f32 %v381_v50, %v381_v50 }
 0x2c2   : > { %198 = vadd.xlane.f32.xlu1 %v197_v51  ;;  %191 = vadd.xlane.f32.xlu0 %v190_v52 }
 0x34f   : > { %v192_v54 = vpop.xlane.xlu0 %191  ;;  %v199_v56 = vpop.xlane.xlu1 %198 }
 0x350   : > { %v193_v55 = vsub.f32 %v382_v53, %v192_v54  ;;  %v200_v57 = vsub.f32 %v504_v9, %v199_v56 }
 0x352   : > { %426 = vrsqrt.f32 %v193_v55 }
 0x35c   : > { %v427_v58 = vpop.eup %426 }
 0x35d   : > { %v201_v59 = vmul.f32 %v427_v58, %v200_v57 }
 0x35f   : > { %v204_v60 = vsel %vm203_vm12, %v201_v59, 0.0 }
 0x360   : > { %v205_v61 = vadd.f32 %v204_v60, %v183_v49 }
 0x362   : > { %206 = vst [vmem:[%s496_s20] sm:$0xff] %v205_v61 }
 0x369   : > { %v383_v62 = vld [vmem:[%s496_s20 + $0x5] ss:$0 sm:$0xff] }
 0x36a   : > { %v219_v63 = vmul.f32 %v383_v62, %v205_v61  ;;  %v212_v0 = vmul.f32 %v383_v62, %v383_v62 }
 0x36c   : > { %220 = vadd.xlane.f32.xlu1 %v219_v63  ;;  %213 = vadd.xlane.f32.xlu0 %v212_v0 }
 0x3f9   : > { %v214_v2 = vpop.xlane.xlu0 %213  ;;  %v221_v4 = vpop.xlane.xlu1 %220 }
 0x3fa   : > { %v215_v3 = vsub.f32 %v384_v1, %v214_v2  ;;  %v222_v5 = vsub.f32 %v504_v9, %v221_v4 }
 0x3fc   : > { %428 = vrsqrt.f32 %v215_v3 }
 0x406   : > { %v429_v6 = vpop.eup %428 }
 0x407   : > { %v223_v7 = vmul.f32 %v429_v6, %v222_v5 }
 0x409   : > { %v226_v8 = vsel %vm225_vm15, %v223_v7, 0.0 }
 0x40a   : > { %v227_v10 = vadd.f32 %v226_v8, %v205_v61 }
 0x40c   : > { %228 = vst [vmem:[%s496_s20] sm:$0xff] %v227_v10 }
 0x413   : > { %v385_v11 = vld [vmem:[%s496_s20 + $0x6] ss:$0 sm:$0xff] }
 0x414   : > { %v241_v12 = vmul.f32 %v385_v11, %v227_v10  ;;  %v234_v13 = vmul.f32 %v385_v11, %v385_v11 }
 0x416   : > { %242 = vadd.xlane.f32.xlu1 %v241_v12  ;;  %235 = vadd.xlane.f32.xlu0 %v234_v13 }
 0x4a3   : > { %v236_v15 = vpop.xlane.xlu0 %235  ;;  %v243_v17 = vpop.xlane.xlu1 %242 }
 0x4a4   : > { %v237_v16 = vsub.f32 %v386_v14, %v236_v15  ;;  %v244_v18 = vsub.f32 %v504_v9, %v243_v17 }
 0x4a6   : > { %430 = vrsqrt.f32 %v237_v16 }
 0x4b0   : > { %v431_v19 = vpop.eup %430 }
 0x4b1   : > { %v245_v20 = vmul.f32 %v431_v19, %v244_v18 }
 0x4b3   : > { %v248_v21 = vsel %vm247_vm2, %v245_v20, 0.0 }
 0x4b4   : > { %v249_v22 = vadd.f32 %v248_v21, %v227_v10 }
 0x4b6   : > { %250 = vst [vmem:[%s496_s20] sm:$0xff] %v249_v22 }
 0x4bd   : > { %v387_v23 = vld [vmem:[%s496_s20 + $0x7] ss:$0 sm:$0xff] }
 0x4be   : > { %v263_v24 = vmul.f32 %v387_v23, %v249_v22  ;;  %v256_v25 = vmul.f32 %v387_v23, %v387_v23 }
 0x4c0   : > { %264 = vadd.xlane.f32.xlu1 %v263_v24  ;;  %257 = vadd.xlane.f32.xlu0 %v256_v25 }
 0x54d   : > { %v258_v27 = vpop.xlane.xlu0 %257  ;;  %v265_v29 = vpop.xlane.xlu1 %264 }
 0x54e   : > { %v259_v28 = vsub.f32 %v388_v26, %v258_v27  ;;  %v266_v30 = vsub.f32 %v504_v9, %v265_v29 }
 0x550   : > { %432 = vrsqrt.f32 %v259_v28 }
 0x55a   : > { %v433_v31 = vpop.eup %432 }
 0x55b   : > { %v267_v32 = vmul.f32 %v433_v31, %v266_v30 }
 0x55d   : > { %v270_v33 = vsel %vm269_vm5, %v267_v32, 0.0 }
 0x55e   : > { %v271_v34 = vadd.f32 %v270_v33, %v249_v22 }
 0x560   : > { %272 = vst [vmem:[%s496_s20] sm:$0xff] %v271_v34  ;;  %309 = vst [vmem:[%s280_s25] sm:$0xff] %v271_v34 }
 0x561 PF: > { %s7_s8 = sadd.s32 1, %s456_s8   ;;  %s551_s6 = smov %s452_s7 }
 0x562   : > { %p4_p5 = scmp.ge.s32.totalorder %s7_s8, 4   ;;  %s552_s7 = smov %s554_s10 }
 0x564   :  { %6 = sbr.rel (!%p4_p5) target bundleno = 2 (0x2), region = 132 }

// kernel: custom-call.212
= control target key start
LH: loop header
LB: loop body
LE: loop exit
PB: predicated region body
PF: predicated region fallthrough
CT: control target
= control target key end

     0   :  { %s385_s6 = smov 0   ;;  %s387_s7 = smov 0   ;;  %s443_s0 = inlined_call_operand.vmem [shape: f32[2,1,8,8], index: 0, kind: input, shape index: {}]   ;;  %s444_s1 = inlined_call_operand.vmem [shape: f32[2,1,8,8], index: 1, kind: output, shape index: {}]  }
   0x1   :  { %s389_s8 = smov 0  }
   0x2 LB: > { %s311_s9 = sadd.s32 4294967295, %s372_s8   ;;  %s33_s10 = sadd.s32 1, %s368_s7  ;;  %s372_s8 = sphi %s389_s8, %s7_s8   ;;  %s368_s7 = sphi %s387_s7, %s446_s7   ;;  %s364_s6 = sphi %s385_s6, %s445_s6  }
   0x3   : > { %p35_p0 = scmp.ge.s32.totalorder %s33_s10, 2  ;;  %p313_p1 = scmp.ge.s32.totalorder %s372_s8, 2 }
   0x4   : > { %s49_s11 = sand.u32 (!%p313_p1), 1, %s372_s8   ;;  %s315_s12 = sshll.u32 (!%p313_p1), %s368_s7, 3 }
   0x5   : > { %s448_s10 = smov (%p35_p0, %s33_s10), 0  ;;  %47 = sbr.rel (%p313_p1) target bundleno = 12 (0xc), region = 16 }
   0x6   : > { %s314_s13 = sshll.u32 (!%p313_p1), %s49_s11, 3  ;;  %s56_s16 = scalar_lea.vmem (!%p313_p1), %s443_s0, %s315_s12 }
   0x7   : > { %v84_v0 = vld [vmem:[%s56_s16] sm:$0xff] (!%p313_p1)  ;;  %s51_s17 = scalar_lea.vmem (!%p313_p1), [#allocation0], %s314_s13 }
   0x8   : > { %85 = vst [vmem:[%s51_s17] sm:$0xff] (!%p313_p1), %v84_v0 }
   0xc PF: > { %p316_p2 = scmp.ge.s32.totalorder %s372_s8, 1  ;;  %p90_p3 = scmp.lt.s32.totalorder %s372_s8, 3 }
   0xe   : > { %p91_p4 = pnand %p316_p2, %p90_p3 }
  0x10   : > { %94 = sbr.rel (%p91_p4) target bundleno = 1213 (0x4bd), region = 54 }
  0x17   : > { %s97_s18 = sand.u32 1, %s311_s9   ;;  %v108_v1 = vlaneseq  ;;  %v374_v10 = vmov -1.0   ;;  %s320_s21 = sshll.u32 %s364_s6, 3 }
  0x18   : > { %s317_s19 = sshll.u32 %s97_s18, 3  ;;  %s219_s24 = scalar_lea.vmem %s444_s1, %s320_s21 }
  0x19   : > { %v412_v2 = vand.u32 127, %v108_v1  ;;  %v112_v3 = vshrl.u32 %v108_v1, 7  ;;  %s99_s20 = scalar_lea.vmem [#allocation0], %s317_s19 }
  0x1a   : > { %v115_v4 = vld [vmem:[%s99_s20] sm:$0xff] }
  0x1b   : > { %vm110_vm0 = vcmp.lt.s32.totalorder %v412_v2, 8  ;;  %vm114_vm1 = vcmp.eq.s32.totalorder %v112_v3, %v412_v2  ;;  %vm119_vm2 = vcmp.ge.s32.totalorder %v112_v3, %v412_v2  ;;  %vm133_vm4 = vcmp.eq.s32.totalorder %v412_v2, 0 }
  0x1c   : > { %v116_v5 = vsel %vm114_vm1, %v115_v4, 0.0  ;;  %vm120_vm3 = vmand %vm119_vm2, %vm110_vm0  ;;  %vm130_vm5 = vcmp.eq.s32.totalorder %v412_v2, %v112_v3  ;;  %v134_v11 = vsel %vm133_vm4, 1.0, %v374_v10  ;;  %vm141_vm6 = vcmp.eq.s32.totalorder %v412_v2, 1 }
  0x1d   : > { %v121_v6 = vsel %vm120_vm3, %v115_v4, 0.0  ;;  %117 = vadd.xlane.f32.xlu0 %v116_v5  ;;  %v135_v12 = vsel %vm130_vm5, %v134_v11, 0.0  ;;  %vm151_vm7 = vcmp.eq.s32.totalorder %v412_v2, 2  ;;  %vm161_vm8 = vcmp.eq.s32.totalorder %v412_v2, 3 }
  0x1e   : > { %vm171_vm9 = vcmp.eq.s32.totalorder %v412_v2, 4  ;;  %vm181_vm10 = vcmp.eq.s32.totalorder %v412_v2, 5  ;;  %vm191_vm11 = vcmp.eq.s32.totalorder %v412_v2, 6  ;;  %vm201_vm12 = vcmp.eq.s32.totalorder %v412_v2, 7 }
  0xaa   : > { %v417_v7 = vpop.xlane.xlu0 %117 }
  0xab   : > { %348 = vrcp.f32 %v417_v7  ;;  %vm208_vm13 = vweird.f32 %v417_v7 }
  0xb5   : > { %v349_v8 = vpop.eup %348 }
  0xb6   : > { %v123_v9 = vmul.f32 %v349_v8, %v121_v6 }
  0xb8   : > { %124 = vst [vmem:[#allocation2] sm:$0xff] %v123_v9 }
  0xbf   : > { %v137_v13 = vld [vmem:[#allocation2 + $0x1] ss:$0 sm:$0xff]  ;;  %v147_v16 = vld [vmem:[#allocation2 + $0x2] ss:$0 sm:$0xff]  ;;  %v157_v21 = vld [vmem:[#allocation2 + $0x3] ss:$0 sm:$0xff] }
  0xc0   : > { %v138_v14 = vxor.u32 2147483648, %v137_v13  ;;  %v148_v18 = vxor.u32 2147483648, %v147_v16  ;;  %v158_v23 = vxor.u32 2147483648, %v157_v21  ;;  %v167_v26 = vld [vmem:[#allocation2 + $0x4] ss:$0 sm:$0xff] }
  0xc1   : > { %v168_v28 = vxor.u32 2147483648, %v167_v26  ;;  %v177_v31 = vld [vmem:[#allocation2 + $0x5] ss:$0 sm:$0xff]  ;;  %v187_v36 = vld [vmem:[#allocation2 + $0x6] ss:$0 sm:$0xff] }
  0xc2   : > { %v142_v15 = vmul.f32 %v138_v14, %v135_v12  ;;  %v178_v33 = vxor.u32 2147483648, %v177_v31  ;;  %v188_v38 = vxor.u32 2147483648, %v187_v36  ;;  %v197_v41 = vld [vmem:[#allocation2 + $0x7] ss:$0 sm:$0xff] }
  0xc3   : > { %v198_v43 = vxor.u32 2147483648, %v197_v41 }
  0xc4   : > { %143 = vadd.xlane.f32.xlu0 %v142_v15 }
 0x151   : > { %v144_v17 = vpop.xlane.xlu0 %143 }
 0x152   : > { %v145_v19 = vsel %vm141_vm6, %v144_v17, %v135_v12 }
 0x153   : > { %v152_v20 = vmul.f32 %v148_v18, %v145_v19 }
 0x155   : > { %153 = vadd.xlane.f32.xlu1 %v152_v20 }
 0x1e2   : > { %v154_v22 = vpop.xlane.xlu1 %153 }
 0x1e3   : > { %v155_v24 = vsel %vm151_vm7, %v154_v22, %v145_v19 }
 0x1e4   : > { %v162_v25 = vmul.f32 %v158_v23, %v155_v24 }
 0x1e6   : > { %163 = vadd.xlane.f32.xlu1 %v162_v25 }
 0x273   : > { %v164_v27 = vpop.xlane.xlu1 %163 }
 0x274   : > { %v165_v29 = vsel %vm161_vm8, %v164_v27, %v155_v24 }
 0x275   : > { %v172_v30 = vmul.f32 %v168_v28, %v165_v29 }
 0x277   : > { %173 = vadd.xlane.f32.xlu0 %v172_v30 }
 0x304   : > { %v174_v32 = vpop.xlane.xlu0 %173 }
 0x305   : > { %v175_v34 = vsel %vm171_vm9, %v174_v32, %v165_v29 }
 0x306   : > { %v182_v35 = vmul.f32 %v178_v33, %v175_v34 }
 0x308   : > { %183 = vadd.xlane.f32.xlu1 %v182_v35 }
 0x395   : > { %v184_v37 = vpop.xlane.xlu1 %183 }
 0x396   : > { %v185_v39 = vsel %vm181_vm10, %v184_v37, %v175_v34 }
 0x397   : > { %v192_v40 = vmul.f32 %v188_v38, %v185_v39 }
 0x399   : > { %193 = vadd.xlane.f32.xlu0 %v192_v40 }
 0x426   : > { %v194_v42 = vpop.xlane.xlu0 %193 }
 0x427   : > { %v195_v44 = vsel %vm191_vm11, %v194_v42, %v185_v39 }
 0x428   : > { %v202_v45 = vmul.f32 %v198_v43, %v195_v44 }
 0x42a   : > { %203 = vadd.xlane.f32.xlu1 %v202_v45 }
 0x4b7   : > { %v204_v46 = vpop.xlane.xlu1 %203 }
 0x4b8   : > { %v205_v47 = vsel %vm201_vm12, %v204_v46, %v195_v44 }
 0x4b9   : > { %v207_v48 = vmul.f32 %v349_v8, %v205_v47 }
 0x4bb   : > { %v209_v49 = vsel %vm208_vm13, %v205_v47, %v207_v48 }
 0x4bc   : > { %248 = vst [vmem:[%s219_s24] sm:$0xff] %v209_v49 }
 0x4bd PF: > { %s7_s8 = sadd.s32 1, %s372_s8   ;;  %s445_s6 = smov %s368_s7 }
 0x4be   : > { %p4_p5 = scmp.ge.s32.totalorder %s7_s8, 4   ;;  %s446_s7 = smov %s448_s10 }
 0x4c0   :  { %6 = sbr.rel (!%p4_p5) target bundleno = 2 (0x2), region = 125 }

// kernel: custom-call.170
= control target key start
LH: loop header
LB: loop body
LE: loop exit
PB: predicated region body
PF: predicated region fallthrough
CT: control target
= control target key end

     0   :  { %s1704_s30 = smov 0   ;;  %s1706_s10 = smov 0   ;;  %s2031_s0 = inlined_call_operand.vmem [shape: f32[2,4,4], index: 0, kind: input, shape index: {}]   ;;  %s2032_s1 = inlined_call_operand.vmem [shape: f32[2,4,4], index: 1, kind: input, shape index: {}]   ;;  %s2033_s2 = inlined_call_operand.vmem [shape: f32[2,4,4], index: 2, kind: input, shape index: {}]   ;;  %s2034_s3 = inlined_call_operand.vmem [shape: f32[2,4,4], index: 3, kind: input, shape index: {}]   ;;  %s2035_s4 = inlined_call_operand.vmem [shape: f32[2,4], index: 4, kind: output, shape index: {0}]   ;;  %s2036_s5 = inlined_call_operand.vmem [shape: f32[2,4], index: 5, kind: output, shape index: {1}]   ;;  %s2037_s6 = inlined_call_operand.vmem [shape: f32[2,4,4], index: 6, kind: output, shape index: {2}]   ;;  %s2038_s7 = inlined_call_operand.vmem [shape: f32[2,4,4], index: 7, kind: output, shape index: {3}]   ;;  %s2039_s8 = inlined_call_operand.vmem [shape: f32[2,4,4], index: 8, kind: output, shape index: {4}]   ;;  %s2040_s9 = inlined_call_operand.vmem [shape: f32[2,4,4], index: 9, kind: output, shape index: {5}]  }
   0x1   :  { %s1708_s11 = smov 0  }
   0x2 LB: > { %s1720_s12 = sadd.s32 4294967295, %s1641_s11   ;;  %s1723_s13 = sadd.s32 1, %s1641_s11   ;;  %s1641_s11 = sphi %s1708_s11, %s2059_s11   ;;  %s1637_s10 = sphi %s1706_s10, %s2058_s10   ;;  %s1633_s30 = sphi %s1704_s30, %s2057_s30  }
   0x3   : > { %s20_s14 = sshrl.u32 %s1641_s11, 3  ;;  %s21_s15 = sshrl.u32 %s1723_s13, 3 }
   0x4   : > { %s22_s16 = ssub.s32 %s20_s14, %s21_s15  ;;  %s25_s17 = sadd.s32 1, %s1637_s10 }
   0x5   : > { %p23_p0 = scmp.eq.s32.totalorder %s22_s16, 0  ;;  %p35_p1 = scmp.ne.s32.totalorder %s1637_s10, %s1633_s30 }
   0x6   : > { %p36_p2 = scmp.eq.s32.totalorder %s1720_s12, 1  ;;  %p1502_p4 = scmp.ge.s32.totalorder %s1641_s11, 2 }
   0x7   : > { %s1732_s18 = scalar_select %p23_p0, %s1637_s10, %s25_s17  }
   0x8   : > { %p1734_p3 = por %p36_p2, %p35_p1  ;;  %86 = sbr.rel (%p1502_p4) target bundleno = 17 (0x11), region = 16 }
   0x9   : > { %2041 = sst [smem:[#allocation33_spill]] %s1732_s18  ;;  %s88_s20 = sand.u32 (!%p1502_p4), 1, %s1641_s11  }
   0xa   : > { %s1504_s21 = sshll.u32 (!%p1502_p4), %s1641_s11, 2  ;;  %s1503_s22 = sshll.u32 (!%p1502_p4), %s88_s20, 2 }
   0xb   : > { %s92_s25 = scalar_lea.vmem (!%p1502_p4), %s2031_s0, %s1504_s21  ;;  %s90_s26 = scalar_lea.vmem (!%p1502_p4), [#allocation1], %s1503_s22 }
   0xc   : > { %v108_v0 = vld [vmem:[%s92_s25] sm:$0xf] (!%p1502_p4)  ;;  %s129_s29 = scalar_lea.vmem (!%p1502_p4), %s2032_s1, %s1504_s21  ;;  %s166_s16 = scalar_lea.vmem (!%p1502_p4), %s2033_s2, %s1504_s21 }
   0xd   : > { %109 = vst [vmem:[%s90_s26] sm:$0xf] (!%p1502_p4), %v108_v0  ;;  %v145_v1 = vld [vmem:[%s129_s29] sm:$0xf] (!%p1502_p4)  ;;  %s127_s17 = scalar_lea.vmem (!%p1502_p4), [#allocation3], %s1503_s22  ;;  %s203_s23 = scalar_lea.vmem (!%p1502_p4), %s2034_s3, %s1504_s21 }
   0xe   : > { %146 = vst [vmem:[%s127_s17] sm:$0xf] (!%p1502_p4), %v145_v1  ;;  %v182_v2 = vld [vmem:[%s166_s16] sm:$0xf] (!%p1502_p4)  ;;  %s164_s24 = scalar_lea.vmem (!%p1502_p4), [#allocation5], %s1503_s22  ;;  %s201_s25 = scalar_lea.vmem (!%p1502_p4), [#allocation7], %s1503_s22 }
   0xf   : > { %183 = vst [vmem:[%s164_s24] sm:$0xf] %v182_v2  ;;  %v219_v3 = vld [vmem:[%s203_s23] sm:$0xf] }
  0x10   : > { %220 = vst [vmem:[%s201_s25] sm:$0xf] %v219_v3 }
  0x11 PF: > { %p1511_p5 = scmp.ge.s32.totalorder %s1641_s11, 1  ;;  %p236_p6 = scmp.lt.s32.totalorder %s1641_s11, 3 }
  0x13   : > { %p237_p7 = pnand %p1511_p5, %p236_p6 }
  0x15   : > { %240 = sbr.rel (%p237_p7) target bundleno = 999 (0x3e7), region = 140 }
  0x1c   : > { %s259_s26 = sand.u32 1, %s1720_s12   ;;  %s277_s27 = sand.u32 1, %s1633_s30   ;;  %v337_v4 = vlaneseq  ;;  %v1651_v5 = vmov 0.0  }
  0x1d   : > { %s1757_s28 = sshll.u32 %s259_s26, 2  ;;  %s1759_s18 = sshll.u32 %s277_s27, 1  ;;  %332 = vst [vmem:[#allocation12] sm:$0xff] %v1651_v5  ;;  %333 = vst [vmem:[#allocation14] sm:$0xff] %v1651_v5 }
  0x1e   : > { %334 = vst [vmem:[#allocation16] sm:$0xff] %v1651_v5  ;;  %335 = vst [vmem:[#allocation18] sm:$0xff] %v1651_v5  ;;  %v1761_v6 = vand.u32 127, %v337_v4  ;;  %v1763_v7 = vshrl.u32 %v337_v4, 7  ;;  %s261_s11 = scalar_lea.vmem [#allocation1], %s1757_s28  ;;  %s265_s30 = scalar_lea.vmem [#allocation3], %s1757_s28 }
  0x1f   : > { %v304_v8 = vld [vmem:[%s261_s11] sm:$0xf]  ;;  %v308_v9 = vld [vmem:[%s265_s30] sm:$0xf]  ;;  %s269_s21 = scalar_lea.vmem [#allocation5], %s1757_s28  ;;  %s273_s22 = scalar_lea.vmem [#allocation7], %s1757_s28 }
  0x20   : > { %305 = vst [vmem:[#allocation0] sm:$0xf] %v304_v8  ;;  %309 = vst [vmem:[#allocation2] sm:$0xf] %v308_v9  ;;  %v312_v10 = vld [vmem:[%s269_s21] sm:$0xf]  ;;  %v339_v6 = vmov %v1761_v6  ;;  %v342_v7 = vmov %v1763_v7 }
  0x21   : > { %v316_v11 = vld [vmem:[%s273_s22] sm:$0xf]  ;;  %313 = vst [vmem:[#allocation4] sm:$0xf] %v312_v10  ;;  %v352_v6 = vmov %v1761_v6  ;;  %v355_v7 = vmov %v1763_v7  ;;  %s320_s29 = smov [#allocation20]  ;;  %s323_s14 = smov [#allocation21]  ;;  %vm346_vm0 = vcmp.eq.s32.totalorder %v342_v7, %v339_v6 }
  0x22   : > { %317 = vst [vmem:[#allocation6] sm:$0xf] %v316_v11  ;;  %vm359_vm1 = vcmp.eq.s32.totalorder %v355_v7, %v352_v6  ;;  %s336_s15 = smov [#allocation12]  ;;  %s349_s16 = smov [#allocation18]  ;;  %vm1391_vm2 = vcmp.lt.s32.totalorder %v1761_v6, 4  ;;  %v1383_v6 = vmov %v1761_v6  ;;  %v1386_v7 = vmov %v1763_v7 }
  0x23   : > { %s326_s17 = smov [#allocation22]  ;;  %s329_s20 = smov [#allocation23]  ;;  %vm1396_vm3 = vcmp.eq.s32.totalorder %v1386_v7, %v1383_v6  ;;  %v1434_v6 = vmov %v1761_v6  ;;  %v1403_v7 = vmov %v1763_v7 }
  0x24   : > { %v343_v12 = vld [vmem:[%s336_s15] sm:$0xf]  ;;  %s1387_s30 = smov [#allocation20]  ;;  %s1404_s21 = smov [#allocation21]  ;;  %v1400_v6 = vmov %v1761_v6  ;;  %v1437_v7 = vmov %v1763_v7 }
  0x25   : > { %v356_v13 = vld [vmem:[%s349_s16] sm:$0xf]  ;;  %v347_v16 = vsel %vm346_vm0, 1.0, %v343_v12  ;;  %s1421_s22 = smov [#allocation22]  ;;  %v1417_v6 = vmov %v1761_v6  ;;  %v1420_v7 = vmov %v1763_v7  ;;  %vm1447_vm4 = vcmp.eq.s32.totalorder %v1437_v7, %v1434_v6 }
  0x26   : > { %v360_v17 = vsel %vm359_vm1, 1.0, %v356_v13  ;;  %348 = vst [vmem:[%s336_s15] sm:$0xf] %v347_v16 }
  0x27   : > { %v321_v14 = vld [vmem:[#allocation0] sm:$0xff]  ;;  %v324_v15 = vld [vmem:[#allocation2] sm:$0xff]  ;;  %361 = vst [vmem:[%s349_s16] sm:$0xf] %v360_v17 }
  0x28   : > { %322 = vst [vmem:[%s320_s29] sm:$0xff] %v321_v14  ;;  %325 = vst [vmem:[%s323_s14] sm:$0xff] %v324_v15  ;;  %v327_v18 = vld [vmem:[#allocation4] sm:$0xff]  ;;  %s1438_s29 = smov [#allocation23] }
  0x29   : > { %v330_v19 = vld [vmem:[#allocation6] sm:$0xff]  ;;  %328 = vst [vmem:[%s326_s17] sm:$0xff] %v327_v18 }
  0x2a   : > { %331 = vst [vmem:[%s329_s20] sm:$0xff] %v330_v19 }
  0x2f   : > { %v1393_v20 = vld [vmem:[%s1387_s30] sm:$0xf] }
  0x30   : > { %v1410_v21 = vld [vmem:[%s1404_s21] sm:$0xf]  ;;  %v1394_v22 = vsel %vm1391_vm2, %v1393_v20, 0.0 }
  0x31   : > { %v1411_v23 = vsel %vm1391_vm2, %v1410_v21, 0.0  ;;  %v1427_v24 = vld [vmem:[%s1421_s22] sm:$0xf]  ;;  %v1395_v26 = vmul.f32 %v1394_v22, %v1394_v22 }
  0x32   : > { %v1444_v25 = vld [vmem:[%s1438_s29] sm:$0xf]  ;;  %v1412_v27 = vmul.f32 %v1411_v23, %v1411_v23  ;;  %v1428_v28 = vsel %vm1391_vm2, %v1427_v24, 0.0 }
  0x33   : > { %v1445_v29 = vsel %vm1391_vm2, %v1444_v25, 0.0  ;;  %v1429_v30 = vmul.f32 %v1428_v28, %v1428_v28  ;;  %v1397_v33 = vsel %vm1396_vm3, 0.0, %v1395_v26 }
  0x34   : > { %v1414_v31 = vadd.f32 %v1412_v27, %v1395_v26  ;;  %v1446_v32 = vmul.f32 %v1445_v29, %v1445_v29  ;;  %v1413_v34 = vadd.f32 %v1412_v27, %v1397_v33 }
  0x36   : > { %v1431_v35 = vadd.f32 %v1429_v30, %v1414_v31  ;;  %v1430_v36 = vadd.f32 %v1429_v30, %v1413_v34  ;;  %v1448_v37 = vsel %vm1447_vm4, 0.0, %v1446_v32 }
  0x38   : > { %v1450_v38 = vadd.f32 %v1446_v32, %v1431_v35  ;;  %v1449_v39 = vadd.f32 %v1448_v37, %v1430_v36 }
  0x3a   : > { %1451 = vadd.xlane.f32.xlu0 %v1450_v38 }
  0x3e   : > { %1459 = vadd.xlane.f32.xlu0 %v1449_v39 }
  0xc7   : > { %v1452_v40 = vpop.xlane.xlu0 %1451 }
  0xc8   : > { %v1453_v41 = vrot.slane %v1452_v40, 4 }
  0xca   : > { %v1454_v42 = vadd.f32 %v1453_v41, %v1452_v40 }
  0xcb   : > { %v1460_v43 = vpop.xlane.xlu0 %1459 }
  0xcc   : > { %v1455_v44 = vrot.slane %v1454_v42, 2  ;;  %v1461_v45 = vrot.slane %v1460_v43, 4 }
  0xce   : > { %v1462_v46 = vadd.f32 %v1461_v45, %v1460_v43  ;;  %v1456_v47 = vadd.f32 %v1455_v44, %v1454_v42 }
  0xd0   : > { %v1463_v48 = vrot.slane %v1462_v46, 2  ;;  %v1457_v50 = vrot.slane %v1456_v47, 1 }
  0xd2   : > { %v1464_v49 = vadd.f32 %v1463_v48, %v1462_v46  ;;  %v1458_v53 = vadd.f32 %v1457_v50, %v1456_v47 }
  0xd4   : > { %v1465_v51 = vrot.slane %v1464_v49, 1 }
  0xd6   : > { %v1466_v52 = vadd.f32 %v1465_v51, %v1464_v49 }
  0xd8   : > { %1552 = vpush %v1466_v52 }
  0xd9   : > { %1554 = vpush %v1458_v53 }
 0x109   : > { %s1553_s14 = spop %1552 }
 0x10a   : > { %s1555_s15 = spop %1554 }
 0x10b   : > { %s1469_s16 = smul.f32 1e-10, %s1555_s15 }
 0x10d   : > { %p1470_p8 = scmp.le.f32.partialorder %s1553_s14, %s1469_s16 }
 0x10e   : > { %s1797_s17 = smov (!%p1470_p8), 0  }
 0x10f   : > { %1473 = sbr.rel (%p1470_p8) target bundleno = 953 (0x3b9), region = 467 }
 0x116 LB: >> { %s1802_s20 = smov 0   ;;  %s1645_s17 = sphi %s1797_s17, %s2043_s17  }
 0x117 LB: >>> { %s466_s30 = smov [#allocation20]  ;;  %v470_v6 = vmov %v1761_v6  ;;  %v473_v7 = vmov %v1763_v7  ;;  %s486_s21 = smov [#allocation21]  ;;  %vm789_vm14 = vcmp.eq.s32.totalorder %v1763_v7, 0  ;;  %vm801_vm15 = vcmp.eq.s32.totalorder %v1763_v7, 3  ;;  %s1649_s20 = sphi %s1802_s20, %s465_s20  }
 0x118   : >>> { %v490_v6 = vmov %v1761_v6  ;;  %v493_v7 = vmov %v1763_v7  ;;  %v474_v54 = vld [vmem:[%s466_s30] sm:$0xf]  ;;  %vm477_vm5 = vcmp.eq.s32.totalorder %v473_v7, %v470_v6  ;;  %s506_s22 = smov [#allocation23]  ;;  %s467_s29 = smov [#allocation24] }
 0x119   : >>> { %vm497_vm6 = vcmp.eq.s32.totalorder %v493_v7, %v490_v6  ;;  %v510_v6 = vmov %v1761_v6  ;;  %v513_v7 = vmov %v1763_v7  ;;  %v478_v55 = vsel %vm477_vm5, %v474_v54, 0.0  ;;  %v494_v56 = vld [vmem:[%s486_s21] sm:$0xf]  ;;  %s487_s14 = smov [#allocation25]  ;;  %s507_s15 = smov [#allocation26] }
 0x11a   : >>> { %vm517_vm7 = vcmp.eq.s32.totalorder %v513_v7, %v510_v6  ;;  %v479_v57 = vrot.slane %v478_v55, 4  ;;  %v498_v58 = vsel %vm497_vm6, %v494_v56, 0.0  ;;  %v514_v59 = vld [vmem:[%s506_s22] sm:$0xf]  ;;  %s530_s16 = smov [#allocation25]  ;;  %s528_s30 = smov [#allocation24]  ;;  %v579_v6 = vmov %v1761_v6 }
 0x11b   : >>> { %v499_v60 = vrot.slane %v498_v58, 4  ;;  %v518_v61 = vsel %vm517_vm7, %v514_v59, 0.0  ;;  %s532_s21 = smov [#allocation26]  ;;  %s567_s22 = smov [#allocation27]  ;;  %v582_v7 = vmov %v1763_v7  ;;  %v594_v6 = vmov %v1761_v6 }
 0x11c   : >>> { %v480_v62 = vadd.f32 %v479_v57, %v478_v55  ;;  %v519_v63 = vrot.slane %v518_v61, 4  ;;  %v597_v7 = vmov %v1763_v7  ;;  %vm584_vm12 = vcmp.eq.s32.totalorder %v582_v7, %v579_v6  ;;  %s1821_s24 = smov [#allocation22]  ;;  %s1827_s23 = smov [#allocation14] }
 0x11d   : >>> { %v500_v0 = vadd.f32 %v499_v60, %v498_v58  ;;  %vm599_vm13 = vcmp.eq.s32.totalorder %v597_v7, %v594_v6  ;;  %s829_s11 = smov [#allocation31]  ;;  %s1833_s27 = smov [#allocation18]  ;;  %v615_v55 = vld [vmem:[%s1821_s24] sm:$0xf]  ;;  %v692_v6 = vmov %v1761_v6  ;;  %v695_v7 = vmov %v1763_v7 }
 0x11e   : >>> { %v481_v1 = vrot.slane %v480_v62, 2  ;;  %v520_v2 = vadd.f32 %v519_v63, %v518_v61  ;;  %v838_v58 = vld [vmem:[%s1827_s23] sm:$0xf]  ;;  %s607_s26 = smov [#allocation32]  ;;  %s831_s25 = smov [#allocation32]  ;;  %v706_v6 = vmov %v1761_v6  ;;  %v709_v7 = vmov %v1763_v7 }
 0x11f   : >>> { %v501_v3 = vrot.slane %v500_v0, 2  ;;  %v840_v61 = vld [vmem:[%s1833_s27] sm:$0xf]  ;;  %vm699_vm0 = vcmp.eq.s32.totalorder %v695_v7, %v692_v6  ;;  %v665_v6 = vmov %v1761_v6  ;;  %v668_v7 = vmov %v1763_v7  ;;  %s465_s20 = sadd.s32 1, %s1649_s20  }
 0x120   : >>> { %v482_v4 = vadd.f32 %v481_v1, %v480_v62  ;;  %v521_v5 = vrot.slane %v520_v2, 2  ;;  %v679_v6 = vmov %v1761_v6  ;;  %v682_v7 = vmov %v1763_v7  ;;  %p462_p9 = scmp.ge.s32.totalorder %s465_s20, 7  }
 0x121   : >>> { %v502_v8 = vadd.f32 %v501_v3, %v500_v0  ;;  %vm714_vm1 = vcmp.eq.s32.totalorder %v709_v7, %v706_v6  ;;  %vm673_vm3 = vcmp.eq.s32.totalorder %v668_v7, %v665_v6  ;;  %vm686_vm4 = vcmp.eq.s32.totalorder %v682_v7, %v679_v6 }
 0x122   : >>> { %v483_v9 = vrot.slane %v482_v4, 1  ;;  %v522_v10 = vadd.f32 %v521_v5, %v520_v2  ;;  %vm728_vm5 = vcmp.eq.s32.totalorder %v1761_v6, 0  ;;  %vm732_vm6 = vcmp.eq.s32.totalorder %v1761_v6, 1 }
 0x123   : >>> { %v503_v11 = vrot.slane %v502_v8, 1  ;;  %vm745_vm7 = vcmp.eq.s32.totalorder %v1761_v6, 3  ;;  %v366_v6 = vmov (%p462_p9), %v1761_v6  ;;  %v369_v7 = vmov (%p462_p9), %v1763_v7 }
 0x124   : >>> { %v484_v12 = vadd.f32 %v483_v9, %v482_v4  ;;  %v523_v13 = vrot.slane %v522_v10, 1  ;;  %v419_v6 = vmov (%p462_p9), %v1761_v6 }
 0x125   : >>> { %v504_v14 = vadd.f32 %v503_v11, %v502_v8 }
 0x126   : >>> { %485 = vst [vmem:[%s467_s29] sm:$0x1] %v484_v12  ;;  %v524_v15 = vadd.f32 %v523_v13, %v522_v10  ;;  %s569_s29 = smov [#allocation28] }
 0x127   : >>> { %505 = vst [vmem:[%s487_s14] sm:$0x1] %v504_v14  ;;  %s526_s14 = smov [#allocation29] }
 0x128   : >>> { %525 = vst [vmem:[%s507_s15] sm:$0x1] %v524_v15  ;;  %s527_s15 = smov [#allocation30]  ;;  %s571_s14 = smov %s526_s14 }
 0x129   : >>> { %s573_s15 = smov %s527_s15 }
 0x12d   : >>> { %v529_v18 = vld [vmem:[%s528_s30] sm:$0xff]  ;;  %s590_s30 = smov [#allocation30] }
 0x12e   : >>> { %v531_v16 = vld [vmem:[%s530_s16] sm:$0xff]  ;;  %v552_v31 = vand.u32 2147483647, %v529_v18  ;;  %s575_s16 = smov [#allocation29] }
 0x12f   : >>> { %v535_v17 = vmul.f32 2.0, %v531_v16  ;;  %v533_v19 = vld [vmem:[%s532_s21] sm:$0xff]  ;;  %v553_v36 = vand.u32 2147483647, %v531_v16  ;;  %s588_s21 = smov [#allocation31] }
 0x130   : >>> { %v534_v20 = vsub.f32 %v533_v19, %v529_v18  ;;  %v554_v32 = vand.u32 2147483647, %v533_v19 }
 0x131   : >>> { %1603 = vrcp.f32 %v535_v17 }
 0x132   : >>> { %v555_v35 = vmin.f32 %v552_v31, %v554_v32 }
 0x134   : >>> { %v556_v37 = vmul.f32 1.1920929e-08, %v555_v35 }
 0x136   : >>> { %vm557_vm11 = vcmp.le.f32.partialorder %v553_v36, %v556_v37 }
 0x13b   : >>> { %v1604_v21 = vpop.eup %1603 }
 0x13c   : >>> { %v537_v22 = vmul.f32 %v1604_v21, %v534_v20 }
 0x13e   : >>> { %v539_v23 = vmul.f32 %v537_v22, %v537_v22  ;;  %vm538_vm10 = vcmp.ge.f32.partialorder %v537_v22, 0.0 }
 0x140   : >>> { %v540_v24 = vadd.f32 1.0, %v539_v23 }
 0x142   : >>> { %1605 = vrsqrt.f32 %v540_v24  ;;  %vm543_vm8 = vcmp.eq.f32.partialorder %v540_v24, inf  ;;  %v546_v26 = vand.u32 2147483648, %v540_v24  ;;  %vm545_vm9 = vcmp.eq.f32.partialorder %v540_v24, 0.0 }
 0x14c   : >>> { %v1606_v25 = vpop.eup %1605 }
 0x14d   : >>> { %v542_v27 = vmul.f32 %v1606_v25, %v540_v24 }
 0x14f   : >>> { %v544_v28 = vsel %vm543_vm8, %v540_v24, %v542_v27  ;;  %vm381_vm8 = vcmp.eq.s32.totalorder (%p462_p9), %v369_v7, %v366_v6  ;;  %v422_v7 = vmov (%p462_p9), %v1763_v7  ;;  %v385_v6 = vmov (%p462_p9), %v1761_v6 }
 0x150   : >>> { %v547_v29 = vsel %vm545_vm9, %v546_v26, %v544_v28  ;;  %v388_v7 = vmov (%p462_p9), %v1763_v7  ;;  %v402_v6 = vmov (%p462_p9), %v1761_v6  ;;  %vm434_vm9 = vcmp.eq.s32.totalorder (%p462_p9), %v422_v7, %v419_v6 }
 0x151   : >>> { %v548_v30 = vxor.u32 2147483648, %v547_v29  ;;  %v405_v7 = vmov (%p462_p9), %v1763_v7 }
 0x153   : >>> { %v549_v33 = vsel %vm538_vm10, %v547_v29, %v548_v30 }
 0x154   : >>> { %v550_v34 = vadd.f32 %v549_v33, %v537_v22 }
 0x156   : >>> { %1607 = vrcp.f32 %v550_v34 }
 0x160   : >>> { %v1608_v38 = vpop.eup %1607 }
 0x161   : >>> { %v558_v39 = vsel %vm557_vm11, 0.0, %v1608_v38 }
 0x162   : >>> { %v559_v40 = vmul.f32 %v558_v39, %v558_v39  ;;  %v563_v41 = vmul.f32 %v558_v39, %v531_v16 }
 0x164   : >>> { %v560_v42 = vadd.f32 1.0, %v559_v40  ;;  %v564_v43 = vsub.f32 %v529_v18, %v563_v41  ;;  %v566_v44 = vadd.f32 %v563_v41, %v533_v19 }
 0x166   : >>> { %1609 = vrsqrt.f32 %v560_v42  ;;  %568 = vst [vmem:[%s567_s22] sm:$0xff] %v564_v43  ;;  %570 = vst [vmem:[%s569_s29] sm:$0xff] %v566_v44  ;;  %s605_s22 = smov [#allocation31]  ;;  %s1817_s29 = smov [#allocation20] }
 0x167   : >>> { %v613_v53 = vld [vmem:[%s1817_s29] sm:$0xf] }
 0x170   : >>> { %v1610_v45 = vpop.eup %1609 }
 0x171   : >>> { %572 = vst [vmem:[%s571_s14] sm:$0xff] %v1610_v45  ;;  %v562_v46 = vmul.f32 %v1610_v45, %v558_v39  ;;  %s603_s14 = smov [#allocation32] }
 0x173   : >>> { %574 = vst [vmem:[%s573_s15] sm:$0xff] %v562_v46  ;;  %s1819_s15 = smov [#allocation21] }
 0x174   : >>> { %v614_v54 = vld [vmem:[%s1819_s15] sm:$0xf] }
 0x178   : >>> { %v576_v47 = vld [vmem:[%s575_s16] ss:$0 sm:$0xff]  ;;  %s1823_s16 = smov [#allocation23] }
 0x179   : >>> { %v585_v48 = vsel %vm584_vm12, %v576_v47, 0.0  ;;  %v616_v56 = vld [vmem:[%s1823_s16] sm:$0xf] }
 0x17a   : >>> { %586 = vadd.xlane.f32.xlu0 %v585_v48  ;;  %v591_v49 = vld [vmem:[%s590_s30] ss:$0 sm:$0xff]  ;;  %s1825_s30 = smov [#allocation12] }
 0x17b   : >>> { %v600_v50 = vsel %vm599_vm13, %v591_v49, 0.0  ;;  %v837_v57 = vld [vmem:[%s1825_s30] sm:$0xf] }
 0x17e   : >>> { %601 = vadd.xlane.f32.xlu0 %v600_v50 }
 0x207   : >>> { %v587_v51 = vpop.xlane.xlu0 %586 }
 0x208   : >>> { %589 = vst [vmem:[%s588_s21] sm:$0xff] %v587_v51  ;;  %s1829_s21 = smov [#allocation16] }
 0x209   : >>> { %v839_v59 = vld [vmem:[%s1829_s21] sm:$0xf] }
 0x20b   : >>> { %v602_v52 = vpop.xlane.xlu0 %601 }
 0x20c   : >>> { %604 = vst [vmem:[%s603_s14] sm:$0xff] %v602_v52  ;;  %s1853_s14 = smov [#allocation23] }
 0x20f   : >>> { %v606_v60 = vld [vmem:[%s605_s22] sm:$0xff]  ;;  %s1851_s22 = smov [#allocation22] }
 0x210   : >>> { %v830_v62 = vld [vmem:[%s829_s11] sm:$0xff]  ;;  %v617_v63 = vmul.f32 %v613_v53, %v606_v60  ;;  %v620_v0 = vmul.f32 %v614_v54, %v606_v60  ;;  %v624_v1 = vmul.f32 %v615_v55, %v606_v60  ;;  %v627_v2 = vmul.f32 %v616_v56, %v606_v60  ;;  %s1849_s11 = smov [#allocation12] }
 0x211   : >>> { %v841_v3 = vmul.f32 %v837_v57, %v830_v62  ;;  %v844_v4 = vmul.f32 %v838_v58, %v830_v62  ;;  %v848_v5 = vmul.f32 %v839_v59, %v830_v62  ;;  %v851_v8 = vmul.f32 %v840_v61, %v830_v62 }
 0x213   : >>> { %v608_v9 = vld [vmem:[%s607_s26] sm:$0xff]  ;;  %s635_s26 = smov [#allocation30] }
 0x214   : >>> { %v832_v10 = vld [vmem:[%s831_s25] sm:$0xff]  ;;  %v618_v11 = vmul.f32 %v615_v55, %v608_v9  ;;  %v621_v12 = vmul.f32 %v616_v56, %v608_v9  ;;  %v623_v13 = vmul.f32 %v613_v53, %v608_v9  ;;  %v626_v14 = vmul.f32 %v614_v54, %v608_v9  ;;  %s633_s25 = smov [#allocation29] }
 0x215   : >>> { %v842_v15 = vmul.f32 %v839_v59, %v832_v10  ;;  %v845_v16 = vmul.f32 %v840_v61, %v832_v10  ;;  %v847_v17 = vmul.f32 %v837_v57, %v832_v10  ;;  %v850_v18 = vmul.f32 %v838_v58, %v832_v10  ;;  %v634_v27 = vld [vmem:[%s633_s25] ss:$0 sm:$0xff]  ;;  %s662_s25 = smov [#allocation27] }
 0x216   : >>> { %v619_v19 = vsub.f32 %v617_v63, %v618_v11  ;;  %v622_v20 = vsub.f32 %v620_v0, %v621_v12  ;;  %v625_v21 = vadd.f32 %v624_v1, %v623_v13  ;;  %v628_v22 = vadd.f32 %v627_v2, %v626_v14  ;;  %v636_v28 = vld [vmem:[%s635_s26] ss:$0 sm:$0xff]  ;;  %s661_s26 = smov [#allocation20] }
 0x217   : >>> { %v843_v23 = vsub.f32 %v841_v3, %v842_v15  ;;  %v846_v24 = vsub.f32 %v844_v4, %v845_v16  ;;  %v849_v25 = vadd.f32 %v848_v5, %v847_v17  ;;  %v852_v26 = vadd.f32 %v851_v8, %v850_v18  ;;  %v669_v63 = vld [vmem:[%s662_s25] ss:$0 sm:$0xff]  ;;  %s905_s25 = sadd.s32 (%p462_p9), 1, %s1645_s17  }
 0x218   : >>> { %630 = vst [vmem:[%s1819_s15] sm:$0xf] %v622_v20  ;;  %632 = vst [vmem:[%s1823_s16] sm:$0xf] %v628_v22  ;;  %s1855_s15 = smov [#allocation20]  ;;  %s703_s16 = smov [#allocation28] }
 0x219   : >>> { %629 = vst [vmem:[%s1817_s29] sm:$0xf] %v619_v19  ;;  %631 = vst [vmem:[%s1821_s24] sm:$0xf] %v625_v21  ;;  %s1857_s24 = smov [#allocation16]  ;;  %s1865_s29 = smov [#allocation21]  ;;  %v710_v59 = vld [vmem:[%s703_s16] ss:$0 sm:$0xff] }
 0x21a   : >>> { %853 = vst [vmem:[%s1825_s30] sm:$0xf] %v843_v23  ;;  %854 = vst [vmem:[%s1827_s23] sm:$0xf] %v846_v24  ;;  %s1859_s23 = smov [#allocation14]  ;;  %s689_s30 = smov [#allocation22] }
 0x21b   : >>> { %855 = vst [vmem:[%s1829_s21] sm:$0xf] %v849_v25  ;;  %856 = vst [vmem:[%s1833_s27] sm:$0xf] %v852_v26  ;;  %s1863_s27 = smov [#allocation18]  ;;  %s702_s21 = smov [#allocation23] }
 0x21c   : >>> { %s805_s16 = smov [#allocation21]  ;;  %p458_p10 = scmp.ge.s32.totalorder (%p462_p9), %s905_s25, 15 }
 0x21d   : >> { %s2043_s17 = smov (%p462_p9), %s905_s25 }
 0x21f   : >>> { %v644_v30 = vld [vmem:[%s1853_s14] sm:$0xf] }
 0x220   : >>> { %v643_v29 = vld [vmem:[%s1851_s22] sm:$0xf]  ;;  %v652_v36 = vmul.f32 %v644_v30, %v636_v28  ;;  %v655_v42 = vmul.f32 %v644_v30, %v634_v27 }
 0x221   : >>> { %v641_v31 = vld [vmem:[%s1855_s15] sm:$0xf]  ;;  %v651_v35 = vmul.f32 %v643_v29, %v634_v27  ;;  %v654_v37 = vmul.f32 %v643_v29, %v636_v28 }
 0x222   : >>> { %v859_v32 = vld [vmem:[%s1849_s11] ss:$0 sm:$0xff]  ;;  %v1531_v34 = vld [vmem:[%s1849_s11 + $0x3] ss:$0 sm:$0xff]  ;;  %v645_v48 = vmul.f32 %v641_v31, %v634_v27  ;;  %v648_v49 = vmul.f32 %v641_v31, %v636_v28 }
 0x223   : >>> { %v1530_v33 = vld [vmem:[%s1849_s11 - $0x1] sm:$0xe]  ;;  %v1535_v45 = vld [vmem:[%s1859_s23 + $0x3] ss:$0 sm:$0xff]  ;;  %v653_v47 = vsub.f32 %v651_v35, %v652_v36  ;;  %v656_v53 = vadd.f32 %v655_v42, %v654_v37 }
 0x224   : >>> { %v866_v38 = vsel %vm789_vm14, %v859_v32, %v1530_v33  ;;  %v870_v39 = vld [vmem:[%s1857_s24] ss:$0 sm:$0xff]  ;;  %v1533_v40 = vld [vmem:[%s1857_s24 + $0x1] sm:$0x7] }
 0x225   : >>> { %v883_v41 = vld [vmem:[%s1859_s23] ss:$0 sm:$0xff]  ;;  %869 = vst [vmem:[%s1849_s11] sm:$0xf] %v866_v38  ;;  %v878_v43 = vsel %vm801_vm15, %v1531_v34, %v1533_v40  ;;  %v1537_v51 = vld [vmem:[%s1863_s27 + $0x1] sm:$0x7]  ;;  %659 = vst [vmem:[%s1851_s22] sm:$0xf] %v653_v47 }
 0x226   : >>> { %v1534_v44 = vld [vmem:[%s1859_s23 - $0x1] sm:$0xe]  ;;  %1532 = vst [vmem:[%s1849_s11 + $0x1] sm:$0x1] %v870_v39  ;;  %880 = vst [vmem:[%s1857_s24] sm:$0xf] %v878_v43  ;;  %v902_v54 = vsel %vm801_vm15, %v1535_v45, %v1537_v51  ;;  %s676_s11 = smov [#allocation21] }
 0x227   : >>> { %v894_v46 = vld [vmem:[%s1863_s27] ss:$0 sm:$0xff]  ;;  %v890_v50 = vsel %vm789_vm14, %v883_v41, %v1534_v44  ;;  %660 = vst [vmem:[%s1853_s14] sm:$0xf] %v656_v53  ;;  %s1907_s22 = smov [#allocation22]  ;;  %s1652_s14 = smov 1  }
 0x228   : >>> { %v642_v52 = vld [vmem:[%s1865_s29] sm:$0xf]  ;;  %893 = vst [vmem:[%s1859_s23] sm:$0xf] %v890_v50  ;;  %904 = vst [vmem:[%s1863_s27] sm:$0xf] %v902_v54  ;;  %s718_s24 = smov [#allocation21]  ;;  %s1910_s27 = smov [#allocation23] }
 0x229   : >>> { %v646_v55 = vmul.f32 %v642_v52, %v636_v28  ;;  %v649_v56 = vmul.f32 %v642_v52, %v634_v27  ;;  %1536 = vst [vmem:[%s1859_s23 + $0x1] sm:$0x1] %v894_v46  ;;  %s1653_s23 = smov 127  }
 0x22b   : >>> { %v647_v57 = vsub.f32 %v645_v48, %v646_v55  ;;  %v650_v58 = vadd.f32 %v649_v56, %v648_v49 }
 0x22c   : >>> { %v696_v60 = vld [vmem:[%s689_s30] sm:$0xf] }
 0x22d   : >>> { %657 = vst [vmem:[%s1855_s15] sm:$0xf] %v647_v57  ;;  %658 = vst [vmem:[%s1865_s29] sm:$0xf] %v650_v58  ;;  %v700_v61 = vsel %vm699_vm0, 0.0, %v696_v60  ;;  %s717_s15 = smov [#allocation20]  ;;  %s781_s29 = smov [#allocation20] }
 0x22e   : >>> { %v711_v62 = vld [vmem:[%s702_s21] sm:$0xf]  ;;  %701 = vst [vmem:[%s689_s30] sm:$0xf] %v700_v61  ;;  %s782_s30 = smov [#allocation22] }
 0x22f   : >>> { %v715_v0 = vsel %vm714_vm1, %v710_v59, %v711_v62 }
 0x230   : >>> { %716 = vst [vmem:[%s702_s21] sm:$0xf] %v715_v0  ;;  %s806_s21 = smov [#allocation23] }
 0x234   : >>> { %v670_v1 = vld [vmem:[%s661_s26] sm:$0xf] }
 0x235   : >>> { %v683_v2 = vld [vmem:[%s676_s11] sm:$0xf]  ;;  %v674_v3 = vsel %vm673_vm3, %v669_v63, %v670_v1 }
 0x236   : >>> { %v687_v4 = vsel %vm686_vm4, 0.0, %v683_v2  ;;  %675 = vst [vmem:[%s661_s26] sm:$0xf] %v674_v3  ;;  %v755_v5 = vld [vmem:[%s1907_s22] sm:$0xf]  ;;  %s370_s26 = smov (%p462_p9), [#allocation20] }
 0x237   : >>> { %688 = vst [vmem:[%s676_s11] sm:$0xf] %v687_v4  ;;  %756 = vrot.lane.b32.xlu0 %v755_v5, %s1652_s14  ;;  %v751_v11 = vld [vmem:[%s1910_s27] sm:$0xf]  ;;  %s389_s11 = smov (%p462_p9), [#allocation21] }
 0x238   : >>> { %v772_v12 = vld [vmem:[%s1910_s27] sm:$0xf] }
 0x239   : >>> { %v754_v30 = vld [vmem:[%s1907_s22] sm:$0xf] }
 0x23d   : >>> { %v723_v8 = vld [vmem:[%s717_s15] sm:$0xf] }
 0x23e   : >>> { %724 = vrot.lane.b32.xlu1 %v723_v8, %s1652_s14  ;;  %v719_v9 = vld [vmem:[%s718_s24] sm:$0xf] }
 0x23f   : >>> { %v740_v10 = vld [vmem:[%s718_s24] sm:$0xf] }
 0x240   : >>> { %v722_v18 = vld [vmem:[%s717_s15] sm:$0xf] }
 0x242   : >>> { %720 = vrot.lane.b32.xlu1 %v719_v9, %s1652_s14 }
 0x246   : >>> { %741 = vrot.lane.b32.xlu1 %v740_v10, %s1653_s23 }
 0x24a   : >>> { %752 = vrot.lane.b32.xlu1 %v751_v11, %s1652_s14  ;;  %s423_s14 = smov (%p462_p9), [#allocation23] }
 0x24e   : >>> { %773 = vrot.lane.b32.xlu1 %v772_v12, %s1653_s23 }
 0x2a9   : >>> { %v757_v20 = vpop.permute.xlu0 %756 }
 0x2aa   : >>> { %v761_v22 = vsel %vm728_vm5, %v755_v5, %v757_v20 }
 0x2b0   : >>> { %v725_v13 = vpop.permute.xlu1 %724 }
 0x2b1   : >>> { %v729_v14 = vsel %vm728_vm5, %v723_v8, %v725_v13 }
 0x2b4   : >>> { %v721_v15 = vpop.permute.xlu1 %720 }
 0x2b5   : >>> { %v733_v16 = vsel %vm732_vm6, %v721_v15, %v729_v14 }
 0x2b6   : >>> { %v739_v17 = vsel %vm1391_vm2, %v733_v16, 0.0 }
 0x2b7   : >>> { %747 = vst [vmem:[%s717_s15] sm:$0xf] %v739_v17 }
 0x2b8   : >>> { %v742_v19 = vpop.permute.xlu1 %741 }
 0x2b9   : >>> { %v746_v21 = vsel %vm745_vm7, %v722_v18, %v742_v19 }
 0x2ba   : >>> { %748 = vst [vmem:[%s718_s24] sm:$0xf] %v746_v21 }
 0x2bc   : >>> { %v753_v23 = vpop.permute.xlu1 %752 }
 0x2bd   : >>> { %v765_v24 = vsel %vm732_vm6, %v753_v23, %v761_v22 }
 0x2be   : >>> { %v783_v25 = vld [vmem:[%s781_s29] ss:$0 sm:$0xff]  ;;  %v1523_v27 = vld [vmem:[%s781_s29 + $0x3] ss:$0 sm:$0xff]  ;;  %v771_v29 = vsel %vm1391_vm2, %v765_v24, 0.0 }
 0x2bf   : >>> { %v1522_v26 = vld [vmem:[%s781_s29 - $0x1] sm:$0xe]  ;;  %779 = vst [vmem:[%s1907_s22] sm:$0xf] %v771_v29  ;;  %s406_s22 = smov (%p462_p9), [#allocation22] }
 0x2c0   : >>> { %v790_v28 = vsel %vm789_vm14, %v783_v25, %v1522_v26  ;;  %v774_v31 = vpop.permute.xlu1 %773 }
 0x2c1   : >>> { %793 = vst [vmem:[%s781_s29] sm:$0xf] %v790_v28  ;;  %v807_v32 = vld [vmem:[%s805_s16] ss:$0 sm:$0xff]  ;;  %v1527_v34 = vld [vmem:[%s805_s16 + $0x3] ss:$0 sm:$0xff]  ;;  %v778_v35 = vsel %vm745_vm7, %v754_v30, %v774_v31 }
 0x2c2   : >>> { %v1526_v33 = vld [vmem:[%s805_s16 - $0x1] sm:$0xe]  ;;  %780 = vst [vmem:[%s1910_s27] sm:$0xf] %v778_v35 }
 0x2c3   : >>> { %v814_v36 = vsel %vm789_vm14, %v807_v32, %v1526_v33 }
 0x2c4   : >>> { %817 = vst [vmem:[%s805_s16] sm:$0xf] %v814_v36 }
 0x2c6   : >>> { %v794_v37 = vld [vmem:[%s782_s30] ss:$0 sm:$0xff]  ;;  %v1525_v38 = vld [vmem:[%s782_s30 + $0x1] sm:$0x7] }
 0x2c7   : >>> { %1524 = vst [vmem:[%s781_s29 + $0x1] sm:$0x1] %v794_v37  ;;  %v802_v39 = vsel %vm801_vm15, %v1523_v27, %v1525_v38  ;;  %464 = sbr.rel (!%p462_p9) target bundleno = 279 (0x117), region = 462 }
 0x2c8   : >>> { %804 = vst [vmem:[%s782_s30] sm:$0xf] %v802_v39 }
 0x2c9   : >>> { %v818_v40 = vld [vmem:[%s806_s21] ss:$0 sm:$0xff]  ;;  %v1529_v41 = vld [vmem:[%s806_s21 + $0x1] sm:$0x7] }
 0x2ca   : >>> { %1528 = vst [vmem:[%s805_s16 + $0x1] sm:$0x1] %v818_v40  ;;  %v826_v42 = vsel %vm801_vm15, %v1527_v34, %v1529_v41 }
 0x2cb   : >>> { %828 = vst [vmem:[%s806_s21] sm:$0xf] %v826_v42 }
 0x2ce   : >> { %v376_v43 = vld [vmem:[%s370_s26] sm:$0xf] }
 0x2cf   : >> { %v377_v45 = vsel %vm1391_vm2, %v376_v43, 0.0  ;;  %v412_v47 = vld [vmem:[%s406_s22] sm:$0xf] }
 0x2d0   : >> { %v378_v49 = vmul.f32 %v377_v45, %v377_v45  ;;  %v413_v51 = vsel %vm1391_vm2, %v412_v47, 0.0 }
 0x2d1   : >> { %v395_v44 = vld [vmem:[%s389_s11] sm:$0xf]  ;;  %v414_v53 = vmul.f32 %v413_v51, %v413_v51 }
 0x2d2   : >> { %v396_v46 = vsel %vm1391_vm2, %v395_v44, 0.0  ;;  %v429_v48 = vld [vmem:[%s423_s14] sm:$0xf]  ;;  %v382_v56 = vsel %vm381_vm8, 0.0, %v378_v49 }
 0x2d3   : >> { %v397_v50 = vmul.f32 %v396_v46, %v396_v46  ;;  %v430_v52 = vsel %vm1391_vm2, %v429_v48, 0.0 }
 0x2d4   : >> { %v431_v55 = vmul.f32 %v430_v52, %v430_v52 }
 0x2d5   : >> { %v399_v54 = vadd.f32 %v397_v50, %v378_v49  ;;  %v398_v57 = vadd.f32 %v397_v50, %v382_v56 }
 0x2d6   : >> { %v435_v60 = vsel %vm434_vm9, 0.0, %v431_v55 }
 0x2d7   : >> { %v416_v58 = vadd.f32 %v414_v53, %v399_v54  ;;  %v415_v59 = vadd.f32 %v414_v53, %v398_v57 }
 0x2d9   : >> { %v437_v61 = vadd.f32 %v431_v55, %v416_v58  ;;  %v436_v62 = vadd.f32 %v435_v60, %v415_v59 }
 0x2db   : >> { %438 = vadd.xlane.f32.xlu0 %v437_v61 }
 0x2df   : >> { %446 = vadd.xlane.f32.xlu0 %v436_v62 }
 0x368   : >> { %v439_v63 = vpop.xlane.xlu0 %438 }
 0x369   : >> { %v440_v0 = vrot.slane %v439_v63, 4 }
 0x36b   : >> { %v441_v1 = vadd.f32 %v440_v0, %v439_v63 }
 0x36c   : >> { %v447_v2 = vpop.xlane.xlu0 %446 }
 0x36d   : >> { %v442_v3 = vrot.slane %v441_v1, 2  ;;  %v448_v4 = vrot.slane %v447_v2, 4 }
 0x36f   : >> { %v449_v5 = vadd.f32 %v448_v4, %v447_v2  ;;  %v443_v8 = vadd.f32 %v442_v3, %v441_v1 }
 0x371   : >> { %v450_v9 = vrot.slane %v449_v5, 2  ;;  %v444_v11 = vrot.slane %v443_v8, 1 }
 0x373   : >> { %v451_v10 = vadd.f32 %v450_v9, %v449_v5  ;;  %v445_v14 = vadd.f32 %v444_v11, %v443_v8 }
 0x375   : >> { %v452_v12 = vrot.slane %v451_v10, 1 }
 0x377   : >> { %v453_v13 = vadd.f32 %v452_v12, %v451_v10 }
 0x379   : >> { %1556 = vpush %v453_v13 }
 0x37a   : >> { %1558 = vpush %v445_v14 }
 0x3aa   : >> { %s1557_s20 = spop %1556 }
 0x3ab   : >> { %s1559_s15 = spop %1558 }
 0x3ac   : >> { %s456_s24 = smul.f32 1e-10, %s1559_s15 }
 0x3ae   : >> { %p457_p11 = scmp.le.f32.partialorder %s1557_s20, %s456_s24 }
 0x3b0   : >> { %p459_p12 = por %p458_p10, %p457_p11 }
 0x3b2   : > { %907 = sbr.rel (!%p459_p12) target bundleno = 278 (0x116), region = 473 }
 0x3b9 PF: > { %s912_s23 = smov [#allocation20]  ;;  %v916_v6 = vmov %v1761_v6  ;;  %v919_v7 = vmov %v1763_v7  ;;  %v967_v15 = vld [vmem:[#allocation12] sm:$0xf]  ;;  %v973_v16 = vld [vmem:[#allocation14] sm:$0xf]  ;;  %s2044_s17 = scalar_lea.vmem [#allocation13], %s1757_s28 }
 0x3ba   : > { %v936_v6 = vmov %v1761_v6  ;;  %v939_v7 = vmov %v1763_v7  ;;  %v920_v17 = vld [vmem:[%s912_s23] sm:$0xf]  ;;  %vm923_vm10 = vcmp.eq.s32.totalorder %v919_v7, %v916_v6  ;;  %969 = vst [vmem:[%s2044_s17] sm:$0xf] %v967_v15  ;;  %s2045_s27 = scalar_lea.vmem [#allocation15], %s1757_s28  ;;  %v979_v18 = vld [vmem:[#allocation16] sm:$0xf] }
 0x3bb   : > { %vm943_vm11 = vcmp.eq.s32.totalorder %v939_v7, %v936_v6  ;;  %975 = vst [vmem:[%s2045_s27] sm:$0xf] %v973_v16  ;;  %v924_v19 = vsel %vm923_vm10, %v920_v17, 0.0  ;;  %s932_s29 = smov [#allocation23]  ;;  %s2046_s16 = scalar_lea.vmem [#allocation17], %s1757_s28  ;;  %v985_v20 = vld [vmem:[#allocation18] sm:$0xf] }
 0x3bc   : > { %981 = vst [vmem:[%s2046_s16] sm:$0xf] %v979_v18  ;;  %v925_v21 = vrot.slane %v924_v19, 4  ;;  %v940_v22 = vld [vmem:[%s932_s29] sm:$0xf]  ;;  %s2047_s30 = scalar_lea.vmem [#allocation19], %s1757_s28  ;;  %s908_s21 = sand.u32 7, %s1720_s12  }
 0x3bd   : > { %987 = vst [vmem:[%s2047_s30] sm:$0xf] %v985_v20  ;;  %v944_v23 = vsel %vm943_vm11, %v940_v22, 0.0  ;;  %s909_s25 = scalar_lea.vmem [#allocation8], %s908_s21  ;;  %s911_s26 = scalar_lea.vmem [#allocation10], %s908_s21 }
 0x3be   : > { %v926_v24 = vadd.f32 %v925_v21, %v924_v19  ;;  %v945_v25 = vrot.slane %v944_v23, 4  ;;  %s913_s25 = smov %s909_s25  ;;  %s933_s26 = smov %s911_s26 }
 0x3bf   : > { %s2048_s11 = scalar_lea.vmem [#allocation9], %s1759_s18  ;;  %s2049_s22 = scalar_lea.vmem [#allocation11], %s1759_s18 }
 0x3c0   : > { %v927_v26 = vrot.slane %v926_v24, 2  ;;  %v946_v6 = vadd.f32 %v945_v25, %v944_v23  ;;  %s1015_s14 = sshrl.u32 (%p1734_p3), %s1720_s12, 3  ;;  %s2050_s20 = scalar_lea.vmem (%p1734_p3), [#allocation9], %s1759_s18 }
 0x3c1   : > { %s1544_s15 = sshll.u32 (%p1734_p3), %s1015_s14, 1 }
 0x3c2   : > { %v928_v7 = vadd.f32 %v927_v26, %v926_v24  ;;  %v947_v27 = vrot.slane %v946_v6, 2  ;;  %s1017_s17 = scalar_lea.vmem (%p1734_p3), %s2035_s4, %s1544_s15 }
 0x3c4   : > { %v929_v28 = vrot.slane %v928_v7, 1  ;;  %v948_v29 = vadd.f32 %v947_v27, %v946_v6 }
 0x3c6   : > { %v930_v30 = vadd.f32 %v929_v28, %v928_v7  ;;  %v949_v31 = vrot.slane %v948_v29, 1 }
 0x3c8   : > { %931 = vst [vmem:[%s913_s25] sm:$0x1] %v930_v30  ;;  %v950_v32 = vadd.f32 %v949_v31, %v948_v29 }
 0x3ca   : > { %951 = vst [vmem:[%s933_s26] sm:$0x1] %v950_v32 }
 0x3cc   : > { %1014 = sbr.rel (!%p1734_p3) target bundleno = 985 (0x3d9), region = 158 }
 0x3cf   : > { %v955_v33 = vld [vmem:[#allocation8] sm:$0x3] }
 0x3d0   : > { %957 = vst [vmem:[%s2048_s11] sm:$0x3] %v955_v33 }
 0x3d1   : > { %v961_v34 = vld [vmem:[#allocation10] sm:$0x3] }
 0x3d2   : > { %963 = vst [vmem:[%s2049_s22] sm:$0x3] %v961_v34 }
 0x3d7   : > { %v1033_v35 = vld [vmem:[%s2050_s20] sm:$0x3] }
 0x3d8   : > { %1034 = vst [vmem:[%s1017_s17] sm:$0x3] %v1033_v35 }
 0x3d9 PF: > { %1051 = sbr.rel (!%p1734_p3) target bundleno = 993 (0x3e1), region = 192  ;;  %s1052_s27 = sshrl.u32 (%p1734_p3), %s1720_s12, 3 }
 0x3da   : > { %s2051_s29 = scalar_lea.vmem (%p1734_p3), [#allocation11], %s1759_s18  ;;  %s1545_s16 = sshll.u32 (%p1734_p3), %s1052_s27, 1 }
 0x3db   : > { %s1054_s25 = scalar_lea.vmem (%p1734_p3), %s2036_s5, %s1545_s16 }
 0x3df   : > { %v1070_v36 = vld [vmem:[%s2051_s29] sm:$0x3] (%p1734_p3) }
 0x3e0   : > { %1071 = vst [vmem:[%s1054_s25] sm:$0x3] %v1070_v36 }
 0x3e1 PF: > { %s1546_s26 = sshll.u32 %s1720_s12, 2  ;;  %s2052_s19 = scalar_lea.vmem [#allocation13], %s1757_s28 }
 0x3e2   : > { %v1103_v37 = vld [vmem:[%s2052_s19] sm:$0xf]  ;;  %s2053_s11 = scalar_lea.vmem [#allocation15], %s1757_s28  ;;  %s1087_s14 = scalar_lea.vmem %s2037_s6, %s1546_s26 }
 0x3e3   : > { %v1136_v38 = vld [vmem:[%s2053_s11] sm:$0xf]  ;;  %s1120_s24 = scalar_lea.vmem %s2038_s7, %s1546_s26  ;;  %s2054_s23 = scalar_lea.vmem [#allocation17], %s1757_s28  ;;  %1104 = vst [vmem:[%s1087_s14] sm:$0xf] %v1103_v37 }
 0x3e4   : > { %v1169_v39 = vld [vmem:[%s2054_s23] sm:$0xf]  ;;  %s2055_s17 = scalar_lea.vmem [#allocation19], %s1757_s28  ;;  %1137 = vst [vmem:[%s1120_s24] sm:$0xf] %v1136_v38  ;;  %s1153_s29 = scalar_lea.vmem %s2039_s8, %s1546_s26 }
 0x3e5   : > { %v1202_v40 = vld [vmem:[%s2055_s17] sm:$0xf]  ;;  %s1186_s21 = scalar_lea.vmem %s2040_s9, %s1546_s26  ;;  %1170 = vst [vmem:[%s1153_s29] sm:$0xf] %v1169_v39 }
 0x3e6   : > { %1203 = vst [vmem:[%s1186_s21] sm:$0xf] %v1202_v40 }
 0x3e7 PF: > { %s2056_s25 = sld [smem:[#allocation33_spill]]  ;;  %p13_p13 = scmp.ge.s32.totalorder %s1723_s13, 4  }
 0x3e8   : > { %s2057_s30 = smov %s1637_s10  ;;  %s2059_s11 = smov %s1723_s13 }
 0x3e9   :  { %15 = sbr.rel (!%p13_p13) target bundleno = 2 (0x2), region = 484 }
 0x3ed   : > { %s2058_s10 = smov %s2056_s25 }

// kernel: reverse.6
= control target key start
LH: loop header
LB: loop body
LE: loop exit
PB: predicated region body
PF: predicated region fallthrough
CT: control target
= control target key end

     0   :  { %v2_v0 = vlaneseq  ;;  %s105_s0 = inlined_call_operand.vmem [shape: f32[2,8], index: 0, kind: input, shape index: {}]   ;;  %s106_s1 = inlined_call_operand.vmem [shape: f32[2,8], index: 1, kind: output, shape index: {}]  }
   0x2   :  { %v3_v1 = vsub.s32 7, %v2_v0 }
   0x4   :  { %4 = vset.pattern.permute.xlu0 %v3_v1 }
   0x5   :  { %v20_v2 = vld [vmem:[%s105_s0] sm:$0x3] }
   0x6   :  { %21 = vst [vmem:[#allocation1] sm:$0x3] %v20_v2 }
   0xd   :  { %v38_v3 = vld [vmem:[#allocation1] sm:$0x3] }
   0xe   :  { %39 = vst [vmem:[#allocation0] sm:$0x3] %v38_v3 }
  0x15   :  { %v40_v4 = vld [vmem:[#allocation0] sm:$0xff] }
  0x16   :  { %41 = vperm.xlu0 %4, %v40_v4  }
  0x95   :  { %v42_v5 = vpop.permute.xlu0 %41 }
  0x96   :  { %43 = vst [vmem:[#allocation2] sm:$0xff] %v42_v5 }
  0x9d   :  { %v47_v6 = vld [vmem:[#allocation2] sm:$0x3] }
  0x9e   :  { %49 = vst [vmem:[#allocation3] sm:$0x3] %v47_v6 }
  0xa5   :  { %v65_v7 = vld [vmem:[#allocation3] sm:$0x3] }
  0xa6   :  { %66 = vst [vmem:[%s106_s1] sm:$0x3] %v65_v7 }

// kernel: custom-call.96
= control target key start
LH: loop header
LB: loop body
LE: loop exit
PB: predicated region body
PF: predicated region fallthrough
CT: control target
= control target key end

     0   :  { %s645_s9 = smov 0   ;;  %s647_s10 = smov 0   ;;  %s792_s0 = inlined_call_operand.vmem [shape: f32[2,8,8], index: 0, kind: input, shape index: {}]   ;;  %s793_s1 = inlined_call_operand.vmem [shape: f32[2,8,8], index: 1, kind: output, shape index: {0}]   ;;  %s794_s2 = inlined_call_operand.vmem [shape: f32[2,8], index: 2, kind: output, shape index: {1}]  }
   0x1   :  { %s649_s11 = smov 0   ;;  %s651_s12 = smov 0  }
   0x2   :  { %s653_s13 = smov 0  }
   0x3 LB: > { %s28_s14 = sadd.s32 1, %s618_s12  ;;  %s500_s15 = sadd.s32 4294967295, %s622_s13   ;;  %s622_s13 = sphi %s653_s13, %s9_s13   ;;  %s618_s12 = sphi %s651_s12, %s801_s12   ;;  %s614_s11 = sphi %s649_s11, %s800_s11   ;;  %s610_s10 = sphi %s647_s10, %s799_s10   ;;  %s606_s9 = sphi %s645_s9, %s798_s9  }
   0x4   : > { %p30_p0 = scmp.ge.s32.totalorder %s28_s14, 2  ;;  %s33_s16 = ssub.s32 0, %s618_s12 }
   0x5   : > { %s502_s17 = smin.u32 %s618_s12, %s33_s16  ;;  %p57_p1 = scmp.ne.s32.totalorder %s610_s10, %s606_s9 }
   0x6   : > { %s803_s14 = smov (%p30_p0, %s28_s14), 0  ;;  %s35_s18 = sshrl.u32 %s502_s17, 3 }
   0x7   : > { %s39_s19 = ssub.s32 0, %s803_s14  ;;  %p58_p2 = scmp.eq.s32.totalorder %s500_s15, 1 }
   0x8   : > { %s503_s20 = smin.u32 %s39_s19, %s803_s14  ;;  %s47_s24 = sadd.s32 1, %s610_s10 }
   0x9   : > { %s41_s21 = sshrl.u32 %s503_s20, 3  ;;  %p680_p3 = por %p58_p2, %p57_p1 }
   0xa   : > { %s44_s23 = ssub.s32 %s35_s18, %s41_s21  ;;  %p505_p5 = scmp.ge.s32.totalorder %s622_s13, 2 }
   0xb   : > { %p45_p4 = scmp.eq.s32.totalorder %s44_s23, 0  ;;  %s82_s26 = sand.u32 (!%p505_p5), 1, %s622_s13  }
   0xc   : > { %80 = sbr.rel (%p505_p5) target bundleno = 19 (0x13), region = 16  ;;  %s507_s27 = sshll.u32 (!%p505_p5), %s618_s12, 3 }
   0xd   : > { %s686_s25 = scalar_select %p45_p4, %s610_s10, %s47_s24  }
   0xe   : > { %s506_s28 = sshll.u32 (!%p505_p5), %s82_s26, 3  ;;  %s88_s3 = scalar_lea.vmem (!%p505_p5), %s792_s0, %s507_s27 }
   0xf   : > { %v116_v0 = vld [vmem:[%s88_s3] sm:$0xff] (!%p505_p5)  ;;  %s84_s4 = scalar_lea.vmem (!%p505_p5), [#allocation0], %s506_s28 }
  0x10   : > { %117 = vst [vmem:[%s84_s4] sm:$0xff] (!%p505_p5), %v116_v0 }
  0x13 PF: > { %p508_p6 = scmp.ge.s32.totalorder %s622_s13, 1  ;;  %p122_p7 = scmp.lt.s32.totalorder %s622_s13, 3 }
  0x15   : > { %p123_p8 = pnand %p508_p6, %p122_p7 }
  0x17   : > { %126 = sbr.rel (%p123_p8) target bundleno = 330 (0x14a), region = 54 }
  0x1e   : > { %s129_s5 = sand.u32 1, %s500_s15   ;;  %s143_s6 = sand.u32 1, %s606_s9   ;;  %v628_v2 = vmov 0.0  }
  0x1f   : > { %s509_s7 = sshll.u32 %s129_s5, 3  ;;  %s697_s8 = sshll.u32 %s143_s6, 1 }
  0x20   : > { %s152_s16 = sand.u32 7, %s614_s11   ;;  %s131_s17 = scalar_lea.vmem [#allocation0], %s509_s7 }
  0x21   : > { %v154_v1 = vld [vmem:[%s131_s17] sm:$0xff]  ;;  %s700_s18 = scalar_lea.vmem [#allocation1], %s509_s7  ;;  %s703_s19 = scalar_lea.vmem [#allocation2], %s152_s16 }
  0x22   : > { %155 = vst [vmem:[%s700_s18] sm:$0xff] %v154_v1  ;;  %156 = vst [vmem:[%s703_s19] sm:$0x1] %v628_v2  ;;  %s145_s15 = scalar_lea.vmem [#allocation3], %s697_s8  ;;  %s707_s20 = smov 0  }
  0x23 LB: >> { %v164_v3 = vlaneseq  ;;  %v716_v6 = vstv %s626_s20  ;;  %s191_s9 = scalar_lea.vmem %s700_s18, %s626_s20 [#allocation1]  ;;  %s249_s21 = scalar_lea.vmem [#allocation4], %s626_s20  ;;  %v629_v59 = vmov 1.0   ;;  %s626_s20 = sphi %s707_s20, %s162_s20  }
  0x24   : >> { %s266_s23 = smov [#allocation4] }
  0x25   : >> { %v713_v5 = vshrl.u32 %v164_v3, 7  ;;  %v243_v48 = vand.u32 127, %v164_v3 }
  0x27   : >> { %vm168_vm0 = vcmp.gt.s32.totalorder %v713_v5, %v716_v6  ;;  %v230_v5 = vmov %v713_v5  ;;  %vm731_vm10 = vcmp.eq.s32.totalorder %v243_v48, %v716_v6  ;;  %vm295_vm13 = vcmp.gt.s32.totalorder %v243_v48, %v716_v6 }
  0x28   : >> { %vm234_vm7 = vcmp.gt.s32.totalorder %v230_v5, %v716_v6  ;;  %vm235_vm8 = vcmp.lt.s32.totalorder %v230_v5, 8  ;;  %v269_v5 = vmov %v713_v5 }
  0x29   : >> { %v163_v4 = vld [vmem:[%s700_s18] sm:$0xff]  ;;  %v192_v15 = vld [vmem:[%s191_s9] ss:$0 sm:$0xff]  ;;  %s227_s18 = smov %s700_s18  ;;  %vm236_vm9 = vmand %vm234_vm7, %vm235_vm8  ;;  %vm274_vm11 = vcmp.lt.s32.totalorder %v269_v5, 8  ;;  %v286_v5 = vmov %v713_v5 }
  0x2a   : >> { %v171_v7 = vsel %vm168_vm0, %v163_v4, 0.0  ;;  %v193_v16 = vand.u32 2147483647, %v192_v15  ;;  %vm218_vm6 = vcmp.lt.f32.partialorder %v192_v15, 0.0  ;;  %v231_v45 = vld [vmem:[%s227_s18] sm:$0xff]  ;;  %s265_s18 = smov %s700_s18  ;;  %vm303_vm12 = vcmp.ge.s32.totalorder %v286_v5, %v716_v6 }
  0x2b   : >> { %v172_v8 = vmul.f32 %v171_v7, %v171_v7  ;;  %v237_v49 = vsel %vm236_vm9, %v231_v45, 0.0  ;;  %v262_v60 = vld [vmem:[%s703_s19] ss:$0 sm:$0xff]  ;;  %vm304_vm14 = vmand %vm731_vm10, %vm303_vm12 }
  0x2c   : >> { %v194_v21 = vmax.f32 %v193_v16, 0.0  ;;  %v272_v63 = vld [vmem:[%s265_s18] sm:$0xff]  ;;  %s282_s18 = smov %s265_s18 }
  0x2d   : >> { %v173_v9 = vrot.slane %v172_v8, 4  ;;  %s307_s24 = scalar_lea.vmem %s282_s18, %s626_s20  ;;  %s162_s20 = sadd.s32 1, %s626_s20  }
  0x2e   : >> { %p159_p9 = scmp.ge.s32.totalorder %s162_s20, 8  }
  0x2f   : >> { %v174_v10 = vadd.f32 %v173_v9, %v172_v8  ;;  %s515_s26 = sshll.u32 (%p159_p9), %s614_s11, 3 }
  0x30   : > { %s332_s29 = scalar_lea.vmem (%p159_p9), %s793_s1, %s515_s26 }
  0x31   : >> { %v175_v11 = vrot.slane %v174_v10, 2 }
  0x33   : >> { %v176_v12 = vadd.f32 %v175_v11, %v174_v10 }
  0x35   : >> { %v177_v13 = vrot.slane %v176_v12, 1 }
  0x37   : >> { %v178_v14 = vadd.f32 %v177_v13, %v176_v12  ;;  %v293_v13 = vld [vmem:[%s282_s18] sm:$0xff] }
  0x39   : >> { %570 = vrsqrt.f32 %v178_v14  ;;  %vm181_vm1 = vcmp.eq.f32.partialorder %v178_v14, inf  ;;  %v184_v18 = vand.u32 2147483648, %v178_v14  ;;  %vm183_vm2 = vcmp.eq.f32.partialorder %v178_v14, 0.0 }
  0x43   : >> { %v571_v17 = vpop.eup %570 }
  0x44   : >> { %v180_v19 = vmul.f32 %v571_v17, %v178_v14 }
  0x46   : >> { %v182_v20 = vsel %vm181_vm1, %v178_v14, %v180_v19 }
  0x47   : >> { %v185_v22 = vsel %vm183_vm2, %v184_v18, %v182_v20 }
  0x48   : >> { %v195_v23 = vand.u32 2147483647, %v185_v22 }
  0x4a   : >> { %v196_v24 = vmax.f32 %v194_v21, %v195_v23 }
  0x4c   : >> { %572 = vrcp.f32 %v196_v24  ;;  %vm208_vm5 = vcmp.eq.f32.partialorder %v196_v24, 0.0 }
  0x56   : >> { %v573_v25 = vpop.eup %572 }
  0x57   : >> { %v198_v26 = vmul.f32 %v573_v25, %v193_v16  ;;  %v201_v27 = vmul.f32 0.0, %v573_v25  ;;  %v205_v28 = vmul.f32 %v573_v25, %v195_v23 }
  0x59   : >> { %v199_v29 = vmul.f32 %v198_v26, %v198_v26  ;;  %v202_v30 = vmul.f32 %v201_v27, %v201_v27  ;;  %v206_v31 = vmul.f32 %v205_v28, %v205_v28 }
  0x5b   : >> { %v203_v32 = vadd.f32 %v202_v30, %v199_v29 }
  0x5d   : >> { %v207_v33 = vadd.f32 %v206_v31, %v203_v32 }
  0x5f   : >> { %574 = vrsqrt.f32 %v207_v33  ;;  %vm211_vm3 = vcmp.eq.f32.partialorder %v207_v33, inf  ;;  %v214_v35 = vand.u32 2147483648, %v207_v33  ;;  %vm213_vm4 = vcmp.eq.f32.partialorder %v207_v33, 0.0 }
  0x69   : >> { %v575_v34 = vpop.eup %574 }
  0x6a   : >> { %v210_v36 = vmul.f32 %v575_v34, %v207_v33 }
  0x6c   : >> { %v212_v37 = vsel %vm211_vm3, %v207_v33, %v210_v36 }
  0x6d   : >> { %v215_v38 = vsel %vm213_vm4, %v214_v35, %v212_v37 }
  0x6e   : >> { %v216_v39 = vmul.f32 %v215_v38, %v196_v24 }
  0x70   : >> { %v217_v40 = vsel %vm208_vm5, 0.0, %v216_v39 }
  0x71   : >> { %v219_v41 = vxor.u32 2147483648, %v217_v40 }
  0x73   : >> { %v220_v42 = vsel %vm218_vm6, %v217_v40, %v219_v41 }
  0x74   : >> { %v724_v43 = vsel %vm183_vm2, %v192_v15, %v220_v42  ;;  %576 = vrcp.f32 %v220_v42  ;;  %v221_v46 = vsub.f32 %v220_v42, %v192_v15 }
  0x75   : >> { %v226_v44 = vsub.f32 %v192_v15, %v724_v43 }
  0x77   : >> { %578 = vrcp.f32 %v226_v44 }
  0x7e   : >> { %v577_v47 = vpop.eup %576 }
  0x7f   : >> { %v223_v50 = vmul.f32 %v577_v47, %v221_v46 }
  0x81   : >> { %v579_v51 = vpop.eup %578  ;;  %v225_v55 = vsel %vm183_vm2, 0.0, %v223_v50 }
  0x82   : >> { %v239_v52 = vmul.f32 %v579_v51, %v237_v49  ;;  %v255_v57 = vsel %vm731_vm10, %v225_v55, 0.0 }
  0x84   : >> { %v240_v54 = vsel %vm183_vm2, 0.0, %v239_v52 }
  0x85   : >> { %v245_v56 = vsel %vm731_vm10, %v240_v54, 0.0 }
  0x86   : >> { %246 = vadd.xlane.f32.xlu0 %v245_v56 }
  0x8a   : >> { %256 = vadd.xlane.f32.xlu0 %v255_v57 }
 0x113   : >> { %v247_v58 = vpop.xlane.xlu0 %246 }
 0x114   : >> { %248 = vst [vmem:[#allocation4] sm:$0xff] %v247_v58 }
 0x115   : >> { %250 = vst [vmem:[%s249_s21] sm:$0x1] %v629_v59 }
 0x117   : >> { %v257_v61 = vpop.xlane.xlu0 %256 }
 0x118   : >> { %v263_v62 = vsel %vm731_vm10, %v257_v61, %v262_v60 }
 0x119   : >> { %264 = vst [vmem:[%s703_s19] sm:$0x1] %v263_v62 }
 0x11c   : >> { %v271_v0 = vld [vmem:[%s266_s23] sm:$0xff]  ;;  %s283_s23 = smov %s266_s23 }
 0x11d   : >> { %v273_v1 = vmul.f32 %v272_v63, %v271_v0  ;;  %v291_v12 = vld [vmem:[%s283_s23] sm:$0xff] }
 0x11f   : >> { %v275_v2 = vsel %vm274_vm11, %v273_v1, 0.0 }
 0x120   : >> { %v276_v3 = vrot.slane %v275_v2, 4  ;;  %v318_v5 = vld [vmem:[#allocation2] sm:$0x3] (%p159_p9) }
 0x121   : > { %320 = vst [vmem:[%s145_s15] sm:$0x3] (%p159_p9), %v318_v5 }
 0x122   : >> { %v277_v4 = vadd.f32 %v276_v3, %v275_v2 }
 0x124   : >> { %v278_v7 = vrot.slane %v277_v4, 2 }
 0x126   : >> { %v279_v8 = vadd.f32 %v278_v7, %v277_v4 }
 0x128   : >> { %v280_v9 = vrot.slane %v279_v8, 1 }
 0x12a   : >> { %v281_v10 = vadd.f32 %v280_v9, %v279_v8 }
 0x12c   : >> { %v287_v11 = vmul.f32 %v281_v10, %v257_v61 }
 0x12e   : >> { %v292_v14 = vmul.f32 %v291_v12, %v287_v11 }
 0x130   : >> { %v296_v15 = vsub.f32 %v293_v13, %v292_v14 }
 0x132   : >> { %v297_v16 = vsel %vm295_vm13, %v296_v15, %v293_v13 }
 0x133   : >> { %v305_v17 = vsel %vm304_vm14, %v291_v12, %v297_v16 }
 0x134   : >> { %306 = vst [vmem:[%s282_s18] sm:$0xff] %v305_v17 }
 0x137   : > { %161 = sbr.rel (!%p159_p9) target bundleno = 35 (0x23), region = 175 }
 0x13b   : >> { %v308_v18 = vld [vmem:[%s307_s24] ss:$0 sm:$0xff] }
 0x13c   : >> { %v313_v19 = vsel %vm731_vm10, %v724_v43, %v308_v18 }
 0x13d   : >> { %314 = vst [vmem:[%s307_s24] sm:$0x1] %v313_v19 }
 0x13e   : > { %p368_p10 = scmp.lt.s32.totalorder (%p680_p3), %s614_s11, 0  ;;  %s369_s30 = ssub.s32 (%p680_p3), 0, %s614_s11  ;;  %v391_v20 = vld [vmem:[%s145_s15] sm:$0x3] (%p680_p3) }
 0x13f   : > { %367 = sbr.rel (!%p680_p3) target bundleno = 330 (0x14a), region = 99  ;;  %s516_s3 = smin.u32 (%p680_p3), %s614_s11, %s369_s30 }
 0x140   : > { %s371_s4 = sshrl.u32 (%p680_p3), %s516_s3, 3 }
 0x141   : > { %s372_s5 = ssub.s32 (%p680_p3), 0, %s371_s4 }
 0x144   : > { %v360_v6 = vld [vmem:[%s700_s18] sm:$0xff] }
 0x145   : > { %361 = vst [vmem:[%s332_s29] sm:$0xff] %v360_v6 }
 0x146   : > { %s805_s5 = smov (!%p368_p10, %s372_s5), %s371_s4 }
 0x147   : > { %s517_s6 = sshll.u32 %s805_s5, 1 }
 0x148   : > { %s375_s17 = scalar_lea.vmem %s794_s2, %s517_s6 }
 0x149   : > { %392 = vst [vmem:[%s375_s17] sm:$0x3] %v391_v20 }
 0x14a PF: > { %s9_s13 = sadd.s32 1, %s622_s13   ;;  %s798_s9 = smov %s610_s10 }
 0x14b   : > { %p6_p11 = scmp.ge.s32.totalorder %s9_s13, 4   ;;  %s799_s10 = smov %s686_s25 }
 0x14c   : > { %s800_s11 = smov %s618_s12  ;;  %s801_s12 = smov %s803_s14 }
 0x14d   :  { %8 = sbr.rel (!%p6_p11) target bundleno = 3 (0x3), region = 186 }

// kernel: custom-call.50
= control target key start
LH: loop header
LB: loop body
LE: loop exit
PB: predicated region body
PF: predicated region fallthrough
CT: control target
= control target key end

     0   :  { %5 = vsyncpa [#allocation6], 0  ;;  %s878_s0 = inlined_call_operand.vmem [shape: f32[9,9], index: 0, kind: input, shape index: {}]   ;;  %s879_s1 = inlined_call_operand.vmem [shape: f32[9,9], index: 1, kind: output, shape index: {0}]   ;;  %s880_s2 = inlined_call_operand.vmem [shape: s32[9], index: 2, kind: output, shape index: {1}]   ;;  %s881_s3 = inlined_call_operand.hbm [shape: s32[9], index: 3, kind: output, shape index: {2}]  }
   0x1   :  { %s19_s14 = scalar_lea.vmem %s878_s0, 8 }
   0x2   :  { %p454_p0 = scmp.gt.s32.totalorder %s878_s0, %s19_s14 }
   0x3   :  { %s747_s17 = smov (!%p454_p0), [#allocation0]   ;;  %s751_s20 = smov (!%p454_p0), %s878_s0  }
   0x4   :  { %455 = sbr.rel (%p454_p0) target bundleno = 21 (0x15), region = 157 }
   0xb LB: > { %v53_v0 = vld [vmem:[%s753_s20] sm:$0xff]  ;;  %s55_s20 = scalar_lea.vmem %s753_s20, 8   ;;  %s753_s20 = sphi %s751_s20, %s55_s20   ;;  %s749_s17 = sphi %s747_s17, %s56_s17  }
   0xc   : > { %54 = vst [vmem:[%s749_s17] sm:$0xff] %v53_v0  ;;  %s56_s17 = scalar_lea.vmem %s749_s17, 8   ;;  %p50_p1 = scmp.gt.s32.totalorder %s55_s20, %s19_s14 }
   0xe   :  { %52 = sbr.rel (!%p50_p1) target bundleno = 11 (0xb), region = 163 }
  0x15 PF:  { %v68_v1 = vld [vmem:[#allocation0] sm:$0xff]  ;;  %v72_v2 = vld [vmem:[#allocation0 + $0x8] sm:$0xff]  ;;  %v75_v3 = vlaneseq  ;;  %v771_v4 = vmov 0   ;;  %s755_s0 = smov 0  }
  0x16   :  { %69 = vst [vmem:[#allocation1] sm:$0xff] %v68_v1  ;;  %73 = vst [vmem:[#allocation1 + $0x8] sm:$0xff] %v72_v2 }
  0x17   :  { %74 = vst [vmem:[#allocation2] sm:$0x1] %v771_v4  ;;  %v803_v5 = vshrl.u32 %v75_v3, 7 }
  0x18 LB: > { %s512_s21 = sshll.u32 %s757_s0, 3  ;;  %s83_s0 = sadd.s32 1, %s757_s0   ;;  %s757_s0 = sphi %s755_s0, %s83_s0  }
  0x19   : > { %v87_v6 = vstv %s512_s21  ;;  %s85_s22 = scalar_lea.vmem [#allocation7], %s512_s21  ;;  %p80_p2 = scmp.ge.s32.totalorder %s83_s0, 2  }
  0x1a   : > { %v88_v7 = vadd.s32 %v87_v6, %v803_v5  ;;  %s806_s23 = smov (%p80_p2), 0  }
  0x1b   :  { %82 = sbr.rel (!%p80_p2) target bundleno = 24 (0x18), region = 174 }
  0x1c   : > { %89 = vst [vmem:[%s85_s22] sm:$0xff] %v88_v7 }
  0x22 LB: > { %v100_v8 = vld [vmem:[#allocation1] sm:$0xff]  ;;  %v112_v9 = vld [vmem:[#allocation1 + $0x8] sm:$0xff]  ;;  %v812_v10 = vadd.s32 8, %v803_v5  ;;  %v815_v12 = vstv %s761_s23  ;;  %s158_s24 = ssub.s32 128, %s761_s23  ;;  %v164_v45 = vand.u32 127, %v75_v3  ;;  %s170_s25 = scalar_lea.vmem [#allocation1], %s761_s23  ;;  %s761_s23 = sphi %s806_s23, %s95_s23  }
  0x23   : > { %v101_v11 = vand.u32 2147483647, %v100_v8  ;;  %v113_v13 = vand.u32 2147483647, %v112_v9  ;;  %vm104_vm1 = vcmp.ge.s32.totalorder %v803_v5, %v815_v12  ;;  %v167_v48 = vld [vmem:[#allocation2] ss:$0 sm:$0xff] }
  0x24   : > { %vm117_vm0 = vcmp.lt.s32.totalorder %v812_v10, 9  ;;  %vm116_vm3 = vcmp.ge.s32.totalorder %v812_v10, %v815_v12  ;;  %vm188_vm15 = vcmp.gt.s32.totalorder %v164_v45, %v815_v12  ;;  %v172_v49 = vld [vmem:[%s170_s25] ss:$0 sm:$0xff]  ;;  %s176_s27 = scalar_lea.vmem [#allocation7], %s761_s23  ;;  %s95_s23 = sadd.s32 1, %s761_s23  }
  0x25   : > { %vm514_vm2 = vcmp.gt.f32.partialorder %v101_v11, -inf  ;;  %vm118_vm5 = vmand %vm116_vm3, %vm117_vm0  ;;  %vm211_vm0 = vcmp.gt.s32.totalorder %v812_v10, %v815_v12  ;;  %v178_v50 = vld [vmem:[%s176_s27] ss:$0 sm:$0xff]  ;;  %p92_p3 = scmp.ge.s32.totalorder %s95_s23, 9  }
  0x26   : > { %vm108_vm4 = vmand %vm104_vm1, %vm514_vm2  ;;  %vm165_vm1 = vcmp.eq.s32.totalorder %v164_v45, %v815_v12  ;;  %s763_s5 = smov (%p92_p3), %s879_s1   ;;  %s767_s6 = smov (%p92_p3), [#allocation1]  }
  0x27   : > { %v109_v14 = vsel %vm108_vm4, %v803_v5, %v815_v12  ;;  %v110_v15 = vsel %vm108_vm4, %v101_v11, -inf  ;;  %vm836_vm2 = vmand %vm211_vm0, %vm165_vm1  ;;  %vm196_vm4 = vcmp.gt.s32.totalorder %v803_v5, %v815_v12 }
  0x28   : > { %vm119_vm6 = vcmp.lt.f32.partialorder %v110_v15, %v113_v13 }
  0x29   : > { %vm120_vm7 = vmand %vm118_vm5, %vm119_vm6 }
  0x2a   : > { %v121_v16 = vsel %vm120_vm7, %v812_v10, %v109_v14  ;;  %v122_v17 = vsel %vm120_vm7, %v113_v13, %v110_v15  ;;  %vm200_vm6 = vmand %vm196_vm4, %vm165_vm1 }
  0x2b   : > { %v123_v18 = vrot.slane %v122_v17, 1  ;;  %v124_v19 = vrot.slane %v121_v16, 1 }
  0x2d   : > { %vm125_vm8 = vcmp.ge.f32.partialorder %v123_v18, %v122_v17  ;;  %v128_v20 = vrot.slane %v123_v18, 1  ;;  %v129_v21 = vrot.slane %v124_v19, 1 }
  0x2e   : > { %v126_v22 = vsel %vm125_vm8, %v123_v18, %v122_v17  ;;  %v127_v23 = vsel %vm125_vm8, %v124_v19, %v121_v16 }
  0x2f   : > { %vm130_vm9 = vcmp.ge.f32.partialorder %v128_v20, %v126_v22  ;;  %v133_v24 = vrot.slane %v128_v20, 1  ;;  %v134_v25 = vrot.slane %v129_v21, 1 }
  0x30   : > { %v131_v26 = vsel %vm130_vm9, %v128_v20, %v126_v22  ;;  %v132_v27 = vsel %vm130_vm9, %v129_v21, %v127_v23 }
  0x31   : > { %vm135_vm10 = vcmp.ge.f32.partialorder %v133_v24, %v131_v26  ;;  %v138_v28 = vrot.slane %v133_v24, 1  ;;  %v139_v29 = vrot.slane %v134_v25, 1 }
  0x32   : > { %v136_v30 = vsel %vm135_vm10, %v133_v24, %v131_v26  ;;  %v137_v31 = vsel %vm135_vm10, %v134_v25, %v132_v27 }
  0x33   : > { %vm140_vm11 = vcmp.ge.f32.partialorder %v138_v28, %v136_v30  ;;  %v143_v32 = vrot.slane %v138_v28, 1  ;;  %v144_v33 = vrot.slane %v139_v29, 1 }
  0x34   : > { %v141_v34 = vsel %vm140_vm11, %v138_v28, %v136_v30  ;;  %v142_v35 = vsel %vm140_vm11, %v139_v29, %v137_v31 }
  0x35   : > { %vm145_vm12 = vcmp.ge.f32.partialorder %v143_v32, %v141_v34  ;;  %v148_v36 = vrot.slane %v143_v32, 1  ;;  %v149_v37 = vrot.slane %v144_v33, 1 }
  0x36   : > { %v146_v38 = vsel %vm145_vm12, %v143_v32, %v141_v34  ;;  %v147_v39 = vsel %vm145_vm12, %v144_v33, %v142_v35 }
  0x37   : > { %vm150_vm13 = vcmp.ge.f32.partialorder %v148_v36, %v146_v38  ;;  %v153_v40 = vrot.slane %v148_v36, 1  ;;  %v154_v41 = vrot.slane %v149_v37, 1 }
  0x38   : > { %v151_v42 = vsel %vm150_vm13, %v148_v36, %v146_v38  ;;  %v152_v43 = vsel %vm150_vm13, %v149_v37, %v147_v39 }
  0x39   : > { %vm155_vm14 = vcmp.ge.f32.partialorder %v153_v40, %v151_v42 }
  0x3a   : > { %v157_v44 = vsel %vm155_vm14, %v154_v41, %v152_v43 }
  0x3b   : > { %159 = vrot.lane.b32.xlu0 %v157_v44, %s158_s24 }
  0xad   : > { %v160_v47 = vpop.permute.xlu0 %159 }
  0xae   : > { %522 = vpush %v160_v47 }
  0xdf   : > { %s523_s26 = spop %522 }
  0xe0   : > { %v166_v51 = vstv %s523_s26  ;;  %s171_s28 = scalar_lea.vmem [#allocation1], %s523_s26  ;;  %s177_s29 = scalar_lea.vmem [#allocation7], %s523_s26 }
  0xe1   : > { %v168_v52 = vsel %vm165_vm1, %v166_v51, %v167_v48  ;;  %v173_v53 = vld [vmem:[%s171_s28] ss:$0 sm:$0xff] }
  0xe2   : > { %v179_v54 = vld [vmem:[%s177_s29] ss:$0 sm:$0xff]  ;;  %169 = vst [vmem:[#allocation2] sm:$0x1] %v168_v52  ;;  %174 = vst [vmem:[%s171_s28] sm:$0x1] %v172_v49  ;;  %vm182_vm3 = vcmp.ne.f32.partialorder %v173_v53, 0.0 }
  0xe3   : > { %180 = vst [vmem:[%s177_s29] sm:$0x1] %v178_v50  ;;  %175 = vst [vmem:[%s170_s25] sm:$0x1] %v173_v53  ;;  %v189_v2 = vsel %vm188_vm15, %v173_v53, 0.0 }
  0xe4   : > { %181 = vst [vmem:[%s176_s27] sm:$0x1] %v179_v54  ;;  %vm183_vm5 = vmand %vm165_vm1, %vm182_vm3 }
  0xe5   : > { %v184_v55 = vsel %vm183_vm5, %v173_v53, 1.0 }
  0xe6   : > { %v212_v56 = vsel %vm211_vm0, %v184_v55, 1.0  ;;  %v197_v57 = vsel %vm196_vm4, %v184_v55, 1.0 }
  0xe7   : > { %655 = vrcp.f32 %v212_v56 }
  0xe8   : > { %657 = vrcp.f32 %v197_v57 }
  0xe9   :  { %v275_v12 = vld [vmem:[#allocation2] sm:$0x1] (%p92_p3) }
  0xea   : > { %v208_v59 = vld [vmem:[#allocation1 + $0x8] sm:$0xff]  ;;  %v193_v62 = vld [vmem:[#allocation1] sm:$0xff]  ;;  %277 = vst [vmem:[#allocation3] sm:$0x1] (%p92_p3), %v275_v12 }
  0xeb   :  { %v222_v11 = vld [vmem:[#allocation7] sm:$0xff] (%p92_p3)  ;;  %v224_v13 = vld [vmem:[#allocation7 + $0x8] sm:$0xff] (%p92_p3) }
  0xf1   : > { %v656_v58 = vpop.eup %655 }
  0xf2   : > { %v658_v60 = vpop.eup %657  ;;  %v214_v61 = vmul.f32 %v656_v58, %v208_v59 }
  0xf3   : > { %v199_v63 = vmul.f32 %v658_v60, %v193_v62 }
  0xf4   : > { %v216_v0 = vsel %vm836_vm2, %v214_v61, 0.0 }
  0xf5   : > { %217 = vadd.xlane.f32.xlu1 %v216_v0  ;;  %v201_v1 = vsel %vm200_vm6, %v199_v63, 0.0 }
  0xf6   : > { %202 = vadd.xlane.f32.xlu0 %v201_v1 }
 0x123   :  { %239 = vxpose.xlu0.b32.start [1/2] (short) (narrow) (%p92_p3), %v222_v11, 8 }
 0x127   :  { %240 = vxpose.xlu0.b32.end [2/2] (short) (narrow) (%p92_p3), %v224_v13, 8 }
 0x182   : > { %v218_v4 = vpop.xlane.xlu1 %217  ;;  %94 = sbr.rel (!%p92_p3) target bundleno = 34 (0x22), region = 185 }
 0x183   : > { %v219_v6 = vmul.f32 %v218_v4, %v189_v2  ;;  %v203_v7 = vpop.xlane.xlu0 %202 }
 0x184   : > { %v204_v8 = vmul.f32 %v203_v7, %v189_v2 }
 0x185   : > { %v220_v9 = vsub.f32 %v214_v61, %v219_v6 }
 0x186   : > { %v205_v10 = vsub.f32 %v199_v63, %v204_v8 }
 0x187   : > { %221 = vst [vmem:[#allocation1 + $0x8] sm:$0xff] %v220_v9 }
 0x188   : > { %206 = vst [vmem:[#allocation1] sm:$0xff] %v205_v10 }
 0x1a3   :  { %v255_v14 = vpop.trf.xlu0 }
 0x1a4   :  { %271 = vst [vmem:[#allocation4] sm:$0x1] %v255_v14 }
 0x1ab   :  { %v281_v15 = vld [vmem:[#allocation4] sm:$0x1] }
 0x1ac   :  { %283 = vst [vmem:[#allocation5] sm:$0x1] %v281_v15 }
 0x1ad LB: > { %v331_v16 = vld [vmem:[%s769_s6] sm:$0xff]  ;;  %s333_s6 = scalar_lea.vmem %s769_s6, 8   ;;  %s769_s6 = sphi %s767_s6, %s333_s6   ;;  %s765_s5 = sphi %s763_s5, %s334_s5  }
 0x1ae   : > { %332 = vst [vmem:[%s765_s5] sm:$0xff] %v331_v16  ;;  %s334_s5 = scalar_lea.vmem %s765_s5, 8   ;;  %p328_p4 = scmp.gt.s32.totalorder %s333_s6, [#allocation1 + $0x8] }
 0x1af   :  { %v408_v3 = vld [vmem:[#allocation3] sm:$0x1] (%p328_p4)  ;;  %s772_s9 = smov (%p328_p4), [#allocation5]  }
 0x1b0   :  { %330 = sbr.rel (!%p328_p4) target bundleno = 429 (0x1ad), region = 207  ;;  %409 = vst [vmem:[%s880_s2] sm:$0x1] (%p328_p4), %v408_v3  ;;  %s415_s1 = sshll.u32 (%p328_p4), %s772_s9, 4  ;;  %s416_s1 = int_to_ptr.vmem [resolvable:$true] %s415_s1 }
 0x1b1   :  { %s659_s10 = scalar_lea.vmem (%p328_p4), %s416_s1, 16  ;;  %s663_s11 = scalar_lea.vmem (%p328_p4), %s416_s1, 32 }
 0x1b2   :  { %p660_p5 = scmp.ne.s32.totalorder (%p328_p4), %s416_s1, %s659_s10  ;;  %p664_p6 = scmp.lt.s32.totalorder (%p328_p4), %s416_s1, %s416_s1 }
 0x1b3   :  { %p665_p7 = scmp.lt.s32.totalorder (%p328_p4), %s663_s11, %s659_s10 }
 0x1b5   :  { %p666_p8 = por (%p328_p4), %p665_p7, %p664_p6 }
 0x1b7   :  { %p667_p9 = pnand %p666_p8, %p660_p5 }
 0x1b9   :  { %670 = shalt.err (!%p667_p9)
}
 0x1ba   :  { %s671_s14 = scalar_lea.hbm %s881_s3, 16 }
 0x1bb   :  { %p672_p10 = scmp.ne.s32.totalorder %s881_s3, %s671_s14  ;;  %p675_p11 = scmp.lt.u32.totalorder %s671_s14, %s881_s3 }
 0x1bd   :  { %p677_p12 = pnand %p675_p11, %p672_p10 }
 0x1bf   :  { %680 = shalt.err (!%p677_p12)
}
 0x1c0   :  { %418 = dma.vmem_to_hbm [thread:$0]  %s416_s1, 16, %s881_s3, [#allocation6]  }
 0x1c1   :  { %745 = dma.done.wait [#allocation6], 16  }
 0x1c2   :  { %746 = vsyncadd [#allocation6], 4294967280 }
 0x1c3   :  { %424 = vsyncpa [#allocation6], 1 }

// kernel: custom-call.199
= control target key start
LH: loop header
LB: loop body
LE: loop exit
PB: predicated region body
PF: predicated region fallthrough
CT: control target
= control target key end

     0   :  { %v395_v2 = vmov 0.0   ;;  %s418_s13 = smov 0   ;;  %s502_s0 = inlined_call_operand.vmem [shape: f32[16,8], index: 0, kind: input, shape index: {}]   ;;  %s503_s1 = inlined_call_operand.vmem [shape: f32[16,8], index: 1, kind: output, shape index: {0}]   ;;  %s504_s2 = inlined_call_operand.vmem [shape: f32[8], index: 2, kind: output, shape index: {1}]  }
   0x1   :  { %v33_v0 = vld [vmem:[%s502_s0] sm:$0xff]  ;;  %v35_v1 = vld [vmem:[%s502_s0 + $0x8] sm:$0xff]  ;;  %46 = vst [vmem:[#allocation2] sm:$0x1] %v395_v2 }
   0x2   :  { %41 = vst [vmem:[#allocation1] sm:$0xff] %v33_v0  ;;  %45 = vst [vmem:[#allocation1 + $0x8] sm:$0xff] %v35_v1 }
   0x3 LB: > { %v54_v3 = vlaneseq  ;;  %v427_v6 = vstv %s393_s13  ;;  %s91_s0 = scalar_lea.vmem [#allocation1], %s393_s13  ;;  %s127_s14 = smov [#allocation1]  ;;  %s393_s13 = sphi %s418_s13, %s52_s13  }
   0x4   : > { %s167_s15 = scalar_lea.vmem [#allocation4], %s393_s13  ;;  %s183_s16 = smov [#allocation1] }
   0x5   : > { %v424_v5 = vshrl.u32 %v54_v3, 7  ;;  %v453_v54 = vand.u32 127, %v54_v3  ;;  %s184_s17 = smov [#allocation4] }
   0x7   : > { %vm58_vm0 = vcmp.gt.s32.totalorder %v424_v5, %v427_v6  ;;  %v65_v8 = vadd.s32 8, %v424_v5  ;;  %v130_v5 = vmov %v424_v5  ;;  %vm457_vm12 = vcmp.eq.s32.totalorder %v453_v54, %v427_v6 }
   0x8   : > { %v149_v50 = vadd.s32 8, %v130_v5  ;;  %vm134_vm10 = vcmp.gt.s32.totalorder %v130_v5, %v427_v6  ;;  %v187_v5 = vmov %v424_v5 }
   0x9   : > { %v53_v4 = vld [vmem:[#allocation1] sm:$0xff]  ;;  %v62_v7 = vld [vmem:[#allocation1 + $0x8] sm:$0xff]  ;;  %vm67_vm1 = vcmp.gt.s32.totalorder %v65_v8, %v427_v6 }
   0xa   : > { %v59_v9 = vsel %vm58_vm0, %v53_v4, 0.0  ;;  %v70_v11 = vsel %vm67_vm1, %v62_v7, 0.0  ;;  %v92_v20 = vld [vmem:[%s91_s0] ss:$0 sm:$0xff]  ;;  %vm151_vm8 = vcmp.gt.s32.totalorder %v149_v50, %v427_v6  ;;  %vm152_vm9 = vcmp.lt.s32.totalorder %v149_v50, 16  ;;  %v361_v53 = vld [vmem:[%s127_s14 + $0x8] sm:$0xff] }
   0xb   : > { %v60_v10 = vmul.f32 %v59_v9, %v59_v9  ;;  %v71_v12 = vmul.f32 %v70_v11, %v70_v11  ;;  %v93_v21 = vand.u32 2147483647, %v92_v20  ;;  %vm118_vm7 = vcmp.lt.f32.partialorder %v92_v20, 0.0  ;;  %v131_v52 = vld [vmem:[%s127_s14] sm:$0xff]  ;;  %vm153_vm11 = vmand %vm151_vm8, %vm152_vm9  ;;  %v180_v7 = vld [vmem:[#allocation2] ss:$0 sm:$0xff] }
   0xc   : > { %v135_v56 = vsel %vm134_vm10, %v131_v52, 0.0  ;;  %v154_v57 = vsel %vm153_vm11, %v361_v53, 0.0  ;;  %vm220_vm0 = vcmp.gt.s32.totalorder %v453_v54, %v427_v6 }
   0xd   : > { %v72_v13 = vadd.f32 %v71_v12, %v60_v10  ;;  %v94_v26 = vmax.f32 %v93_v21, 0.0  ;;  %v396_v12 = vmov 1.0  }
   0xf   : > { %v73_v14 = vrot.slane %v72_v13, 4 }
  0x11   : > { %v74_v15 = vadd.f32 %v73_v14, %v72_v13  ;;  %v192_v13 = vadd.s32 8, %v187_v5  ;;  %v190_v14 = vld [vmem:[%s183_s16] sm:$0xff]  ;;  %v211_v5 = vmov %v424_v5 }
  0x12   : > { %vm228_vm14 = vcmp.ge.s32.totalorder %v211_v5, %v427_v6 }
  0x13   : > { %v75_v16 = vrot.slane %v74_v15, 2  ;;  %vm198_vm13 = vcmp.lt.s32.totalorder %v192_v13, 16  ;;  %vm229_vm1 = vmand %vm457_vm12, %vm228_vm14 }
  0x15   : > { %v76_v17 = vadd.f32 %v75_v16, %v74_v15  ;;  %v363_v15 = vld [vmem:[%s183_s16 + $0x8] sm:$0xff]  ;;  %s207_s16 = smov %s183_s16 }
  0x16   : > { %s253_s18 = scalar_lea.vmem %s207_s16, %s393_s13  ;;  %s52_s13 = sadd.s32 1, %s393_s13  }
  0x17   : > { %v77_v18 = vrot.slane %v76_v17, 1  ;;  %p49_p0 = scmp.ge.s32.totalorder %s52_s13, 8  }
  0x19   : > { %v433_v19 = vadd.f32 %v77_v18, %v76_v17 }
  0x1b   : > { %377 = vrsqrt.f32 %v433_v19  ;;  %vm81_vm2 = vcmp.eq.f32.partialorder %v433_v19, inf  ;;  %v84_v23 = vand.u32 2147483648, %v433_v19  ;;  %vm83_vm3 = vcmp.eq.f32.partialorder %v433_v19, 0.0 }
  0x25   : > { %v378_v22 = vpop.eup %377 }
  0x26   : > { %v80_v24 = vmul.f32 %v378_v22, %v433_v19 }
  0x28   : > { %v82_v25 = vsel %vm81_vm2, %v433_v19, %v80_v24 }
  0x29   : > { %v85_v27 = vsel %vm83_vm3, %v84_v23, %v82_v25 }
  0x2a   : > { %v95_v28 = vand.u32 2147483647, %v85_v27  ;;  %v232_v27 = vadd.s32 8, %v211_v5 }
  0x2c   : > { %v96_v29 = vmax.f32 %v94_v26, %v95_v28  ;;  %vm249_vm15 = vcmp.ge.s32.totalorder %v232_v27, %v427_v6 }
  0x2d   : > { %vm250_vm2 = vmand %vm457_vm12, %vm249_vm15 }
  0x2e   : > { %379 = vrcp.f32 %v96_v29  ;;  %vm108_vm6 = vcmp.eq.f32.partialorder %v96_v29, 0.0 }
  0x38   : > { %v380_v30 = vpop.eup %379 }
  0x39   : > { %v98_v31 = vmul.f32 %v380_v30, %v93_v21  ;;  %v101_v32 = vmul.f32 0.0, %v380_v30  ;;  %v105_v33 = vmul.f32 %v380_v30, %v95_v28 }
  0x3b   : > { %v99_v34 = vmul.f32 %v98_v31, %v98_v31  ;;  %v102_v35 = vmul.f32 %v101_v32, %v101_v32  ;;  %v106_v36 = vmul.f32 %v105_v33, %v105_v33  ;;  %v365_v33 = vld [vmem:[%s207_s16 + $0x8] sm:$0xff] }
  0x3d   : > { %v103_v37 = vadd.f32 %v102_v35, %v99_v34 }
  0x3f   : > { %v107_v38 = vadd.f32 %v106_v36, %v103_v37 }
  0x41   : > { %381 = vrsqrt.f32 %v107_v38  ;;  %vm111_vm4 = vcmp.eq.f32.partialorder %v107_v38, inf  ;;  %v114_v40 = vand.u32 2147483648, %v107_v38  ;;  %vm113_vm5 = vcmp.eq.f32.partialorder %v107_v38, 0.0 }
  0x4b   : > { %v382_v39 = vpop.eup %381 }
  0x4c   : > { %v110_v41 = vmul.f32 %v382_v39, %v107_v38 }
  0x4e   : > { %v112_v42 = vsel %vm111_vm4, %v107_v38, %v110_v41 }
  0x4f   : > { %v115_v43 = vsel %vm113_vm5, %v114_v40, %v112_v42 }
  0x50   : > { %v116_v44 = vmul.f32 %v115_v43, %v96_v29  ;;  %v218_v29 = vld [vmem:[%s207_s16] sm:$0xff] }
  0x52   : > { %v117_v45 = vsel %vm108_vm6, 0.0, %v116_v44 }
  0x53   : > { %v119_v46 = vxor.u32 2147483648, %v117_v45 }
  0x55   : > { %v120_v47 = vsel %vm118_vm7, %v117_v45, %v119_v46 }
  0x56   : > { %v447_v48 = vsel %vm83_vm3, %v92_v20, %v120_v47  ;;  %383 = vrcp.f32 %v120_v47  ;;  %v121_v51 = vsub.f32 %v120_v47, %v92_v20 }
  0x57   : > { %v126_v49 = vsub.f32 %v92_v20, %v447_v48 }
  0x59   : > { %385 = vrcp.f32 %v126_v49 }
  0x60   : > { %v384_v55 = vpop.eup %383 }
  0x61   : > { %v123_v58 = vmul.f32 %v384_v55, %v121_v51 }
  0x63   : > { %v386_v59 = vpop.eup %385  ;;  %v125_v61 = vsel %vm83_vm3, 0.0, %v123_v58 }
  0x64   : > { %v137_v62 = vmul.f32 %v386_v59, %v135_v56  ;;  %v156_v63 = vmul.f32 %v386_v59, %v154_v57  ;;  %v173_v0 = vsel %vm457_vm12, %v125_v61, 0.0 }
  0x65   : > { %174 = vadd.xlane.f32.xlu1 %v173_v0 }
  0x66   : > { %v138_v1 = vsel %vm83_vm3, 0.0, %v137_v62  ;;  %v157_v2 = vsel %vm83_vm3, 0.0, %v156_v63 }
  0x67   : > { %v143_v3 = vsel %vm457_vm12, %v138_v1, 0.0  ;;  %v162_v4 = vsel %vm457_vm12, %v157_v2, 0.0 }
  0x68   : > { %144 = vadd.xlane.f32.xlu0 %v143_v3 }
  0x6c   : > { %163 = vadd.xlane.f32.xlu0 %v162_v4 }
  0xf2   : > { %v175_v8 = vpop.xlane.xlu1 %174 }
  0xf3   : > { %v181_v9 = vsel %vm457_vm12, %v175_v8, %v180_v7 }
  0xf4   : > { %182 = vst [vmem:[#allocation2] sm:$0x1] %v181_v9 }
  0xf5   : > { %v145_v10 = vpop.xlane.xlu0 %144 }
  0xf6   : > { %146 = vst [vmem:[#allocation4] sm:$0xff] %v145_v10 }
  0xf9   : > { %v164_v11 = vpop.xlane.xlu0 %163 }
  0xfa   : > { %166 = vst [vmem:[#allocation4 + $0x8] sm:$0xff] %v164_v11 }
  0xfb   : > { %168 = vst [vmem:[%s167_s15] sm:$0x1] %v396_v12  ;;  %v264_v42 = vld [vmem:[#allocation2] sm:$0x1] (%p49_p0) }
  0xfc   :  { %266 = vst [vmem:[#allocation3] sm:$0x1] (%p49_p0), %v264_v42 }
 0x102   : > { %v189_v16 = vld [vmem:[%s184_s17] sm:$0xff]  ;;  %v362_v17 = vld [vmem:[%s184_s17 + $0x8] sm:$0xff]  ;;  %s208_s17 = smov %s184_s17 }
 0x103   : > { %v191_v18 = vmul.f32 %v190_v14, %v189_v16  ;;  %v197_v19 = vmul.f32 %v363_v15, %v362_v17  ;;  %v216_v31 = vld [vmem:[%s208_s17] sm:$0xff]  ;;  %v364_v32 = vld [vmem:[%s208_s17 + $0x8] sm:$0xff]  ;;  %v320_v45 = vld [vmem:[#allocation3] sm:$0x1] (%p49_p0) }
 0x104   :  { %321 = vst [vmem:[%s504_s2] sm:$0x1] (%p49_p0), %v320_v45 }
 0x105   : > { %v199_v20 = vsel %vm198_vm13, %v197_v19, 0.0 }
 0x106   : > { %v200_v21 = vadd.f32 %v199_v20, %v191_v18 }
 0x108   : > { %v201_v22 = vrot.slane %v200_v21, 4 }
 0x10a   : > { %v202_v23 = vadd.f32 %v201_v22, %v200_v21 }
 0x10c   : > { %v203_v24 = vrot.slane %v202_v23, 2 }
 0x10e   : > { %v204_v25 = vadd.f32 %v203_v24, %v202_v23 }
 0x110   : > { %v205_v26 = vrot.slane %v204_v25, 1 }
 0x112   : > { %v206_v28 = vadd.f32 %v205_v26, %v204_v25 }
 0x114   : > { %v212_v30 = vmul.f32 %v206_v28, %v175_v8 }
 0x116   : > { %v217_v34 = vmul.f32 %v216_v31, %v212_v30  ;;  %v237_v35 = vmul.f32 %v364_v32, %v212_v30 }
 0x118   : > { %v221_v36 = vsub.f32 %v218_v29, %v217_v34  ;;  %v242_v5 = vsub.f32 %v365_v33, %v237_v35 }
 0x11a   : > { %v222_v37 = vsel %vm220_vm0, %v221_v36, %v218_v29  ;;  %v243_v38 = vsel %vm220_vm0, %v242_v5, %v365_v33 }
 0x11b   : > { %v230_v39 = vsel %vm229_vm1, %v216_v31, %v222_v37  ;;  %v251_v40 = vsel %vm250_vm2, %v364_v32, %v243_v38 }
 0x11c   : > { %231 = vst [vmem:[%s207_s16] sm:$0xff] %v230_v39  ;;  %366 = vst [vmem:[%s207_s16 + $0x8] sm:$0xff] %v251_v40 }
 0x11f   :  { %51 = sbr.rel (!%p49_p0) target bundleno = 3 (0x3), region = 148 }
 0x123   : > { %v254_v41 = vld [vmem:[%s253_s18] ss:$0 sm:$0xff] }
 0x124   : > { %v259_v6 = vsel %vm457_vm12, %v447_v48, %v254_v41 }
 0x125   : > { %260 = vst [vmem:[%s253_s18] sm:$0x1] %v259_v6 }
 0x12c   :  { %v296_v43 = vld [vmem:[#allocation1] sm:$0xff]  ;;  %v298_v44 = vld [vmem:[#allocation1 + $0x8] sm:$0xff] }
 0x12d   :  { %297 = vst [vmem:[%s503_s1] sm:$0xff] %v296_v43  ;;  %299 = vst [vmem:[%s503_s1 + $0x8] sm:$0xff] %v298_v44 }

// kernel: custom-call.200
= control target key start
LH: loop header
LB: loop body
LE: loop exit
PB: predicated region body
PF: predicated region fallthrough
CT: control target
= control target key end

     0   :  { %s437_s6 = smov [#allocation0]   ;;  %s479_s0 = inlined_call_operand.vmem [shape: f32[8,8], index: 0, kind: input, shape index: {}]   ;;  %s480_s1 = inlined_call_operand.vmem [shape: f32[8,8], index: 1, kind: output, shape index: {}]  }
   0x1   :  { %s441_s9 = smov %s479_s0  }
   0x2 LB: > { %v49_v0 = vld [vmem:[%s443_s9] sm:$0xff]  ;;  %s51_s9 = scalar_lea.vmem %s443_s9, 8   ;;  %s443_s9 = sphi %s441_s9, %s51_s9   ;;  %s439_s6 = sphi %s437_s6, %s52_s6  }
   0x3   : > { %50 = vst [vmem:[%s439_s6] sm:$0xff] %v49_v0  ;;  %s52_s6 = scalar_lea.vmem %s439_s6, 8   ;;  %p46_p0 = scmp.gt.s32.totalorder %s51_s9, %s479_s0 }
   0x4   :  { %v64_v1 = vlaneseq (%p46_p0)  ;;  %vm78_vm0 = vcmask (%p46_p0), 64512   ;;  %s445_s13 = smov (%p46_p0), %s480_s1   ;;  %s449_s14 = smov (%p46_p0), [#allocation1]  }
   0x5   :  { %48 = sbr.rel (!%p46_p0) target bundleno = 2 (0x2), region = 87 }
   0x6   :  { %v65_v3 = vand.u32 (%p46_p0), 127, %v64_v1  ;;  %v67_v4 = vshrl.u32 (%p46_p0), %v64_v1, 7 }
   0x8   :  { %vm69_vm1 = vcmp.eq.s32.totalorder (%p46_p0), %v65_v3, %v67_v4  ;;  %vm73_vm2 = vcmp.eq.s32.totalorder (%p46_p0), %v65_v3, 0  ;;  %vm82_vm3 = vcmp.eq.s32.totalorder (%p46_p0), %v65_v3, 1  ;;  %vm93_vm4 = vcmp.eq.s32.totalorder (%p46_p0), %v65_v3, 2 }
   0x9   :  { %vm104_vm5 = vcmp.eq.s32.totalorder (%p46_p0), %v65_v3, 3  ;;  %vm115_vm6 = vcmp.eq.s32.totalorder (%p46_p0), %v65_v3, 4  ;;  %vm126_vm7 = vcmp.eq.s32.totalorder (%p46_p0), %v65_v3, 5  ;;  %vm137_vm8 = vcmp.eq.s32.totalorder (%p46_p0), %v65_v3, 6 }
   0xa   :  { %v77_v2 = vld [vmem:[#allocation0 + $0x1] ss:$0 sm:$0xff] (%p46_p0)  ;;  %v88_v10 = vld [vmem:[#allocation0 + $0x2] ss:$0 sm:$0xff] (%p46_p0)  ;;  %v99_v15 = vld [vmem:[#allocation0 + $0x3] ss:$0 sm:$0xff] (%p46_p0) }
   0xb   :  { %v70_v5 = vld [vmem:[#allocation0] sm:$0xff] (%p46_p0)  ;;  %v79_v6 = vsel (%p46_p0), %vm78_vm0, %v77_v2, 0.0  ;;  %v90_v11 = vsel (%p46_p0), %vm78_vm0, %v88_v10, 0.0  ;;  %v101_v16 = vsel (%p46_p0), %vm78_vm0, %v99_v15, 0.0  ;;  %vm148_vm9 = vcmp.eq.s32.totalorder (%p46_p0), %v65_v3, 7 }
   0xc   :  { %v74_v7 = vsel %vm73_vm2, %v70_v5, 1.0  ;;  %v110_v20 = vld [vmem:[#allocation0 + $0x4] ss:$0 sm:$0xff]  ;;  %v121_v25 = vld [vmem:[#allocation0 + $0x5] ss:$0 sm:$0xff] }
   0xd   :  { %v75_v8 = vsel %vm69_vm1, %v74_v7, 0.0  ;;  %v112_v21 = vsel %vm78_vm0, %v110_v20, 0.0  ;;  %v123_v26 = vsel %vm78_vm0, %v121_v25, 0.0  ;;  %v132_v30 = vld [vmem:[#allocation0 + $0x6] ss:$0 sm:$0xff] }
   0xe   :  { %v83_v9 = vmul.f32 %v79_v6, %v75_v8  ;;  %v134_v31 = vsel %vm78_vm0, %v132_v30, 0.0  ;;  %v143_v35 = vld [vmem:[#allocation0 + $0x7] ss:$0 sm:$0xff] }
   0xf   :  { %v145_v36 = vsel %vm78_vm0, %v143_v35, 0.0 }
  0x10   :  { %84 = vadd.xlane.f32.xlu0 %v83_v9 }
  0x9d   :  { %v85_v12 = vpop.xlane.xlu0 %84 }
  0x9e   :  { %v86_v13 = vsel %vm82_vm3, %v85_v12, %v75_v8 }
  0x9f   :  { %v94_v14 = vmul.f32 %v90_v11, %v86_v13 }
  0xa1   :  { %95 = vadd.xlane.f32.xlu0 %v94_v14 }
 0x12e   :  { %v96_v17 = vpop.xlane.xlu0 %95 }
 0x12f   :  { %v97_v18 = vsel %vm93_vm4, %v96_v17, %v86_v13 }
 0x130   :  { %v105_v19 = vmul.f32 %v101_v16, %v97_v18 }
 0x132   :  { %106 = vadd.xlane.f32.xlu1 %v105_v19 }
 0x1bf   :  { %v107_v22 = vpop.xlane.xlu1 %106 }
 0x1c0   :  { %v108_v23 = vsel %vm104_vm5, %v107_v22, %v97_v18 }
 0x1c1   :  { %v116_v24 = vmul.f32 %v112_v21, %v108_v23 }
 0x1c3   :  { %117 = vadd.xlane.f32.xlu1 %v116_v24 }
 0x250   :  { %v118_v27 = vpop.xlane.xlu1 %117 }
 0x251   :  { %v119_v28 = vsel %vm115_vm6, %v118_v27, %v108_v23 }
 0x252   :  { %v127_v29 = vmul.f32 %v123_v26, %v119_v28 }
 0x254   :  { %128 = vadd.xlane.f32.xlu0 %v127_v29 }
 0x2e1   :  { %v129_v32 = vpop.xlane.xlu0 %128 }
 0x2e2   :  { %v130_v33 = vsel %vm126_vm7, %v129_v32, %v119_v28 }
 0x2e3   :  { %v138_v34 = vmul.f32 %v134_v31, %v130_v33 }
 0x2e5   :  { %139 = vadd.xlane.f32.xlu1 %v138_v34 }
 0x372   :  { %v140_v37 = vpop.xlane.xlu1 %139 }
 0x373   :  { %v141_v38 = vsel %vm137_vm8, %v140_v37, %v130_v33 }
 0x374   :  { %v149_v39 = vmul.f32 %v145_v36, %v141_v38 }
 0x376   :  { %150 = vadd.xlane.f32.xlu0 %v149_v39 }
 0x403   :  { %v151_v40 = vpop.xlane.xlu0 %150 }
 0x404   :  { %v152_v41 = vsel %vm148_vm9, %v151_v40, %v141_v38  }
 0x405   :  { %153 = vst [vmem:[#allocation1] sm:$0xff] %v152_v41 }
 0x406 LB:  { %s451_s14 = sphi %s449_s14, %s203_s14   ;;  %s447_s13 = sphi %s445_s13, %s204_s13  }
 0x40c   : > { %v201_v42 = vld [vmem:[%s451_s14] sm:$0xff]  ;;  %s203_s14 = scalar_lea.vmem %s451_s14, 8  }
 0x40d   : > { %202 = vst [vmem:[%s447_s13] sm:$0xff] %v201_v42  ;;  %s204_s13 = scalar_lea.vmem %s447_s13, 8   ;;  %p198_p1 = scmp.gt.s32.totalorder %s203_s14, [#allocation1] }
 0x40f   :  { %200 = sbr.rel (!%p198_p1) target bundleno = 1030 (0x406), region = 109 }

// kernel: custom-call.197
= control target key start
LH: loop header
LB: loop body
LE: loop exit
PB: predicated region body
PF: predicated region fallthrough
CT: control target
= control target key end

     0   :  { %v264_v0 = vmov 0.0   ;;  %vm35_vm0 = vcmask 7168   ;;  %vm53_vm1 = vcmask 15368   ;;  %vm70_vm2 = vcmask 1047553   ;;  %s292_s0 = inlined_call_operand.vmem [shape: f32[8,8], index: 0, kind: input, shape index: {}]   ;;  %s293_s1 = inlined_call_operand.vmem [shape: f32[8,8], index: 1, kind: output, shape index: {}]  }
   0x1   :  { %34 = vst [vmem:[#allocation1] sm:$0xff] %v264_v0  ;;  %v278_v4 = vld [vmem:[%s292_s0] sm:$0xff]  ;;  %vm71_vm3 = vmand %vm53_vm1, %vm70_vm2  ;;  %vm75_vm4 = vcmask 23568   ;;  %vm92_vm5 = vcmask 1047554   ;;  %vm97_vm7 = vcmask 31768   ;;  %vm114_vm8 = vcmask 1047555  }
   0x2   :  { %30 = vst [vmem:[#allocation0] sm:$0xff] %v278_v4  ;;  %vm93_vm6 = vmand %vm75_vm4, %vm92_vm5  ;;  %vm119_vm10 = vcmask 39968   ;;  %vm136_vm11 = vcmask 1047556   ;;  %vm141_vm13 = vcmask 48168   ;;  %vm158_vm14 = vcmask 1047557  }
   0x3   :  { %vm115_vm9 = vmand %vm97_vm7, %vm114_vm8  ;;  %vm180_vm1 = vcmask 1047558   ;;  %vm202_vm4 = vcmask 1047559  }
   0x4   :  { %vm137_vm12 = vmand %vm119_vm10, %vm136_vm11 }
   0x5   :  { %vm159_vm15 = vmand %vm141_vm13, %vm158_vm14 }
   0x8   :  { %v36_v1 = vld [vmem:[#allocation1] ss:$0 sm:$0xff] }
   0x9   :  { %v38_v2 = vmul.f32 %v36_v1, %v36_v1  ;;  %v45_v3 = vmul.f32 0.0, %v36_v1  ;;  %v37_v5 = vld [vmem:[#allocation0] ss:$0 sm:$0xff]  ;;  %v57_v16 = vld [vmem:[#allocation0 + $0x1] ss:$0 sm:$0xff] }
   0xa   :  { %v79_v28 = vld [vmem:[#allocation0 + $0x2] ss:$0 sm:$0xff]  ;;  %v101_v40 = vld [vmem:[#allocation0 + $0x3] ss:$0 sm:$0xff]  ;;  %v123_v52 = vld [vmem:[#allocation0 + $0x4] ss:$0 sm:$0xff] }
   0xb   :  { %39 = vadd.xlane.f32.xlu0 %v38_v2  ;;  %v145_v0 = vld [vmem:[#allocation0 + $0x5] ss:$0 sm:$0xff] }
   0xf   :  { %46 = vadd.xlane.f32.xlu0 %v45_v3 }
  0x98   :  { %v40_v6 = vpop.xlane.xlu0 %39 }
  0x99   :  { %v41_v7 = vsub.f32 %v37_v5, %v40_v6 }
  0x9b   :  { %248 = vrsqrt.f32 %v41_v7 }
  0x9c   :  { %v47_v8 = vpop.xlane.xlu0 %46 }
  0x9d   :  { %v48_v9 = vsub.f32 %v278_v4, %v47_v8 }
  0xa5   :  { %v249_v10 = vpop.eup %248 }
  0xa6   :  { %v49_v11 = vmul.f32 %v249_v10, %v48_v9 }
  0xa8   :  { %v50_v12 = vsel %vm35_vm0, %v49_v11, 0.0  ;;  %vm163_vm0 = vcmask 56368  }
  0xa9   :  { %52 = vst [vmem:[#allocation1] sm:$0xff] %v50_v12  ;;  %vm181_vm2 = vmand %vm163_vm0, %vm180_vm1 }
  0xb0   :  { %v55_v13 = vld [vmem:[#allocation1 + $0x1] ss:$0 sm:$0xff] }
  0xb1   :  { %v58_v14 = vmul.f32 %v55_v13, %v55_v13  ;;  %v65_v15 = vmul.f32 %v55_v13, %v50_v12  ;;  %v167_v13 = vld [vmem:[#allocation0 + $0x6] ss:$0 sm:$0xff] }
  0xb3   :  { %59 = vadd.xlane.f32.xlu1 %v58_v14 }
  0xb7   :  { %66 = vadd.xlane.f32.xlu1 %v65_v15 }
 0x140   :  { %v60_v17 = vpop.xlane.xlu1 %59 }
 0x141   :  { %v61_v18 = vsub.f32 %v57_v16, %v60_v17 }
 0x143   :  { %250 = vrsqrt.f32 %v61_v18 }
 0x144   :  { %v67_v19 = vpop.xlane.xlu1 %66 }
 0x145   :  { %v68_v20 = vsub.f32 %v278_v4, %v67_v19 }
 0x14d   :  { %v251_v21 = vpop.eup %250 }
 0x14e   :  { %v69_v22 = vmul.f32 %v251_v21, %v68_v20 }
 0x150   :  { %v72_v23 = vsel %vm71_vm3, %v69_v22, 0.0  ;;  %vm185_vm3 = vcmask 64568  }
 0x151   :  { %v73_v24 = vadd.f32 %v72_v23, %v50_v12  ;;  %vm203_vm5 = vmand %vm185_vm3, %vm202_vm4 }
 0x153   :  { %74 = vst [vmem:[#allocation1] sm:$0xff] %v73_v24 }
 0x15a   :  { %v77_v25 = vld [vmem:[#allocation1 + $0x2] ss:$0 sm:$0xff] }
 0x15b   :  { %v87_v26 = vmul.f32 %v77_v25, %v73_v24  ;;  %v80_v27 = vmul.f32 %v77_v25, %v77_v25  ;;  %v189_v25 = vld [vmem:[#allocation0 + $0x7] ss:$0 sm:$0xff] }
 0x15d   :  { %88 = vadd.xlane.f32.xlu1 %v87_v26  ;;  %81 = vadd.xlane.f32.xlu0 %v80_v27 }
 0x1ea   :  { %v82_v29 = vpop.xlane.xlu0 %81  ;;  %v89_v31 = vpop.xlane.xlu1 %88 }
 0x1eb   :  { %v83_v30 = vsub.f32 %v79_v28, %v82_v29  ;;  %v90_v32 = vsub.f32 %v278_v4, %v89_v31 }
 0x1ed   :  { %252 = vrsqrt.f32 %v83_v30 }
 0x1f7   :  { %v253_v33 = vpop.eup %252 }
 0x1f8   :  { %v91_v34 = vmul.f32 %v253_v33, %v90_v32 }
 0x1fa   :  { %v94_v35 = vsel %vm93_vm6, %v91_v34, 0.0 }
 0x1fb   :  { %v95_v36 = vadd.f32 %v94_v35, %v73_v24 }
 0x1fd   :  { %96 = vst [vmem:[#allocation1] sm:$0xff] %v95_v36 }
 0x204   :  { %v99_v37 = vld [vmem:[#allocation1 + $0x3] ss:$0 sm:$0xff] }
 0x205   :  { %v109_v38 = vmul.f32 %v99_v37, %v95_v36  ;;  %v102_v39 = vmul.f32 %v99_v37, %v99_v37 }
 0x207   :  { %110 = vadd.xlane.f32.xlu1 %v109_v38  ;;  %103 = vadd.xlane.f32.xlu0 %v102_v39 }
 0x294   :  { %v104_v41 = vpop.xlane.xlu0 %103  ;;  %v111_v43 = vpop.xlane.xlu1 %110 }
 0x295   :  { %v105_v42 = vsub.f32 %v101_v40, %v104_v41  ;;  %v112_v44 = vsub.f32 %v278_v4, %v111_v43 }
 0x297   :  { %254 = vrsqrt.f32 %v105_v42 }
 0x2a1   :  { %v255_v45 = vpop.eup %254 }
 0x2a2   :  { %v113_v46 = vmul.f32 %v255_v45, %v112_v44 }
 0x2a4   :  { %v116_v47 = vsel %vm115_vm9, %v113_v46, 0.0 }
 0x2a5   :  { %v117_v48 = vadd.f32 %v116_v47, %v95_v36 }
 0x2a7   :  { %118 = vst [vmem:[#allocation1] sm:$0xff] %v117_v48 }
 0x2ae   :  { %v121_v49 = vld [vmem:[#allocation1 + $0x4] ss:$0 sm:$0xff] }
 0x2af   :  { %v131_v50 = vmul.f32 %v121_v49, %v117_v48  ;;  %v124_v51 = vmul.f32 %v121_v49, %v121_v49 }
 0x2b1   :  { %132 = vadd.xlane.f32.xlu1 %v131_v50  ;;  %125 = vadd.xlane.f32.xlu0 %v124_v51 }
 0x33e   :  { %v126_v53 = vpop.xlane.xlu0 %125  ;;  %v133_v55 = vpop.xlane.xlu1 %132 }
 0x33f   :  { %v127_v54 = vsub.f32 %v123_v52, %v126_v53  ;;  %v134_v56 = vsub.f32 %v278_v4, %v133_v55 }
 0x341   :  { %256 = vrsqrt.f32 %v127_v54 }
 0x34b   :  { %v257_v57 = vpop.eup %256 }
 0x34c   :  { %v135_v58 = vmul.f32 %v257_v57, %v134_v56 }
 0x34e   :  { %v138_v59 = vsel %vm137_vm12, %v135_v58, 0.0 }
 0x34f   :  { %v139_v60 = vadd.f32 %v138_v59, %v117_v48 }
 0x351   :  { %140 = vst [vmem:[#allocation1] sm:$0xff] %v139_v60 }
 0x358   :  { %v143_v61 = vld [vmem:[#allocation1 + $0x5] ss:$0 sm:$0xff] }
 0x359   :  { %v153_v62 = vmul.f32 %v143_v61, %v139_v60  ;;  %v146_v63 = vmul.f32 %v143_v61, %v143_v61 }
 0x35b   :  { %154 = vadd.xlane.f32.xlu1 %v153_v62  ;;  %147 = vadd.xlane.f32.xlu0 %v146_v63 }
 0x3e8   :  { %v148_v1 = vpop.xlane.xlu0 %147  ;;  %v155_v3 = vpop.xlane.xlu1 %154 }
 0x3e9   :  { %v149_v2 = vsub.f32 %v145_v0, %v148_v1  ;;  %v156_v5 = vsub.f32 %v278_v4, %v155_v3 }
 0x3eb   :  { %258 = vrsqrt.f32 %v149_v2 }
 0x3f5   :  { %v259_v6 = vpop.eup %258 }
 0x3f6   :  { %v157_v7 = vmul.f32 %v259_v6, %v156_v5 }
 0x3f8   :  { %v160_v8 = vsel %vm159_vm15, %v157_v7, 0.0 }
 0x3f9   :  { %v161_v9 = vadd.f32 %v160_v8, %v139_v60 }
 0x3fb   :  { %162 = vst [vmem:[#allocation1] sm:$0xff] %v161_v9 }
 0x402   :  { %v165_v10 = vld [vmem:[#allocation1 + $0x6] ss:$0 sm:$0xff] }
 0x403   :  { %v175_v11 = vmul.f32 %v165_v10, %v161_v9  ;;  %v168_v12 = vmul.f32 %v165_v10, %v165_v10 }
 0x405   :  { %176 = vadd.xlane.f32.xlu1 %v175_v11  ;;  %169 = vadd.xlane.f32.xlu0 %v168_v12 }
 0x492   :  { %v170_v14 = vpop.xlane.xlu0 %169  ;;  %v177_v16 = vpop.xlane.xlu1 %176 }
 0x493   :  { %v171_v15 = vsub.f32 %v167_v13, %v170_v14  ;;  %v178_v17 = vsub.f32 %v278_v4, %v177_v16 }
 0x495   :  { %260 = vrsqrt.f32 %v171_v15 }
 0x49f   :  { %v261_v18 = vpop.eup %260 }
 0x4a0   :  { %v179_v19 = vmul.f32 %v261_v18, %v178_v17 }
 0x4a2   :  { %v182_v20 = vsel %vm181_vm2, %v179_v19, 0.0 }
 0x4a3   :  { %v183_v21 = vadd.f32 %v182_v20, %v161_v9 }
 0x4a5   :  { %184 = vst [vmem:[#allocation1] sm:$0xff] %v183_v21 }
 0x4ac   :  { %v187_v22 = vld [vmem:[#allocation1 + $0x7] ss:$0 sm:$0xff] }
 0x4ad   :  { %v197_v23 = vmul.f32 %v187_v22, %v183_v21  ;;  %v190_v24 = vmul.f32 %v187_v22, %v187_v22 }
 0x4af   :  { %198 = vadd.xlane.f32.xlu1 %v197_v23  ;;  %191 = vadd.xlane.f32.xlu0 %v190_v24 }
 0x53c   :  { %v192_v26 = vpop.xlane.xlu0 %191  ;;  %v199_v28 = vpop.xlane.xlu1 %198 }
 0x53d   :  { %v193_v27 = vsub.f32 %v189_v25, %v192_v26  ;;  %v200_v29 = vsub.f32 %v278_v4, %v199_v28 }
 0x53f   :  { %262 = vrsqrt.f32 %v193_v27 }
 0x549   :  { %v263_v30 = vpop.eup %262 }
 0x54a   :  { %v201_v31 = vmul.f32 %v263_v30, %v200_v29 }
 0x54c   :  { %v204_v32 = vsel %vm203_vm5, %v201_v31, 0.0 }
 0x54d   :  { %v205_v33 = vadd.f32 %v204_v32, %v183_v21 }
 0x54f   :  { %206 = vst [vmem:[#allocation1] sm:$0xff] %v205_v33  ;;  %235 = vst [vmem:[%s293_s1] sm:$0xff] %v205_v33 }

// kernel: custom-call.198
= control target key start
LH: loop header
LB: loop body
LE: loop exit
PB: predicated region body
PF: predicated region fallthrough
CT: control target
= control target key end

     0   :  { %v34_v0 = vlaneseq  ;;  %v180_v9 = vmov -1.0   ;;  %s215_s0 = inlined_call_operand.vmem [shape: f32[1,8,8], index: 0, kind: input, shape index: {}]   ;;  %s216_s1 = inlined_call_operand.vmem [shape: f32[1,8,8], index: 1, kind: output, shape index: {}]  }
   0x1   :  { %v29_v1 = vld [vmem:[%s215_s0] sm:$0xff] }
   0x2   :  { %v194_v2 = vand.u32 127, %v34_v0  ;;  %v38_v3 = vshrl.u32 %v34_v0, 7 }
   0x4   :  { %vm36_vm0 = vcmp.lt.s32.totalorder %v194_v2, 8  ;;  %vm40_vm1 = vcmp.eq.s32.totalorder %v38_v3, %v194_v2  ;;  %vm45_vm2 = vcmp.ge.s32.totalorder %v38_v3, %v194_v2  ;;  %vm59_vm4 = vcmp.eq.s32.totalorder %v194_v2, 0 }
   0x5   :  { %v42_v4 = vsel %vm40_vm1, %v29_v1, 0.0  ;;  %vm46_vm3 = vmand %vm45_vm2, %vm36_vm0  ;;  %vm56_vm5 = vcmp.eq.s32.totalorder %v194_v2, %v38_v3  ;;  %v60_v10 = vsel %vm59_vm4, 1.0, %v180_v9  ;;  %vm67_vm6 = vcmp.eq.s32.totalorder %v194_v2, 1 }
   0x6   :  { %v47_v5 = vsel %vm46_vm3, %v29_v1, 0.0  ;;  %43 = vadd.xlane.f32.xlu0 %v42_v4  ;;  %v61_v11 = vsel %vm56_vm5, %v60_v10, 0.0  ;;  %vm77_vm7 = vcmp.eq.s32.totalorder %v194_v2, 2  ;;  %vm87_vm8 = vcmp.eq.s32.totalorder %v194_v2, 3 }
   0x7   :  { %vm97_vm9 = vcmp.eq.s32.totalorder %v194_v2, 4  ;;  %vm107_vm10 = vcmp.eq.s32.totalorder %v194_v2, 5  ;;  %vm117_vm11 = vcmp.eq.s32.totalorder %v194_v2, 6  ;;  %vm127_vm12 = vcmp.eq.s32.totalorder %v194_v2, 7 }
  0x93   :  { %v199_v6 = vpop.xlane.xlu0 %43 }
  0x94   :  { %178 = vrcp.f32 %v199_v6  ;;  %vm134_vm13 = vweird.f32 %v199_v6 }
  0x9e   :  { %v179_v7 = vpop.eup %178 }
  0x9f   :  { %v49_v8 = vmul.f32 %v179_v7, %v47_v5 }
  0xa1   :  { %50 = vst [vmem:[#allocation2] sm:$0xff] %v49_v8 }
  0xa8   :  { %v63_v12 = vld [vmem:[#allocation2 + $0x1] ss:$0 sm:$0xff]  ;;  %v73_v15 = vld [vmem:[#allocation2 + $0x2] ss:$0 sm:$0xff]  ;;  %v83_v20 = vld [vmem:[#allocation2 + $0x3] ss:$0 sm:$0xff] }
  0xa9   :  { %v64_v13 = vxor.u32 2147483648, %v63_v12  ;;  %v74_v17 = vxor.u32 2147483648, %v73_v15  ;;  %v84_v22 = vxor.u32 2147483648, %v83_v20  ;;  %v93_v25 = vld [vmem:[#allocation2 + $0x4] ss:$0 sm:$0xff] }
  0xaa   :  { %v94_v27 = vxor.u32 2147483648, %v93_v25  ;;  %v103_v30 = vld [vmem:[#allocation2 + $0x5] ss:$0 sm:$0xff]  ;;  %v113_v35 = vld [vmem:[#allocation2 + $0x6] ss:$0 sm:$0xff] }
  0xab   :  { %v68_v14 = vmul.f32 %v64_v13, %v61_v11  ;;  %v104_v32 = vxor.u32 2147483648, %v103_v30  ;;  %v114_v37 = vxor.u32 2147483648, %v113_v35  ;;  %v123_v40 = vld [vmem:[#allocation2 + $0x7] ss:$0 sm:$0xff] }
  0xac   :  { %v124_v42 = vxor.u32 2147483648, %v123_v40 }
  0xad   :  { %69 = vadd.xlane.f32.xlu0 %v68_v14 }
 0x13a   :  { %v70_v16 = vpop.xlane.xlu0 %69 }
 0x13b   :  { %v71_v18 = vsel %vm67_vm6, %v70_v16, %v61_v11 }
 0x13c   :  { %v78_v19 = vmul.f32 %v74_v17, %v71_v18 }
 0x13e   :  { %79 = vadd.xlane.f32.xlu1 %v78_v19 }
 0x1cb   :  { %v80_v21 = vpop.xlane.xlu1 %79 }
 0x1cc   :  { %v81_v23 = vsel %vm77_vm7, %v80_v21, %v71_v18 }
 0x1cd   :  { %v88_v24 = vmul.f32 %v84_v22, %v81_v23 }
 0x1cf   :  { %89 = vadd.xlane.f32.xlu1 %v88_v24 }
 0x25c   :  { %v90_v26 = vpop.xlane.xlu1 %89 }
 0x25d   :  { %v91_v28 = vsel %vm87_vm8, %v90_v26, %v81_v23 }
 0x25e   :  { %v98_v29 = vmul.f32 %v94_v27, %v91_v28 }
 0x260   :  { %99 = vadd.xlane.f32.xlu0 %v98_v29 }
 0x2ed   :  { %v100_v31 = vpop.xlane.xlu0 %99 }
 0x2ee   :  { %v101_v33 = vsel %vm97_vm9, %v100_v31, %v91_v28 }
 0x2ef   :  { %v108_v34 = vmul.f32 %v104_v32, %v101_v33 }
 0x2f1   :  { %109 = vadd.xlane.f32.xlu1 %v108_v34 }
 0x37e   :  { %v110_v36 = vpop.xlane.xlu1 %109 }
 0x37f   :  { %v111_v38 = vsel %vm107_vm10, %v110_v36, %v101_v33 }
 0x380   :  { %v118_v39 = vmul.f32 %v114_v37, %v111_v38 }
 0x382   :  { %119 = vadd.xlane.f32.xlu0 %v118_v39 }
 0x40f   :  { %v120_v41 = vpop.xlane.xlu0 %119 }
 0x410   :  { %v121_v43 = vsel %vm117_vm11, %v120_v41, %v111_v38 }
 0x411   :  { %v128_v44 = vmul.f32 %v124_v42, %v121_v43 }
 0x413   :  { %129 = vadd.xlane.f32.xlu1 %v128_v44 }
 0x4a0   :  { %v130_v45 = vpop.xlane.xlu1 %129 }
 0x4a1   :  { %v131_v46 = vsel %vm127_vm12, %v130_v45, %v121_v43 }
 0x4a2   :  { %v133_v47 = vmul.f32 %v179_v7, %v131_v46 }
 0x4a4   :  { %v135_v48 = vsel %vm134_vm13, %v131_v46, %v133_v47 }
 0x4a5   :  { %165 = vst [vmem:[%s216_s1] sm:$0xff] %v135_v48 }

// kernel: custom-call.51
= control target key start
LH: loop header
LB: loop body
LE: loop exit
PB: predicated region body
PF: predicated region fallthrough
CT: control target
= control target key end

     0   :  { %v292_v3 = vlaneseq  ;;  %v1743_v5 = vmov 0.0   ;;  %s281_s17 = smov [#allocation22]  ;;  %s284_s18 = smov [#allocation23]  ;;  %s2026_s0 = inlined_call_operand.vmem [shape: f32[4,4], index: 0, kind: input, shape index: {}]   ;;  %s2027_s1 = inlined_call_operand.vmem [shape: f32[4,4], index: 1, kind: input, shape index: {}]   ;;  %s2028_s2 = inlined_call_operand.vmem [shape: f32[4,4], index: 2, kind: input, shape index: {}]   ;;  %s2029_s3 = inlined_call_operand.vmem [shape: f32[4,4], index: 3, kind: input, shape index: {}]   ;;  %s2030_s4 = inlined_call_operand.vmem [shape: f32[4], index: 4, kind: output, shape index: {0}]   ;;  %s2031_s5 = inlined_call_operand.vmem [shape: f32[4], index: 5, kind: output, shape index: {1}]   ;;  %s2032_s6 = inlined_call_operand.vmem [shape: f32[4,4], index: 6, kind: output, shape index: {2}]   ;;  %s2033_s7 = inlined_call_operand.vmem [shape: f32[4,4], index: 7, kind: output, shape index: {3}]   ;;  %s2034_s8 = inlined_call_operand.vmem [shape: f32[4,4], index: 8, kind: output, shape index: {4}]   ;;  %s2035_s9 = inlined_call_operand.vmem [shape: f32[4,4], index: 9, kind: output, shape index: {5}]  }
   0x1   :  { %v71_v0 = vld [vmem:[%s2026_s0] sm:$0xf]  ;;  %287 = vst [vmem:[#allocation12] sm:$0xff] %v1743_v5  ;;  %288 = vst [vmem:[#allocation14] sm:$0xff] %v1743_v5  ;;  %s291_s0 = smov [#allocation12]  ;;  %s1441_s19 = smov [#allocation20] }
   0x2   :  { %v133_v1 = vld [vmem:[%s2027_s1] sm:$0xf]  ;;  %72 = vst [vmem:[#allocation1] sm:$0xf] %v71_v0  ;;  %289 = vst [vmem:[#allocation16] sm:$0xff] %v1743_v5  ;;  %v1808_v6 = vand.u32 127, %v292_v3 }
   0x3   :  { %v195_v2 = vld [vmem:[%s2028_s2] sm:$0xf]  ;;  %134 = vst [vmem:[#allocation3] sm:$0xf] %v133_v1  ;;  %290 = vst [vmem:[#allocation18] sm:$0xff] %v1743_v5  ;;  %v1810_v7 = vshrl.u32 %v292_v3, 7 }
   0x4   :  { %196 = vst [vmem:[#allocation5] sm:$0xf] %v195_v2  ;;  %v257_v4 = vld [vmem:[%s2029_s3] sm:$0xf]  ;;  %v294_v6 = vmov %v1808_v6  ;;  %s304_s1 = smov [#allocation18]  ;;  %s275_s2 = smov [#allocation20] }
   0x5   :  { %258 = vst [vmem:[#allocation7] sm:$0xf] %v257_v4  ;;  %v297_v7 = vmov %v1810_v7  ;;  %v307_v6 = vmov %v1808_v6  ;;  %s278_s3 = smov [#allocation21]  ;;  %vm1445_vm2 = vcmp.lt.s32.totalorder %v1808_v6, 4  ;;  %s1458_s20 = smov [#allocation21] }
   0x6   :  { %v310_v7 = vmov %v1810_v7  ;;  %vm301_vm0 = vcmp.eq.s32.totalorder %v297_v7, %v294_v6  ;;  %s1475_s21 = smov [#allocation22]  ;;  %s1492_s22 = smov [#allocation23] }
   0x7   :  { %vm314_vm1 = vcmp.eq.s32.totalorder %v310_v7, %v307_v6  ;;  %v1437_v6 = vmov %v1808_v6  ;;  %v1440_v7 = vmov %v1810_v7 }
   0x8   :  { %v298_v12 = vld [vmem:[%s291_s0] sm:$0xf]  ;;  %vm1450_vm3 = vcmp.eq.s32.totalorder %v1440_v7, %v1437_v6  ;;  %v1488_v6 = vmov %v1808_v6  ;;  %v1457_v7 = vmov %v1810_v7 }
   0x9   :  { %v261_v8 = vld [vmem:[#allocation1] sm:$0xf]  ;;  %v302_v14 = vsel %vm301_vm0, 1.0, %v298_v12  ;;  %v1454_v6 = vmov %v1808_v6  ;;  %v1491_v7 = vmov %v1810_v7 }
   0xa   :  { %v265_v9 = vld [vmem:[#allocation3] sm:$0xf]  ;;  %262 = vst [vmem:[#allocation0] sm:$0xf] %v261_v8  ;;  %v311_v13 = vld [vmem:[%s304_s1] sm:$0xf]  ;;  %v1471_v6 = vmov %v1808_v6  ;;  %v1474_v7 = vmov %v1810_v7  ;;  %vm1501_vm4 = vcmp.eq.s32.totalorder %v1491_v7, %v1488_v6 }
   0xb   :  { %v269_v10 = vld [vmem:[#allocation5] sm:$0xf]  ;;  %266 = vst [vmem:[#allocation2] sm:$0xf] %v265_v9  ;;  %v315_v15 = vsel %vm314_vm1, 1.0, %v311_v13  ;;  %303 = vst [vmem:[%s291_s0] sm:$0xf] %v302_v14 }
   0xc   :  { %270 = vst [vmem:[#allocation4] sm:$0xf] %v269_v10  ;;  %v273_v11 = vld [vmem:[#allocation7] sm:$0xf]  ;;  %316 = vst [vmem:[%s304_s1] sm:$0xf] %v315_v15 }
   0xd   :  { %274 = vst [vmem:[#allocation6] sm:$0xf] %v273_v11 }
  0x11   :  { %v276_v16 = vld [vmem:[#allocation0] sm:$0xff] }
  0x12   :  { %v279_v17 = vld [vmem:[#allocation2] sm:$0xff]  ;;  %277 = vst [vmem:[%s275_s2] sm:$0xff] %v276_v16 }
  0x13   :  { %v282_v18 = vld [vmem:[#allocation4] sm:$0xff]  ;;  %280 = vst [vmem:[%s278_s3] sm:$0xff] %v279_v17 }
  0x14   :  { %283 = vst [vmem:[%s281_s17] sm:$0xff] %v282_v18  ;;  %v285_v19 = vld [vmem:[#allocation6] sm:$0xff] }
  0x15   :  { %286 = vst [vmem:[%s284_s18] sm:$0xff] %v285_v19 }
  0x19   :  { %v1447_v20 = vld [vmem:[%s1441_s19] sm:$0xf] }
  0x1a   :  { %v1464_v21 = vld [vmem:[%s1458_s20] sm:$0xf]  ;;  %v1448_v22 = vsel %vm1445_vm2, %v1447_v20, 0.0 }
  0x1b   :  { %v1465_v23 = vsel %vm1445_vm2, %v1464_v21, 0.0  ;;  %v1481_v24 = vld [vmem:[%s1475_s21] sm:$0xf]  ;;  %v1449_v26 = vmul.f32 %v1448_v22, %v1448_v22 }
  0x1c   :  { %v1498_v25 = vld [vmem:[%s1492_s22] sm:$0xf]  ;;  %v1466_v27 = vmul.f32 %v1465_v23, %v1465_v23  ;;  %v1482_v28 = vsel %vm1445_vm2, %v1481_v24, 0.0 }
  0x1d   :  { %v1499_v29 = vsel %vm1445_vm2, %v1498_v25, 0.0  ;;  %v1483_v30 = vmul.f32 %v1482_v28, %v1482_v28  ;;  %v1451_v33 = vsel %vm1450_vm3, 0.0, %v1449_v26 }
  0x1e   :  { %v1468_v31 = vadd.f32 %v1466_v27, %v1449_v26  ;;  %v1500_v32 = vmul.f32 %v1499_v29, %v1499_v29  ;;  %v1467_v34 = vadd.f32 %v1466_v27, %v1451_v33 }
  0x20   :  { %v1485_v35 = vadd.f32 %v1483_v30, %v1468_v31  ;;  %v1484_v36 = vadd.f32 %v1483_v30, %v1467_v34  ;;  %v1502_v37 = vsel %vm1501_vm4, 0.0, %v1500_v32 }
  0x22   :  { %v1504_v38 = vadd.f32 %v1500_v32, %v1485_v35  ;;  %v1503_v39 = vadd.f32 %v1502_v37, %v1484_v36 }
  0x24   :  { %1505 = vadd.xlane.f32.xlu0 %v1504_v38 }
  0x28   :  { %1513 = vadd.xlane.f32.xlu0 %v1503_v39 }
  0xb1   :  { %v1506_v40 = vpop.xlane.xlu0 %1505 }
  0xb2   :  { %v1507_v41 = vrot.slane %v1506_v40, 4 }
  0xb4   :  { %v1508_v42 = vadd.f32 %v1507_v41, %v1506_v40 }
  0xb5   :  { %v1514_v43 = vpop.xlane.xlu0 %1513 }
  0xb6   :  { %v1509_v44 = vrot.slane %v1508_v42, 2  ;;  %v1515_v45 = vrot.slane %v1514_v43, 4 }
  0xb8   :  { %v1516_v46 = vadd.f32 %v1515_v45, %v1514_v43  ;;  %v1510_v47 = vadd.f32 %v1509_v44, %v1508_v42 }
  0xba   :  { %v1517_v48 = vrot.slane %v1516_v46, 2  ;;  %v1511_v50 = vrot.slane %v1510_v47, 1 }
  0xbc   :  { %v1518_v49 = vadd.f32 %v1517_v48, %v1516_v46  ;;  %v1512_v53 = vadd.f32 %v1511_v50, %v1510_v47 }
  0xbe   :  { %v1519_v51 = vrot.slane %v1518_v49, 1 }
  0xc0   :  { %v1520_v52 = vadd.f32 %v1519_v51, %v1518_v49 }
  0xc2   :  { %1692 = vpush %v1520_v52 }
  0xc3   :  { %1694 = vpush %v1512_v53 }
  0xf3   :  { %s1693_s23 = spop %1692 }
  0xf4   :  { %s1695_s24 = spop %1694 }
  0xf5   :  { %s1523_s25 = smul.f32 1e-10, %s1695_s24 }
  0xf7   :  { %p1524_p0 = scmp.le.f32.partialorder %s1693_s23, %s1523_s25 }
  0xf8   :  { %s1834_s26 = smov (!%p1524_p0), 0  }
  0xf9   :  { %1527 = sbr.rel (%p1524_p0) target bundleno = 931 (0x3a3), region = 440 }
 0x100 LB: > { %s1839_s27 = smov 0   ;;  %s1737_s26 = sphi %s1834_s26, %s2036_s26  }
 0x101 LB: >> { %s421_s28 = smov [#allocation20]  ;;  %v425_v6 = vmov %v1808_v6  ;;  %v428_v7 = vmov %v1810_v7  ;;  %s441_s29 = smov [#allocation21]  ;;  %vm744_vm14 = vcmp.eq.s32.totalorder %v1810_v7, 0  ;;  %vm756_vm15 = vcmp.eq.s32.totalorder %v1810_v7, 3  ;;  %s1741_s27 = sphi %s1839_s27, %s420_s27  }
 0x102   : >> { %v445_v6 = vmov %v1808_v6  ;;  %v448_v7 = vmov %v1810_v7  ;;  %v429_v54 = vld [vmem:[%s421_s28] sm:$0xf]  ;;  %vm432_vm5 = vcmp.eq.s32.totalorder %v428_v7, %v425_v6  ;;  %s461_s30 = smov [#allocation23]  ;;  %s422_s10 = smov [#allocation24] }
 0x103   : >> { %vm452_vm6 = vcmp.eq.s32.totalorder %v448_v7, %v445_v6  ;;  %v465_v6 = vmov %v1808_v6  ;;  %v468_v7 = vmov %v1810_v7  ;;  %v433_v55 = vsel %vm432_vm5, %v429_v54, 0.0  ;;  %v449_v56 = vld [vmem:[%s441_s29] sm:$0xf]  ;;  %s442_s11 = smov [#allocation25]  ;;  %s462_s12 = smov [#allocation26] }
 0x104   : >> { %vm472_vm7 = vcmp.eq.s32.totalorder %v468_v7, %v465_v6  ;;  %v434_v57 = vrot.slane %v433_v55, 4  ;;  %v453_v58 = vsel %vm452_vm6, %v449_v56, 0.0  ;;  %v469_v59 = vld [vmem:[%s461_s30] sm:$0xf]  ;;  %s485_s13 = smov [#allocation25]  ;;  %s483_s14 = smov [#allocation24]  ;;  %v534_v6 = vmov %v1808_v6 }
 0x105   : >> { %v454_v60 = vrot.slane %v453_v58, 4  ;;  %v473_v61 = vsel %vm472_vm7, %v469_v59, 0.0  ;;  %s487_s15 = smov [#allocation26]  ;;  %s522_s16 = smov [#allocation27]  ;;  %v537_v7 = vmov %v1810_v7  ;;  %v549_v6 = vmov %v1808_v6 }
 0x106   : >> { %v435_v62 = vadd.f32 %v434_v57, %v433_v55  ;;  %v474_v63 = vrot.slane %v473_v61, 4  ;;  %s524_s0 = smov [#allocation28]  ;;  %s481_s1 = smov [#allocation29]  ;;  %v552_v7 = vmov %v1810_v7  ;;  %vm539_vm12 = vcmp.eq.s32.totalorder %v537_v7, %v534_v6 }
 0x107   : >> { %v455_v0 = vadd.f32 %v454_v60, %v453_v58  ;;  %s482_s2 = smov [#allocation30]  ;;  %s526_s1 = smov %s481_s1  ;;  %vm554_vm13 = vcmp.eq.s32.totalorder %v552_v7, %v549_v6  ;;  %v647_v6 = vmov %v1808_v6  ;;  %v650_v7 = vmov %v1810_v7 }
 0x108   : >> { %v436_v1 = vrot.slane %v435_v62, 2  ;;  %v475_v2 = vadd.f32 %v474_v63, %v473_v61  ;;  %s528_s2 = smov %s482_s2  ;;  %s530_s3 = smov [#allocation29]  ;;  %v661_v6 = vmov %v1808_v6  ;;  %v664_v7 = vmov %v1810_v7 }
 0x109   : >> { %v456_v3 = vrot.slane %v455_v0, 2  ;;  %s545_s17 = smov [#allocation30]  ;;  %s543_s18 = smov [#allocation31]  ;;  %vm654_vm0 = vcmp.eq.s32.totalorder %v650_v7, %v647_v6  ;;  %v620_v6 = vmov %v1808_v6  ;;  %v623_v7 = vmov %v1810_v7 }
 0x10a   : >> { %v437_v4 = vadd.f32 %v436_v1, %v435_v62  ;;  %v476_v5 = vrot.slane %v475_v2, 2  ;;  %s560_s19 = smov [#allocation31]  ;;  %s1854_s20 = smov [#allocation20]  ;;  %v634_v6 = vmov %v1808_v6  ;;  %v637_v7 = vmov %v1810_v7 }
 0x10b   : >> { %v457_v8 = vadd.f32 %v456_v3, %v455_v0  ;;  %s558_s21 = smov [#allocation32]  ;;  %s1856_s22 = smov [#allocation21]  ;;  %v568_v53 = vld [vmem:[%s1854_s20] sm:$0xf]  ;;  %vm669_vm1 = vcmp.eq.s32.totalorder %v664_v7, %v661_v6  ;;  %vm628_vm3 = vcmp.eq.s32.totalorder %v623_v7, %v620_v6  ;;  %vm641_vm4 = vcmp.eq.s32.totalorder %v637_v7, %v634_v6 }
 0x10c   : >> { %v438_v9 = vrot.slane %v437_v4, 1  ;;  %v477_v10 = vadd.f32 %v476_v5, %v475_v2  ;;  %s1858_s23 = smov [#allocation22]  ;;  %s1860_s24 = smov [#allocation23]  ;;  %v569_v54 = vld [vmem:[%s1856_s22] sm:$0xf]  ;;  %vm683_vm5 = vcmp.eq.s32.totalorder %v1808_v6, 0 }
 0x10d   : >> { %v458_v11 = vrot.slane %v457_v8, 1  ;;  %s1862_s25 = smov [#allocation12]  ;;  %s1864_s28 = smov [#allocation14]  ;;  %v570_v55 = vld [vmem:[%s1858_s23] sm:$0xf]  ;;  %vm687_vm6 = vcmp.eq.s32.totalorder %v1808_v6, 1 }
 0x10e   : >> { %v439_v12 = vadd.f32 %v438_v9, %v437_v4  ;;  %v478_v13 = vrot.slane %v477_v10, 1  ;;  %s1866_s29 = smov [#allocation16]  ;;  %s784_s30 = smov [#allocation31]  ;;  %v571_v56 = vld [vmem:[%s1860_s24] sm:$0xf]  ;;  %vm700_vm7 = vcmp.eq.s32.totalorder %v1808_v6, 3 }
 0x10f   : >> { %v459_v14 = vadd.f32 %v458_v11, %v457_v8  ;;  %v792_v57 = vld [vmem:[%s1862_s25] sm:$0xf]  ;;  %s420_s27 = sadd.s32 1, %s1741_s27  }
 0x110   : >> { %440 = vst [vmem:[%s422_s10] sm:$0x1] %v439_v12  ;;  %v479_v15 = vadd.f32 %v478_v13, %v477_v10  ;;  %s1870_s10 = smov [#allocation18]  ;;  %v793_v58 = vld [vmem:[%s1864_s28] sm:$0xf]  ;;  %p417_p1 = scmp.ge.s32.totalorder %s420_s27, 7  }
 0x111   : >> { %460 = vst [vmem:[%s442_s11] sm:$0x1] %v459_v14  ;;  %v794_v59 = vld [vmem:[%s1866_s29] sm:$0xf]  ;;  %s562_s11 = smov [#allocation32]  ;;  %v321_v6 = vmov (%p417_p1), %v1808_v6  ;;  %v324_v7 = vmov (%p417_p1), %v1810_v7 }
 0x112   : >> { %480 = vst [vmem:[%s462_s12] sm:$0x1] %v479_v15  ;;  %v795_v61 = vld [vmem:[%s1870_s10] sm:$0xf]  ;;  %s786_s12 = smov [#allocation32]  ;;  %v374_v6 = vmov (%p417_p1), %v1808_v6 }
 0x117   : >> { %v484_v18 = vld [vmem:[%s483_s14] sm:$0xff]  ;;  %s590_s14 = smov [#allocation30] }
 0x118   : >> { %v486_v16 = vld [vmem:[%s485_s13] sm:$0xff]  ;;  %v507_v31 = vand.u32 2147483647, %v484_v18  ;;  %s588_s13 = smov [#allocation29] }
 0x119   : >> { %v490_v17 = vmul.f32 2.0, %v486_v16  ;;  %v488_v19 = vld [vmem:[%s487_s15] sm:$0xff]  ;;  %v508_v36 = vand.u32 2147483647, %v486_v16  ;;  %s1886_s15 = smov [#allocation12] }
 0x11a   : >> { %v489_v20 = vsub.f32 %v488_v19, %v484_v18  ;;  %v509_v32 = vand.u32 2147483647, %v488_v19 }
 0x11b   : >> { %1719 = vrcp.f32 %v490_v17 }
 0x11c   : >> { %v510_v35 = vmin.f32 %v507_v31, %v509_v32 }
 0x11e   : >> { %v511_v37 = vmul.f32 1.1920929e-08, %v510_v35 }
 0x120   : >> { %vm512_vm11 = vcmp.le.f32.partialorder %v508_v36, %v511_v37 }
 0x125   : >> { %v1720_v21 = vpop.eup %1719 }
 0x126   : >> { %v492_v22 = vmul.f32 %v1720_v21, %v489_v20 }
 0x128   : >> { %v494_v23 = vmul.f32 %v492_v22, %v492_v22  ;;  %vm493_vm10 = vcmp.ge.f32.partialorder %v492_v22, 0.0 }
 0x12a   : >> { %v495_v24 = vadd.f32 1.0, %v494_v23 }
 0x12c   : >> { %1721 = vrsqrt.f32 %v495_v24  ;;  %vm498_vm8 = vcmp.eq.f32.partialorder %v495_v24, inf  ;;  %v501_v26 = vand.u32 2147483648, %v495_v24  ;;  %vm500_vm9 = vcmp.eq.f32.partialorder %v495_v24, 0.0 }
 0x136   : >> { %v1722_v25 = vpop.eup %1721 }
 0x137   : >> { %v497_v27 = vmul.f32 %v1722_v25, %v495_v24 }
 0x139   : >> { %v499_v28 = vsel %vm498_vm8, %v495_v24, %v497_v27  ;;  %vm336_vm8 = vcmp.eq.s32.totalorder (%p417_p1), %v324_v7, %v321_v6  ;;  %v377_v7 = vmov (%p417_p1), %v1810_v7  ;;  %v340_v6 = vmov (%p417_p1), %v1808_v6 }
 0x13a   : >> { %v502_v29 = vsel %vm500_vm9, %v501_v26, %v499_v28  ;;  %v343_v7 = vmov (%p417_p1), %v1810_v7  ;;  %v357_v6 = vmov (%p417_p1), %v1808_v6  ;;  %vm389_vm9 = vcmp.eq.s32.totalorder (%p417_p1), %v377_v7, %v374_v6 }
 0x13b   : >> { %v503_v30 = vxor.u32 2147483648, %v502_v29  ;;  %v360_v7 = vmov (%p417_p1), %v1810_v7 }
 0x13d   : >> { %v504_v33 = vsel %vm493_vm10, %v502_v29, %v503_v30 }
 0x13e   : >> { %v505_v34 = vadd.f32 %v504_v33, %v492_v22 }
 0x140   : >> { %1723 = vrcp.f32 %v505_v34 }
 0x14a   : >> { %v1724_v38 = vpop.eup %1723 }
 0x14b   : >> { %v513_v39 = vsel %vm512_vm11, 0.0, %v1724_v38 }
 0x14c   : >> { %v514_v40 = vmul.f32 %v513_v39, %v513_v39  ;;  %v518_v41 = vmul.f32 %v513_v39, %v486_v16 }
 0x14e   : >> { %v515_v42 = vadd.f32 1.0, %v514_v40  ;;  %v519_v43 = vsub.f32 %v484_v18, %v518_v41  ;;  %v521_v44 = vadd.f32 %v518_v41, %v488_v19 }
 0x150   : >> { %1725 = vrsqrt.f32 %v515_v42  ;;  %523 = vst [vmem:[%s522_s16] sm:$0xff] %v519_v43  ;;  %525 = vst [vmem:[%s524_s0] sm:$0xff] %v521_v44  ;;  %s1888_s16 = smov [#allocation22]  ;;  %s1890_s0 = smov [#allocation23] }
 0x15a   : >> { %v1726_v45 = vpop.eup %1725 }
 0x15b   : >> { %527 = vst [vmem:[%s526_s1] sm:$0xff] %v1726_v45  ;;  %v517_v46 = vmul.f32 %v1726_v45, %v513_v39  ;;  %s1892_s1 = smov [#allocation20] }
 0x15d   : >> { %529 = vst [vmem:[%s528_s2] sm:$0xff] %v517_v46  ;;  %s1894_s2 = smov [#allocation16] }
 0x162   : >> { %v531_v47 = vld [vmem:[%s530_s3] ss:$0 sm:$0xff]  ;;  %s1896_s3 = smov [#allocation14] }
 0x163   : >> { %v540_v48 = vsel %vm539_vm12, %v531_v47, 0.0  ;;  %v589_v27 = vld [vmem:[%s588_s13] ss:$0 sm:$0xff]  ;;  %s760_s13 = smov [#allocation21] }
 0x164   : >> { %541 = vadd.xlane.f32.xlu0 %v540_v48  ;;  %v546_v49 = vld [vmem:[%s545_s17] ss:$0 sm:$0xff]  ;;  %s1900_s17 = smov [#allocation18] }
 0x165   : >> { %v555_v50 = vsel %vm554_vm13, %v546_v49, 0.0  ;;  %v591_v28 = vld [vmem:[%s590_s14] ss:$0 sm:$0xff]  ;;  %s737_s14 = smov [#allocation22] }
 0x168   : >> { %556 = vadd.xlane.f32.xlu0 %v555_v50 }
 0x1f1   : >> { %v542_v51 = vpop.xlane.xlu0 %541 }
 0x1f2   : >> { %544 = vst [vmem:[%s543_s18] sm:$0xff] %v542_v51  ;;  %s1902_s18 = smov [#allocation21] }
 0x1f5   : >> { %v557_v52 = vpop.xlane.xlu0 %556 }
 0x1f6   : >> { %559 = vst [vmem:[%s558_s21] sm:$0xff] %v557_v52  ;;  %s657_s21 = smov [#allocation23] }
 0x1f9   : >> { %v561_v60 = vld [vmem:[%s560_s19] sm:$0xff]  ;;  %s658_s19 = smov [#allocation28] }
 0x1fa   : >> { %v785_v62 = vld [vmem:[%s784_s30] sm:$0xff]  ;;  %v572_v63 = vmul.f32 %v568_v53, %v561_v60  ;;  %v575_v0 = vmul.f32 %v569_v54, %v561_v60  ;;  %v579_v1 = vmul.f32 %v570_v55, %v561_v60  ;;  %v582_v2 = vmul.f32 %v571_v56, %v561_v60  ;;  %s673_s30 = smov [#allocation21] }
 0x1fb   : >> { %v796_v3 = vmul.f32 %v792_v57, %v785_v62  ;;  %v799_v4 = vmul.f32 %v793_v58, %v785_v62  ;;  %v803_v5 = vmul.f32 %v794_v59, %v785_v62  ;;  %v806_v8 = vmul.f32 %v795_v61, %v785_v62 }
 0x1fd   : >> { %v563_v9 = vld [vmem:[%s562_s11] sm:$0xff]  ;;  %s1947_s11 = smov [#allocation23] }
 0x1fe   : >> { %v787_v10 = vld [vmem:[%s786_s12] sm:$0xff]  ;;  %v573_v11 = vmul.f32 %v570_v55, %v563_v9  ;;  %v576_v12 = vmul.f32 %v571_v56, %v563_v9  ;;  %v578_v13 = vmul.f32 %v568_v53, %v563_v9  ;;  %v581_v14 = vmul.f32 %v569_v54, %v563_v9  ;;  %s736_s12 = smov [#allocation20] }
 0x1ff   : >> { %v797_v15 = vmul.f32 %v794_v59, %v787_v10  ;;  %v800_v16 = vmul.f32 %v795_v61, %v787_v10  ;;  %v802_v17 = vmul.f32 %v792_v57, %v787_v10  ;;  %v805_v18 = vmul.f32 %v793_v58, %v787_v10  ;;  %v665_v59 = vld [vmem:[%s658_s19] ss:$0 sm:$0xff] }
 0x200   : >> { %v574_v19 = vsub.f32 %v572_v63, %v573_v11  ;;  %v577_v20 = vsub.f32 %v575_v0, %v576_v12  ;;  %v580_v21 = vadd.f32 %v579_v1, %v578_v13  ;;  %v583_v22 = vadd.f32 %v582_v2, %v581_v14 }
 0x201   : >> { %v798_v23 = vsub.f32 %v796_v3, %v797_v15  ;;  %v801_v24 = vsub.f32 %v799_v4, %v800_v16  ;;  %v804_v25 = vadd.f32 %v803_v5, %v802_v17  ;;  %v807_v26 = vadd.f32 %v806_v8, %v805_v18 }
 0x202   : >> { %585 = vst [vmem:[%s1856_s22] sm:$0xf] %v577_v20  ;;  %587 = vst [vmem:[%s1860_s24] sm:$0xf] %v583_v22  ;;  %s617_s22 = smov [#allocation27]  ;;  %s631_s24 = smov [#allocation21] }
 0x203   : >> { %584 = vst [vmem:[%s1854_s20] sm:$0xf] %v574_v19  ;;  %586 = vst [vmem:[%s1858_s23] sm:$0xf] %v580_v21  ;;  %s644_s20 = smov [#allocation22]  ;;  %s616_s23 = smov [#allocation20]  ;;  %v624_v63 = vld [vmem:[%s617_s22] ss:$0 sm:$0xff] }
 0x204   : >> { %808 = vst [vmem:[%s1862_s25] sm:$0xf] %v798_v23  ;;  %809 = vst [vmem:[%s1864_s28] sm:$0xf] %v801_v24  ;;  %s1944_s25 = smov [#allocation22]  ;;  %s1744_s28 = smov 1  }
 0x205   : >> { %810 = vst [vmem:[%s1866_s29] sm:$0xf] %v804_v25  ;;  %811 = vst [vmem:[%s1870_s10] sm:$0xf] %v807_v26  ;;  %s672_s29 = smov [#allocation20]  ;;  %s1745_s10 = smov 127  }
 0x209   : >> { %v599_v30 = vld [vmem:[%s1890_s0] sm:$0xf] }
 0x20a   : >> { %v598_v29 = vld [vmem:[%s1888_s16] sm:$0xf]  ;;  %v607_v36 = vmul.f32 %v599_v30, %v591_v28  ;;  %v610_v42 = vmul.f32 %v599_v30, %v589_v27 }
 0x20b   : >> { %v596_v31 = vld [vmem:[%s1892_s1] sm:$0xf]  ;;  %v606_v35 = vmul.f32 %v598_v29, %v589_v27  ;;  %v609_v37 = vmul.f32 %v598_v29, %v591_v28 }
 0x20c   : >> { %v814_v32 = vld [vmem:[%s1886_s15] ss:$0 sm:$0xff]  ;;  %v1667_v34 = vld [vmem:[%s1886_s15 + $0x3] ss:$0 sm:$0xff]  ;;  %v600_v48 = vmul.f32 %v596_v31, %v589_v27  ;;  %v603_v49 = vmul.f32 %v596_v31, %v591_v28 }
 0x20d   : >> { %v1666_v33 = vld [vmem:[%s1886_s15 - $0x1] sm:$0xe]  ;;  %v1671_v45 = vld [vmem:[%s1896_s3 + $0x3] ss:$0 sm:$0xff]  ;;  %v608_v47 = vsub.f32 %v606_v35, %v607_v36  ;;  %v611_v53 = vadd.f32 %v610_v42, %v609_v37 }
 0x20e   : >> { %v821_v38 = vsel %vm744_vm14, %v814_v32, %v1666_v33  ;;  %v825_v39 = vld [vmem:[%s1894_s2] ss:$0 sm:$0xff]  ;;  %v1669_v40 = vld [vmem:[%s1894_s2 + $0x1] sm:$0x7] }
 0x20f   : >> { %v838_v41 = vld [vmem:[%s1896_s3] ss:$0 sm:$0xff]  ;;  %824 = vst [vmem:[%s1886_s15] sm:$0xf] %v821_v38  ;;  %v833_v43 = vsel %vm756_vm15, %v1667_v34, %v1669_v40  ;;  %v1673_v51 = vld [vmem:[%s1900_s17 + $0x1] sm:$0x7]  ;;  %614 = vst [vmem:[%s1888_s16] sm:$0xf] %v608_v47 }
 0x210   : >> { %v1670_v44 = vld [vmem:[%s1896_s3 - $0x1] sm:$0xe]  ;;  %1668 = vst [vmem:[%s1886_s15 + $0x1] sm:$0x1] %v825_v39  ;;  %835 = vst [vmem:[%s1894_s2] sm:$0xf] %v833_v43  ;;  %v857_v54 = vsel %vm756_vm15, %v1671_v45, %v1673_v51  ;;  %s761_s15 = smov [#allocation23] }
 0x211   : >> { %v849_v46 = vld [vmem:[%s1900_s17] ss:$0 sm:$0xff]  ;;  %v845_v50 = vsel %vm744_vm14, %v838_v41, %v1670_v44  ;;  %615 = vst [vmem:[%s1890_s0] sm:$0xf] %v611_v53  ;;  %s860_s16 = sadd.s32 (%p417_p1), 1, %s1737_s26   ;;  %s325_s0 = smov (%p417_p1), [#allocation20] }
 0x212   : >> { %v597_v52 = vld [vmem:[%s1902_s18] sm:$0xf]  ;;  %848 = vst [vmem:[%s1896_s3] sm:$0xf] %v845_v50  ;;  %859 = vst [vmem:[%s1900_s17] sm:$0xf] %v857_v54  ;;  %s361_s2 = smov (%p417_p1), [#allocation22]  ;;  %p413_p2 = scmp.ge.s32.totalorder (%p417_p1), %s860_s16, 15 }
 0x213   : >> { %v601_v55 = vmul.f32 %v597_v52, %v591_v28  ;;  %v604_v56 = vmul.f32 %v597_v52, %v589_v27  ;;  %1672 = vst [vmem:[%s1896_s3 + $0x1] sm:$0x1] %v849_v46  ;;  %s378_s3 = smov (%p417_p1), [#allocation23]  ;;  %s2036_s26 = smov (%p417_p1), %s860_s16 }
 0x215   : >> { %v602_v57 = vsub.f32 %v600_v48, %v601_v55  ;;  %v605_v58 = vadd.f32 %v604_v56, %v603_v49 }
 0x216   : >> { %v651_v60 = vld [vmem:[%s644_s20] sm:$0xf] }
 0x217   : >> { %612 = vst [vmem:[%s1892_s1] sm:$0xf] %v602_v57  ;;  %613 = vst [vmem:[%s1902_s18] sm:$0xf] %v605_v58  ;;  %v655_v61 = vsel %vm654_vm0, 0.0, %v651_v60  ;;  %s344_s1 = smov (%p417_p1), [#allocation21] }
 0x218   : >> { %v666_v62 = vld [vmem:[%s657_s21] sm:$0xf]  ;;  %656 = vst [vmem:[%s644_s20] sm:$0xf] %v655_v61 }
 0x219   : >> { %v670_v0 = vsel %vm669_vm1, %v665_v59, %v666_v62 }
 0x21a   : >> { %671 = vst [vmem:[%s657_s21] sm:$0xf] %v670_v0 }
 0x21e   : >> { %v625_v1 = vld [vmem:[%s616_s23] sm:$0xf] }
 0x21f   : >> { %v638_v2 = vld [vmem:[%s631_s24] sm:$0xf]  ;;  %v629_v3 = vsel %vm628_vm3, %v624_v63, %v625_v1 }
 0x220   : >> { %v642_v4 = vsel %vm641_vm4, 0.0, %v638_v2  ;;  %630 = vst [vmem:[%s616_s23] sm:$0xf] %v629_v3  ;;  %v710_v5 = vld [vmem:[%s1944_s25] sm:$0xf] }
 0x221   : >> { %643 = vst [vmem:[%s631_s24] sm:$0xf] %v642_v4  ;;  %711 = vrot.lane.b32.xlu0 %v710_v5, %s1744_s28  ;;  %v706_v11 = vld [vmem:[%s1947_s11] sm:$0xf] }
 0x222   : >> { %v727_v12 = vld [vmem:[%s1947_s11] sm:$0xf] }
 0x223   : >> { %v709_v30 = vld [vmem:[%s1944_s25] sm:$0xf] }
 0x227   : >> { %v678_v8 = vld [vmem:[%s672_s29] sm:$0xf] }
 0x228   : >> { %679 = vrot.lane.b32.xlu1 %v678_v8, %s1744_s28  ;;  %v674_v9 = vld [vmem:[%s673_s30] sm:$0xf] }
 0x229   : >> { %v695_v10 = vld [vmem:[%s673_s30] sm:$0xf] }
 0x22a   : >> { %v677_v18 = vld [vmem:[%s672_s29] sm:$0xf] }
 0x22c   : >> { %675 = vrot.lane.b32.xlu1 %v674_v9, %s1744_s28 }
 0x230   : >> { %696 = vrot.lane.b32.xlu1 %v695_v10, %s1745_s10 }
 0x234   : >> { %707 = vrot.lane.b32.xlu1 %v706_v11, %s1744_s28 }
 0x238   : >> { %728 = vrot.lane.b32.xlu1 %v727_v12, %s1745_s10 }
 0x293   : >> { %v712_v20 = vpop.permute.xlu0 %711 }
 0x294   : >> { %v716_v22 = vsel %vm683_vm5, %v710_v5, %v712_v20 }
 0x29a   : >> { %v680_v13 = vpop.permute.xlu1 %679 }
 0x29b   : >> { %v684_v14 = vsel %vm683_vm5, %v678_v8, %v680_v13 }
 0x29e   : >> { %v676_v15 = vpop.permute.xlu1 %675 }
 0x29f   : >> { %v688_v16 = vsel %vm687_vm6, %v676_v15, %v684_v14 }
 0x2a0   : >> { %v694_v17 = vsel %vm1445_vm2, %v688_v16, 0.0 }
 0x2a1   : >> { %702 = vst [vmem:[%s672_s29] sm:$0xf] %v694_v17 }
 0x2a2   : >> { %v697_v19 = vpop.permute.xlu1 %696 }
 0x2a3   : >> { %v701_v21 = vsel %vm700_vm7, %v677_v18, %v697_v19 }
 0x2a4   : >> { %703 = vst [vmem:[%s673_s30] sm:$0xf] %v701_v21 }
 0x2a6   : >> { %v708_v23 = vpop.permute.xlu1 %707 }
 0x2a7   : >> { %v720_v24 = vsel %vm687_vm6, %v708_v23, %v716_v22 }
 0x2a8   : >> { %v738_v25 = vld [vmem:[%s736_s12] ss:$0 sm:$0xff]  ;;  %v1659_v27 = vld [vmem:[%s736_s12 + $0x3] ss:$0 sm:$0xff]  ;;  %v726_v29 = vsel %vm1445_vm2, %v720_v24, 0.0 }
 0x2a9   : >> { %v1658_v26 = vld [vmem:[%s736_s12 - $0x1] sm:$0xe]  ;;  %734 = vst [vmem:[%s1944_s25] sm:$0xf] %v726_v29 }
 0x2aa   : >> { %v745_v28 = vsel %vm744_vm14, %v738_v25, %v1658_v26  ;;  %v729_v31 = vpop.permute.xlu1 %728 }
 0x2ab   : >> { %748 = vst [vmem:[%s736_s12] sm:$0xf] %v745_v28  ;;  %v762_v32 = vld [vmem:[%s760_s13] ss:$0 sm:$0xff]  ;;  %v1663_v34 = vld [vmem:[%s760_s13 + $0x3] ss:$0 sm:$0xff]  ;;  %v733_v35 = vsel %vm700_vm7, %v709_v30, %v729_v31 }
 0x2ac   : >> { %v1662_v33 = vld [vmem:[%s760_s13 - $0x1] sm:$0xe]  ;;  %735 = vst [vmem:[%s1947_s11] sm:$0xf] %v733_v35 }
 0x2ad   : >> { %v769_v36 = vsel %vm744_vm14, %v762_v32, %v1662_v33 }
 0x2ae   : >> { %772 = vst [vmem:[%s760_s13] sm:$0xf] %v769_v36 }
 0x2b0   : >> { %v749_v37 = vld [vmem:[%s737_s14] ss:$0 sm:$0xff]  ;;  %v1661_v38 = vld [vmem:[%s737_s14 + $0x1] sm:$0x7] }
 0x2b1   : >> { %1660 = vst [vmem:[%s736_s12 + $0x1] sm:$0x1] %v749_v37  ;;  %v757_v39 = vsel %vm756_vm15, %v1659_v27, %v1661_v38  ;;  %419 = sbr.rel (!%p417_p1) target bundleno = 257 (0x101), region = 435 }
 0x2b2   : >> { %759 = vst [vmem:[%s737_s14] sm:$0xf] %v757_v39 }
 0x2b3   : >> { %v773_v40 = vld [vmem:[%s761_s15] ss:$0 sm:$0xff]  ;;  %v1665_v41 = vld [vmem:[%s761_s15 + $0x1] sm:$0x7] }
 0x2b4   : >> { %1664 = vst [vmem:[%s760_s13 + $0x1] sm:$0x1] %v773_v40  ;;  %v781_v42 = vsel %vm756_vm15, %v1663_v34, %v1665_v41 }
 0x2b5   : >> { %783 = vst [vmem:[%s761_s15] sm:$0xf] %v781_v42 }
 0x2b8   : > { %v331_v43 = vld [vmem:[%s325_s0] sm:$0xf] }
 0x2b9   : > { %v332_v45 = vsel %vm1445_vm2, %v331_v43, 0.0  ;;  %v367_v47 = vld [vmem:[%s361_s2] sm:$0xf] }
 0x2ba   : > { %v333_v49 = vmul.f32 %v332_v45, %v332_v45  ;;  %v368_v51 = vsel %vm1445_vm2, %v367_v47, 0.0 }
 0x2bb   : > { %v350_v44 = vld [vmem:[%s344_s1] sm:$0xf]  ;;  %v369_v53 = vmul.f32 %v368_v51, %v368_v51 }
 0x2bc   : > { %v351_v46 = vsel %vm1445_vm2, %v350_v44, 0.0  ;;  %v384_v48 = vld [vmem:[%s378_s3] sm:$0xf]  ;;  %v337_v56 = vsel %vm336_vm8, 0.0, %v333_v49 }
 0x2bd   : > { %v352_v50 = vmul.f32 %v351_v46, %v351_v46  ;;  %v385_v52 = vsel %vm1445_vm2, %v384_v48, 0.0 }
 0x2be   : > { %v386_v55 = vmul.f32 %v385_v52, %v385_v52 }
 0x2bf   : > { %v354_v54 = vadd.f32 %v352_v50, %v333_v49  ;;  %v353_v57 = vadd.f32 %v352_v50, %v337_v56 }
 0x2c0   : > { %v390_v60 = vsel %vm389_vm9, 0.0, %v386_v55 }
 0x2c1   : > { %v371_v58 = vadd.f32 %v369_v53, %v354_v54  ;;  %v370_v59 = vadd.f32 %v369_v53, %v353_v57 }
 0x2c3   : > { %v392_v61 = vadd.f32 %v386_v55, %v371_v58  ;;  %v391_v62 = vadd.f32 %v390_v60, %v370_v59 }
 0x2c5   : > { %393 = vadd.xlane.f32.xlu0 %v392_v61 }
 0x2c9   : > { %401 = vadd.xlane.f32.xlu0 %v391_v62 }
 0x352   : > { %v394_v63 = vpop.xlane.xlu0 %393 }
 0x353   : > { %v395_v0 = vrot.slane %v394_v63, 4 }
 0x355   : > { %v396_v1 = vadd.f32 %v395_v0, %v394_v63 }
 0x356   : > { %v402_v2 = vpop.xlane.xlu0 %401 }
 0x357   : > { %v397_v3 = vrot.slane %v396_v1, 2  ;;  %v403_v4 = vrot.slane %v402_v2, 4 }
 0x359   : > { %v404_v5 = vadd.f32 %v403_v4, %v402_v2  ;;  %v398_v8 = vadd.f32 %v397_v3, %v396_v1 }
 0x35b   : > { %v405_v9 = vrot.slane %v404_v5, 2  ;;  %v399_v11 = vrot.slane %v398_v8, 1 }
 0x35d   : > { %v406_v10 = vadd.f32 %v405_v9, %v404_v5  ;;  %v400_v14 = vadd.f32 %v399_v11, %v398_v8 }
 0x35f   : > { %v407_v12 = vrot.slane %v406_v10, 1 }
 0x361   : > { %v408_v13 = vadd.f32 %v407_v12, %v406_v10 }
 0x363   : > { %1696 = vpush %v408_v13 }
 0x364   : > { %1698 = vpush %v400_v14 }
 0x394   : > { %s1697_s27 = spop %1696 }
 0x395   : > { %s1699_s17 = spop %1698 }
 0x396   : > { %s411_s18 = smul.f32 1e-10, %s1699_s17 }
 0x398   : > { %p412_p3 = scmp.le.f32.partialorder %s1697_s27, %s411_s18 }
 0x39a   : > { %p414_p4 = por %p413_p2, %p412_p3 }
 0x39c   :  { %862 = sbr.rel (!%p414_p4) target bundleno = 256 (0x100), region = 446 }
 0x3a3 PF:  { %s863_s19 = smov [#allocation20]  ;;  %v867_v6 = vmov %v1808_v6  ;;  %v870_v7 = vmov %v1810_v7  ;;  %v918_v15 = vld [vmem:[#allocation12] sm:$0xf]  ;;  %v924_v16 = vld [vmem:[#allocation14] sm:$0xf]  ;;  %s883_s20 = smov [#allocation23] }
 0x3a4   :  { %v887_v6 = vmov %v1808_v6  ;;  %v890_v7 = vmov %v1810_v7  ;;  %v871_v17 = vld [vmem:[%s863_s19] sm:$0xf]  ;;  %vm874_vm10 = vcmp.eq.s32.totalorder %v870_v7, %v867_v6  ;;  %920 = vst [vmem:[#allocation13] sm:$0xf] %v918_v15  ;;  %926 = vst [vmem:[#allocation15] sm:$0xf] %v924_v16 }
 0x3a5   :  { %vm894_vm11 = vcmp.eq.s32.totalorder %v890_v7, %v887_v6  ;;  %v930_v18 = vld [vmem:[#allocation16] sm:$0xf]  ;;  %v875_v19 = vsel %vm874_vm10, %v871_v17, 0.0  ;;  %v891_v20 = vld [vmem:[%s883_s20] sm:$0xf]  ;;  %s864_s30 = smov [#allocation8] }
 0x3a6   :  { %932 = vst [vmem:[#allocation17] sm:$0xf] %v930_v18  ;;  %v936_v21 = vld [vmem:[#allocation18] sm:$0xf]  ;;  %v876_v22 = vrot.slane %v875_v19, 4  ;;  %v895_v23 = vsel %vm894_vm11, %v891_v20, 0.0 }
 0x3a7   :  { %938 = vst [vmem:[#allocation19] sm:$0xf] %v936_v21  ;;  %v896_v24 = vrot.slane %v895_v23, 4 }
 0x3a8   :  { %v877_v25 = vadd.f32 %v876_v22, %v875_v19 }
 0x3a9   :  { %v897_v26 = vadd.f32 %v896_v24, %v895_v23 }
 0x3aa   :  { %v878_v27 = vrot.slane %v877_v25, 2 }
 0x3ab   :  { %v898_v28 = vrot.slane %v897_v26, 2  ;;  %v1127_v29 = vld [vmem:[#allocation13] sm:$0xf]  ;;  %v1189_v30 = vld [vmem:[#allocation15] sm:$0xf] }
 0x3ac   :  { %v879_v31 = vadd.f32 %v878_v27, %v877_v25  ;;  %1128 = vst [vmem:[%s2032_s6] sm:$0xf] %v1127_v29  ;;  %1190 = vst [vmem:[%s2033_s7] sm:$0xf] %v1189_v30  ;;  %s884_s6 = smov [#allocation10] }
 0x3ad   :  { %v1251_v6 = vld [vmem:[#allocation17] sm:$0xf]  ;;  %v899_v7 = vadd.f32 %v898_v28, %v897_v26 }
 0x3ae   :  { %1252 = vst [vmem:[%s2034_s8] sm:$0xf] %v1251_v6  ;;  %v1313_v32 = vld [vmem:[#allocation19] sm:$0xf]  ;;  %v880_v33 = vrot.slane %v879_v31, 1 }
 0x3af   :  { %1314 = vst [vmem:[%s2035_s9] sm:$0xf] %v1313_v32  ;;  %v900_v34 = vrot.slane %v899_v7, 1 }
 0x3b0   :  { %v881_v35 = vadd.f32 %v880_v33, %v879_v31 }
 0x3b1   :  { %v901_v36 = vadd.f32 %v900_v34, %v899_v7 }
 0x3b2   :  { %882 = vst [vmem:[%s864_s30] sm:$0x1] %v881_v35 }
 0x3b3   :  { %902 = vst [vmem:[%s884_s6] sm:$0x1] %v901_v36 }
 0x3b9   :  { %v906_v37 = vld [vmem:[#allocation8] sm:$0x1] }
 0x3ba   :  { %908 = vst [vmem:[#allocation9] sm:$0x1] %v906_v37  ;;  %v912_v38 = vld [vmem:[#allocation10] sm:$0x1] }
 0x3bb   :  { %914 = vst [vmem:[#allocation11] sm:$0x1] %v912_v38 }
 0x3c1   :  { %v1001_v39 = vld [vmem:[#allocation9] sm:$0x1] }
 0x3c2   :  { %1002 = vst [vmem:[%s2030_s4] sm:$0x1] %v1001_v39  ;;  %v1065_v40 = vld [vmem:[#allocation11] sm:$0x1] }
 0x3c3   :  { %1066 = vst [vmem:[%s2031_s5] sm:$0x1] %v1065_v40 }

// kernel: reverse.1
= control target key start
LH: loop header
LB: loop body
LE: loop exit
PB: predicated region body
PF: predicated region fallthrough
CT: control target
= control target key end

     0   :  { %v2_v0 = vlaneseq  ;;  %s123_s0 = inlined_call_operand.vmem [shape: f32[8], index: 0, kind: input, shape index: {}]   ;;  %s124_s1 = inlined_call_operand.vmem [shape: f32[8], index: 1, kind: output, shape index: {}]  }
   0x2   :  { %v3_v1 = vsub.s32 7, %v2_v0 }
   0x4   :  { %4 = vset.pattern.permute.xlu0 %v3_v1 }
   0x5   :  { %v43_v2 = vld [vmem:[#allocation1] sm:$0x1]  ;;  %v21_v3 = vld [vmem:[%s123_s0] sm:$0x1]  ;;  %v58_v10 = vshrl.u32 %v2_v0, 7 }
   0x6   :  { %44 = vst [vmem:[#allocation0] sm:$0x1] %v43_v2  ;;  %22 = vst [vmem:[#allocation1 + $0x1] sm:$0x1] %v21_v3 }
   0x7   :  { %vm59_vm0 = vcmp.lt.s32.totalorder %v58_v10, 1 }
   0xd   :  { %v46_v4 = vld [vmem:[#allocation0 + $0x7] ss:$-1 sm:$0xff]  ;;  %v40_v5 = vld [vmem:[#allocation1 + $0x1] sm:$0x1] }
   0xe   :  { %v47_v6 = vrot.slane %v46_v4, 7  ;;  %42 = vst [vmem:[#allocation0 + $0x8] sm:$0x1] %v40_v5 }
  0x10   :  { %48 = vperm.xlu0 %4, %v47_v6  }
  0x15   :  { %v53_v7 = vld [vmem:[#allocation0 + $0xf] ss:$-1 sm:$0xff] }
  0x16   :  { %v54_v8 = vrot.slane %v53_v7, 7 }
  0x18   :  { %55 = vperm.xlu0 %4, %v54_v8  }
  0x8f   :  { %v49_v9 = vpop.permute.xlu0 %48 }
  0x90   :  { %50 = vst [vmem:[#allocation2] sm:$0xff] %v49_v9 }
  0x97   :  { %v56_v11 = vpop.permute.xlu0 %55 }
  0x98   :  { %60 = vst.msk [vmem:[#allocation2] sm:$0xff] %vm59_vm0, %v56_v11 }
  0x9f   :  { %v64_v12 = vld [vmem:[#allocation2] sm:$0x1] }
  0xa0   :  { %66 = vst [vmem:[#allocation3] sm:$0x1] %v64_v12 }
  0xa7   :  { %v82_v13 = vld [vmem:[#allocation3] sm:$0x1] }
  0xa8   :  { %83 = vst [vmem:[%s124_s1] sm:$0x1] %v82_v13 }

// kernel: custom-call.44
= control target key start
LH: loop header
LB: loop body
LE: loop exit
PB: predicated region body
PF: predicated region fallthrough
CT: control target
= control target key end

     0   :  { %v321_v1 = vmov 0.0   ;;  %s341_s11 = smov 0   ;;  %s394_s0 = inlined_call_operand.vmem [shape: f32[8,8], index: 0, kind: input, shape index: {}]   ;;  %s395_s1 = inlined_call_operand.vmem [shape: f32[8,8], index: 1, kind: output, shape index: {0}]   ;;  %s396_s2 = inlined_call_operand.vmem [shape: f32[8], index: 2, kind: output, shape index: {1}]  }
   0x1   :  { %v31_v0 = vld [vmem:[%s394_s0] sm:$0xff]  ;;  %38 = vst [vmem:[#allocation2] sm:$0x1] %v321_v1 }
   0x2   :  { %37 = vst [vmem:[#allocation1] sm:$0xff] %v31_v0 }
   0x3 LB: > { %v46_v2 = vlaneseq  ;;  %v349_v5 = vstv %s319_s11  ;;  %s73_s0 = scalar_lea.vmem [#allocation1], %s319_s11  ;;  %s109_s12 = smov [#allocation1]  ;;  %v322_v58 = vmov 1.0   ;;  %s319_s11 = sphi %s341_s11, %s44_s11  }
   0x4   : > { %s131_s13 = scalar_lea.vmem [#allocation4], %s319_s11  ;;  %s147_s14 = smov [#allocation1] }
   0x5   : > { %v346_v4 = vshrl.u32 %v46_v2, 7  ;;  %v125_v47 = vand.u32 127, %v46_v2  ;;  %s148_s15 = smov [#allocation4] }
   0x7   : > { %vm50_vm0 = vcmp.gt.s32.totalorder %v346_v4, %v349_v5  ;;  %v112_v4 = vmov %v346_v4  ;;  %vm362_vm10 = vcmp.eq.s32.totalorder %v125_v47, %v349_v5  ;;  %vm177_vm13 = vcmp.gt.s32.totalorder %v125_v47, %v349_v5 }
   0x8   : > { %vm116_vm7 = vcmp.gt.s32.totalorder %v112_v4, %v349_v5  ;;  %vm117_vm8 = vcmp.lt.s32.totalorder %v112_v4, 8  ;;  %v144_v59 = vld [vmem:[#allocation2] ss:$0 sm:$0xff]  ;;  %v151_v4 = vmov %v346_v4 }
   0x9   : > { %v45_v3 = vld [vmem:[#allocation1] sm:$0xff]  ;;  %vm118_vm9 = vmand %vm116_vm7, %vm117_vm8  ;;  %vm156_vm11 = vcmp.lt.s32.totalorder %v151_v4, 8  ;;  %v168_v4 = vmov %v346_v4 }
   0xa   : > { %v53_v6 = vsel %vm50_vm0, %v45_v3, 0.0  ;;  %v74_v14 = vld [vmem:[%s73_s0] ss:$0 sm:$0xff]  ;;  %vm185_vm12 = vcmp.ge.s32.totalorder %v168_v4, %v349_v5 }
   0xb   : > { %v54_v7 = vmul.f32 %v53_v6, %v53_v6  ;;  %v75_v15 = vand.u32 2147483647, %v74_v14  ;;  %vm100_vm6 = vcmp.lt.f32.partialorder %v74_v14, 0.0  ;;  %v113_v44 = vld [vmem:[%s109_s12] sm:$0xff]  ;;  %vm186_vm14 = vmand %vm362_vm10, %vm185_vm12 }
   0xc   : > { %v119_v48 = vsel %vm118_vm9, %v113_v44, 0.0  ;;  %v154_v62 = vld [vmem:[%s147_s14] sm:$0xff]  ;;  %s164_s14 = smov %s147_s14 }
   0xd   : > { %v55_v8 = vrot.slane %v54_v7, 4  ;;  %v76_v20 = vmax.f32 %v75_v15, 0.0  ;;  %s189_s16 = scalar_lea.vmem %s164_s14, %s319_s11  ;;  %s44_s11 = sadd.s32 1, %s319_s11  }
   0xe   : > { %p41_p0 = scmp.ge.s32.totalorder %s44_s11, 8  }
   0xf   : > { %v56_v9 = vadd.f32 %v55_v8, %v54_v7 }
  0x11   : > { %v57_v10 = vrot.slane %v56_v9, 2 }
  0x13   : > { %v58_v11 = vadd.f32 %v57_v10, %v56_v9 }
  0x15   : > { %v59_v12 = vrot.slane %v58_v11, 1 }
  0x17   : > { %v60_v13 = vadd.f32 %v59_v12, %v58_v11  ;;  %v175_v12 = vld [vmem:[%s164_s14] sm:$0xff] }
  0x19   : > { %303 = vrsqrt.f32 %v60_v13  ;;  %vm63_vm1 = vcmp.eq.f32.partialorder %v60_v13, inf  ;;  %v66_v17 = vand.u32 2147483648, %v60_v13  ;;  %vm65_vm2 = vcmp.eq.f32.partialorder %v60_v13, 0.0 }
  0x23   : > { %v304_v16 = vpop.eup %303 }
  0x24   : > { %v62_v18 = vmul.f32 %v304_v16, %v60_v13 }
  0x26   : > { %v64_v19 = vsel %vm63_vm1, %v60_v13, %v62_v18 }
  0x27   : > { %v67_v21 = vsel %vm65_vm2, %v66_v17, %v64_v19 }
  0x28   : > { %v77_v22 = vand.u32 2147483647, %v67_v21 }
  0x2a   : > { %v78_v23 = vmax.f32 %v76_v20, %v77_v22 }
  0x2c   : > { %305 = vrcp.f32 %v78_v23  ;;  %vm90_vm5 = vcmp.eq.f32.partialorder %v78_v23, 0.0 }
  0x36   : > { %v306_v24 = vpop.eup %305 }
  0x37   : > { %v80_v25 = vmul.f32 %v306_v24, %v75_v15  ;;  %v83_v26 = vmul.f32 0.0, %v306_v24  ;;  %v87_v27 = vmul.f32 %v306_v24, %v77_v22 }
  0x39   : > { %v81_v28 = vmul.f32 %v80_v25, %v80_v25  ;;  %v84_v29 = vmul.f32 %v83_v26, %v83_v26  ;;  %v88_v30 = vmul.f32 %v87_v27, %v87_v27 }
  0x3b   : > { %v85_v31 = vadd.f32 %v84_v29, %v81_v28 }
  0x3d   : > { %v89_v32 = vadd.f32 %v88_v30, %v85_v31 }
  0x3f   : > { %307 = vrsqrt.f32 %v89_v32  ;;  %vm93_vm3 = vcmp.eq.f32.partialorder %v89_v32, inf  ;;  %v96_v34 = vand.u32 2147483648, %v89_v32  ;;  %vm95_vm4 = vcmp.eq.f32.partialorder %v89_v32, 0.0 }
  0x49   : > { %v308_v33 = vpop.eup %307 }
  0x4a   : > { %v92_v35 = vmul.f32 %v308_v33, %v89_v32 }
  0x4c   : > { %v94_v36 = vsel %vm93_vm3, %v89_v32, %v92_v35 }
  0x4d   : > { %v97_v37 = vsel %vm95_vm4, %v96_v34, %v94_v36 }
  0x4e   : > { %v98_v38 = vmul.f32 %v97_v37, %v78_v23 }
  0x50   : > { %v99_v39 = vsel %vm90_vm5, 0.0, %v98_v38 }
  0x51   : > { %v101_v40 = vxor.u32 2147483648, %v99_v39 }
  0x53   : > { %v102_v41 = vsel %vm100_vm6, %v99_v39, %v101_v40 }
  0x54   : > { %v356_v42 = vsel %vm65_vm2, %v74_v14, %v102_v41  ;;  %309 = vrcp.f32 %v102_v41  ;;  %v103_v45 = vsub.f32 %v102_v41, %v74_v14 }
  0x55   : > { %v108_v43 = vsub.f32 %v74_v14, %v356_v42 }
  0x57   : > { %311 = vrcp.f32 %v108_v43 }
  0x5e   : > { %v310_v46 = vpop.eup %309 }
  0x5f   : > { %v105_v49 = vmul.f32 %v310_v46, %v103_v45 }
  0x61   : > { %v312_v50 = vpop.eup %311  ;;  %v107_v54 = vsel %vm65_vm2, 0.0, %v105_v49 }
  0x62   : > { %v121_v51 = vmul.f32 %v312_v50, %v119_v48  ;;  %v137_v56 = vsel %vm362_vm10, %v107_v54, 0.0 }
  0x64   : > { %v122_v53 = vsel %vm65_vm2, 0.0, %v121_v51 }
  0x65   : > { %v127_v55 = vsel %vm362_vm10, %v122_v53, 0.0 }
  0x66   : > { %128 = vadd.xlane.f32.xlu0 %v127_v55 }
  0x6a   : > { %138 = vadd.xlane.f32.xlu0 %v137_v56 }
  0xf3   : > { %v129_v57 = vpop.xlane.xlu0 %128 }
  0xf4   : > { %130 = vst [vmem:[#allocation4] sm:$0xff] %v129_v57 }
  0xf5   : > { %132 = vst [vmem:[%s131_s13] sm:$0x1] %v322_v58 }
  0xf7   : > { %v139_v60 = vpop.xlane.xlu0 %138 }
  0xf8   : > { %v145_v61 = vsel %vm362_vm10, %v139_v60, %v144_v59 }
  0xf9   : > { %146 = vst [vmem:[#allocation2] sm:$0x1] %v145_v61 }
  0xfc   : > { %v153_v63 = vld [vmem:[%s148_s15] sm:$0xff]  ;;  %s165_s15 = smov %s148_s15 }
  0xfd   : > { %v155_v0 = vmul.f32 %v154_v62, %v153_v63  ;;  %v173_v11 = vld [vmem:[%s165_s15] sm:$0xff] }
  0xff   : > { %v157_v1 = vsel %vm156_vm11, %v155_v0, 0.0 }
 0x100   : > { %v158_v2 = vrot.slane %v157_v1, 4  ;;  %v200_v4 = vld [vmem:[#allocation2] sm:$0x1] (%p41_p0) }
 0x101   :  { %202 = vst [vmem:[#allocation3] sm:$0x1] (%p41_p0), %v200_v4 }
 0x102   : > { %v159_v3 = vadd.f32 %v158_v2, %v157_v1 }
 0x104   : > { %v160_v6 = vrot.slane %v159_v3, 2 }
 0x106   : > { %v161_v7 = vadd.f32 %v160_v6, %v159_v3 }
 0x108   : > { %v162_v8 = vrot.slane %v161_v7, 1  ;;  %v252_v19 = vld [vmem:[#allocation3] sm:$0x1] (%p41_p0) }
 0x109   :  { %253 = vst [vmem:[%s396_s2] sm:$0x1] (%p41_p0), %v252_v19 }
 0x10a   : > { %v163_v9 = vadd.f32 %v162_v8, %v161_v7 }
 0x10c   : > { %v169_v10 = vmul.f32 %v163_v9, %v139_v60 }
 0x10e   : > { %v174_v13 = vmul.f32 %v173_v11, %v169_v10 }
 0x110   : > { %v178_v14 = vsub.f32 %v175_v12, %v174_v13 }
 0x112   : > { %v179_v15 = vsel %vm177_vm13, %v178_v14, %v175_v12 }
 0x113   : > { %v187_v16 = vsel %vm186_vm14, %v173_v11, %v179_v15 }
 0x114   : > { %188 = vst [vmem:[%s164_s14] sm:$0xff] %v187_v16 }
 0x117   :  { %43 = sbr.rel (!%p41_p0) target bundleno = 3 (0x3), region = 139 }
 0x11b   : > { %v190_v17 = vld [vmem:[%s189_s16] ss:$0 sm:$0xff] }
 0x11c   : > { %v195_v18 = vsel %vm362_vm10, %v356_v42, %v190_v17 }
 0x11d   : > { %196 = vst [vmem:[%s189_s16] sm:$0x1] %v195_v18 }
 0x124   :  { %v230_v5 = vld [vmem:[#allocation1] sm:$0xff] }
 0x125   :  { %231 = vst [vmem:[%s395_s1] sm:$0xff] %v230_v5 }

// kernel: _lambda_.1
= control target key start
LH: loop header
LB: loop body
LE: loop exit
PB: predicated region body
PF: predicated region fallthrough
CT: control target
= control target key end

     0   :  { %12 = vsyncpa [#allocation3], 0  ;;  %s3061_s0 = inlined_call_operand.vmem [shape: f32[2,8,128], index: 0, kind: input, shape index: {}]   ;;  %s3062_s1 = inlined_call_operand.vmem [shape: f32[2,8,128], index: 1, kind: input, shape index: {}]   ;;  %s3063_s2 = inlined_call_operand.vmem [shape: f32[2,8,128], index: 2, kind: input, shape index: {}]   ;;  %s3064_s3 = inlined_call_operand.vmem [shape: bf16[3,2,128,128], index: 3, kind: input, shape index: {}]   ;;  %s3065_s4 = inlined_call_operand.vmem [shape: bf16[128,128], index: 4, kind: input, shape index: {}]   ;;  %s3066_s5 = inlined_call_operand.vmem [shape: f32[2,8,256], index: 5, kind: output, shape index: {0}]   ;;  %s3067_s6 = inlined_call_operand.hbm [shape: f32[2,2,8,8], index: 6, kind: output, shape index: {1}]  }
   0x1   :  { %14 = vsyncpa [#allocation3 + $0x1], 0  ;;  %s2520_s21 = smov 0   ;;  %s2522_s22 = smov 0  }
   0x2   :  { %s2524_s23 = smov 0   ;;  %s2526_s24 = smov 0  }
   0x3 LB: > { %s2541_s25 = sadd.s32 4294967295, %s2473_s24   ;;  %s1805_s26 = sadd.s32 4294967294, %s2473_s24   ;;  %s2473_s24 = sphi %s2526_s24, %s3073_s24   ;;  %s2469_s23 = sphi %s2524_s23, %s3072_s23   ;;  %s2465_s22 = sphi %s2522_s22, %s3071_s22   ;;  %s2461_s21 = sphi %s2520_s21, %s3070_s21  }
   0x4   : > { %s2545_s27 = sadd.s32 1, %s2473_s24   ;;  %s173_s28 = sadd.s32 1, %s2469_s23 }
   0x5   : > { %s170_s29 = ssub.s32 %s2473_s24, %s2545_s27  ;;  %p183_p0 = scmp.ne.s32.totalorder %s2469_s23, %s2465_s22 }
   0x6   : > { %p171_p1 = scmp.eq.s32.totalorder %s170_s29, 0  ;;  %p184_p2 = scmp.eq.s32.totalorder %s2541_s25, 1 }
   0x7   : > { %p189_p3 = scmp.ne.s32.totalorder %s2465_s22, %s2461_s21  ;;  %p190_p4 = scmp.eq.s32.totalorder %s1805_s26, 1 }
   0x8   : > { %s2556_s30 = scalar_select %p171_p1, %s2469_s23, %s173_s28  }
   0x9   : > { %p2558_p5 = por %p184_p2, %p183_p0  ;;  %p2562_p6 = por %p190_p4, %p189_p3 }
   0xa   : > { %p1808_p7 = scmp.ge.s32.totalorder %s2473_s24, 1  ;;  %p235_p8 = scmp.lt.s32.totalorder %s2473_s24, 3 }
   0xc   : > { %p236_p9 = pnand %p1808_p7, %p235_p8 }
   0xd   : > { %v2267_v0 = vld [vmem:[%s3064_s3] sm:$0xff] (!%p236_p9)   ;;  %v2475_v1 = vmov (!%p236_p9), 0.0   ;;  %vm2476_vm0 = vmmov (!%p236_p9), 0   ;;  %v2269_v3 = vld [vmem:[%s3064_s3 + $0x8] sm:$0xff] (!%p236_p9)   ;;  %v2271_v5 = vld [vmem:[%s3064_s3 + $0x10] sm:$0xff] (!%p236_p9)   ;;  %p277_p10 = scmp.lt.s32.totalorder (!%p236_p9), %s2541_s25, 1 }
   0xe   : > { %239 = sbr.rel (%p236_p9) target bundleno = 4387 (0x1123), region = 40  ;;  %2037 = vmatprep.subr.bf16.mxu0 (!%p236_p9), %v2475_v1  ;;  %2057 = vmatprep.subr.bf16.mxu1 (!%p236_p9), %v2475_v1  ;;  %v2268_v2 = vld [vmem:[%s3064_s3 + $0x80] sm:$0xff] (!%p236_p9)   ;;  %v2270_v4 = vld [vmem:[%s3064_s3 + $0x88] sm:$0xff] (!%p236_p9)   ;;  %v2272_v6 = vld [vmem:[%s3064_s3 + $0x90] sm:$0xff] (!%p236_p9)   ;;  %v2477_v21 = vmov (!%p236_p9), 8   ;;  %s2478_s19 = smov (!%p236_p9), 6  }
   0xf   : > { %2038 = vmatpush3.bf16.xpose.msra.mxu0 (!%p236_p9), %v2267_v0  ;;  %2053 = vmatprep.mubr.msk.bf16.mxu0 (!%p236_p9), %vm2476_vm0, %v2475_v1  ;;  %v2273_v7 = vld [vmem:[%s3064_s3 + $0x18] sm:$0xff] (!%p236_p9)   ;;  %v2275_v9 = vld [vmem:[%s3064_s3 + $0x20] sm:$0xff] (!%p236_p9)   ;;  %v2277_v11 = vld [vmem:[%s3064_s3 + $0x28] sm:$0xff] (!%p236_p9)   ;;  %s2479_s20 = smov (!%p236_p9), 7   ;;  %vm829_vm1 = vcmask (!%p236_p9), 64512   ;;  %vm848_vm2 = vcmask (!%p236_p9), 1043456  }
  0x10   : > { %2058 = vmatpush3.bf16.xpose.msra.mxu1 (!%p236_p9), %v2268_v2  ;;  %2039 = vmatprep.subr.bf16.mxu0 (!%p236_p9), %v2475_v1  ;;  %v2274_v8 = vld [vmem:[%s3064_s3 + $0x98] sm:$0xff] (!%p236_p9)   ;;  %v2276_v10 = vld [vmem:[%s3064_s3 + $0xa0] sm:$0xff] (!%p236_p9)   ;;  %v2278_v12 = vld [vmem:[%s3064_s3 + $0xa8] sm:$0xff] (!%p236_p9)  }
  0x11   : > { %2059 = vmatprep.subr.bf16.mxu1 (!%p236_p9), %v2475_v1  ;;  %2073 = vmatprep.mubr.msk.bf16.mxu1 (!%p236_p9), %vm2476_vm0, %v2475_v1  ;;  %v2279_v13 = vld [vmem:[%s3064_s3 + $0x30] sm:$0xff] (!%p236_p9)   ;;  %v2281_v15 = vld [vmem:[%s3064_s3 + $0x38] sm:$0xff] (!%p236_p9)   ;;  %v2283_v38 = vld [vmem:[%s3064_s3 + $0x100] sm:$0xff] (!%p236_p9)  }
  0x12   : > { %v2280_v14 = vld [vmem:[%s3064_s3 + $0xb0] sm:$0xff] (!%p236_p9)   ;;  %v2282_v16 = vld [vmem:[%s3064_s3 + $0xb8] sm:$0xff] (!%p236_p9)   ;;  %2257 = vset.pattern.permute.xlu0 (!%p236_p9), %v2477_v21  ;;  %2258 = vset.pattern.permute.xlu1 (!%p236_p9), %v2477_v21  ;;  %v2284_v61 = vld [vmem:[%s3064_s3 + $0x108] sm:$0xff] (!%p236_p9)  }
  0x13   : > { %v2285_v62 = vld [vmem:[%s3064_s3 + $0x110] sm:$0xff] (!%p236_p9)   ;;  %v2286_v63 = vld [vmem:[%s3064_s3 + $0x118] sm:$0xff] (!%p236_p9)   ;;  %v2287_v0 = vld [vmem:[%s3064_s3 + $0x120] sm:$0xff] (!%p236_p9)  }
  0x14   : > { %v2288_v2 = vld [vmem:[%s3064_s3 + $0x128] sm:$0xff] (!%p236_p9)  }
  0x15   : > { %s2630_s28 = scalar_select %p277_p10, %s2541_s25, 1 }
  0x17   : > { %2040 = vmatpush3.bf16.xpose.msra.mxu0 %v2269_v3  ;;  %s2635_s29 = sshll.u32 %s2630_s28, 3  ;;  %v2289_v3 = vld [vmem:[%s3064_s3 + $0x130] sm:$0xff]  }
  0x18   : > { %2060 = vmatpush3.bf16.xpose.msra.mxu1 %v2270_v4  ;;  %2041 = vmatprep.subr.bf16.mxu0 %v2475_v1  ;;  %s280_s15 = scalar_lea.vmem %s3061_s0, %s2635_s29  ;;  %s284_s18 = scalar_lea.vmem %s3062_s1, %s2635_s29  ;;  %v2290_v4 = vld [vmem:[%s3064_s3 + $0x138] sm:$0xff]  }
  0x19   : > { %2061 = vmatprep.subr.bf16.mxu1 %v2475_v1  ;;  %v295_v17 = vld [vmem:[%s280_s15] sm:$0xff]  ;;  %s288_s15 = scalar_lea.vmem %s3063_s2, %s2635_s29  ;;  %s274_s29 = sand.u32 1, %s2465_s22  }
  0x1a   : > { %v296_v18 = vld [vmem:[%s284_s18] sm:$0xff]  ;;  %v2653_v19 = vpack.c.bf16 %v295_v17, %v295_v17  ;;  %s1809_s16 = sshll.u32 %s274_s29, 4  ;;  %s3014_s14 = scalar_lea.sflag [#allocation3], %s274_s29 }
  0x1b   : > { %v2655_v20 = vpack.c.bf16 %v296_v18, %v296_v18  ;;  %s2755_s26 = scalar_lea.vmem [#allocation2], %s1809_s16 }
  0x1f   : > { %2042 = vmatpush3.bf16.xpose.msra.mxu0 %v2271_v5  ;;  %v297_v5 = vld [vmem:[%s288_s15] sm:$0xff] }
  0x20   : > { %2062 = vmatpush3.bf16.xpose.msra.mxu1 %v2272_v6  ;;  %2043 = vmatprep.subr.bf16.mxu0 %v2475_v1  ;;  %v2719_v6 = vpack.c.bf16 %v297_v5, %v297_v5 }
  0x21   : > { %2063 = vmatprep.subr.bf16.mxu1 %v2475_v1 }
  0x27   : > { %2044 = vmatpush3.bf16.xpose.msra.mxu0 %v2273_v7 }
  0x28   : > { %2064 = vmatpush3.bf16.xpose.msra.mxu1 %v2274_v8  ;;  %2045 = vmatprep.subr.bf16.mxu0 %v2475_v1 }
  0x29   : > { %2065 = vmatprep.subr.bf16.mxu1 %v2475_v1 }
  0x2f   : > { %2046 = vmatpush3.bf16.xpose.msra.mxu0 %v2275_v9 }
  0x30   : > { %2066 = vmatpush3.bf16.xpose.msra.mxu1 %v2276_v10  ;;  %2047 = vmatprep.subr.bf16.mxu0 %v2475_v1 }
  0x31   : > { %2067 = vmatprep.subr.bf16.mxu1 %v2475_v1 }
  0x37   : > { %2048 = vmatpush3.bf16.xpose.msra.mxu0 %v2277_v11 }
  0x38   : > { %2068 = vmatpush3.bf16.xpose.msra.mxu1 %v2278_v12  ;;  %2049 = vmatprep.subr.bf16.mxu0 %v2475_v1 }
  0x39   : > { %2069 = vmatprep.subr.bf16.mxu1 %v2475_v1 }
  0x3f   : > { %2050 = vmatpush3.bf16.xpose.msra.mxu0 %v2279_v13 }
  0x40   : > { %2070 = vmatpush3.bf16.xpose.msra.mxu1 %v2280_v14  ;;  %2051 = vmatprep.subr.bf16.mxu0 %v2475_v1 }
  0x41   : > { %2071 = vmatprep.subr.bf16.mxu1 %v2475_v1 }
  0x47   : > { %2052 = vmatpush3.bf16.xpose.msra.mxu0 %v2281_v15 }
  0x48   : > { %2072 = vmatpush3.bf16.xpose.msra.mxu1 %v2282_v16  ;;  %2077 = vmatprep.subr.bf16.mxu0 %v2475_v1 }
  0x49   : > { %2103 = vmatprep.subr.bf16.mxu1 %v2475_v1 }
  0x4e   : > { %2054 = vmatmul.mubr.bf16.vlgmr.msra.gmra.mrb[0].mxu0 %v2653_v19 }
  0x4f   : > { %2074 = vmatmul.mubr.bf16.vlgmr.msra.gmra.mrb[0].mxu1 %v2655_v20  ;;  %2093 = vmatprep.mubr.msk.bf16.mxu0 %vm2476_vm0, %v2475_v1 }
  0x50   : > { %2119 = vmatprep.mubr.msk.bf16.mxu1 %vm2476_vm0, %v2475_v1  ;;  %2078 = vmatpush3.bf16.xpose.msra.mxu0 %v2283_v38 }
  0x51   : > { %2079 = vmatprep.subr.bf16.mxu0 %v2475_v1 }
  0x58   : > { %2080 = vmatpush3.bf16.xpose.msra.mxu0 %v2284_v61 }
  0x59   : > { %2081 = vmatprep.subr.bf16.mxu0 %v2475_v1 }
  0x60   : > { %2082 = vmatpush3.bf16.xpose.msra.mxu0 %v2285_v62 }
  0x61   : > { %2083 = vmatprep.subr.bf16.mxu0 %v2475_v1 }
  0x68   : > { %2084 = vmatpush3.bf16.xpose.msra.mxu0 %v2286_v63 }
  0x69   : > { %2085 = vmatprep.subr.bf16.mxu0 %v2475_v1 }
  0x70   : > { %2086 = vmatpush3.bf16.xpose.msra.mxu0 %v2287_v0 }
  0x71   : > { %2087 = vmatprep.subr.bf16.mxu0 %v2475_v1 }
  0x78   : > { %2088 = vmatpush3.bf16.xpose.msra.mxu0 %v2288_v2 }
  0x79   : > { %2089 = vmatprep.subr.bf16.mxu0 %v2475_v1 }
  0x80   : > { %2090 = vmatpush3.bf16.xpose.msra.mxu0 %v2289_v3 }
  0x81   : > { %2091 = vmatprep.subr.bf16.mxu0 %v2475_v1 }
  0x88   : > { %2092 = vmatpush3.bf16.xpose.msra.mxu0 %v2290_v4 }
  0x89   : > { %2097 = vmatprep.subr.bf16.mxu0 %v2475_v1 }
  0x8f   : > { %2094 = vmatmul.mubr.bf16.vlgmr.msra.gmra.mrb[4].mxu0 %v2719_v6 }
  0x90   : > { %2099 = vmatprep.mubr.msk.bf16.mxu0 %vm2476_vm0, %v2475_v1 }
 0x121   : > { %v416_v22 = vpop.f32.mrb[0].mxu0 }
 0x122   : > { %v422_v23 = vadd.f32 1e-06, %v416_v22  ;;  %v2055_v24 = vpop.f32.mrb[1].mxu0  ;;  %v552_v25 = vpop.f32.mrb[0].mxu1 }
 0x123   : > { %v419_v26 = vpop.f32.mrb[2].mxu0  ;;  %v558_v27 = vadd.f32 1e-06, %v552_v25  ;;  %v2075_v28 = vpop.f32.mrb[1].mxu1 }
 0x124   : > { %2323 = vrcp.f32 %v422_v23  ;;  %v2056_v29 = vpop.f32.mrb[3].mxu0  ;;  %v555_v30 = vpop.f32.mrb[2].mxu1 }
 0x125   : > { %v2076_v31 = vpop.f32.mrb[3].mxu1  ;;  %2325 = vrcp.f32 %v558_v27 }
 0x12e   : > { %v2324_v32 = vpop.eup %2323 }
 0x12f   : > { %426 = vperm.xlu0 %2257, %v2324_v32   ;;  %v2326_v33 = vpop.eup %2325 }
 0x133   : > { %562 = vperm.xlu0 %2257, %v2326_v33  }
 0x1ae   : > { %v427_v34 = vpop.permute.xlu0 %426 }
 0x1af   : > { %v2665_v35 = vmul.f32 %v427_v34, %v416_v22  ;;  %v688_v34 = vpop.f32.mrb[4].mxu0 }
 0x1b1   : > { %435 = vrot.lane.b32.xlu1 %v2665_v35, %s2478_s19 }
 0x1b2   : > { %v563_v36 = vpop.permute.xlu0 %562 }
 0x1b3   : > { %v2669_v37 = vmul.f32 %v563_v36, %v552_v25 }
 0x1b5   : > { %431 = vrot.lane.b32.xlu1 %v2665_v35, %s2479_s20  ;;  %571 = vrot.lane.b32.xlu0 %v2669_v37, %s2478_s19 }
 0x1b9   : > { %567 = vrot.lane.b32.xlu1 %v2669_v37, %s2479_s20 }
 0x223   : > { %v436_v39 = vpop.permute.xlu1 %435 }
 0x224   : > { %v438_v40 = vsub.f32 %v2665_v35, %v436_v39 }
 0x226   : > { %v439_v41 = vadd.f32 1e-06, %v438_v40  ;;  %v2480_v40 = vmov 1  }
 0x227   : > { %v572_v42 = vpop.permute.xlu0 %571  ;;  %v432_v45 = vpop.permute.xlu1 %431 }
 0x228   : > { %2327 = vrcp.f32 %v439_v41  ;;  %v574_v43 = vsub.f32 %v2669_v37, %v572_v42  ;;  %v434_v46 = vsub.f32 %v2665_v35, %v432_v45  ;;  %v2481_v41 = vmov 0  }
 0x229   : > { %v694_v42 = vadd.f32 1e-06, %v688_v34 }
 0x22a   : > { %v575_v44 = vadd.f32 1e-06, %v574_v43 }
 0x22b   : > { %v568_v48 = vpop.permute.xlu1 %567 }
 0x22c   : > { %2329 = vrcp.f32 %v575_v44  ;;  %v570_v51 = vsub.f32 %v2669_v37, %v568_v48 }
 0x232   : > { %v2328_v47 = vpop.eup %2327 }
 0x233   : > { %v441_v49 = vmul.f32 %v2328_v47, %v434_v46 }
 0x235   : > { %v442_v50 = vadd.f32 1e-06, %v441_v49 }
 0x236   : > { %v2330_v52 = vpop.eup %2329 }
 0x237   : > { %v443_v53 = vmul.f32 1e-06, %v442_v50  ;;  %v577_v54 = vmul.f32 %v2330_v52, %v570_v51  ;;  %v314_v51 = vlaneseq }
 0x239   : > { %v444_v55 = vadd.f32 %v443_v53, %v2665_v35  ;;  %v578_v56 = vadd.f32 1e-06, %v577_v54  ;;  %v2736_v52 = vshrl.u32 %v314_v51, 7 }
 0x23b   : > { %2331 = vrcp.f32 %v444_v55  ;;  %v579_v57 = vmul.f32 1e-06, %v578_v56  ;;  %v816_v54 = vsub.s32 0, %v2736_v52 }
 0x23d   : > { %v580_v58 = vadd.f32 %v579_v57, %v2669_v37 }
 0x23f   : > { %2333 = vrcp.f32 %v580_v58 }
 0x245   : > { %v2332_v59 = vpop.eup %2331 }
 0x246   : > { %448 = vperm.xlu0 %2257, %v2332_v59   ;;  %v807_v59 = vsub.s32 1, %v2736_v52 }
 0x249   : > { %v2334_v60 = vpop.eup %2333 }
 0x24a   : > { %584 = vperm.xlu1 %2258, %v2334_v60  }
 0x2c5   : > { %v449_v7 = vpop.permute.xlu0 %448 }
 0x2c6   : > { %v451_v8 = vmul.f32 %v449_v7, %v2665_v35  ;;  %v2095_v35 = vpop.f32.mrb[5].mxu0 }
 0x2c7   : > { %v691_v36 = vpop.f32.mrb[6].mxu0 }
 0x2c8   : > { %725 = vrot.lane.b32.xlu1 %v451_v8, %s2479_s20  ;;  %729 = vrot.lane.b32.xlu0 %v451_v8, %s2478_s19  ;;  %v2291_v36 = vld [vmem:[%s3064_s3 + $0x40] sm:$0xff]  }
 0x2c9   : > { %v585_v9 = vpop.permute.xlu1 %584 }
 0x2ca   : > { %v587_v10 = vmul.f32 %v585_v9, %v2669_v37  ;;  %v2096_v37 = vpop.f32.mrb[7].mxu0 }
 0x2cc   : > { %747 = vrot.lane.b32.xlu1 %v587_v10, %s2479_s20  ;;  %751 = vrot.lane.b32.xlu0 %v587_v10, %s2478_s19 }
 0x33a   : > { %v730_v11 = vpop.permute.xlu0 %729  ;;  %v726_v17 = vpop.permute.xlu1 %725 }
 0x33b   : > { %v732_v12 = vsub.f32 %v451_v8, %v730_v11  ;;  %v728_v18 = vsub.f32 %v451_v8, %v726_v17 }
 0x33d   : > { %v733_v13 = vadd.f32 1e-06, %v732_v12 }
 0x33e   : > { %v752_v14 = vpop.permute.xlu0 %751  ;;  %v748_v23 = vpop.permute.xlu1 %747 }
 0x33f   : > { %2335 = vrcp.f32 %v733_v13  ;;  %v754_v15 = vsub.f32 %v587_v10, %v752_v14  ;;  %v750_v26 = vsub.f32 %v587_v10, %v748_v23 }
 0x341   : > { %v755_v16 = vadd.f32 1e-06, %v754_v15 }
 0x343   : > { %2337 = vrcp.f32 %v755_v16 }
 0x349   : > { %v2336_v22 = vpop.eup %2335 }
 0x34a   : > { %v735_v24 = vmul.f32 %v2336_v22, %v728_v18 }
 0x34c   : > { %v736_v25 = vadd.f32 1e-06, %v735_v24 }
 0x34d   : > { %v2338_v27 = vpop.eup %2337 }
 0x34e   : > { %v737_v28 = vmul.f32 1e-06, %v736_v25  ;;  %v757_v29 = vmul.f32 %v2338_v27, %v750_v26 }
 0x350   : > { %v738_v30 = vadd.f32 %v737_v28, %v451_v8  ;;  %v758_v31 = vadd.f32 1e-06, %v757_v29 }
 0x352   : > { %2339 = vrcp.f32 %v738_v30  ;;  %v759_v32 = vmul.f32 1e-06, %v758_v31 }
 0x354   : > { %v760_v33 = vadd.f32 %v759_v32, %v587_v10 }
 0x356   : > { %2341 = vrcp.f32 %v760_v33 }
 0x357   : > { %2343 = vrcp.f32 %v694_v42  ;;  %v2294_v42 = vld [vmem:[%s3064_s3 + $0x58] sm:$0xff]  }
 0x35c   : > { %v2340_v38 = vpop.eup %2339 }
 0x35d   : > { %742 = vperm.xlu0 %2257, %v2340_v38   ;;  %v2292_v38 = vld [vmem:[%s3064_s3 + $0x48] sm:$0xff]  }
 0x360   : > { %v2342_v39 = vpop.eup %2341 }
 0x361   : > { %764 = vperm.xlu1 %2258, %v2342_v39   ;;  %2259 = vset.pattern.permute.xlu0 %v2480_v40  ;;  %v2344_v45 = vpop.eup %2343  ;;  %v2293_v39 = vld [vmem:[%s3064_s3 + $0x50] sm:$0xff]  }
 0x365   : > { %2260 = vset.pattern.permute.xlu1 %v2481_v41 }
 0x3dc   : > { %v743_v43 = vpop.permute.xlu0 %742 }
 0x3dd   : > { %v745_v44 = vmul.f32 %v743_v43, %v451_v8  ;;  %v2295_v43 = vld [vmem:[%s3064_s3 + $0x60] sm:$0xff]  }
 0x3df   : > { %802 = vperm.xlu1 %2260, %v745_v44   ;;  %811 = vperm.xlu0 %2259, %v745_v44   ;;  %v2296_v44 = vld [vmem:[%s3064_s3 + $0x68] sm:$0xff]  }
 0x3e0   : > { %v765_v46 = vpop.permute.xlu1 %764 }
 0x3e1   : > { %v767_v47 = vmul.f32 %v765_v46, %v587_v10  ;;  %v2298_v46 = vld [vmem:[%s3064_s3 + $0x78] sm:$0xff]  }
 0x3e3   : > { %2261 = vset.pattern.permute.xlu0 %v2477_v21 }
 0x3e4   : > { %698 = vperm.xlu0 %2261, %v2344_v45   ;;  %v2297_v45 = vld [vmem:[%s3064_s3 + $0x70] sm:$0xff]  }
 0x408   : > { %768 = vxpose.xlu1.b32.start.end [1/1] (short) (narrow) %v767_v47, 8  ;;  %v2797_v47 = vld [vmem:[%s3065_s4] sm:$0xff]  }
 0x409   : > { %2104 = vmatpush3.bf16.xpose.msra.mxu1 %v2797_v47 }
 0x40a   : > { %2105 = vmatprep.subr.bf16.mxu1 %v2475_v1 }
 0x426   : > { %2262 = vset.pattern.permute.xlu1 %v2477_v21 }
 0x45e   : > { %v812_v48 = vpop.permute.xlu0 %811  ;;  %v803_v53 = vpop.permute.xlu1 %802 }
 0x463   : > { %v699_v49 = vpop.permute.xlu0 %698 }
 0x464   : > { %v701_v50 = vmul.f32 %v699_v49, %v688_v34  ;;  %v2818_v49 = vld [vmem:[%s3065_s4 + $0x18] sm:$0xff]  }
 0x466   : > { %707 = vrot.lane.b32.xlu1 %v701_v50, %s2478_s19 }
 0x488   : > { %v784_v55 = vpop.trf.xlu1 }
 0x489   : > { %v817_v56 = vrot.slane %v784_v55, %v816_v54  ;;  %v808_v60 = vrot.slane %v784_v55, %v807_v59  ;;  %v2837_v55 = vand.u32 127, %v314_v51  ;;  %v2852_v51 = vld [vmem:[%s3065_s4 + $0x38] sm:$0xff]  }
 0x48b   : > { %v818_v57 = vmul.f32 %v817_v56, %v812_v48  ;;  %v809_v61 = vmul.f32 %v808_v60, %v803_v53  ;;  %v2804_v48 = vld [vmem:[%s3065_s4 + $0x8] sm:$0xff]   ;;  %vm316_vm3 = vcmp.lt.s32.totalorder %v2837_v55, 8 }
 0x48c   : > { %2106 = vmatpush3.bf16.xpose.msra.mxu1 %v2804_v48  ;;  %v2832_v53 = vld [vmem:[%s3065_s4 + $0x28] sm:$0xff]  }
 0x48d   : > { %v819_v58 = vadd.f32 1e-06, %v818_v57  ;;  %2107 = vmatprep.subr.bf16.mxu1 %v2475_v1 }
 0x48f   : > { %2345 = vrcp.f32 %v819_v58 }
 0x499   : > { %v2346_v62 = vpop.eup %2345 }
 0x49a   : > { %v821_v63 = vmul.f32 %v2346_v62, %v809_v61 }
 0x49c   : > { %v822_v0 = vand.u32 2147483647, %v821_v63  ;;  %v2845_v63 = vld [vmem:[%s3065_s4 + $0x30] sm:$0xff]  }
 0x49e   : > { %v823_v2 = vadd.f32 1e-06, %v822_v0 }
 0x4a0   : > { %2347 = vlog2.f32 %v823_v2 }
 0x4aa   : > { %v2348_v3 = vpop.eup %2347 }
 0x4ab   : > { %v825_v4 = vmul.f32 0.6931472, %v2348_v3 }
 0x4ad   : > { %v826_v5 = vand.u32 2147483647, %v825_v4 }
 0x4af   : > { %v827_v7 = vadd.f32 1.0, %v826_v5 }
 0x4b1   : > { %2349 = vrcp.f32 %v827_v7 }
 0x4bb   : > { %v2350_v8 = vpop.eup %2349 }
 0x4bc   : > { %v830_v9 = vsel %vm829_vm1, %v2350_v8, -inf }
 0x4bd   : > { %831 = vmax.xlane.f32.xlu0 %v830_v9 }
 0x4d3   : > { %703 = vrot.lane.b32.xlu0 %v701_v50, %s2479_s20 }
 0x4d8   : > { %v708_v10 = vpop.permute.xlu1 %707 }
 0x4d9   : > { %v710_v11 = vsub.f32 %v701_v50, %v708_v10 }
 0x4db   : > { %v711_v12 = vadd.f32 1e-06, %v710_v11 }
 0x4dd   : > { %2351 = vrcp.f32 %v711_v12 }
 0x4e7   : > { %v2352_v18 = vpop.eup %2351 }
 0x54a   : > { %v832_v13 = vpop.xlane.xlu0 %831 }
 0x54b   : > { %v833_v14 = vsub.f32 %v2350_v8, %v832_v13  ;;  %v2307_v13 = vld [vmem:[%s3064_s3 + $0xc0] sm:$0xff]  }
 0x54d   : > { %v834_v15 = vmul.f32 1.442695, %v833_v14 }
 0x54e   : > { %v704_v16 = vpop.permute.xlu0 %703 }
 0x54f   : > { %2353 = vpow2.f32 %v834_v15  ;;  %v706_v17 = vsub.f32 %v701_v50, %v704_v16  ;;  %v2308_v15 = vld [vmem:[%s3064_s3 + $0xc8] sm:$0xff]   ;;  %v2309_v16 = vld [vmem:[%s3064_s3 + $0xd0] sm:$0xff]  }
 0x551   : > { %v713_v22 = vmul.f32 %v2352_v18, %v706_v17  ;;  %v2310_v17 = vld [vmem:[%s3064_s3 + $0xd8] sm:$0xff]   ;;  %v2311_v18 = vld [vmem:[%s3064_s3 + $0xe0] sm:$0xff]  }
 0x553   : > { %v714_v23 = vadd.f32 1e-06, %v713_v22  ;;  %v2312_v22 = vld [vmem:[%s3064_s3 + $0xe8] sm:$0xff]  }
 0x555   : > { %v715_v24 = vmul.f32 1e-06, %v714_v23 }
 0x557   : > { %v716_v25 = vadd.f32 %v715_v24, %v701_v50 }
 0x559   : > { %v2354_v26 = vpop.eup %2353  ;;  %2355 = vrcp.f32 %v716_v25  ;;  %v2313_v25 = vld [vmem:[%s3064_s3 + $0xf0] sm:$0xff]  }
 0x55a   : > { %v836_v27 = vsel %vm829_vm1, %v2354_v26, 0.0 }
 0x55b   : > { %837 = vadd.xlane.f32.xlu0 %v836_v27 }
 0x563   : > { %v2356_v28 = vpop.eup %2355 }
 0x564   : > { %720 = vperm.xlu1 %2262, %v2356_v28  }
 0x5e3   : > { %v721_v29 = vpop.permute.xlu1 %720 }
 0x5e4   : > { %v723_v30 = vmul.f32 %v721_v29, %v701_v50  ;;  %v2825_v50 = vld [vmem:[%s3065_s4 + $0x20] sm:$0xff]  }
 0x5e6   : > { %v844_v31 = vpack.c.bf16 %v723_v30, %v723_v30 }
 0x5e8   : > { %v850_v32 = vsel %vm848_vm2, %v844_v31, 0  ;;  %v838_v33 = vpop.xlane.xlu0 %837 }
 0x5e9   : > { %2357 = vrcp.f32 %v838_v33  ;;  %2098 = vmatpush3.bf16.msra.mxu0 %v850_v32 }
 0x5ea   : > { %2123 = vmatprep.subr.bf16.mxu0 %v2475_v1 }
 0x5f3   : > { %v2358_v34 = vpop.eup %2357 }
 0x5f4   : > { %v841_v35 = vmul.f32 %v2358_v34, %v2354_v26  ;;  %v2314_v26 = vld [vmem:[%s3064_s3 + $0xf8] sm:$0xff]  }
 0x5f6   : > { %v843_v37 = vpack.c.bf16 %v841_v35, %v841_v35  ;;  %842 = vst.msk [vmem:[%s2755_s26] sm:$0xff] %vm829_vm1, %v841_v35 }
 0x5f8   : > { %2100 = vmatmul.mubr.msk.bf16.vlgmr.msra.gmra.mrb[8].mxu0 %vm829_vm1, %v843_v37 }
 0x5f9   : > { %2124 = vmatpush3.bf16.xpose.msra.mxu0 %v2291_v36  ;;  %2139 = vmatprep.mubr.msk.bf16.mxu0 %vm2476_vm0, %v2475_v1 }
 0x5fa   : > { %2125 = vmatprep.subr.bf16.mxu0 %v2475_v1 }
 0x601   : > { %2126 = vmatpush3.bf16.xpose.msra.mxu0 %v2292_v38 }
 0x602   : > { %2127 = vmatprep.subr.bf16.mxu0 %v2475_v1 }
 0x609   : > { %2128 = vmatpush3.bf16.xpose.msra.mxu0 %v2293_v39 }
 0x60a   : > { %2129 = vmatprep.subr.bf16.mxu0 %v2475_v1 }
 0x611   : > { %2130 = vmatpush3.bf16.xpose.msra.mxu0 %v2294_v42 }
 0x612   : > { %2131 = vmatprep.subr.bf16.mxu0 %v2475_v1 }
 0x619   : > { %2132 = vmatpush3.bf16.xpose.msra.mxu0 %v2295_v43 }
 0x61a   : > { %2133 = vmatprep.subr.bf16.mxu0 %v2475_v1 }
 0x621   : > { %2134 = vmatpush3.bf16.xpose.msra.mxu0 %v2296_v44 }
 0x622   : > { %2135 = vmatprep.subr.bf16.mxu0 %v2475_v1 }
 0x629   : > { %2136 = vmatpush3.bf16.xpose.msra.mxu0 %v2297_v45 }
 0x62a   : > { %2137 = vmatprep.subr.bf16.mxu0 %v2475_v1 }
 0x631   : > { %2138 = vmatpush3.bf16.xpose.msra.mxu0 %v2298_v46 }
 0x632   : > { %2163 = vmatprep.subr.bf16.mxu0 %v2475_v1 }
 0x638   : > { %2140 = vmatmul.mubr.bf16.vlgmr.msra.gmra.mrb[12].mxu0 %v2653_v19  ;;  %v2811_v19 = vld [vmem:[%s3065_s4 + $0x10] sm:$0xff]  }
 0x639   : > { %2179 = vmatprep.mubr.msk.bf16.mxu0 %vm2476_vm0, %v2475_v1  ;;  %2108 = vmatpush3.bf16.xpose.msra.mxu1 %v2811_v19 }
 0x63a   : > { %2109 = vmatprep.subr.bf16.mxu1 %v2475_v1 }
 0x641   : > { %2110 = vmatpush3.bf16.xpose.msra.mxu1 %v2818_v49 }
 0x642   : > { %2111 = vmatprep.subr.bf16.mxu1 %v2475_v1 }
 0x649   : > { %2112 = vmatpush3.bf16.xpose.msra.mxu1 %v2825_v50 }
 0x64a   : > { %2113 = vmatprep.subr.bf16.mxu1 %v2475_v1 }
 0x651   : > { %2114 = vmatpush3.bf16.xpose.msra.mxu1 %v2832_v53 }
 0x652   : > { %2115 = vmatprep.subr.bf16.mxu1 %v2475_v1 }
 0x659   : > { %2116 = vmatpush3.bf16.xpose.msra.mxu1 %v2845_v63 }
 0x65a   : > { %2117 = vmatprep.subr.bf16.mxu1 %v2475_v1 }
 0x661   : > { %2118 = vmatpush3.bf16.xpose.msra.mxu1 %v2852_v51 }
 0x662   : > { %2143 = vmatprep.subr.bf16.mxu1 %v2475_v1 }
 0x6cb   : > { %v886_v56 = vpop.f32.mrb[8].mxu0 }
 0x6cc   : > { %v2101_v57 = vpop.f32.mrb[9].mxu0  ;;  %v892_v58 = vsel %vm316_vm3, %v886_v56, 0.0 }
 0x6cd   : > { %v889_v60 = vpop.f32.mrb[10].mxu0  ;;  %v893_v61 = vmul.f32 %v892_v58, %v892_v58 }
 0x6ce   : > { %v2102_v62 = vpop.f32.mrb[11].mxu0 }
 0x6cf   : > { %894 = vadd.xlane.f32.xlu1 %v893_v61  ;;  %v2315_v61 = vld [vmem:[%s3064_s3 + $0x140] sm:$0xff]   ;;  %v2316_v62 = vld [vmem:[%s3064_s3 + $0x148] sm:$0xff]  }
 0x6d0   : > { %2164 = vmatpush3.bf16.xpose.msra.mxu0 %v2315_v61 }
 0x6d1   : > { %2165 = vmatprep.subr.bf16.mxu0 %v2475_v1 }
 0x6d8   : > { %2166 = vmatpush3.bf16.xpose.msra.mxu0 %v2316_v62 }
 0x6d9   : > { %2167 = vmatprep.subr.bf16.mxu0 %v2475_v1 }
 0x70b   : > { %v1119_v0 = vpop.f32.mrb[12].mxu0 }
 0x70c   : > { %v1125_v2 = vadd.f32 1e-06, %v1119_v0  ;;  %v2141_v3 = vpop.f32.mrb[13].mxu0 }
 0x70d   : > { %v1122_v4 = vpop.f32.mrb[14].mxu0  ;;  %v2319_v3 = vld [vmem:[%s3064_s3 + $0x160] sm:$0xff]  }
 0x70e   : > { %2359 = vrcp.f32 %v1125_v2  ;;  %v2142_v5 = vpop.f32.mrb[15].mxu0  ;;  %v2318_v2 = vld [vmem:[%s3064_s3 + $0x158] sm:$0xff]   ;;  %v2320_v4 = vld [vmem:[%s3064_s3 + $0x168] sm:$0xff]  }
 0x70f   : > { %v2321_v5 = vld [vmem:[%s3064_s3 + $0x170] sm:$0xff]  }
 0x718   : > { %v2360_v7 = vpop.eup %2359 }
 0x719   : > { %1129 = vperm.xlu0 %2261, %v2360_v7   ;;  %v2322_v7 = vld [vmem:[%s3064_s3 + $0x178] sm:$0xff]  }
 0x75c   : > { %v895_v8 = vpop.xlane.xlu1 %894 }
 0x75d   : > { %v896_v9 = vadd.f32 1e-12, %v895_v8 }
 0x75f   : > { %2361 = vrsqrt.f32 %v896_v9 }
 0x769   : > { %v2362_v10 = vpop.eup %2361 }
 0x76a   : > { %v898_v11 = vmul.f32 %v2362_v10, %v886_v56 }
 0x76c   : > { %v899_v12 = vsel %vm316_vm3, %v898_v11, %v886_v56 }
 0x76d   : > { %v900_v14 = vpack.c.bf16 %v899_v12, %v899_v12 }
 0x76f   : > { %2120 = vmatmul.mubr.bf16.vlgmr.msra.gmra.mrb[4].mxu1 %v900_v14 }
 0x770   : > { %2144 = vmatpush3.bf16.xpose.msra.mxu1 %v2307_v13  ;;  %2159 = vmatprep.mubr.msk.bf16.mxu1 %vm2476_vm0, %v2475_v1 }
 0x771   : > { %2145 = vmatprep.subr.bf16.mxu1 %v2475_v1 }
 0x778   : > { %2146 = vmatpush3.bf16.xpose.msra.mxu1 %v2308_v15 }
 0x779   : > { %2147 = vmatprep.subr.bf16.mxu1 %v2475_v1 }
 0x780   : > { %2148 = vmatpush3.bf16.xpose.msra.mxu1 %v2309_v16 }
 0x781   : > { %2149 = vmatprep.subr.bf16.mxu1 %v2475_v1 }
 0x788   : > { %2150 = vmatpush3.bf16.xpose.msra.mxu1 %v2310_v17 }
 0x789   : > { %2151 = vmatprep.subr.bf16.mxu1 %v2475_v1 }
 0x790   : > { %2152 = vmatpush3.bf16.xpose.msra.mxu1 %v2311_v18 }
 0x791   : > { %2153 = vmatprep.subr.bf16.mxu1 %v2475_v1 }
 0x798   : > { %2154 = vmatpush3.bf16.xpose.msra.mxu1 %v2312_v22  ;;  %v1130_v23 = vpop.permute.xlu0 %1129 }
 0x799   : > { %v2883_v24 = vmul.f32 %v1130_v23, %v1119_v0  ;;  %2155 = vmatprep.subr.bf16.mxu1 %v2475_v1  ;;  %v2317_v0 = vld [vmem:[%s3064_s3 + $0x150] sm:$0xff]  }
 0x79a   : > { %2168 = vmatpush3.bf16.xpose.msra.mxu0 %v2317_v0 }
 0x79b   : > { %1138 = vrot.lane.b32.xlu0 %v2883_v24, %s2478_s19  ;;  %2169 = vmatprep.subr.bf16.mxu0 %v2475_v1 }
 0x79f   : > { %1134 = vrot.lane.b32.xlu0 %v2883_v24, %s2479_s20 }
 0x7a0   : > { %2156 = vmatpush3.bf16.xpose.msra.mxu1 %v2313_v25 }
 0x7a1   : > { %2157 = vmatprep.subr.bf16.mxu1 %v2475_v1 }
 0x7a2   : > { %2170 = vmatpush3.bf16.xpose.msra.mxu0 %v2318_v2 }
 0x7a3   : > { %2171 = vmatprep.subr.bf16.mxu0 %v2475_v1 }
 0x7a8   : > { %2158 = vmatpush3.bf16.xpose.msra.mxu1 %v2314_v26 }
 0x7a9   : > { %2183 = vmatprep.subr.bf16.mxu1 %v2475_v1 }
 0x7aa   : > { %2172 = vmatpush3.bf16.xpose.msra.mxu0 %v2319_v3 }
 0x7ab   : > { %2173 = vmatprep.subr.bf16.mxu0 %v2475_v1 }
 0x7af   : > { %2160 = vmatmul.mubr.bf16.vlgmr.msra.gmra.mrb[8].mxu1 %v2655_v20 }
 0x7b0   : > { %2185 = vmatprep.mubr.msk.bf16.mxu1 %vm2476_vm0, %v2475_v1 }
 0x7b2   : > { %2174 = vmatpush3.bf16.xpose.msra.mxu0 %v2320_v4 }
 0x7b3   : > { %2175 = vmatprep.subr.bf16.mxu0 %v2475_v1 }
 0x7ba   : > { %2176 = vmatpush3.bf16.xpose.msra.mxu0 %v2321_v5 }
 0x7bb   : > { %2177 = vmatprep.subr.bf16.mxu0 %v2475_v1 }
 0x7c2   : > { %2178 = vmatpush3.bf16.xpose.msra.mxu0 %v2322_v7 }
 0x7c9   : > { %2180 = vmatmul.mubr.bf16.vlgmr.msra.gmra.mrb[16].mxu0 %v2719_v6 }
 0x80d   : > { %v1139_v37 = vpop.permute.xlu0 %1138 }
 0x80e   : > { %v1141_v38 = vsub.f32 %v2883_v24, %v1139_v37 }
 0x810   : > { %v1142_v20 = vadd.f32 1e-06, %v1141_v38 }
 0x811   : > { %v1135_v39 = vpop.permute.xlu0 %1134 }
 0x812   : > { %v1137_v43 = vsub.f32 %v2883_v24, %v1135_v39 }
 0x842   : > { %v2901_v27 = vpop.f32.mrb[4].mxu1 }
 0x843   : > { %v2121_v28 = vpop.f32.mrb[5].mxu1 }
 0x844   : > { %v986_v29 = vpop.f32.mrb[6].mxu1 }
 0x845   : > { %v2122_v30 = vpop.f32.mrb[7].mxu1 }
 0x882   : > { %v1254_v31 = vpop.f32.mrb[8].mxu1 }
 0x883   : > { %v1260_v32 = vadd.f32 1e-06, %v1254_v31  ;;  %v2161_v33 = vpop.f32.mrb[9].mxu1 }
 0x884   : > { %v1257_v34 = vpop.f32.mrb[10].mxu1 }
 0x885   : > { %2363 = vrcp.f32 %v1260_v32  ;;  %v2162_v35 = vpop.f32.mrb[11].mxu1 }
 0x886   : > { %2365 = vrcp.f32 %v1142_v20 }
 0x88f   : > { %v2364_v36 = vpop.eup %2363 }
 0x890   : > { %1264 = vperm.xlu1 %2262, %v2364_v36   ;;  %v2366_v42 = vpop.eup %2365 }
 0x891   : > { %v1144_v44 = vmul.f32 %v2366_v42, %v1137_v43 }
 0x893   : > { %v1145_v45 = vadd.f32 1e-06, %v1144_v44 }
 0x895   : > { %v1146_v46 = vmul.f32 1e-06, %v1145_v45 }
 0x897   : > { %v1147_v56 = vadd.f32 %v1146_v46, %v2883_v24 }
 0x899   : > { %2367 = vrcp.f32 %v1147_v56 }
 0x89c   : > { %v1389_v37 = vpop.f32.mrb[16].mxu0 }
 0x89d   : > { %v2181_v38 = vpop.f32.mrb[17].mxu0  ;;  %v1395_v62 = vadd.f32 1e-06, %v1389_v37 }
 0x89e   : > { %v1392_v20 = vpop.f32.mrb[18].mxu0  ;;  %v989_v38 = vadd.f32 1e-06, %v2901_v27 }
 0x89f   : > { %v2182_v39 = vpop.f32.mrb[19].mxu0 }
 0x8a3   : > { %v2368_v60 = vpop.eup %2367 }
 0x90f   : > { %v1265_v57 = vpop.permute.xlu1 %1264 }
 0x910   : > { %v1267_v58 = vmul.f32 %v1265_v57, %v1254_v31 }
 0x912   : > { %1269 = vrot.lane.b32.xlu1 %v1267_v58, %s2479_s20  ;;  %1273 = vrot.lane.b32.xlu0 %v1267_v58, %s2478_s19 }
 0x916   : > { %1151 = vperm.xlu0 %2261, %v2368_v60  }
 0x984   : > { %v1274_v8 = vpop.permute.xlu0 %1273  ;;  %v1270_v11 = vpop.permute.xlu1 %1269 }
 0x985   : > { %v1276_v9 = vsub.f32 %v1267_v58, %v1274_v8  ;;  %v1272_v12 = vsub.f32 %v1267_v58, %v1270_v11 }
 0x987   : > { %v1277_v10 = vadd.f32 1e-06, %v1276_v9 }
 0x989   : > { %2369 = vrcp.f32 %v1277_v10 }
 0x993   : > { %v2370_v13 = vpop.eup %2369 }
 0x994   : > { %v1279_v14 = vmul.f32 %v2370_v13, %v1272_v12 }
 0x995   : > { %v1152_v15 = vpop.permute.xlu0 %1151 }
 0x996   : > { %v1280_v16 = vadd.f32 1e-06, %v1279_v14  ;;  %v1154_v17 = vmul.f32 %v1152_v15, %v2883_v24 }
 0x998   : > { %v1281_v18 = vmul.f32 1e-06, %v1280_v16  ;;  %1430 = vrot.lane.b32.xlu0 %v1154_v17, %s2478_s19 }
 0x99a   : > { %v1282_v22 = vadd.f32 %v1281_v18, %v1267_v58 }
 0x99c   : > { %2371 = vrcp.f32 %v1282_v22 }
 0x9a6   : > { %v2372_v23 = vpop.eup %2371 }
 0x9a7   : > { %1286 = vperm.xlu1 %2262, %v2372_v23  }
 0x9ab   : > { %1426 = vrot.lane.b32.xlu1 %v1154_v17, %s2479_s20 }
 0xa0a   : > { %v1431_v6 = vpop.permute.xlu0 %1430 }
 0xa0b   : > { %v1433_v25 = vsub.f32 %v1154_v17, %v1431_v6 }
 0xa0d   : > { %v1434_v26 = vadd.f32 1e-06, %v1433_v25 }
 0xa0f   : > { %2373 = vrcp.f32 %v1434_v26 }
 0xa19   : > { %v2374_v31 = vpop.eup %2373 }
 0xa26   : > { %v1287_v28 = vpop.permute.xlu1 %1286 }
 0xa27   : > { %v1289_v29 = vmul.f32 %v1287_v28, %v1267_v58 }
 0xa29   : > { %1448 = vrot.lane.b32.xlu1 %v1289_v29, %s2479_s20  ;;  %1452 = vrot.lane.b32.xlu0 %v1289_v29, %s2478_s19 }
 0xa2a   : > { %v1427_v24 = vpop.permute.xlu1 %1426 }
 0xa2b   : > { %v1429_v30 = vsub.f32 %v1154_v17, %v1427_v24 }
 0xa2d   : > { %v1436_v32 = vmul.f32 %v2374_v31, %v1429_v30 }
 0xa2f   : > { %v1437_v33 = vadd.f32 1e-06, %v1436_v32 }
 0xa31   : > { %v1438_v34 = vmul.f32 1e-06, %v1437_v33 }
 0xa33   : > { %v1439_v35 = vadd.f32 %v1438_v34, %v1154_v17 }
 0xa35   : > { %2375 = vrcp.f32 %v1439_v35 }
 0xa3f   : > { %v2376_v36 = vpop.eup %2375 }
 0xa40   : > { %1443 = vperm.xlu0 %2261, %v2376_v36  }
 0xa44   : > { %2263 = vset.pattern.permute.xlu0 %v2480_v40 }
 0xa9b   : > { %v1453_v42 = vpop.permute.xlu0 %1452  ;;  %v1449_v45 = vpop.permute.xlu1 %1448 }
 0xa9c   : > { %v1455_v43 = vsub.f32 %v1289_v29, %v1453_v42  ;;  %v1451_v46 = vsub.f32 %v1289_v29, %v1449_v45 }
 0xa9e   : > { %v1456_v44 = vadd.f32 1e-06, %v1455_v43 }
 0xaa0   : > { %2377 = vrcp.f32 %v1456_v44 }
 0xaaa   : > { %v2378_v56 = vpop.eup %2377 }
 0xaab   : > { %v1458_v57 = vmul.f32 %v2378_v56, %v1451_v46 }
 0xaad   : > { %v1459_v58 = vadd.f32 1e-06, %v1458_v57 }
 0xaaf   : > { %v1460_v60 = vmul.f32 1e-06, %v1459_v58 }
 0xab1   : > { %v1461_v61 = vadd.f32 %v1460_v60, %v1289_v29 }
 0xab3   : > { %2379 = vrcp.f32 %v1461_v61 }
 0xab4   : > { %2381 = vrcp.f32 %v1395_v62 }
 0xabd   : > { %v2380_v0 = vpop.eup %2379 }
 0xabe   : > { %1465 = vperm.xlu1 %2262, %v2380_v0   ;;  %v2382_v3 = vpop.eup %2381 }
 0xabf   : > { %v1444_v40 = vpop.permute.xlu0 %1443 }
 0xac0   : > { %v1446_v2 = vmul.f32 %v1444_v40, %v1154_v17 }
 0xac2   : > { %2264 = vset.pattern.permute.xlu1 %v2481_v41  ;;  %1512 = vperm.xlu0 %2263, %v1446_v2  }
 0xac3   : > { %1503 = vperm.xlu1 %2264, %v1446_v2  }
 0xac6   : > { %2265 = vset.pattern.permute.xlu0 %v2477_v21 }
 0xac7   : > { %1399 = vperm.xlu0 %2265, %v2382_v3  }
 0xb3d   : > { %v1466_v4 = vpop.permute.xlu1 %1465 }
 0xb3e   : > { %v1468_v5 = vmul.f32 %v1466_v4, %v1289_v29 }
 0xb40   : > { %1469 = vxpose.xlu1.b32.start.end [1/1] (short) (narrow) %v1468_v5, 8 }
 0xb41   : > { %v1513_v7 = vpop.permute.xlu0 %1512 }
 0xb42   : > { %v1504_v10 = vpop.permute.xlu1 %1503 }
 0xb46   : > { %v1400_v8 = vpop.permute.xlu0 %1399 }
 0xb47   : > { %v1402_v9 = vmul.f32 %v1400_v8, %v1389_v37 }
 0xb5e   : > { %1404 = vrot.lane.b32.xlu1 %v1402_v9, %s2479_s20 }
 0xb5f   : > { %2266 = vset.pattern.permute.xlu1 %v2477_v21 }
 0xbc0   : > { %v1485_v11 = vpop.trf.xlu1 }
 0xbc1   : > { %v1518_v41 = vrot.slane %v1485_v11, %v816_v54  ;;  %v1509_v14 = vrot.slane %v1485_v11, %v807_v59 }
 0xbc3   : > { %v1519_v12 = vmul.f32 %v1518_v41, %v1513_v7  ;;  %v1510_v15 = vmul.f32 %v1509_v14, %v1504_v10 }
 0xbc5   : > { %v1520_v13 = vadd.f32 1e-06, %v1519_v12 }
 0xbc7   : > { %2383 = vrcp.f32 %v1520_v13 }
 0xbd0   : > { %v1405_v32 = vpop.permute.xlu1 %1404 }
 0xbd1   : > { %v2384_v16 = vpop.eup %2383  ;;  %v1407_v34 = vsub.f32 %v1402_v9, %v1405_v32 }
 0xbd2   : > { %v1522_v17 = vmul.f32 %v2384_v16, %v1510_v15 }
 0xbd4   : > { %v1523_v18 = vand.u32 2147483647, %v1522_v17 }
 0xbd6   : > { %v1524_v22 = vadd.f32 1e-06, %v1523_v18 }
 0xbd8   : > { %2385 = vlog2.f32 %v1524_v22 }
 0xbe2   : > { %v2386_v23 = vpop.eup %2385 }
 0xbe3   : > { %v1526_v6 = vmul.f32 0.6931472, %v2386_v23 }
 0xbe5   : > { %v1527_v21 = vand.u32 2147483647, %v1526_v6 }
 0xbe7   : > { %v1528_v25 = vadd.f32 1.0, %v1527_v21 }
 0xbe9   : > { %2387 = vrcp.f32 %v1528_v25 }
 0xbf3   : > { %v2388_v26 = vpop.eup %2387 }
 0xbf4   : > { %v1530_v54 = vsel %vm829_vm1, %v2388_v26, -inf }
 0xbf5   : > { %1531 = vmax.xlane.f32.xlu0 %v1530_v54 }
 0xc0b   : > { %1408 = vrot.lane.b32.xlu0 %v1402_v9, %s2478_s19 }
 0xc82   : > { %v1532_v28 = vpop.xlane.xlu0 %1531 }
 0xc83   : > { %v1533_v52 = vsub.f32 %v2388_v26, %v1532_v28 }
 0xc85   : > { %v1534_v59 = vmul.f32 1.442695, %v1533_v52 }
 0xc86   : > { %v1409_v29 = vpop.permute.xlu0 %1408 }
 0xc87   : > { %2389 = vpow2.f32 %v1534_v59  ;;  %v1411_v24 = vsub.f32 %v1402_v9, %v1409_v29 }
 0xc89   : > { %v1412_v30 = vadd.f32 1e-06, %v1411_v24 }
 0xc8b   : > { %2391 = vrcp.f32 %v1412_v30 }
 0xc8c   : > { %2393 = vrcp.f32 %v989_v38 }
 0xc91   : > { %v2390_v31 = vpop.eup %2389 }
 0xc92   : > { %v1536_v33 = vsel %vm829_vm1, %v2390_v31, 0.0 }
 0xc93   : > { %1537 = vadd.xlane.f32.xlu0 %v1536_v33 }
 0xc95   : > { %v2392_v35 = vpop.eup %2391 }
 0xc96   : > { %v1414_v36 = vmul.f32 %v2392_v35, %v1407_v34  ;;  %v2394_v42 = vpop.eup %2393 }
 0xc98   : > { %v1415_v37 = vadd.f32 1e-06, %v1414_v36 }
 0xc9a   : > { %v1416_v20 = vmul.f32 1e-06, %v1415_v37 }
 0xc9c   : > { %v1417_v39 = vadd.f32 %v1416_v20, %v1402_v9 }
 0xc9e   : > { %2395 = vrcp.f32 %v1417_v39 }
 0xca8   : > { %v2396_v43 = vpop.eup %2395 }
 0xca9   : > { %993 = vperm.xlu0 %2265, %v2394_v42   ;;  %1421 = vperm.xlu1 %2266, %v2396_v43  }
 0xd20   : > { %v1538_v44 = vpop.xlane.xlu0 %1537 }
 0xd21   : > { %2397 = vrcp.f32 %v1538_v44 }
 0xd28   : > { %v1422_v45 = vpop.permute.xlu1 %1421  ;;  %v994_v46 = vpop.permute.xlu0 %993 }
 0xd29   : > { %v1424_v56 = vmul.f32 %v1422_v45, %v1402_v9  ;;  %v2959_v57 = vmul.f32 %v994_v46, %v2901_v27 }
 0xd2b   : > { %v2398_v58 = vpop.eup %2397  ;;  %v1545_v60 = vpack.c.bf16 %v1424_v56, %v1424_v56  ;;  %1002 = vrot.lane.b32.xlu0 %v2959_v57, %s2478_s19 }
 0xd2c   : > { %v1541_v61 = vmul.f32 %v2398_v58, %v2390_v31 }
 0xd2d   : > { %v1550_v62 = vsel %vm848_vm2, %v1545_v60, 0 }
 0xd2e   : > { %2184 = vmatpush3.bf16.msra.mxu1 %v1550_v62  ;;  %v1544_v0 = vpack.c.bf16 %v1541_v61, %v1541_v61  ;;  %1952 = vst.msk [vmem:[%s2755_s26 + $0x8] sm:$0xff] %vm829_vm1, %v1541_v61 }
 0xd2f   : > { %2189 = vmatprep.subr.bf16.mxu1 %v2475_v1 }
 0xd31   : > { %2186 = vmatmul.mubr.msk.bf16.vlgmr.msra.gmra.mrb[12].mxu1 %vm829_vm1, %v1544_v0 }
 0xd32   : > { %2205 = vmatprep.mubr.msk.bf16.mxu1 %vm2476_vm0, %v2475_v1 }
 0xd37   : > { %2190 = vmatpush3.bf16.xpose.msra.mxu1 %v2797_v47 }
 0xd38   : > { %2191 = vmatprep.subr.bf16.mxu1 %v2475_v1 }
 0xd3f   : > { %2192 = vmatpush3.bf16.xpose.msra.mxu1 %v2804_v48 }
 0xd40   : > { %2193 = vmatprep.subr.bf16.mxu1 %v2475_v1 }
 0xd47   : > { %2194 = vmatpush3.bf16.xpose.msra.mxu1 %v2811_v19 }
 0xd48   : > { %2195 = vmatprep.subr.bf16.mxu1 %v2475_v1 }
 0xd4f   : > { %2196 = vmatpush3.bf16.xpose.msra.mxu1 %v2818_v49 }
 0xd50   : > { %2197 = vmatprep.subr.bf16.mxu1 %v2475_v1 }
 0xd57   : > { %2198 = vmatpush3.bf16.xpose.msra.mxu1 %v2825_v50 }
 0xd58   : > { %2199 = vmatprep.subr.bf16.mxu1 %v2475_v1 }
 0xd5f   : > { %2200 = vmatpush3.bf16.xpose.msra.mxu1 %v2832_v53 }
 0xd60   : > { %2201 = vmatprep.subr.bf16.mxu1 %v2475_v1 }
 0xd67   : > { %2202 = vmatpush3.bf16.xpose.msra.mxu1 %v2845_v63 }
 0xd68   : > { %2203 = vmatprep.subr.bf16.mxu1 %v2475_v1 }
 0xd6f   : > { %2204 = vmatpush3.bf16.xpose.msra.mxu1 %v2852_v51 }
 0xd9d   : > { %v1003_v55 = vpop.permute.xlu0 %1002 }
 0xd9e   : > { %v1005_v41 = vsub.f32 %v2959_v57, %v1003_v55 }
 0xda0   : > { %v1006_v12 = vadd.f32 1e-06, %v1005_v41 }
 0xe04   : > { %v1586_v47 = vpop.f32.mrb[12].mxu1 }
 0xe05   : > { %v2187_v48 = vpop.f32.mrb[13].mxu1  ;;  %v1592_v19 = vsel %vm316_vm3, %v1586_v47, 0.0 }
 0xe06   : > { %v1589_v49 = vpop.f32.mrb[14].mxu1  ;;  %v1593_v27 = vmul.f32 %v1592_v19, %v1592_v19 }
 0xe07   : > { %v2188_v50 = vpop.f32.mrb[15].mxu1 }
 0xe08   : > { %1594 = vadd.xlane.f32.xlu1 %v1593_v27 }
 0xe95   : > { %v1595_v40 = vpop.xlane.xlu1 %1594 }
 0xe96   : > { %v1596_v2 = vadd.f32 1e-12, %v1595_v40 }
 0xe98   : > { %2399 = vrsqrt.f32 %v1596_v2 }
 0xea2   : > { %v2400_v53 = vpop.eup %2399 }
 0xea3   : > { %v1598_v3 = vmul.f32 %v2400_v53, %v1586_v47 }
 0xea5   : > { %v1599_v63 = vsel %vm316_vm3, %v1598_v3, %v1586_v47 }
 0xea6   : > { %v1600_v1 = vpack.c.bf16 %v1599_v63, %v1599_v63 }
 0xea8   : > { %2206 = vmatmul.mubr.bf16.vlgmr.msra.gmra.mrb[16].mxu1 %v1600_v1 }
 0xf7b   : > { %v1635_v51 = vpop.f32.mrb[16].mxu1 }
 0xf7c   : > { %v1641_v4 = vadd.f32 1e-06, %v1635_v51  ;;  %v2207_v5 = vpop.f32.mrb[17].mxu1 }
 0xf7d   : > { %v1638_v7 = vpop.f32.mrb[18].mxu1 }
 0xf7e   : > { %2401 = vrcp.f32 %v1641_v4  ;;  %v2208_v8 = vpop.f32.mrb[19].mxu1 }
 0xf7f   : > { %2403 = vrcp.f32 %v1006_v12 }
 0xf88   : > { %v2402_v9 = vpop.eup %2401 }
 0xf89   : > { %1645 = vperm.xlu1 %2266, %v2402_v9   ;;  %v2404_v18 = vpop.eup %2403 }
0x1008   : > { %v1646_v10 = vpop.permute.xlu1 %1645 }
0x1009   : > { %v2989_v11 = vmul.f32 %v1646_v10, %v1635_v51 }
0x100b   : > { %1654 = vrot.lane.b32.xlu0 %v2989_v11, %s2478_s19  ;;  %s1960_s19 = sshll.u32 %s2541_s25, 8  ;;  %s2482_s25 = smov [#allocation2]  }
0x100c   : > { %s3008_s13 = scalar_lea.hbm %s3067_s6, %s1960_s19 }
0x100f   : > { %998 = vrot.lane.b32.xlu0 %v2959_v57, %s2479_s20 }
0x1013   : > { %1650 = vrot.lane.b32.xlu0 %v2989_v11, %s2479_s20  ;;  %s1694_s20 = sshll.u32 %s2755_s26, 4  ;;  %s2415_s26 = sshll.u32 %s2482_s25, 4  ;;  %s3010_s20 = int_to_ptr.vmem [resolvable:$true] %s1694_s20  ;;  %s2416_s26 = int_to_ptr.vmem [resolvable:$false] %s2415_s26 }
0x1014   : > { %s2411_s15 = scalar_lea.vmem %s3010_s20, 256  ;;  %s2417_s16 = scalar_lea.vmem %s2416_s26, 512 }
0x1015   : > { %p2412_p11 = scmp.ne.s32.totalorder %s3010_s20, %s2411_s15  ;;  %p2418_p0 = scmp.lt.s32.totalorder %s3010_s20, %s2416_s26 }
0x1016   : > { %p2419_p1 = scmp.lt.s32.totalorder %s2417_s16, %s2411_s15 }
0x1017   : > { %p2413_p12 = pnand %p2412_p11, %p2558_p5 }
0x1018   : > { %p2420_p2 = por %p2419_p1, %p2418_p0 }
0x1019   : > { %p2414_p13 = pneg %p2413_p12 }
0x101b   : > { %p2421_p3 = pnand %p2420_p2, %p2414_p13 }
0x107d   : > { %v1655_v13 = vpop.permute.xlu0 %1654 }
0x107e   : > { %v1657_v14 = vsub.f32 %v2989_v11, %v1655_v13 }
0x1080   : > { %v1658_v15 = vadd.f32 1e-06, %v1657_v14 }
0x1081   : > { %v999_v16 = vpop.permute.xlu0 %998 }
0x1082   : > { %2405 = vrcp.f32 %v1658_v15  ;;  %v1001_v17 = vsub.f32 %v2959_v57, %v999_v16 }
0x1084   : > { %v1008_v22 = vmul.f32 %v2404_v18, %v1001_v17 }
0x1085   : > { %v1651_v21 = vpop.permute.xlu0 %1650 }
0x1086   : > { %v1009_v23 = vadd.f32 1e-06, %v1008_v22  ;;  %v1653_v26 = vsub.f32 %v2989_v11, %v1651_v21 }
0x1088   : > { %v1010_v6 = vmul.f32 1e-06, %v1009_v23 }
0x108a   : > { %v1011_v25 = vadd.f32 %v1010_v6, %v2959_v57 }
0x108c   : > { %v2406_v54 = vpop.eup %2405  ;;  %2407 = vrcp.f32 %v1011_v25 }
0x108d   : > { %v1660_v28 = vmul.f32 %v2406_v54, %v1653_v26 }
0x108f   : > { %v1661_v52 = vadd.f32 1e-06, %v1660_v28 }
0x1091   : > { %v1662_v59 = vmul.f32 1e-06, %v1661_v52 }
0x1093   : > { %v1663_v29 = vadd.f32 %v1662_v59, %v2989_v11 }
0x1095   : > { %2409 = vrcp.f32 %v1663_v29 }
0x1096   : > { %v2408_v24 = vpop.eup %2407 }
0x1097   : > { %1015 = vperm.xlu1 %2266, %v2408_v24  }
0x109f   : > { %v2410_v30 = vpop.eup %2409 }
0x10a0   : > { %1667 = vperm.xlu0 %2265, %v2410_v30  }
0x10a1   : > { %2424 = shalt.err (!%p2421_p3)
}
0x10a2   : > { %s2425_s29 = scalar_lea.hbm %s3008_s13, 256  ;;  %s2429_s9 = scalar_lea.hbm %s3067_s6, 512 }
0x10a3   : > { %p2426_p4 = scmp.ne.s32.totalorder %s3008_s13, %s2425_s29  ;;  %p2430_p9 = scmp.lt.u32.totalorder %s3008_s13, %s3067_s6 }
0x10a4   : > { %p2431_p10 = scmp.lt.u32.totalorder %s2429_s9, %s2425_s29  ;;  %p2433_p12 = scmp.lt.u32.totalorder %s2425_s29, %s3008_s13 }
0x10a5   : > { %p2427_p7 = pnand %p2426_p4, %p2558_p5 }
0x10a6   : > { %p2432_p11 = por %p2431_p10, %p2430_p9 }
0x10a7   : > { %p2428_p8 = pneg %p2427_p7 }
0x10a8   : > { %p2434_p13 = por %p2433_p12, %p2432_p11 }
0x10aa   : > { %p2435_p0 = pnand %p2434_p13, %p2428_p8 }
0x10ac   : > { %2438 = shalt.err (!%p2435_p0)
}
0x10ad   : > { %s2483_s11 = smov 128   ;;  %s2484_s12 = smov 8  }
0x10ae   : > { %2209 = dma.vmem_to_hbm [thread:$0]  (%p2558_p5), %s3010_s20, 256, %s3008_s13, %s3014_s14, %s2483_s11, %s2483_s11, %s2484_s12  }
0x10af   : > { %s1959_s15 = sshll.u32 %s2630_s28, 4 }
0x10b0   : > { %s293_s16 = scalar_lea.vmem %s3066_s5, %s1959_s15 }
0x1116   : > { %v1016_v31 = vpop.permute.xlu1 %1015 }
0x1117   : > { %v1018_v32 = vmul.f32 %v1016_v31, %v2959_v57 }
0x1119   : > { %1019 = vst [vmem:[%s293_s16] sm:$0xff] %v1018_v32 }
0x111f   : > { %v1668_v33 = vpop.permute.xlu0 %1667 }
0x1120   : > { %v1670_v34 = vmul.f32 %v1668_v33, %v2989_v11 }
0x1122   : > { %1671 = vst [vmem:[%s293_s16 + $0x8] sm:$0xff] %v1670_v34 }
0x1123 PF: > { %p2215_p1 = scmp.ge.s32.totalorder %s2473_s24, 2  ;;  %s1717_s7 = sand.u32 1, %s2461_s21  }
0x1124   : > { %s1718_s28 = scalar_lea.sflag [#allocation3], %s1717_s7 }
0x1125   : > { %p2212_p5 = pnand %p2215_p1, %p2562_p6 }
0x1127   : > { %2456 = dma.done.wait (!%p2212_p5), %s1718_s28, 256  }
0x1128   : > { %2458 = vsyncadd (!%p2212_p5), %s1718_s28, 4294967040  ;;  %p17_p2 = scmp.ge.s32.totalorder %s2545_s27, 4   ;;  %s3070_s21 = smov %s2465_s22 }
0x1129   : > { %s3071_s22 = smov %s2469_s23  ;;  %s3072_s23 = smov %s2556_s30 }
0x112a   : > { %s3073_s24 = smov %s2545_s27  ;;  %19 = sbr.rel (!%p17_p2) target bundleno = 3 (0x3), region = 99 }
0x1131   :  { %1723 = vsyncpa [#allocation3], 1 }
0x1132   :  { %1725 = vsyncpa [#allocation3 + $0x1], 1 }

</bundles_post_ra>
